<compile_context>
chip_gen: v7x
topology: tpu7x:2x2x1
jax: 0.10.0
libtpu: 0.0.40
codegen_flags: <defaults>
</compile_context>

<pallas_src>
from math import sqrt

import numpy as np
import jax
import jax.numpy as jnp
from jax import lax
from jax.experimental import pallas as pl
from jax.experimental.pallas import tpu as pltpu

KSIZE = 5
STRIDE = 2
PAD = 2


# ---------------------------------------------------------------------------
# Host-side (init-time) weight unrolling
# ---------------------------------------------------------------------------
def _unroll_conv_rowwise(w, w_in):
    """Fold W-axis taps / stride / zero-pad of a 5x5 s2 p2 conv into dense
    per-kernel-row matrices.

    w: (Co, Ci, 5, 5) -> U: (5, Ci*w_in, 2*Co*(Wo//2)) with
      U[di][(ci, w), (wo%2, co, wo//2)] = w[co, ci, di, w - 2*wo + 2]
    so   conv_out[co, ho, wo] = sum_di padded_input_row[2*ho + di] @ U[di]
    and the following 2x2 W-pool is max(lanes[:half], lanes[half:]).
    """
    w = np.asarray(w, np.float32)
    co_n, ci_n, k, _ = w.shape
    wo_n = (w_in + 2 * PAD - k) // STRIDE + 1
    wh = wo_n // 2
    U = np.zeros((k, ci_n * w_in, 2 * co_n * wh), np.float32)
    ci_idx = np.arange(ci_n)
    co_idx = np.arange(co_n)
    for di in range(k):
        for wo in range(wo_n):
            col0 = (wo % 2) * co_n * wh + (wo // 2)
            for dj in range(k):
                wpos = STRIDE * wo + dj - PAD
                if 0 <= wpos < w_in:
                    rows = ci_idx * w_in + wpos
                    cols = col0 + co_idx * wh
                    U[di, rows[:, None], cols[None, :]] = w[:, :, di, dj].T
    return U


def _unroll_conv_full(w, h_in, w_in):
    """Fully unrolled (Toeplitz) conv matrix for a tiny spatial extent.

    w: (Co, Ci, 5, 5) -> U: (h_in*Ci*w_in, Co*Ho*Wo) with input lanes ordered
    (h, ci, w) and output lanes (co, ho, wo) == NCHW flatten order.
    """
    w = np.asarray(w, np.float32)
    co_n, ci_n, k, _ = w.shape
    ho_n = (h_in + 2 * PAD - k) // STRIDE + 1
    wo_n = (w_in + 2 * PAD - k) // STRIDE + 1
    U = np.zeros((h_in * ci_n * w_in, co_n * ho_n * wo_n), np.float32)
    ci_idx = np.arange(ci_n)
    co_idx = np.arange(co_n)
    for ho in range(ho_n):
        for wo in range(wo_n):
            for di in range(k):
                hpos = STRIDE * ho + di - PAD
                if not 0 <= hpos < h_in:
                    continue
                for dj in range(k):
                    wpos = STRIDE * wo + dj - PAD
                    if not 0 <= wpos < w_in:
                        continue
                    rows = hpos * ci_n * w_in + ci_idx * w_in + wpos
                    cols = co_idx * ho_n * wo_n + ho * wo_n + wo
                    U[rows[:, None], cols[None, :]] = w[:, :, di, dj].T
    return U


def _raw_weights(key):
    """Same parameter distributions as Target.init_weights() (torch RNG itself
    cannot be reproduced; the distributions are identical, biases are zero)."""
    k1, k2, k3, k4 = jax.random.split(key, 4)
    w1 = jax.random.normal(k1, (16, 3, 5, 5), jnp.float32) / sqrt(5 * 5 * 3)
    w2 = jax.random.normal(k2, (64, 16, 5, 5), jnp.float32) / sqrt(5 * 5 * 16)
    w3 = jax.random.normal(k3, (8, 64, 5, 5), jnp.float32) / sqrt(5 * 5 * 64)
    wfc = jax.random.normal(k4, (2, 32), jnp.float32) / sqrt(32)
    return w1, w2, w3, wfc


def init_params(key):
    """All layout work (unrolling, bias lane orders, dtype casts) happens here,
    once, instead of every forward pass."""
    w1, w2, w3, wfc = _raw_weights(key)
    b1 = np.zeros(16, np.float32)
    b2 = np.zeros(64, np.float32)
    b3 = np.zeros(8, np.float32)
    bfc = np.zeros(2, np.float32)
    return {
        "u1": jnp.asarray(_unroll_conv_rowwise(w1, 64), jnp.bfloat16),      # (5, 192, 512)
        "u2": jnp.asarray(_unroll_conv_rowwise(w2, 16), jnp.bfloat16),      # (5, 256, 512)
        "u3": jnp.asarray(_unroll_conv_full(w3, 4, 4),
                          jnp.float32).reshape(4, 256, 32),                 # (4, 256, 32)
        "b1": jnp.asarray(np.tile(np.repeat(b1, 16), 2)[None, :]),          # (1, 512)
        "b2": jnp.asarray(np.tile(np.repeat(b2, 4), 2)[None, :]),           # (1, 512)
        "b3": jnp.asarray(np.repeat(b3, 4)[None, :]),                       # (1, 32)
        "wfc": wfc.T,                                                       # (32, 2)
        "bfc": jnp.asarray(bfc[None, :]),                                   # (1, 2)
    }


# ---------------------------------------------------------------------------
# Fused Pallas kernel: entire forward pass for B samples per grid step
# ---------------------------------------------------------------------------
def _target_kernel(x_ref, u1_ref, u2_ref, u3_ref, b1_ref, b2_ref, b3_ref,
                   wfc_ref, bfc_ref, o_ref):
    """x_ref : (4, 1, 17*B, 192) bf16 -- H-padded input rows split by
               (padded_row mod 4); inside each slab rows are flattened as
               (slab_row, sample) so every stride-2 H-tap of conv1 is one
               contiguous (16*B, 192) slice.  Lanes are (c_in, w).
       o_ref : (B, 2) f32 -- final logits for this step's B samples."""
    f32 = jnp.float32
    bf16 = jnp.bfloat16
    B = o_ref.shape[0]

    # ---- conv1: 3x64x64 -> 16x32x32 (bias+ReLU fused), then 2x2 max pool ---
    # Even output rows (ho=2m) and odd output rows (ho=2m+1) are computed as
    # two stacks, each ordered (m, sample); the H-pool is one block max.
    def conv1_half(off):
        acc = None
        for di in range(KSIZE):
            hp0 = off + di                          # padded input row for m=0
            r, t0 = hp0 % 4, hp0 // 4
            slab = x_ref[r, 0, t0 * B:(t0 + 16) * B, :]          # (16B, 192)
            part = jnp.dot(slab, u1_ref[di], preferred_element_type=f32)
            acc = part if acc is None else acc + part
        return acc                                               # (16B, 512)

    b1 = b1_ref[...]
    y1a = jnp.maximum(conv1_half(0) + b1, 0.0)                   # ho even
    y1b = jnp.maximum(conv1_half(2) + b1, 0.0)                   # ho odd
    # W-pool (lane halves), H-pool (the two stacks), single cast to bf16.
    p1 = jnp.maximum(jnp.maximum(y1a[:, 0:256], y1a[:, 256:512]),
                     jnp.maximum(y1b[:, 0:256], y1b[:, 256:512])).astype(bf16)
    # p1: (16B, 256), rows (h, sample) with h = 0..15, lanes (c=16, w=16).

    # ---- conv2: 16x16x16 -> 64x8x8 (bias+ReLU fused), then 2x2 max pool ----
    # Group pooled rows by (h mod 4): every conv2 tap operand is then a whole
    # (4B, 256) block (zero blocks stand in for the H padding).
    g = [jnp.concatenate(
            [p1[(4 * j + r) * B:(4 * j + r + 1) * B] for j in range(4)],
            axis=0) for r in range(4)]                           # 4 x (4B, 256)
    zB = jnp.zeros((B, 256), bf16)
    g2_dn = jnp.concatenate([zB, g[2][:3 * B]], axis=0)          # pad row above
    g3_dn = jnp.concatenate([zB, g[3][:3 * B]], axis=0)
    g0_up = jnp.concatenate([g[0][B:], zB], axis=0)              # pad row below

    half0_ops = (g2_dn, g3_dn, g[0], g[1], g[2])                 # ho = 2m
    half1_ops = (g[0], g[1], g[2], g[3], g0_up)                  # ho = 2m+1

    def conv2_half(ops):
        acc = None
        for di in range(KSIZE):
            part = jnp.dot(ops[di], u2_ref[di], preferred_element_type=f32)
            acc = part if acc is None else acc + part
        return acc                                               # (4B, 512)

    b2 = b2_ref[...]
    y2a = jnp.maximum(conv2_half(half0_ops) + b2, 0.0)
    y2b = jnp.maximum(conv2_half(half1_ops) + b2, 0.0)
    p2 = jnp.maximum(jnp.maximum(y2a[:, 0:256], y2a[:, 256:512]),
                     jnp.maximum(y2b[:, 0:256], y2b[:, 256:512]))
    # p2: (4B, 256) f32, rows (h2, sample) with h2 = 0..3, lanes (c=64, w=4).

    # ---- conv3: 64x4x4 -> 8x2x2 (+ReLU), then fc -- all f32 ----------------
    # Fully-unrolled conv3 evaluated as 4 per-row partial matmuls; output lanes
    # are already in NCHW flatten order, so fc_1 follows directly.
    z = None
    for h2 in range(4):
        part = jnp.dot(p2[h2 * B:(h2 + 1) * B, :], u3_ref[h2],
                       preferred_element_type=f32)
        z = part if z is None else z + part
    z = jnp.maximum(z + b3_ref[...], 0.0)                        # (B, 32)
    o_ref[...] = (jnp.dot(z, wfc_ref[...], preferred_element_type=f32)
                  + bfc_ref[...])                                # (B, 2)


# ---------------------------------------------------------------------------
# Public forward pass
# ---------------------------------------------------------------------------
@jax.jit
def target_forward(x_nchw, params):
    """Equivalent of Target.forward(x) for NCHW float32 input (N, 3, 64, 64)."""
    N, C, H, W = x_nchw.shape
    assert (C, H, W) == (3, 64, 64), "fc_1(32, 2) implies a 3x64x64 input"

    # Per-step batch: large enough to amortize step overhead / fill the MXU,
    # small enough to keep >=2 grid steps for v7x's two TensorCores at
    # moderate N.  Must be a multiple of 16 (bf16 sublane tile).
    B = 32 if N >= 64 else 16
    n_pad = -(-N // B) * B
    grid_n = n_pad // B
    rows4 = (H + 2 * PAD) // 4                                   # 17

    # One-time XLA prep (layout only): NCHW -> rows h with (c, w) lanes, pad H
    # by 2, split padded rows 4-way by (row mod 4) and flatten each slab as
    # (slab_row, sample) per B-chunk; cast to bf16 for the MXU.
    xr = jnp.transpose(x_nchw, (0, 2, 1, 3)).reshape(N, H, C * W)
    xr = jnp.pad(xr, ((0, n_pad - N), (PAD, PAD), (0, 0)))
    x_prep = jnp.transpose(
        xr.reshape(grid_n, B, rows4, 4, C * W), (3, 0, 2, 1, 4)
    ).reshape(4, grid_n, rows4 * B, C * W).astype(jnp.bfloat16)  # (4, G, 17B, 192)

    u1, u2, u3 = params["u1"], params["u2"], params["u3"]
    b1, b2, b3 = params["b1"], params["b2"], params["b3"]
    wfc, bfc = params["wfc"], params["bfc"]

    out = pl.pallas_call(
        _target_kernel,
        grid=(grid_n,),
        in_specs=[
            pl.BlockSpec((4, 1, rows4 * B, C * W), lambda n: (0, n, 0, 0)),
            pl.BlockSpec(u1.shape, lambda n: (0, 0, 0)),
            pl.BlockSpec(u2.shape, lambda n: (0, 0, 0)),
            pl.BlockSpec(u3.shape, lambda n: (0, 0, 0)),
            pl.BlockSpec(b1.shape, lambda n: (0, 0)),
            pl.BlockSpec(b2.shape, lambda n: (0, 0)),
            pl.BlockSpec(b3.shape, lambda n: (0, 0)),
            pl.BlockSpec(wfc.shape, lambda n: (0, 0)),
            pl.BlockSpec(bfc.shape, lambda n: (0, 0)),
        ],
        out_specs=pl.BlockSpec((B, 2), lambda n: (n, 0)),
        out_shape=jax.ShapeDtypeStruct((n_pad, 2), jnp.float32),
        compiler_params=pltpu.CompilerParams(
            dimension_semantics=("parallel",),
            vmem_limit_bytes=32 * 1024 * 1024),
    )(x_prep, u1, u2, u3, b1, b2, b3, wfc, bfc)
    return out[:N]                                               # (N, 2)


# ---------------------------------------------------------------------------
# Pure-JAX f32 reference (tolerance check; conv1/conv2 run in bf16 on the MXU)
# ---------------------------------------------------------------------------
def _reference_forward(x, key):
    w1, w2, w3, wfc = _raw_weights(key)
    dn = ("NCHW", "OIHW", "NCHW")

    def conv(v, w):
        return lax.conv_general_dilated(v, w, (STRIDE, STRIDE),
                                        ((PAD, PAD), (PAD, PAD)),
                                        dimension_numbers=dn)

    def pool(v):
        return lax.reduce_window(v, -jnp.inf, lax.max,
                                 (1, 1, 2, 2), (1, 1, 2, 2), "VALID")

    h = pool(jax.nn.relu(conv(x, w1)))
    h = pool(jax.nn.relu(conv(h, w2)))
    h = jax.nn.relu(conv(h, w3))
    h = h.reshape(h.shape[0], -1)
    return h @ wfc.T                                             # biases are 0


if __name__ == "__main__":
    key = jax.random.PRNGKey(0)
    k_in, k_param = jax.random.split(key)
    # Three stride-2 convs + two 2x2 pools reduce 64x64 -> 2x2, and fc_1
    # expects 32 = 8 channels * 2 * 2, so the input must be (N, 3, 64, 64).
    x = jax.random.normal(k_in, (2, 3, 64, 64), jnp.float32)
    params = init_params(k_param)

    out = jax.block_until_ready(target_forward(x, params))
    assert out.shape == (2, 2) and out.dtype == jnp.float32

    ref = jax.block_until_ready(_reference_forward(x, k_param))
    np.testing.assert_allclose(np.asarray(out), np.asarray(ref),
                               rtol=0.1, atol=0.1)               # bf16 tolerance
    print("KERNEL_OK")
</pallas_src>

<mosaic_0001>
module attributes {stable_mosaic.version = 11 : i64} {
  func.func @_target_kernel(%arg0: i32, %arg1: memref<4x1x272x192xbf16, #tpu.memory_space<vmem>>, %arg2: memref<5x192x512xbf16, #tpu.memory_space<vmem>>, %arg3: memref<5x256x512xbf16, #tpu.memory_space<vmem>>, %arg4: memref<4x256x32xf32, #tpu.memory_space<vmem>>, %arg5: memref<1x512xf32, #tpu.memory_space<vmem>>, %arg6: memref<1x512xf32, #tpu.memory_space<vmem>>, %arg7: memref<1x32xf32, #tpu.memory_space<vmem>>, %arg8: memref<32x2xf32, #tpu.memory_space<vmem>>, %arg9: memref<1x2xf32, #tpu.memory_space<vmem>>, %arg10: memref<16x2xf32, #tpu.memory_space<vmem>>) attributes {dimension_semantics = [#tpu.dimension_semantics<parallel>], iteration_bounds = array<i64: 1>, scalar_prefetch = 0 : i64, scratch_operands = 0 : i64, tpu.core_type = #tpu.core_type<tc>, window_params = [{transform_indices = @transform_0, window_bounds = array<i64: 4, 1, 272, 192>}, {pipeline_mode = #tpu.pipeline_mode<synchronous>, transform_indices = @transform_1, window_bounds = array<i64: 5, 192, 512>}, {pipeline_mode = #tpu.pipeline_mode<synchronous>, transform_indices = @transform_2, window_bounds = array<i64: 5, 256, 512>}, {pipeline_mode = #tpu.pipeline_mode<synchronous>, transform_indices = @transform_3, window_bounds = array<i64: 4, 256, 32>}, {pipeline_mode = #tpu.pipeline_mode<synchronous>, transform_indices = @transform_4, window_bounds = array<i64: 1, 512>}, {pipeline_mode = #tpu.pipeline_mode<synchronous>, transform_indices = @transform_5, window_bounds = array<i64: 1, 512>}, {pipeline_mode = #tpu.pipeline_mode<synchronous>, transform_indices = @transform_6, window_bounds = array<i64: 1, 32>}, {pipeline_mode = #tpu.pipeline_mode<synchronous>, transform_indices = @transform_7, window_bounds = array<i64: 32, 2>}, {pipeline_mode = #tpu.pipeline_mode<synchronous>, transform_indices = @transform_8, window_bounds = array<i64: 1, 2>}, {transform_indices = @transform_9, window_bounds = array<i64: 16, 2>}]} {
    %c0 = arith.constant 0 : index
    %c0_0 = arith.constant 0 : index
    %0 = vector.load %arg5[%c0, %c0_0] : memref<1x512xf32, #tpu.memory_space<vmem>>, vector<1x512xf32>
    %c0_1 = arith.constant 0 : index
    %c0_2 = arith.constant 0 : index
    %c0_3 = arith.constant 0 : index
    %c0_4 = arith.constant 0 : index
    %1 = vector.load %arg1[%c0_1, %c0_2, %c0_3, %c0_4] : memref<4x1x272x192xbf16, #tpu.memory_space<vmem>>, vector<1x1x256x192xbf16>
    %2 = vector.shape_cast %1 : vector<1x1x256x192xbf16> to vector<256x192xbf16>
    %c0_5 = arith.constant 0 : index
    %c0_6 = arith.constant 0 : index
    %c0_7 = arith.constant 0 : index
    %3 = vector.load %arg2[%c0_5, %c0_6, %c0_7] : memref<5x192x512xbf16, #tpu.memory_space<vmem>>, vector<1x192x512xbf16>
    %4 = vector.shape_cast %3 : vector<1x192x512xbf16> to vector<192x512xbf16>
    %cst = arith.constant dense<0.000000e+00> : vector<256x512xf32>
    %5 = tpu.matmul %2, %4, %cst {dimension_numbers = #tpu.dot_dimension_numbers<[1], [0], [0], [1], [0, 0, 1, 1], [], []>} : vector<256x192xbf16>, vector<192x512xbf16>, vector<256x512xf32> -> vector<256x512xf32>
    %c1 = arith.constant 1 : index
    %c0_8 = arith.constant 0 : index
    %c0_9 = arith.constant 0 : index
    %c0_10 = arith.constant 0 : index
    %6 = vector.load %arg1[%c1, %c0_8, %c0_9, %c0_10] : memref<4x1x272x192xbf16, #tpu.memory_space<vmem>>, vector<1x1x256x192xbf16>
    %7 = vector.shape_cast %6 : vector<1x1x256x192xbf16> to vector<256x192xbf16>
    %c1_11 = arith.constant 1 : index
    %c0_12 = arith.constant 0 : index
    %c0_13 = arith.constant 0 : index
    %8 = vector.load %arg2[%c1_11, %c0_12, %c0_13] : memref<5x192x512xbf16, #tpu.memory_space<vmem>>, vector<1x192x512xbf16>
    %9 = vector.shape_cast %8 : vector<1x192x512xbf16> to vector<192x512xbf16>
    %cst_14 = arith.constant dense<0.000000e+00> : vector<256x512xf32>
    %10 = tpu.matmul %7, %9, %cst_14 {dimension_numbers = #tpu.dot_dimension_numbers<[1], [0], [0], [1], [0, 0, 1, 1], [], []>} : vector<256x192xbf16>, vector<192x512xbf16>, vector<256x512xf32> -> vector<256x512xf32>
    %11 = arith.addf %5, %10 : vector<256x512xf32>
    %c2 = arith.constant 2 : index
    %c0_15 = arith.constant 0 : index
    %c0_16 = arith.constant 0 : index
    %c0_17 = arith.constant 0 : index
    %12 = vector.load %arg1[%c2, %c0_15, %c0_16, %c0_17] : memref<4x1x272x192xbf16, #tpu.memory_space<vmem>>, vector<1x1x256x192xbf16>
    %13 = vector.shape_cast %12 : vector<1x1x256x192xbf16> to vector<256x192xbf16>
    %c2_18 = arith.constant 2 : index
    %c0_19 = arith.constant 0 : index
    %c0_20 = arith.constant 0 : index
    %14 = vector.load %arg2[%c2_18, %c0_19, %c0_20] : memref<5x192x512xbf16, #tpu.memory_space<vmem>>, vector<1x192x512xbf16>
    %15 = vector.shape_cast %14 : vector<1x192x512xbf16> to vector<192x512xbf16>
    %cst_21 = arith.constant dense<0.000000e+00> : vector<256x512xf32>
    %16 = tpu.matmul %13, %15, %cst_21 {dimension_numbers = #tpu.dot_dimension_numbers<[1], [0], [0], [1], [0, 0, 1, 1], [], []>} : vector<256x192xbf16>, vector<192x512xbf16>, vector<256x512xf32> -> vector<256x512xf32>
    %17 = arith.addf %11, %16 : vector<256x512xf32>
    %c3 = arith.constant 3 : index
    %c0_22 = arith.constant 0 : index
    %c0_23 = arith.constant 0 : index
    %c0_24 = arith.constant 0 : index
    %18 = vector.load %arg1[%c3, %c0_22, %c0_23, %c0_24] : memref<4x1x272x192xbf16, #tpu.memory_space<vmem>>, vector<1x1x256x192xbf16>
    %19 = vector.shape_cast %18 : vector<1x1x256x192xbf16> to vector<256x192xbf16>
    %c3_25 = arith.constant 3 : index
    %c0_26 = arith.constant 0 : index
    %c0_27 = arith.constant 0 : index
    %20 = vector.load %arg2[%c3_25, %c0_26, %c0_27] : memref<5x192x512xbf16, #tpu.memory_space<vmem>>, vector<1x192x512xbf16>
    %21 = vector.shape_cast %20 : vector<1x192x512xbf16> to vector<192x512xbf16>
    %cst_28 = arith.constant dense<0.000000e+00> : vector<256x512xf32>
    %22 = tpu.matmul %19, %21, %cst_28 {dimension_numbers = #tpu.dot_dimension_numbers<[1], [0], [0], [1], [0, 0, 1, 1], [], []>} : vector<256x192xbf16>, vector<192x512xbf16>, vector<256x512xf32> -> vector<256x512xf32>
    %23 = arith.addf %17, %22 : vector<256x512xf32>
    %c0_29 = arith.constant 0 : index
    %c0_30 = arith.constant 0 : index
    %c16 = arith.constant 16 : index
    %c0_31 = arith.constant 0 : index
    %24 = vector.load %arg1[%c0_29, %c0_30, %c16, %c0_31] : memref<4x1x272x192xbf16, #tpu.memory_space<vmem>>, vector<1x1x256x192xbf16>
    %25 = vector.shape_cast %24 : vector<1x1x256x192xbf16> to vector<256x192xbf16>
    %c4 = arith.constant 4 : index
    %c0_32 = arith.constant 0 : index
    %c0_33 = arith.constant 0 : index
    %26 = vector.load %arg2[%c4, %c0_32, %c0_33] : memref<5x192x512xbf16, #tpu.memory_space<vmem>>, vector<1x192x512xbf16>
    %27 = vector.shape_cast %26 : vector<1x192x512xbf16> to vector<192x512xbf16>
    %cst_34 = arith.constant dense<0.000000e+00> : vector<256x512xf32>
    %28 = tpu.matmul %25, %27, %cst_34 {dimension_numbers = #tpu.dot_dimension_numbers<[1], [0], [0], [1], [0, 0, 1, 1], [], []>} : vector<256x192xbf16>, vector<192x512xbf16>, vector<256x512xf32> -> vector<256x512xf32>
    %29 = arith.addf %23, %28 : vector<256x512xf32>
    %30 = vector.broadcast %0 : vector<1x512xf32> to vector<256x512xf32>
    %31 = arith.addf %29, %30 : vector<256x512xf32>
    %cst_35 = arith.constant 0.000000e+00 : f32
    %32 = vector.broadcast %cst_35 : f32 to vector<256x512xf32>
    %33 = arith.maximumf %31, %32 : vector<256x512xf32>
    %c2_36 = arith.constant 2 : index
    %c0_37 = arith.constant 0 : index
    %c0_38 = arith.constant 0 : index
    %c0_39 = arith.constant 0 : index
    %34 = vector.load %arg1[%c2_36, %c0_37, %c0_38, %c0_39] : memref<4x1x272x192xbf16, #tpu.memory_space<vmem>>, vector<1x1x256x192xbf16>
    %35 = vector.shape_cast %34 : vector<1x1x256x192xbf16> to vector<256x192xbf16>
    %c0_40 = arith.constant 0 : index
    %c0_41 = arith.constant 0 : index
    %c0_42 = arith.constant 0 : index
    %36 = vector.load %arg2[%c0_40, %c0_41, %c0_42] : memref<5x192x512xbf16, #tpu.memory_space<vmem>>, vector<1x192x512xbf16>
    %37 = vector.shape_cast %36 : vector<1x192x512xbf16> to vector<192x512xbf16>
    %cst_43 = arith.constant dense<0.000000e+00> : vector<256x512xf32>
    %38 = tpu.matmul %35, %37, %cst_43 {dimension_numbers = #tpu.dot_dimension_numbers<[1], [0], [0], [1], [0, 0, 1, 1], [], []>} : vector<256x192xbf16>, vector<192x512xbf16>, vector<256x512xf32> -> vector<256x512xf32>
    %c3_44 = arith.constant 3 : index
    %c0_45 = arith.constant 0 : index
    %c0_46 = arith.constant 0 : index
    %c0_47 = arith.constant 0 : index
    %39 = vector.load %arg1[%c3_44, %c0_45, %c0_46, %c0_47] : memref<4x1x272x192xbf16, #tpu.memory_space<vmem>>, vector<1x1x256x192xbf16>
    %40 = vector.shape_cast %39 : vector<1x1x256x192xbf16> to vector<256x192xbf16>
    %c1_48 = arith.constant 1 : index
    %c0_49 = arith.constant 0 : index
    %c0_50 = arith.constant 0 : index
    %41 = vector.load %arg2[%c1_48, %c0_49, %c0_50] : memref<5x192x512xbf16, #tpu.memory_space<vmem>>, vector<1x192x512xbf16>
    %42 = vector.shape_cast %41 : vector<1x192x512xbf16> to vector<192x512xbf16>
    %cst_51 = arith.constant dense<0.000000e+00> : vector<256x512xf32>
    %43 = tpu.matmul %40, %42, %cst_51 {dimension_numbers = #tpu.dot_dimension_numbers<[1], [0], [0], [1], [0, 0, 1, 1], [], []>} : vector<256x192xbf16>, vector<192x512xbf16>, vector<256x512xf32> -> vector<256x512xf32>
    %44 = arith.addf %38, %43 : vector<256x512xf32>
    %c0_52 = arith.constant 0 : index
    %c0_53 = arith.constant 0 : index
    %c16_54 = arith.constant 16 : index
    %c0_55 = arith.constant 0 : index
    %45 = vector.load %arg1[%c0_52, %c0_53, %c16_54, %c0_55] : memref<4x1x272x192xbf16, #tpu.memory_space<vmem>>, vector<1x1x256x192xbf16>
    %46 = vector.shape_cast %45 : vector<1x1x256x192xbf16> to vector<256x192xbf16>
    %c2_56 = arith.constant 2 : index
    %c0_57 = arith.constant 0 : index
    %c0_58 = arith.constant 0 : index
    %47 = vector.load %arg2[%c2_56, %c0_57, %c0_58] : memref<5x192x512xbf16, #tpu.memory_space<vmem>>, vector<1x192x512xbf16>
    %48 = vector.shape_cast %47 : vector<1x192x512xbf16> to vector<192x512xbf16>
    %cst_59 = arith.constant dense<0.000000e+00> : vector<256x512xf32>
    %49 = tpu.matmul %46, %48, %cst_59 {dimension_numbers = #tpu.dot_dimension_numbers<[1], [0], [0], [1], [0, 0, 1, 1], [], []>} : vector<256x192xbf16>, vector<192x512xbf16>, vector<256x512xf32> -> vector<256x512xf32>
    %50 = arith.addf %44, %49 : vector<256x512xf32>
    %c1_60 = arith.constant 1 : index
    %c0_61 = arith.constant 0 : index
    %c16_62 = arith.constant 16 : index
    %c0_63 = arith.constant 0 : index
    %51 = vector.load %arg1[%c1_60, %c0_61, %c16_62, %c0_63] : memref<4x1x272x192xbf16, #tpu.memory_space<vmem>>, vector<1x1x256x192xbf16>
    %52 = vector.shape_cast %51 : vector<1x1x256x192xbf16> to vector<256x192xbf16>
    %c3_64 = arith.constant 3 : index
    %c0_65 = arith.constant 0 : index
    %c0_66 = arith.constant 0 : index
    %53 = vector.load %arg2[%c3_64, %c0_65, %c0_66] : memref<5x192x512xbf16, #tpu.memory_space<vmem>>, vector<1x192x512xbf16>
    %54 = vector.shape_cast %53 : vector<1x192x512xbf16> to vector<192x512xbf16>
    %cst_67 = arith.constant dense<0.000000e+00> : vector<256x512xf32>
    %55 = tpu.matmul %52, %54, %cst_67 {dimension_numbers = #tpu.dot_dimension_numbers<[1], [0], [0], [1], [0, 0, 1, 1], [], []>} : vector<256x192xbf16>, vector<192x512xbf16>, vector<256x512xf32> -> vector<256x512xf32>
    %56 = arith.addf %50, %55 : vector<256x512xf32>
    %c2_68 = arith.constant 2 : index
    %c0_69 = arith.constant 0 : index
    %c16_70 = arith.constant 16 : index
    %c0_71 = arith.constant 0 : index
    %57 = vector.load %arg1[%c2_68, %c0_69, %c16_70, %c0_71] : memref<4x1x272x192xbf16, #tpu.memory_space<vmem>>, vector<1x1x256x192xbf16>
    %58 = vector.shape_cast %57 : vector<1x1x256x192xbf16> to vector<256x192xbf16>
    %c4_72 = arith.constant 4 : index
    %c0_73 = arith.constant 0 : index
    %c0_74 = arith.constant 0 : index
    %59 = vector.load %arg2[%c4_72, %c0_73, %c0_74] : memref<5x192x512xbf16, #tpu.memory_space<vmem>>, vector<1x192x512xbf16>
    %60 = vector.shape_cast %59 : vector<1x192x512xbf16> to vector<192x512xbf16>
    %cst_75 = arith.constant dense<0.000000e+00> : vector<256x512xf32>
    %61 = tpu.matmul %58, %60, %cst_75 {dimension_numbers = #tpu.dot_dimension_numbers<[1], [0], [0], [1], [0, 0, 1, 1], [], []>} : vector<256x192xbf16>, vector<192x512xbf16>, vector<256x512xf32> -> vector<256x512xf32>
    %62 = arith.addf %56, %61 : vector<256x512xf32>
    %63 = vector.broadcast %0 : vector<1x512xf32> to vector<256x512xf32>
    %64 = arith.addf %62, %63 : vector<256x512xf32>
    %cst_76 = arith.constant 0.000000e+00 : f32
    %65 = vector.broadcast %cst_76 : f32 to vector<256x512xf32>
    %66 = arith.maximumf %64, %65 : vector<256x512xf32>
    %67 = vector.extract_strided_slice %33 {offsets = [0, 0], sizes = [256, 256], strides = [1, 1]} : vector<256x512xf32> to vector<256x256xf32>
    %68 = vector.extract_strided_slice %33 {offsets = [0, 256], sizes = [256, 256], strides = [1, 1]} : vector<256x512xf32> to vector<256x256xf32>
    %69 = arith.maximumf %67, %68 : vector<256x256xf32>
    %70 = vector.extract_strided_slice %66 {offsets = [0, 0], sizes = [256, 256], strides = [1, 1]} : vector<256x512xf32> to vector<256x256xf32>
    %71 = vector.extract_strided_slice %66 {offsets = [0, 256], sizes = [256, 256], strides = [1, 1]} : vector<256x512xf32> to vector<256x256xf32>
    %72 = arith.maximumf %70, %71 : vector<256x256xf32>
    %73 = arith.maximumf %69, %72 : vector<256x256xf32>
    %74 = arith.truncf %73 : vector<256x256xf32> to vector<256x256xbf16>
    %75 = vector.extract_strided_slice %74 {offsets = [0, 0], sizes = [16, 256], strides = [1, 1]} : vector<256x256xbf16> to vector<16x256xbf16>
    %76 = vector.extract_strided_slice %74 {offsets = [64, 0], sizes = [16, 256], strides = [1, 1]} : vector<256x256xbf16> to vector<16x256xbf16>
    %77 = vector.extract_strided_slice %74 {offsets = [128, 0], sizes = [16, 256], strides = [1, 1]} : vector<256x256xbf16> to vector<16x256xbf16>
    %78 = vector.extract_strided_slice %74 {offsets = [192, 0], sizes = [16, 256], strides = [1, 1]} : vector<256x256xbf16> to vector<16x256xbf16>
    %79 = tpu.concatenate %75, %76, %77, %78 in 0 : vector<16x256xbf16>, vector<16x256xbf16>, vector<16x256xbf16>, vector<16x256xbf16> -> vector<64x256xbf16>
    %80 = vector.extract_strided_slice %74 {offsets = [16, 0], sizes = [16, 256], strides = [1, 1]} : vector<256x256xbf16> to vector<16x256xbf16>
    %81 = vector.extract_strided_slice %74 {offsets = [80, 0], sizes = [16, 256], strides = [1, 1]} : vector<256x256xbf16> to vector<16x256xbf16>
    %82 = vector.extract_strided_slice %74 {offsets = [144, 0], sizes = [16, 256], strides = [1, 1]} : vector<256x256xbf16> to vector<16x256xbf16>
    %83 = vector.extract_strided_slice %74 {offsets = [208, 0], sizes = [16, 256], strides = [1, 1]} : vector<256x256xbf16> to vector<16x256xbf16>
    %84 = tpu.concatenate %80, %81, %82, %83 in 0 : vector<16x256xbf16>, vector<16x256xbf16>, vector<16x256xbf16>, vector<16x256xbf16> -> vector<64x256xbf16>
    %85 = vector.extract_strided_slice %74 {offsets = [32, 0], sizes = [16, 256], strides = [1, 1]} : vector<256x256xbf16> to vector<16x256xbf16>
    %86 = vector.extract_strided_slice %74 {offsets = [96, 0], sizes = [16, 256], strides = [1, 1]} : vector<256x256xbf16> to vector<16x256xbf16>
    %87 = vector.extract_strided_slice %74 {offsets = [160, 0], sizes = [16, 256], strides = [1, 1]} : vector<256x256xbf16> to vector<16x256xbf16>
    %88 = vector.extract_strided_slice %74 {offsets = [224, 0], sizes = [16, 256], strides = [1, 1]} : vector<256x256xbf16> to vector<16x256xbf16>
    %89 = tpu.concatenate %85, %86, %87, %88 in 0 : vector<16x256xbf16>, vector<16x256xbf16>, vector<16x256xbf16>, vector<16x256xbf16> -> vector<64x256xbf16>
    %90 = vector.extract_strided_slice %74 {offsets = [48, 0], sizes = [16, 256], strides = [1, 1]} : vector<256x256xbf16> to vector<16x256xbf16>
    %91 = vector.extract_strided_slice %74 {offsets = [112, 0], sizes = [16, 256], strides = [1, 1]} : vector<256x256xbf16> to vector<16x256xbf16>
    %92 = vector.extract_strided_slice %74 {offsets = [176, 0], sizes = [16, 256], strides = [1, 1]} : vector<256x256xbf16> to vector<16x256xbf16>
    %93 = vector.extract_strided_slice %74 {offsets = [240, 0], sizes = [16, 256], strides = [1, 1]} : vector<256x256xbf16> to vector<16x256xbf16>
    %94 = tpu.concatenate %90, %91, %92, %93 in 0 : vector<16x256xbf16>, vector<16x256xbf16>, vector<16x256xbf16>, vector<16x256xbf16> -> vector<64x256xbf16>
    %cst_77 = arith.constant 0.000000e+00 : bf16
    %95 = vector.broadcast %cst_77 : bf16 to vector<16x256xbf16>
    %96 = vector.extract_strided_slice %89 {offsets = [0, 0], sizes = [48, 256], strides = [1, 1]} : vector<64x256xbf16> to vector<48x256xbf16>
    %97 = tpu.concatenate %95, %96 in 0 : vector<16x256xbf16>, vector<48x256xbf16> -> vector<64x256xbf16>
    %98 = vector.extract_strided_slice %94 {offsets = [0, 0], sizes = [48, 256], strides = [1, 1]} : vector<64x256xbf16> to vector<48x256xbf16>
    %99 = tpu.concatenate %95, %98 in 0 : vector<16x256xbf16>, vector<48x256xbf16> -> vector<64x256xbf16>
    %100 = vector.extract_strided_slice %79 {offsets = [16, 0], sizes = [48, 256], strides = [1, 1]} : vector<64x256xbf16> to vector<48x256xbf16>
    %101 = tpu.concatenate %100, %95 in 0 : vector<48x256xbf16>, vector<16x256xbf16> -> vector<64x256xbf16>
    %c0_78 = arith.constant 0 : index
    %c0_79 = arith.constant 0 : index
    %102 = vector.load %arg6[%c0_78, %c0_79] : memref<1x512xf32, #tpu.memory_space<vmem>>, vector<1x512xf32>
    %c0_80 = arith.constant 0 : index
    %c0_81 = arith.constant 0 : index
    %c0_82 = arith.constant 0 : index
    %103 = vector.load %arg3[%c0_80, %c0_81, %c0_82] : memref<5x256x512xbf16, #tpu.memory_space<vmem>>, vector<1x256x512xbf16>
    %104 = vector.shape_cast %103 : vector<1x256x512xbf16> to vector<256x512xbf16>
    %cst_83 = arith.constant dense<0.000000e+00> : vector<64x512xf32>
    %105 = tpu.matmul %97, %104, %cst_83 {dimension_numbers = #tpu.dot_dimension_numbers<[1], [0], [0], [1], [0, 0, 1, 1], [], []>} : vector<64x256xbf16>, vector<256x512xbf16>, vector<64x512xf32> -> vector<64x512xf32>
    %c1_84 = arith.constant 1 : index
    %c0_85 = arith.constant 0 : index
    %c0_86 = arith.constant 0 : index
    %106 = vector.load %arg3[%c1_84, %c0_85, %c0_86] : memref<5x256x512xbf16, #tpu.memory_space<vmem>>, vector<1x256x512xbf16>
    %107 = vector.shape_cast %106 : vector<1x256x512xbf16> to vector<256x512xbf16>
    %cst_87 = arith.constant dense<0.000000e+00> : vector<64x512xf32>
    %108 = tpu.matmul %99, %107, %cst_87 {dimension_numbers = #tpu.dot_dimension_numbers<[1], [0], [0], [1], [0, 0, 1, 1], [], []>} : vector<64x256xbf16>, vector<256x512xbf16>, vector<64x512xf32> -> vector<64x512xf32>
    %109 = arith.addf %105, %108 : vector<64x512xf32>
    %c2_88 = arith.constant 2 : index
    %c0_89 = arith.constant 0 : index
    %c0_90 = arith.constant 0 : index
    %110 = vector.load %arg3[%c2_88, %c0_89, %c0_90] : memref<5x256x512xbf16, #tpu.memory_space<vmem>>, vector<1x256x512xbf16>
    %111 = vector.shape_cast %110 : vector<1x256x512xbf16> to vector<256x512xbf16>
    %cst_91 = arith.constant dense<0.000000e+00> : vector<64x512xf32>
    %112 = tpu.matmul %79, %111, %cst_91 {dimension_numbers = #tpu.dot_dimension_numbers<[1], [0], [0], [1], [0, 0, 1, 1], [], []>} : vector<64x256xbf16>, vector<256x512xbf16>, vector<64x512xf32> -> vector<64x512xf32>
    %113 = arith.addf %109, %112 : vector<64x512xf32>
    %c3_92 = arith.constant 3 : index
    %c0_93 = arith.constant 0 : index
    %c0_94 = arith.constant 0 : index
    %114 = vector.load %arg3[%c3_92, %c0_93, %c0_94] : memref<5x256x512xbf16, #tpu.memory_space<vmem>>, vector<1x256x512xbf16>
    %115 = vector.shape_cast %114 : vector<1x256x512xbf16> to vector<256x512xbf16>
    %cst_95 = arith.constant dense<0.000000e+00> : vector<64x512xf32>
    %116 = tpu.matmul %84, %115, %cst_95 {dimension_numbers = #tpu.dot_dimension_numbers<[1], [0], [0], [1], [0, 0, 1, 1], [], []>} : vector<64x256xbf16>, vector<256x512xbf16>, vector<64x512xf32> -> vector<64x512xf32>
    %117 = arith.addf %113, %116 : vector<64x512xf32>
    %c4_96 = arith.constant 4 : index
    %c0_97 = arith.constant 0 : index
    %c0_98 = arith.constant 0 : index
    %118 = vector.load %arg3[%c4_96, %c0_97, %c0_98] : memref<5x256x512xbf16, #tpu.memory_space<vmem>>, vector<1x256x512xbf16>
    %119 = vector.shape_cast %118 : vector<1x256x512xbf16> to vector<256x512xbf16>
    %cst_99 = arith.constant dense<0.000000e+00> : vector<64x512xf32>
    %120 = tpu.matmul %89, %119, %cst_99 {dimension_numbers = #tpu.dot_dimension_numbers<[1], [0], [0], [1], [0, 0, 1, 1], [], []>} : vector<64x256xbf16>, vector<256x512xbf16>, vector<64x512xf32> -> vector<64x512xf32>
    %121 = arith.addf %117, %120 : vector<64x512xf32>
    %122 = vector.broadcast %102 : vector<1x512xf32> to vector<64x512xf32>
    %123 = arith.addf %121, %122 : vector<64x512xf32>
    %cst_100 = arith.constant 0.000000e+00 : f32
    %124 = vector.broadcast %cst_100 : f32 to vector<64x512xf32>
    %125 = arith.maximumf %123, %124 : vector<64x512xf32>
    %c0_101 = arith.constant 0 : index
    %c0_102 = arith.constant 0 : index
    %c0_103 = arith.constant 0 : index
    %126 = vector.load %arg3[%c0_101, %c0_102, %c0_103] : memref<5x256x512xbf16, #tpu.memory_space<vmem>>, vector<1x256x512xbf16>
    %127 = vector.shape_cast %126 : vector<1x256x512xbf16> to vector<256x512xbf16>
    %cst_104 = arith.constant dense<0.000000e+00> : vector<64x512xf32>
    %128 = tpu.matmul %79, %127, %cst_104 {dimension_numbers = #tpu.dot_dimension_numbers<[1], [0], [0], [1], [0, 0, 1, 1], [], []>} : vector<64x256xbf16>, vector<256x512xbf16>, vector<64x512xf32> -> vector<64x512xf32>
    %c1_105 = arith.constant 1 : index
    %c0_106 = arith.constant 0 : index
    %c0_107 = arith.constant 0 : index
    %129 = vector.load %arg3[%c1_105, %c0_106, %c0_107] : memref<5x256x512xbf16, #tpu.memory_space<vmem>>, vector<1x256x512xbf16>
    %130 = vector.shape_cast %129 : vector<1x256x512xbf16> to vector<256x512xbf16>
    %cst_108 = arith.constant dense<0.000000e+00> : vector<64x512xf32>
    %131 = tpu.matmul %84, %130, %cst_108 {dimension_numbers = #tpu.dot_dimension_numbers<[1], [0], [0], [1], [0, 0, 1, 1], [], []>} : vector<64x256xbf16>, vector<256x512xbf16>, vector<64x512xf32> -> vector<64x512xf32>
    %132 = arith.addf %128, %131 : vector<64x512xf32>
    %c2_109 = arith.constant 2 : index
    %c0_110 = arith.constant 0 : index
    %c0_111 = arith.constant 0 : index
    %133 = vector.load %arg3[%c2_109, %c0_110, %c0_111] : memref<5x256x512xbf16, #tpu.memory_space<vmem>>, vector<1x256x512xbf16>
    %134 = vector.shape_cast %133 : vector<1x256x512xbf16> to vector<256x512xbf16>
    %cst_112 = arith.constant dense<0.000000e+00> : vector<64x512xf32>
    %135 = tpu.matmul %89, %134, %cst_112 {dimension_numbers = #tpu.dot_dimension_numbers<[1], [0], [0], [1], [0, 0, 1, 1], [], []>} : vector<64x256xbf16>, vector<256x512xbf16>, vector<64x512xf32> -> vector<64x512xf32>
    %136 = arith.addf %132, %135 : vector<64x512xf32>
    %c3_113 = arith.constant 3 : index
    %c0_114 = arith.constant 0 : index
    %c0_115 = arith.constant 0 : index
    %137 = vector.load %arg3[%c3_113, %c0_114, %c0_115] : memref<5x256x512xbf16, #tpu.memory_space<vmem>>, vector<1x256x512xbf16>
    %138 = vector.shape_cast %137 : vector<1x256x512xbf16> to vector<256x512xbf16>
    %cst_116 = arith.constant dense<0.000000e+00> : vector<64x512xf32>
    %139 = tpu.matmul %94, %138, %cst_116 {dimension_numbers = #tpu.dot_dimension_numbers<[1], [0], [0], [1], [0, 0, 1, 1], [], []>} : vector<64x256xbf16>, vector<256x512xbf16>, vector<64x512xf32> -> vector<64x512xf32>
    %140 = arith.addf %136, %139 : vector<64x512xf32>
    %c4_117 = arith.constant 4 : index
    %c0_118 = arith.constant 0 : index
    %c0_119 = arith.constant 0 : index
    %141 = vector.load %arg3[%c4_117, %c0_118, %c0_119] : memref<5x256x512xbf16, #tpu.memory_space<vmem>>, vector<1x256x512xbf16>
    %142 = vector.shape_cast %141 : vector<1x256x512xbf16> to vector<256x512xbf16>
    %cst_120 = arith.constant dense<0.000000e+00> : vector<64x512xf32>
    %143 = tpu.matmul %101, %142, %cst_120 {dimension_numbers = #tpu.dot_dimension_numbers<[1], [0], [0], [1], [0, 0, 1, 1], [], []>} : vector<64x256xbf16>, vector<256x512xbf16>, vector<64x512xf32> -> vector<64x512xf32>
    %144 = arith.addf %140, %143 : vector<64x512xf32>
    %145 = vector.broadcast %102 : vector<1x512xf32> to vector<64x512xf32>
    %146 = arith.addf %144, %145 : vector<64x512xf32>
    %cst_121 = arith.constant 0.000000e+00 : f32
    %147 = vector.broadcast %cst_121 : f32 to vector<64x512xf32>
    %148 = arith.maximumf %146, %147 : vector<64x512xf32>
    %149 = vector.extract_strided_slice %125 {offsets = [0, 0], sizes = [64, 256], strides = [1, 1]} : vector<64x512xf32> to vector<64x256xf32>
    %150 = vector.extract_strided_slice %125 {offsets = [0, 256], sizes = [64, 256], strides = [1, 1]} : vector<64x512xf32> to vector<64x256xf32>
    %151 = arith.maximumf %149, %150 : vector<64x256xf32>
    %152 = vector.extract_strided_slice %148 {offsets = [0, 0], sizes = [64, 256], strides = [1, 1]} : vector<64x512xf32> to vector<64x256xf32>
    %153 = vector.extract_strided_slice %148 {offsets = [0, 256], sizes = [64, 256], strides = [1, 1]} : vector<64x512xf32> to vector<64x256xf32>
    %154 = arith.maximumf %152, %153 : vector<64x256xf32>
    %155 = arith.maximumf %151, %154 : vector<64x256xf32>
    %156 = vector.extract_strided_slice %155 {offsets = [0, 0], sizes = [16, 256], strides = [1, 1]} : vector<64x256xf32> to vector<16x256xf32>
    %c0_122 = arith.constant 0 : index
    %c0_123 = arith.constant 0 : index
    %c0_124 = arith.constant 0 : index
    %157 = vector.load %arg4[%c0_122, %c0_123, %c0_124] : memref<4x256x32xf32, #tpu.memory_space<vmem>>, vector<1x256x32xf32>
    %158 = vector.shape_cast %157 : vector<1x256x32xf32> to vector<256x32xf32>
    %cst_125 = arith.constant dense<0.000000e+00> : vector<16x32xf32>
    %159 = tpu.matmul %156, %158, %cst_125 {dimension_numbers = #tpu.dot_dimension_numbers<[1], [0], [0], [1], [0, 0, 1, 1], [], []>} : vector<16x256xf32>, vector<256x32xf32>, vector<16x32xf32> -> vector<16x32xf32>
    %160 = vector.extract_strided_slice %155 {offsets = [16, 0], sizes = [16, 256], strides = [1, 1]} : vector<64x256xf32> to vector<16x256xf32>
    %c1_126 = arith.constant 1 : index
    %c0_127 = arith.constant 0 : index
    %c0_128 = arith.constant 0 : index
    %161 = vector.load %arg4[%c1_126, %c0_127, %c0_128] : memref<4x256x32xf32, #tpu.memory_space<vmem>>, vector<1x256x32xf32>
    %162 = vector.shape_cast %161 : vector<1x256x32xf32> to vector<256x32xf32>
    %cst_129 = arith.constant dense<0.000000e+00> : vector<16x32xf32>
    %163 = tpu.matmul %160, %162, %cst_129 {dimension_numbers = #tpu.dot_dimension_numbers<[1], [0], [0], [1], [0, 0, 1, 1], [], []>} : vector<16x256xf32>, vector<256x32xf32>, vector<16x32xf32> -> vector<16x32xf32>
    %164 = arith.addf %159, %163 : vector<16x32xf32>
    %165 = vector.extract_strided_slice %155 {offsets = [32, 0], sizes = [16, 256], strides = [1, 1]} : vector<64x256xf32> to vector<16x256xf32>
    %c2_130 = arith.constant 2 : index
    %c0_131 = arith.constant 0 : index
    %c0_132 = arith.constant 0 : index
    %166 = vector.load %arg4[%c2_130, %c0_131, %c0_132] : memref<4x256x32xf32, #tpu.memory_space<vmem>>, vector<1x256x32xf32>
    %167 = vector.shape_cast %166 : vector<1x256x32xf32> to vector<256x32xf32>
    %cst_133 = arith.constant dense<0.000000e+00> : vector<16x32xf32>
    %168 = tpu.matmul %165, %167, %cst_133 {dimension_numbers = #tpu.dot_dimension_numbers<[1], [0], [0], [1], [0, 0, 1, 1], [], []>} : vector<16x256xf32>, vector<256x32xf32>, vector<16x32xf32> -> vector<16x32xf32>
    %169 = arith.addf %164, %168 : vector<16x32xf32>
    %170 = vector.extract_strided_slice %155 {offsets = [48, 0], sizes = [16, 256], strides = [1, 1]} : vector<64x256xf32> to vector<16x256xf32>
    %c3_134 = arith.constant 3 : index
    %c0_135 = arith.constant 0 : index
    %c0_136 = arith.constant 0 : index
    %171 = vector.load %arg4[%c3_134, %c0_135, %c0_136] : memref<4x256x32xf32, #tpu.memory_space<vmem>>, vector<1x256x32xf32>
    %172 = vector.shape_cast %171 : vector<1x256x32xf32> to vector<256x32xf32>
    %cst_137 = arith.constant dense<0.000000e+00> : vector<16x32xf32>
    %173 = tpu.matmul %170, %172, %cst_137 {dimension_numbers = #tpu.dot_dimension_numbers<[1], [0], [0], [1], [0, 0, 1, 1], [], []>} : vector<16x256xf32>, vector<256x32xf32>, vector<16x32xf32> -> vector<16x32xf32>
    %174 = arith.addf %169, %173 : vector<16x32xf32>
    %c0_138 = arith.constant 0 : index
    %c0_139 = arith.constant 0 : index
    %175 = vector.load %arg7[%c0_138, %c0_139] : memref<1x32xf32, #tpu.memory_space<vmem>>, vector<1x32xf32>
    %176 = vector.broadcast %175 : vector<1x32xf32> to vector<16x32xf32>
    %177 = arith.addf %174, %176 : vector<16x32xf32>
    %cst_140 = arith.constant 0.000000e+00 : f32
    %178 = vector.broadcast %cst_140 : f32 to vector<16x32xf32>
    %179 = arith.maximumf %177, %178 : vector<16x32xf32>
    %c0_141 = arith.constant 0 : index
    %c0_142 = arith.constant 0 : index
    %180 = vector.load %arg8[%c0_141, %c0_142] : memref<32x2xf32, #tpu.memory_space<vmem>>, vector<32x2xf32>
    %cst_143 = arith.constant dense<0.000000e+00> : vector<16x2xf32>
    %181 = tpu.matmul %179, %180, %cst_143 {dimension_numbers = #tpu.dot_dimension_numbers<[1], [0], [0], [1], [0, 0, 1, 1], [], []>} : vector<16x32xf32>, vector<32x2xf32>, vector<16x2xf32> -> vector<16x2xf32>
    %c0_144 = arith.constant 0 : index
    %c0_145 = arith.constant 0 : index
    %182 = vector.load %arg9[%c0_144, %c0_145] : memref<1x2xf32, #tpu.memory_space<vmem>>, vector<1x2xf32>
    %183 = vector.broadcast %182 : vector<1x2xf32> to vector<16x2xf32>
    %184 = arith.addf %181, %183 : vector<16x2xf32>
    %c0_146 = arith.constant 0 : index
    %c0_147 = arith.constant 0 : index
    %185 = vector.load %arg10[%c0_146, %c0_147] : memref<16x2xf32, #tpu.memory_space<vmem>>, vector<16x2xf32>
    tpu.vector_store %arg10[%c0_146, %c0_147], %184 {strides = array<i32>} : memref<16x2xf32, #tpu.memory_space<vmem>>, vector<16x2xf32>,
    return
  }
  func.func @transform_0(%arg0: i32) -> (i32, i32, i32, i32) {
    %c0_i32 = arith.constant 0 : i32
    %c0_i32_0 = arith.constant 0 : i32
    %c0_i32_1 = arith.constant 0 : i32
    %c0_i32_2 = arith.constant 0 : i32
    return %c0_i32, %arg0, %c0_i32_0, %c0_i32_1 : i32, i32, i32, i32
  }
  func.func @transform_1(%arg0: i32) -> (i32, i32, i32) {
    %c0_i32 = arith.constant 0 : i32
    %c0_i32_0 = arith.constant 0 : i32
    %c0_i32_1 = arith.constant 0 : i32
    %c0_i32_2 = arith.constant 0 : i32
    return %c0_i32, %c0_i32_0, %c0_i32_1 : i32, i32, i32
  }
  func.func @transform_2(%arg0: i32) -> (i32, i32, i32) {
    %c0_i32 = arith.constant 0 : i32
    %c0_i32_0 = arith.constant 0 : i32
    %c0_i32_1 = arith.constant 0 : i32
    %c0_i32_2 = arith.constant 0 : i32
    return %c0_i32, %c0_i32_0, %c0_i32_1 : i32, i32, i32
  }
  func.func @transform_3(%arg0: i32) -> (i32, i32, i32) {
    %c0_i32 = arith.constant 0 : i32
    %c0_i32_0 = arith.constant 0 : i32
    %c0_i32_1 = arith.constant 0 : i32
    %c0_i32_2 = arith.constant 0 : i32
    return %c0_i32, %c0_i32_0, %c0_i32_1 : i32, i32, i32
  }
  func.func @transform_4(%arg0: i32) -> (i32, i32) {
    %c0_i32 = arith.constant 0 : i32
    %c0_i32_0 = arith.constant 0 : i32
    %c0_i32_1 = arith.constant 0 : i32
    return %c0_i32, %c0_i32_0 : i32, i32
  }
  func.func @transform_5(%arg0: i32) -> (i32, i32) {
    %c0_i32 = arith.constant 0 : i32
    %c0_i32_0 = arith.constant 0 : i32
    %c0_i32_1 = arith.constant 0 : i32
    return %c0_i32, %c0_i32_0 : i32, i32
  }
  func.func @transform_6(%arg0: i32) -> (i32, i32) {
    %c0_i32 = arith.constant 0 : i32
    %c0_i32_0 = arith.constant 0 : i32
    %c0_i32_1 = arith.constant 0 : i32
    return %c0_i32, %c0_i32_0 : i32, i32
  }
  func.func @transform_7(%arg0: i32) -> (i32, i32) {
    %c0_i32 = arith.constant 0 : i32
    %c0_i32_0 = arith.constant 0 : i32
    %c0_i32_1 = arith.constant 0 : i32
    return %c0_i32, %c0_i32_0 : i32, i32
  }
  func.func @transform_8(%arg0: i32) -> (i32, i32) {
    %c0_i32 = arith.constant 0 : i32
    %c0_i32_0 = arith.constant 0 : i32
    %c0_i32_1 = arith.constant 0 : i32
    return %c0_i32, %c0_i32_0 : i32, i32
  }
  func.func @transform_9(%arg0: i32) -> (i32, i32) {
    %c0_i32 = arith.constant 0 : i32
    %c0_i32_0 = arith.constant 0 : i32
    return %arg0, %c0_i32 : i32, i32
  }
}

</mosaic_0001>

<bundles_post_ra>
// kernel: target_forward.1
= control target key start
LH: loop header
LB: loop body
LE: loop exit
PB: predicated region body
PF: predicated region fallthrough
CT: control target
= control target key end

     0   :  { %vm580_vm0 = vcmask 523264   ;;  %vm12666_vm1 = vcmask 261120   ;;  %vm12748_vm2 = vcmask 15360   ;;  %s24108_s1 = inlined_call_operand.vmem [shape: bf16[5,192,512], index: 1, kind: input, shape index: {}]   ;;  %s24109_s0 = inlined_call_operand.vmem [shape: bf16[4,1,272,192], index: 0, kind: input, shape index: {}]   ;;  %s24110_s4 = inlined_call_operand.vmem [shape: f32[1,512], index: 4, kind: input, shape index: {}]   ;;  %s24111_s2 = inlined_call_operand.vmem [shape: bf16[5,256,512], index: 2, kind: input, shape index: {}]   ;;  %s24112_s5 = inlined_call_operand.vmem [shape: f32[1,512], index: 5, kind: input, shape index: {}]   ;;  %s24113_s3 = inlined_call_operand.vmem [shape: f32[4,256,32], index: 3, kind: input, shape index: {}]   ;;  %s24114_s7 = inlined_call_operand.vmem [shape: f32[32,2], index: 7, kind: input, shape index: {}]   ;;  %s24115_s6 = inlined_call_operand.vmem [shape: f32[1,32], index: 6, kind: input, shape index: {}]   ;;  %s24116_s8 = inlined_call_operand.vmem [shape: f32[1,2], index: 8, kind: input, shape index: {}]   ;;  %s24117_s9 = inlined_call_operand.vmem [shape: f32[16,2], index: 9, kind: output, shape index: {}]  }
   0x1   :  { %v16153_v0 = vld [vmem:[%s24108_s1 + $0x184] ss:$16 sps:$4 sm:$0xff]   ;;  %v16155_v1 = vld [vmem:[%s24108_s1 + $0x18c] ss:$16 sps:$4 sm:$0xff]   ;;  %v16157_v2 = vld [vmem:[%s24108_s1 + $0x180] ss:$16 sps:$4 sm:$0xff]  }
   0x2   :  { %629 = vmatprep.subr.bf16.mxu0 %v16153_v0  ;;  %v16158_v3 = vld [vmem:[%s24108_s1 + $0x188] ss:$16 sps:$4 sm:$0xff]   ;;  %822 = vmatprep.subr.bf16.mxu1 %v16155_v1  ;;  %v16159_v4 = vld [vmem:[%s24108_s1 + $0x1a4] ss:$16 sps:$4 sm:$0xff]   ;;  %v16161_v5 = vld [vmem:[%s24108_s1 + $0x1ac] ss:$16 sps:$4 sm:$0xff]  }
   0x3   :  { %630 = vmatpush1.bf16.msra.mxu0 %v16157_v2  ;;  %823 = vmatpush1.bf16.msra.mxu1 %v16158_v3  ;;  %v16163_v6 = vld [vmem:[%s24108_s1 + $0x1a0] ss:$16 sps:$4 sm:$0xff]   ;;  %v16164_v7 = vld [vmem:[%s24108_s1 + $0x1a8] ss:$16 sps:$4 sm:$0xff]   ;;  %v16165_v8 = vld [vmem:[%s24108_s1 + $0x1c4] ss:$16 sps:$4 sm:$0xff]  }
   0x4   :  { %631 = vmatprep.subr.bf16.mxu0 %v16159_v4  ;;  %824 = vmatprep.subr.bf16.mxu1 %v16161_v5  ;;  %v16167_v9 = vld [vmem:[%s24108_s1 + $0x1cc] ss:$16 sps:$4 sm:$0xff]   ;;  %v16169_v10 = vld [vmem:[%s24108_s1 + $0x1c0] ss:$16 sps:$4 sm:$0xff]   ;;  %v16170_v11 = vld [vmem:[%s24108_s1 + $0x1c8] ss:$16 sps:$4 sm:$0xff]  }
   0x5   :  { %v16171_v12 = vld [vmem:[%s24108_s1 + $0x1e4] ss:$16 sps:$4 sm:$0xff]   ;;  %v16173_v13 = vld [vmem:[%s24108_s1 + $0x1ec] ss:$16 sps:$4 sm:$0xff]   ;;  %v16175_v14 = vld [vmem:[%s24108_s1 + $0x1e0] ss:$16 sps:$4 sm:$0xff]  }
   0x6   :  { %v16176_v15 = vld [vmem:[%s24108_s1 + $0x1e8] ss:$16 sps:$4 sm:$0xff]   ;;  %v16177_v16 = vld [vmem:[%s24108_s1 + $0x204] ss:$16 sps:$4 sm:$0xff]   ;;  %v16179_v17 = vld [vmem:[%s24108_s1 + $0x20c] ss:$16 sps:$4 sm:$0xff]  }
   0x7   :  { %632 = vmatpush1.bf16.msra.mxu0 %v16163_v6  ;;  %825 = vmatpush1.bf16.msra.mxu1 %v16164_v7  ;;  %v16181_v18 = vld [vmem:[%s24108_s1 + $0x200] ss:$16 sps:$4 sm:$0xff]   ;;  %v16182_v19 = vld [vmem:[%s24108_s1 + $0x208] ss:$16 sps:$4 sm:$0xff]   ;;  %v16183_v20 = vld [vmem:[%s24108_s1 + $0x224] ss:$16 sps:$4 sm:$0xff]  }
   0x8   :  { %633 = vmatprep.subr.bf16.mxu0 %v16165_v8  ;;  %826 = vmatprep.subr.bf16.mxu1 %v16167_v9  ;;  %v16185_v21 = vld [vmem:[%s24108_s1 + $0x22c] ss:$16 sps:$4 sm:$0xff]   ;;  %v16187_v22 = vld [vmem:[%s24108_s1 + $0x220] ss:$16 sps:$4 sm:$0xff]   ;;  %v16188_v23 = vld [vmem:[%s24108_s1 + $0x228] ss:$16 sps:$4 sm:$0xff]  }
   0x9   :  { %v16189_v24 = vld [vmem:[%s24108_s1 + $0x244] ss:$16 sps:$4 sm:$0xff]   ;;  %v16191_v25 = vld [vmem:[%s24108_s1 + $0x24c] ss:$16 sps:$4 sm:$0xff]   ;;  %v16193_v26 = vld [vmem:[%s24108_s1 + $0x240] ss:$16 sps:$4 sm:$0xff]  }
   0xa   :  { %v16194_v27 = vld [vmem:[%s24108_s1 + $0x248] ss:$16 sps:$4 sm:$0xff]   ;;  %v16195_v28 = vld [vmem:[%s24108_s1 + $0x264] ss:$16 sps:$4 sm:$0xff]   ;;  %v16197_v29 = vld [vmem:[%s24108_s1 + $0x26c] ss:$16 sps:$4 sm:$0xff]  }
   0xb   :  { %634 = vmatpush1.bf16.msra.mxu0 %v16169_v10  ;;  %827 = vmatpush1.bf16.msra.mxu1 %v16170_v11  ;;  %v16199_v30 = vld [vmem:[%s24108_s1 + $0x260] ss:$16 sps:$4 sm:$0xff]   ;;  %v16200_v31 = vld [vmem:[%s24108_s1 + $0x268] ss:$16 sps:$4 sm:$0xff]   ;;  %v16201_v32 = vld [vmem:[%s24108_s1 + $0x284] ss:$16 sps:$4 sm:$0xff]  }
   0xc   :  { %635 = vmatprep.subr.bf16.mxu0 %v16171_v12  ;;  %828 = vmatprep.subr.bf16.mxu1 %v16173_v13  ;;  %v16203_v33 = vld [vmem:[%s24108_s1 + $0x28c] ss:$16 sps:$4 sm:$0xff]   ;;  %v16205_v34 = vld [vmem:[%s24108_s1 + $0x280] ss:$16 sps:$4 sm:$0xff]   ;;  %v16206_v35 = vld [vmem:[%s24108_s1 + $0x288] ss:$16 sps:$4 sm:$0xff]  }
   0xd   :  { %v16207_v36 = vld [vmem:[%s24108_s1 + $0x2a4] ss:$16 sps:$4 sm:$0xff]   ;;  %v16209_v37 = vld [vmem:[%s24108_s1 + $0x2ac] ss:$16 sps:$4 sm:$0xff]   ;;  %v16211_v39 = vld [vmem:[%s24108_s1 + $0x2a0] ss:$16 sps:$4 sm:$0xff]  }
   0xe   :  { %v16227_v38 = vld [vmem:[%s24109_s0 + $0x114] ss:$8 sps:$4 sm:$0xff]   ;;  %v16212_v40 = vld [vmem:[%s24108_s1 + $0x2a8] ss:$16 sps:$4 sm:$0xff]   ;;  %v16217_v43 = vld [vmem:[%s24108_s1 + $0x2c0] ss:$16 sps:$4 sm:$0xff]  }
   0xf   :  { %636 = vmatpush1.bf16.msra.mxu0 %v16175_v14  ;;  %829 = vmatpush1.bf16.msra.mxu1 %v16176_v15  ;;  %v16213_v41 = vld [vmem:[%s24108_s1 + $0x2c4] ss:$16 sps:$4 sm:$0xff]   ;;  %v16215_v42 = vld [vmem:[%s24108_s1 + $0x2cc] ss:$16 sps:$4 sm:$0xff]   ;;  %v16218_v44 = vld [vmem:[%s24108_s1 + $0x2c8] ss:$16 sps:$4 sm:$0xff]  }
  0x10   :  { %637 = vmatprep.subr.bf16.mxu0 %v16177_v16  ;;  %830 = vmatprep.subr.bf16.mxu1 %v16179_v17  ;;  %v16219_v45 = vld [vmem:[%s24108_s1 + $0x2e4] ss:$16 sps:$4 sm:$0xff]   ;;  %v16221_v46 = vld [vmem:[%s24108_s1 + $0x2ec] ss:$16 sps:$4 sm:$0xff]   ;;  %v16223_v47 = vld [vmem:[%s24108_s1 + $0x2e0] ss:$16 sps:$4 sm:$0xff]  }
  0x11   :  { %12915 = vmatprep.mubr.msk.bf16.mxu0 %vm580_vm0, %v16227_v38  ;;  %12931 = vmatprep.mubr.msk.bf16.mxu1 %vm580_vm0, %v16227_v38  ;;  %v16224_v48 = vld [vmem:[%s24108_s1 + $0x2e8] ss:$16 sps:$4 sm:$0xff]   ;;  %v16230_v49 = vld [vmem:[%s24108_s1 + $0x4] ss:$16 sps:$4 sm:$0xff]   ;;  %v16233_v50 = vld [vmem:[%s24108_s1 + $0xc] ss:$16 sps:$4 sm:$0xff]  }
  0x12   :  { %v16225_v51 = vld [vmem:[%s24109_s0 + $0x110] ss:$8 sps:$4 sm:$0xff]   ;;  %v16234_v54 = vld [vmem:[%s24109_s0 + $0x124] ss:$8 sps:$4 sm:$0xff]   ;;  %v16236_v61 = vld [vmem:[%s24109_s0 + $0x120] ss:$8 sps:$4 sm:$0xff]  }
  0x13   :  { %638 = vmatpush1.bf16.msra.mxu0 %v16181_v18  ;;  %831 = vmatpush1.bf16.msra.mxu1 %v16182_v19  ;;  %v16228_v52 = vld [vmem:[%s24108_s1] ss:$16 sps:$4 sm:$0xff]   ;;  %v16231_v53 = vld [vmem:[%s24108_s1 + $0x8] ss:$16 sps:$4 sm:$0xff]   ;;  %v16239_v55 = vld [vmem:[%s24108_s1 + $0x24] ss:$16 sps:$4 sm:$0xff]  }
  0x14   :  { %639 = vmatprep.subr.bf16.mxu0 %v16183_v20  ;;  %832 = vmatprep.subr.bf16.mxu1 %v16185_v21  ;;  %v16242_v56 = vld [vmem:[%s24108_s1 + $0x2c] ss:$16 sps:$4 sm:$0xff]   ;;  %v16237_v57 = vld [vmem:[%s24108_s1 + $0x20] ss:$16 sps:$4 sm:$0xff]   ;;  %v16240_v58 = vld [vmem:[%s24108_s1 + $0x28] ss:$16 sps:$4 sm:$0xff]  }
  0x15   :  { %v16248_v59 = vld [vmem:[%s24108_s1 + $0x44] ss:$16 sps:$4 sm:$0xff]   ;;  %v16251_v60 = vld [vmem:[%s24108_s1 + $0x4c] ss:$16 sps:$4 sm:$0xff]   ;;  %v16246_v63 = vld [vmem:[%s24108_s1 + $0x40] ss:$16 sps:$4 sm:$0xff]  }
  0x16   :  { %v16243_v62 = vld [vmem:[%s24109_s0 + $0x134] ss:$8 sps:$4 sm:$0xff]   ;;  %v16249_v0 = vld [vmem:[%s24108_s1 + $0x48] ss:$16 sps:$4 sm:$0xff]   ;;  %v16258_v3 = vld [vmem:[%s24108_s1 + $0x60] ss:$16 sps:$4 sm:$0xff]  }
  0x17   :  { %640 = vmatpush1.bf16.msra.mxu0 %v16187_v22  ;;  %833 = vmatpush1.bf16.msra.mxu1 %v16188_v23  ;;  %v16260_v1 = vld [vmem:[%s24108_s1 + $0x64] ss:$16 sps:$4 sm:$0xff]   ;;  %v16263_v2 = vld [vmem:[%s24108_s1 + $0x6c] ss:$16 sps:$4 sm:$0xff]   ;;  %v16261_v4 = vld [vmem:[%s24108_s1 + $0x68] ss:$16 sps:$4 sm:$0xff]  }
  0x18   :  { %641 = vmatprep.subr.bf16.mxu0 %v16189_v24  ;;  %834 = vmatprep.subr.bf16.mxu1 %v16191_v25  ;;  %v16269_v5 = vld [vmem:[%s24108_s1 + $0x84] ss:$16 sps:$4 sm:$0xff]   ;;  %v16272_v6 = vld [vmem:[%s24108_s1 + $0x8c] ss:$16 sps:$4 sm:$0xff]   ;;  %v16245_v7 = vld [vmem:[%s24109_s0 + $0x130] ss:$8 sps:$4 sm:$0xff]  }
  0x19   :  { %v16252_v8 = vld [vmem:[%s24109_s0 + $0x144] ss:$8 sps:$4 sm:$0xff]   ;;  %v16267_v9 = vld [vmem:[%s24108_s1 + $0x80] ss:$16 sps:$4 sm:$0xff]   ;;  %v16270_v10 = vld [vmem:[%s24108_s1 + $0x88] ss:$16 sps:$4 sm:$0xff]  }
  0x1a   :  { %v16278_v11 = vld [vmem:[%s24108_s1 + $0xa4] ss:$16 sps:$4 sm:$0xff]   ;;  %v16281_v12 = vld [vmem:[%s24108_s1 + $0xac] ss:$16 sps:$4 sm:$0xff]   ;;  %v16276_v13 = vld [vmem:[%s24108_s1 + $0xa0] ss:$16 sps:$4 sm:$0xff]  }
  0x1b   :  { %642 = vmatpush1.bf16.msra.mxu0 %v16193_v26  ;;  %835 = vmatpush1.bf16.msra.mxu1 %v16194_v27  ;;  %v16279_v14 = vld [vmem:[%s24108_s1 + $0xa8] ss:$16 sps:$4 sm:$0xff]   ;;  %v16290_v15 = vld [vmem:[%s24108_s1 + $0xc4] ss:$16 sps:$4 sm:$0xff]   ;;  %v16293_v16 = vld [vmem:[%s24108_s1 + $0xcc] ss:$16 sps:$4 sm:$0xff]  }
  0x1c   :  { %643 = vmatprep.subr.bf16.mxu0 %v16195_v28  ;;  %836 = vmatprep.subr.bf16.mxu1 %v16197_v29  ;;  %v16254_v17 = vld [vmem:[%s24109_s0 + $0x140] ss:$8 sps:$4 sm:$0xff]   ;;  %v16255_v18 = vld [vmem:[%s24109_s0 + $0x154] ss:$8 sps:$4 sm:$0xff]   ;;  %v16257_v27 = vld [vmem:[%s24109_s0 + $0x150] ss:$8 sps:$4 sm:$0xff]  }
  0x1d   :  { %v16288_v19 = vld [vmem:[%s24108_s1 + $0xc0] ss:$16 sps:$4 sm:$0xff]   ;;  %v16291_v20 = vld [vmem:[%s24108_s1 + $0xc8] ss:$16 sps:$4 sm:$0xff]   ;;  %v16299_v21 = vld [vmem:[%s24108_s1 + $0xe4] ss:$16 sps:$4 sm:$0xff]  }
  0x1e   :  { %v16302_v22 = vld [vmem:[%s24108_s1 + $0xec] ss:$16 sps:$4 sm:$0xff]   ;;  %v16297_v23 = vld [vmem:[%s24108_s1 + $0xe0] ss:$16 sps:$4 sm:$0xff]   ;;  %v16300_v24 = vld [vmem:[%s24108_s1 + $0xe8] ss:$16 sps:$4 sm:$0xff]  }
  0x1f   :  { %644 = vmatpush1.bf16.msra.mxu0 %v16199_v30  ;;  %837 = vmatpush1.bf16.msra.mxu1 %v16200_v31  ;;  %v16308_v25 = vld [vmem:[%s24108_s1 + $0x104] ss:$16 sps:$4 sm:$0xff]   ;;  %v16311_v26 = vld [vmem:[%s24108_s1 + $0x10c] ss:$16 sps:$4 sm:$0xff]   ;;  %v16306_v29 = vld [vmem:[%s24108_s1 + $0x100] ss:$16 sps:$4 sm:$0xff]  }
  0x20   :  { %645 = vmatprep.subr.bf16.mxu0 %v16201_v32  ;;  %838 = vmatprep.subr.bf16.mxu1 %v16203_v33  ;;  %v16264_v28 = vld [vmem:[%s24109_s0 + $0x164] ss:$8 sps:$4 sm:$0xff]   ;;  %v16309_v30 = vld [vmem:[%s24108_s1 + $0x108] ss:$16 sps:$4 sm:$0xff]   ;;  %v16318_v33 = vld [vmem:[%s24108_s1 + $0x120] ss:$16 sps:$4 sm:$0xff]  }
  0x21   :  { %v16320_v31 = vld [vmem:[%s24108_s1 + $0x124] ss:$16 sps:$4 sm:$0xff]   ;;  %v16323_v32 = vld [vmem:[%s24108_s1 + $0x12c] ss:$16 sps:$4 sm:$0xff]  }
  0x22   :  { %v16273_v38 = vld [vmem:[%s24109_s0 + $0x174] ss:$8 sps:$4 sm:$0xff]  }
  0x23   :  { %646 = vmatpush1.bf16.msra.mxu0 %v16205_v34  ;;  %839 = vmatpush1.bf16.msra.mxu1 %v16206_v35  ;;  %v16321_v34 = vld [vmem:[%s24108_s1 + $0x128] ss:$16 sps:$4 sm:$0xff]   ;;  %v16329_v35 = vld [vmem:[%s24108_s1 + $0x144] ss:$16 sps:$4 sm:$0xff]  }
  0x24   :  { %647 = vmatprep.subr.bf16.mxu0 %v16207_v36  ;;  %840 = vmatprep.subr.bf16.mxu1 %v16209_v37  ;;  %v16332_v36 = vld [vmem:[%s24108_s1 + $0x14c] ss:$16 sps:$4 sm:$0xff]   ;;  %v16266_v37 = vld [vmem:[%s24109_s0 + $0x160] ss:$8 sps:$4 sm:$0xff]  }
  0x27   :  { %648 = vmatpush1.bf16.msra.mxu0 %v16211_v39  ;;  %841 = vmatpush1.bf16.msra.mxu1 %v16212_v40  ;;  %v16327_v39 = vld [vmem:[%s24108_s1 + $0x140] ss:$16 sps:$4 sm:$0xff]   ;;  %v16330_v40 = vld [vmem:[%s24108_s1 + $0x148] ss:$16 sps:$4 sm:$0xff]  }
  0x28   :  { %649 = vmatprep.subr.bf16.mxu0 %v16213_v41  ;;  %842 = vmatprep.subr.bf16.mxu1 %v16215_v42  ;;  %v16338_v41 = vld [vmem:[%s24108_s1 + $0x164] ss:$16 sps:$4 sm:$0xff]   ;;  %v16341_v42 = vld [vmem:[%s24108_s1 + $0x16c] ss:$16 sps:$4 sm:$0xff]  }
  0x2b   :  { %650 = vmatpush1.bf16.msra.mxu0 %v16217_v43  ;;  %843 = vmatpush1.bf16.msra.mxu1 %v16218_v44  ;;  %v16336_v43 = vld [vmem:[%s24108_s1 + $0x160] ss:$16 sps:$4 sm:$0xff]   ;;  %v16339_v44 = vld [vmem:[%s24108_s1 + $0x168] ss:$16 sps:$4 sm:$0xff]  }
  0x2c   :  { %651 = vmatprep.subr.bf16.mxu0 %v16219_v45  ;;  %844 = vmatprep.subr.bf16.mxu1 %v16221_v46  ;;  %v16350_v45 = vld [vmem:[%s24108_s1 + $0x304] ss:$16 sps:$4 sm:$0xff]   ;;  %v16353_v46 = vld [vmem:[%s24108_s1 + $0x30c] ss:$16 sps:$4 sm:$0xff]  }
  0x2f   :  { %652 = vmatpush1.bf16.msra.mxu0 %v16223_v47  ;;  %845 = vmatpush1.bf16.msra.mxu1 %v16224_v48  ;;  %v16275_v47 = vld [vmem:[%s24109_s0 + $0x170] ss:$8 sps:$4 sm:$0xff]   ;;  %v16282_v48 = vld [vmem:[%s24109_s0 + $0x184] ss:$8 sps:$4 sm:$0xff]  }
  0x30   :  { %1447 = vmatprep.subr.bf16.mxu0 %v16230_v49  ;;  %1640 = vmatprep.subr.bf16.mxu1 %v16233_v50  ;;  %v16284_v49 = vld [vmem:[%s24109_s0 + $0x180] ss:$8 sps:$4 sm:$0xff]   ;;  %v16285_v50 = vld [vmem:[%s24109_s0 + $0x194] ss:$8 sps:$4 sm:$0xff]  }
  0x32   :  { %662 = vmatmul.mubr.bf16.vlgmr.msra.gmra.mrb[0].mxu0 %v16225_v51  ;;  %855 = vmatmul.mubr.bf16.vlgmr.msra.gmra.mrb[0].mxu1 %v16225_v51  ;;  %v16287_v51 = vld [vmem:[%s24109_s0 + $0x190] ss:$8 sps:$4 sm:$0xff]  }
  0x33   :  { %1448 = vmatpush1.bf16.msra.mxu0 %v16228_v52  ;;  %1641 = vmatpush1.bf16.msra.mxu1 %v16231_v53  ;;  %v16294_v52 = vld [vmem:[%s24109_s0 + $0x1a4] ss:$8 sps:$4 sm:$0xff]   ;;  %v16296_v53 = vld [vmem:[%s24109_s0 + $0x1a0] ss:$8 sps:$4 sm:$0xff]  }
  0x34   :  { %12916 = vmatprep.mubr.msk.bf16.mxu0 %vm580_vm0, %v16234_v54  ;;  %12932 = vmatprep.mubr.msk.bf16.mxu1 %vm580_vm0, %v16234_v54  ;;  %v16303_v54 = vld [vmem:[%s24109_s0 + $0x1b4] ss:$8 sps:$4 sm:$0xff]  }
  0x35   :  { %1449 = vmatprep.subr.bf16.mxu0 %v16239_v55  ;;  %1642 = vmatprep.subr.bf16.mxu1 %v16242_v56  ;;  %v16305_v55 = vld [vmem:[%s24109_s0 + $0x1b0] ss:$8 sps:$4 sm:$0xff]   ;;  %v16312_v56 = vld [vmem:[%s24109_s0 + $0x1c4] ss:$8 sps:$4 sm:$0xff]  }
  0x37   :  { %1450 = vmatpush1.bf16.msra.mxu0 %v16237_v57  ;;  %1643 = vmatpush1.bf16.msra.mxu1 %v16240_v58  ;;  %v16314_v57 = vld [vmem:[%s24109_s0 + $0x1c0] ss:$8 sps:$4 sm:$0xff]   ;;  %v16315_v58 = vld [vmem:[%s24109_s0 + $0x1d4] ss:$8 sps:$4 sm:$0xff]  }
  0x38   :  { %1451 = vmatprep.subr.bf16.mxu0 %v16248_v59  ;;  %1644 = vmatprep.subr.bf16.mxu1 %v16251_v60  ;;  %v16317_v59 = vld [vmem:[%s24109_s0 + $0x1d0] ss:$8 sps:$4 sm:$0xff]   ;;  %v16324_v60 = vld [vmem:[%s24109_s0 + $0x1e4] ss:$8 sps:$4 sm:$0xff]  }
  0x3a   :  { %672 = vmatmul.mubr.bf16.gmra.mrb[4].mxu0 %v16236_v61  ;;  %865 = vmatmul.mubr.bf16.gmra.mrb[4].mxu1 %v16236_v61  ;;  %v16326_v61 = vld [vmem:[%s24109_s0 + $0x1e0] ss:$8 sps:$4 sm:$0xff]  }
  0x3b   :  { %12917 = vmatprep.mubr.msk.bf16.mxu0 %vm580_vm0, %v16243_v62  ;;  %12933 = vmatprep.mubr.msk.bf16.mxu1 %vm580_vm0, %v16243_v62  ;;  %v16333_v62 = vld [vmem:[%s24109_s0 + $0x1f4] ss:$8 sps:$4 sm:$0xff]  }
  0x3c   :  { %1452 = vmatpush1.bf16.msra.mxu0 %v16246_v63  ;;  %1645 = vmatpush1.bf16.msra.mxu1 %v16249_v0  ;;  %v16335_v63 = vld [vmem:[%s24109_s0 + $0x1f0] ss:$8 sps:$4 sm:$0xff]   ;;  %v16342_v0 = vld [vmem:[%s24109_s0 + $0x204] ss:$8 sps:$4 sm:$0xff]  }
  0x3d   :  { %1453 = vmatprep.subr.bf16.mxu0 %v16260_v1  ;;  %1646 = vmatprep.subr.bf16.mxu1 %v16263_v2  ;;  %v16344_v1 = vld [vmem:[%s24109_s0 + $0x200] ss:$8 sps:$4 sm:$0xff]   ;;  %v16347_v2 = vld [vmem:[%s24109_s0 + $0x4] ss:$8 sps:$4 sm:$0xff]  }
  0x40   :  { %1454 = vmatpush1.bf16.msra.mxu0 %v16258_v3  ;;  %1647 = vmatpush1.bf16.msra.mxu1 %v16261_v4  ;;  %v16345_v3 = vld [vmem:[%s24109_s0] ss:$8 sps:$4 sm:$0xff]  }
  0x41   :  { %1455 = vmatprep.subr.bf16.mxu0 %v16269_v5  ;;  %1648 = vmatprep.subr.bf16.mxu1 %v16272_v6  ;;  %v16348_v4 = vld [vmem:[%s24108_s1 + $0x300] ss:$16 sps:$4 sm:$0xff]   ;;  %v16351_v5 = vld [vmem:[%s24108_s1 + $0x308] ss:$16 sps:$4 sm:$0xff]   ;;  %v16354_v6 = vld [vmem:[%s24109_s0 + $0x14] ss:$8 sps:$4 sm:$0xff]  }
  0x42   :  { %682 = vmatmul.mubr.bf16.gmra.mrb[8].mxu0 %v16245_v7  ;;  %875 = vmatmul.mubr.bf16.gmra.mrb[8].mxu1 %v16245_v7  ;;  %v16359_v7 = vld [vmem:[%s24108_s1 + $0x324] ss:$16 sps:$4 sm:$0xff]  }
  0x43   :  { %12918 = vmatprep.mubr.msk.bf16.mxu0 %vm580_vm0, %v16252_v8  ;;  %12934 = vmatprep.mubr.msk.bf16.mxu1 %vm580_vm0, %v16252_v8  ;;  %v16362_v8 = vld [vmem:[%s24108_s1 + $0x32c] ss:$16 sps:$4 sm:$0xff]  }
  0x44   :  { %1456 = vmatpush1.bf16.msra.mxu0 %v16267_v9  ;;  %1649 = vmatpush1.bf16.msra.mxu1 %v16270_v10  ;;  %v16357_v9 = vld [vmem:[%s24108_s1 + $0x320] ss:$16 sps:$4 sm:$0xff]   ;;  %v16360_v10 = vld [vmem:[%s24108_s1 + $0x328] ss:$16 sps:$4 sm:$0xff]  }
  0x45   :  { %1457 = vmatprep.subr.bf16.mxu0 %v16278_v11  ;;  %1650 = vmatprep.subr.bf16.mxu1 %v16281_v12  ;;  %v16368_v11 = vld [vmem:[%s24108_s1 + $0x344] ss:$16 sps:$4 sm:$0xff]   ;;  %v16356_v12 = vld [vmem:[%s24109_s0 + $0x10] ss:$8 sps:$4 sm:$0xff]  }
  0x48   :  { %1458 = vmatpush1.bf16.msra.mxu0 %v16276_v13  ;;  %1651 = vmatpush1.bf16.msra.mxu1 %v16279_v14  ;;  %v16371_v13 = vld [vmem:[%s24108_s1 + $0x34c] ss:$16 sps:$4 sm:$0xff]  }
  0x49   :  { %1459 = vmatprep.subr.bf16.mxu0 %v16290_v15  ;;  %1652 = vmatprep.subr.bf16.mxu1 %v16293_v16  ;;  %v16363_v14 = vld [vmem:[%s24109_s0 + $0x24] ss:$8 sps:$4 sm:$0xff]   ;;  %v16366_v15 = vld [vmem:[%s24108_s1 + $0x340] ss:$16 sps:$4 sm:$0xff]   ;;  %v16369_v16 = vld [vmem:[%s24108_s1 + $0x348] ss:$16 sps:$4 sm:$0xff]  }
  0x4a   :  { %692 = vmatmul.mubr.bf16.gmra.mrb[12].mxu0 %v16254_v17  ;;  %885 = vmatmul.mubr.bf16.gmra.mrb[12].mxu1 %v16254_v17  ;;  %v16380_v17 = vld [vmem:[%s24108_s1 + $0x364] ss:$16 sps:$4 sm:$0xff]  }
  0x4b   :  { %12919 = vmatprep.mubr.msk.bf16.mxu0 %vm580_vm0, %v16255_v18  ;;  %12935 = vmatprep.mubr.msk.bf16.mxu1 %vm580_vm0, %v16255_v18  ;;  %v16383_v18 = vld [vmem:[%s24108_s1 + $0x36c] ss:$16 sps:$4 sm:$0xff]  }
  0x4c   :  { %1460 = vmatpush1.bf16.msra.mxu0 %v16288_v19  ;;  %1653 = vmatpush1.bf16.msra.mxu1 %v16291_v20  ;;  %v16378_v19 = vld [vmem:[%s24108_s1 + $0x360] ss:$16 sps:$4 sm:$0xff]   ;;  %v16381_v20 = vld [vmem:[%s24108_s1 + $0x368] ss:$16 sps:$4 sm:$0xff]  }
  0x4d   :  { %1461 = vmatprep.subr.bf16.mxu0 %v16299_v21  ;;  %1654 = vmatprep.subr.bf16.mxu1 %v16302_v22  ;;  %v16389_v21 = vld [vmem:[%s24108_s1 + $0x384] ss:$16 sps:$4 sm:$0xff]   ;;  %v16392_v22 = vld [vmem:[%s24108_s1 + $0x38c] ss:$16 sps:$4 sm:$0xff]  }
  0x50   :  { %1462 = vmatpush1.bf16.msra.mxu0 %v16297_v23  ;;  %1655 = vmatpush1.bf16.msra.mxu1 %v16300_v24  ;;  %v16365_v23 = vld [vmem:[%s24109_s0 + $0x20] ss:$8 sps:$4 sm:$0xff]   ;;  %v16372_v24 = vld [vmem:[%s24109_s0 + $0x34] ss:$8 sps:$4 sm:$0xff]  }
  0x51   :  { %1463 = vmatprep.subr.bf16.mxu0 %v16308_v25  ;;  %1656 = vmatprep.subr.bf16.mxu1 %v16311_v26  ;;  %v16387_v25 = vld [vmem:[%s24108_s1 + $0x380] ss:$16 sps:$4 sm:$0xff]   ;;  %v16390_v26 = vld [vmem:[%s24108_s1 + $0x388] ss:$16 sps:$4 sm:$0xff]  }
  0x52   :  { %702 = vmatmul.mubr.bf16.gmra.mrb[16].mxu0 %v16257_v27  ;;  %895 = vmatmul.mubr.bf16.gmra.mrb[16].mxu1 %v16257_v27  ;;  %v16398_v27 = vld [vmem:[%s24108_s1 + $0x3a4] ss:$16 sps:$4 sm:$0xff]  }
  0x53   :  { %12920 = vmatprep.mubr.msk.bf16.mxu0 %vm580_vm0, %v16264_v28  ;;  %12936 = vmatprep.mubr.msk.bf16.mxu1 %vm580_vm0, %v16264_v28  ;;  %v16401_v28 = vld [vmem:[%s24108_s1 + $0x3ac] ss:$16 sps:$4 sm:$0xff]  }
  0x54   :  { %1464 = vmatpush1.bf16.msra.mxu0 %v16306_v29  ;;  %1657 = vmatpush1.bf16.msra.mxu1 %v16309_v30  ;;  %v16396_v29 = vld [vmem:[%s24108_s1 + $0x3a0] ss:$16 sps:$4 sm:$0xff]   ;;  %v16399_v30 = vld [vmem:[%s24108_s1 + $0x3a8] ss:$16 sps:$4 sm:$0xff]  }
  0x55   :  { %1465 = vmatprep.subr.bf16.mxu0 %v16320_v31  ;;  %1658 = vmatprep.subr.bf16.mxu1 %v16323_v32  ;;  %v16410_v31 = vld [vmem:[%s24108_s1 + $0x3c4] ss:$16 sps:$4 sm:$0xff]   ;;  %v16413_v32 = vld [vmem:[%s24108_s1 + $0x3cc] ss:$16 sps:$4 sm:$0xff]  }
  0x58   :  { %1466 = vmatpush1.bf16.msra.mxu0 %v16318_v33  ;;  %1659 = vmatpush1.bf16.msra.mxu1 %v16321_v34  ;;  %v16374_v33 = vld [vmem:[%s24109_s0 + $0x30] ss:$8 sps:$4 sm:$0xff]   ;;  %v16375_v34 = vld [vmem:[%s24109_s0 + $0x44] ss:$8 sps:$4 sm:$0xff]  }
  0x59   :  { %1467 = vmatprep.subr.bf16.mxu0 %v16329_v35  ;;  %1660 = vmatprep.subr.bf16.mxu1 %v16332_v36  ;;  %v16408_v35 = vld [vmem:[%s24108_s1 + $0x3c0] ss:$16 sps:$4 sm:$0xff]   ;;  %v16411_v36 = vld [vmem:[%s24108_s1 + $0x3c8] ss:$16 sps:$4 sm:$0xff]  }
  0x5a   :  { %712 = vmatmul.mubr.bf16.gmra.mrb[20].mxu0 %v16266_v37  ;;  %905 = vmatmul.mubr.bf16.gmra.mrb[20].mxu1 %v16266_v37  ;;  %v16419_v37 = vld [vmem:[%s24108_s1 + $0x3e4] ss:$16 sps:$4 sm:$0xff]  }
  0x5b   :  { %12921 = vmatprep.mubr.msk.bf16.mxu0 %vm580_vm0, %v16273_v38  ;;  %12937 = vmatprep.mubr.msk.bf16.mxu1 %vm580_vm0, %v16273_v38  ;;  %v16422_v38 = vld [vmem:[%s24108_s1 + $0x3ec] ss:$16 sps:$4 sm:$0xff]  }
  0x5c   :  { %1468 = vmatpush1.bf16.msra.mxu0 %v16327_v39  ;;  %1661 = vmatpush1.bf16.msra.mxu1 %v16330_v40  ;;  %v16417_v39 = vld [vmem:[%s24108_s1 + $0x3e0] ss:$16 sps:$4 sm:$0xff]   ;;  %v16420_v40 = vld [vmem:[%s24108_s1 + $0x3e8] ss:$16 sps:$4 sm:$0xff]  }
  0x5d   :  { %1469 = vmatprep.subr.bf16.mxu0 %v16338_v41  ;;  %1662 = vmatprep.subr.bf16.mxu1 %v16341_v42  ;;  %v16428_v41 = vld [vmem:[%s24108_s1 + $0x404] ss:$16 sps:$4 sm:$0xff]   ;;  %v16431_v42 = vld [vmem:[%s24108_s1 + $0x40c] ss:$16 sps:$4 sm:$0xff]  }
  0x60   :  { %1470 = vmatpush1.bf16.msra.mxu0 %v16336_v43  ;;  %1663 = vmatpush1.bf16.msra.mxu1 %v16339_v44  ;;  %v16377_v43 = vld [vmem:[%s24109_s0 + $0x40] ss:$8 sps:$4 sm:$0xff]   ;;  %v16384_v44 = vld [vmem:[%s24109_s0 + $0x54] ss:$8 sps:$4 sm:$0xff]  }
  0x61   :  { %2347 = vmatprep.subr.bf16.mxu0 %v16350_v45  ;;  %2540 = vmatprep.subr.bf16.mxu1 %v16353_v46  ;;  %v16426_v45 = vld [vmem:[%s24108_s1 + $0x400] ss:$16 sps:$4 sm:$0xff]   ;;  %v16429_v46 = vld [vmem:[%s24108_s1 + $0x408] ss:$16 sps:$4 sm:$0xff]  }
  0x62   :  { %722 = vmatmul.mubr.bf16.gmra.mrb[24].mxu0 %v16275_v47  ;;  %915 = vmatmul.mubr.bf16.gmra.mrb[24].mxu1 %v16275_v47  ;;  %v16440_v47 = vld [vmem:[%s24108_s1 + $0x424] ss:$16 sps:$4 sm:$0xff]  }
  0x63   :  { %12922 = vmatprep.mubr.msk.bf16.mxu0 %vm580_vm0, %v16282_v48  ;;  %12938 = vmatprep.mubr.msk.bf16.mxu1 %vm580_vm0, %v16282_v48  ;;  %v16443_v48 = vld [vmem:[%s24108_s1 + $0x42c] ss:$16 sps:$4 sm:$0xff]  }
  0x6a   :  { %732 = vmatmul.mubr.bf16.gmra.mrb[28].mxu0 %v16284_v49  ;;  %925 = vmatmul.mubr.bf16.gmra.mrb[28].mxu1 %v16284_v49  ;;  %v16438_v49 = vld [vmem:[%s24108_s1 + $0x420] ss:$16 sps:$4 sm:$0xff]  }
  0x6b   :  { %12923 = vmatprep.mubr.msk.bf16.mxu0 %vm580_vm0, %v16285_v50  ;;  %12939 = vmatprep.mubr.msk.bf16.mxu1 %vm580_vm0, %v16285_v50  ;;  %v16441_v50 = vld [vmem:[%s24108_s1 + $0x428] ss:$16 sps:$4 sm:$0xff]  }
  0x72   :  { %742 = vmatmul.mubr.bf16.gmra.mrb[32].mxu0 %v16287_v51  ;;  %935 = vmatmul.mubr.bf16.gmra.mrb[32].mxu1 %v16287_v51  ;;  %v16449_v51 = vld [vmem:[%s24108_s1 + $0x444] ss:$16 sps:$4 sm:$0xff]  }
  0x73   :  { %12924 = vmatprep.mubr.msk.bf16.mxu0 %vm580_vm0, %v16294_v52  ;;  %12940 = vmatprep.mubr.msk.bf16.mxu1 %vm580_vm0, %v16294_v52  ;;  %v16452_v52 = vld [vmem:[%s24108_s1 + $0x44c] ss:$16 sps:$4 sm:$0xff]  }
  0x7a   :  { %752 = vmatmul.mubr.bf16.gmra.mrb[36].mxu0 %v16296_v53  ;;  %945 = vmatmul.mubr.bf16.gmra.mrb[36].mxu1 %v16296_v53  ;;  %v16386_v53 = vld [vmem:[%s24109_s0 + $0x50] ss:$8 sps:$4 sm:$0xff]  }
  0x7b   :  { %12925 = vmatprep.mubr.msk.bf16.mxu0 %vm580_vm0, %v16303_v54  ;;  %12941 = vmatprep.mubr.msk.bf16.mxu1 %vm580_vm0, %v16303_v54  ;;  %v16393_v54 = vld [vmem:[%s24109_s0 + $0x64] ss:$8 sps:$4 sm:$0xff]  }
  0x82   :  { %762 = vmatmul.mubr.bf16.gmra.mrb[40].mxu0 %v16305_v55  ;;  %955 = vmatmul.mubr.bf16.gmra.mrb[40].mxu1 %v16305_v55  ;;  %v16447_v55 = vld [vmem:[%s24108_s1 + $0x440] ss:$16 sps:$4 sm:$0xff]  }
  0x83   :  { %12926 = vmatprep.mubr.msk.bf16.mxu0 %vm580_vm0, %v16312_v56  ;;  %12942 = vmatprep.mubr.msk.bf16.mxu1 %vm580_vm0, %v16312_v56  ;;  %v16450_v56 = vld [vmem:[%s24108_s1 + $0x448] ss:$16 sps:$4 sm:$0xff]  }
  0x8a   :  { %772 = vmatmul.mubr.bf16.gmra.mrb[44].mxu0 %v16314_v57  ;;  %965 = vmatmul.mubr.bf16.gmra.mrb[44].mxu1 %v16314_v57  ;;  %v16458_v57 = vld [vmem:[%s24108_s1 + $0x464] ss:$16 sps:$4 sm:$0xff]  }
  0x8b   :  { %12927 = vmatprep.mubr.msk.bf16.mxu0 %vm580_vm0, %v16315_v58  ;;  %12943 = vmatprep.mubr.msk.bf16.mxu1 %vm580_vm0, %v16315_v58  ;;  %v16461_v58 = vld [vmem:[%s24108_s1 + $0x46c] ss:$16 sps:$4 sm:$0xff]  }
  0x92   :  { %782 = vmatmul.mubr.bf16.gmra.mrb[48].mxu0 %v16317_v59  ;;  %975 = vmatmul.mubr.bf16.gmra.mrb[48].mxu1 %v16317_v59  ;;  %v16456_v59 = vld [vmem:[%s24108_s1 + $0x460] ss:$16 sps:$4 sm:$0xff]  }
  0x93   :  { %12928 = vmatprep.mubr.msk.bf16.mxu0 %vm580_vm0, %v16324_v60  ;;  %12944 = vmatprep.mubr.msk.bf16.mxu1 %vm580_vm0, %v16324_v60  ;;  %v16459_v60 = vld [vmem:[%s24108_s1 + $0x468] ss:$16 sps:$4 sm:$0xff]  }
  0x9a   :  { %792 = vmatmul.mubr.bf16.gmra.mrb[52].mxu0 %v16326_v61  ;;  %985 = vmatmul.mubr.bf16.gmra.mrb[52].mxu1 %v16326_v61  ;;  %v16470_v61 = vld [vmem:[%s24108_s1 + $0x484] ss:$16 sps:$4 sm:$0xff]  }
  0x9b   :  { %12929 = vmatprep.mubr.msk.bf16.mxu0 %vm580_vm0, %v16333_v62  ;;  %12945 = vmatprep.mubr.msk.bf16.mxu1 %vm580_vm0, %v16333_v62  ;;  %v16473_v62 = vld [vmem:[%s24108_s1 + $0x48c] ss:$16 sps:$4 sm:$0xff]  }
  0xa2   :  { %802 = vmatmul.mubr.bf16.gmra.mrb[56].mxu0 %v16335_v63  ;;  %995 = vmatmul.mubr.bf16.gmra.mrb[56].mxu1 %v16335_v63  ;;  %v16395_v63 = vld [vmem:[%s24109_s0 + $0x60] ss:$8 sps:$4 sm:$0xff]  }
  0xa3   :  { %12930 = vmatprep.mubr.msk.bf16.mxu0 %vm580_vm0, %v16342_v0  ;;  %12946 = vmatprep.mubr.msk.bf16.mxu1 %vm580_vm0, %v16342_v0  ;;  %v16402_v0 = vld [vmem:[%s24109_s0 + $0x74] ss:$8 sps:$4 sm:$0xff]  }
  0xaa   :  { %812 = vmatmul.mubr.bf16.gmra.mrb[60].mxu0 %v16344_v1  ;;  %1005 = vmatmul.mubr.bf16.gmra.mrb[60].mxu1 %v16344_v1  ;;  %v16404_v1 = vld [vmem:[%s24109_s0 + $0x70] ss:$8 sps:$4 sm:$0xff]  }
  0xab   :  { %13027 = vmatprep.mubr.msk.bf16.mxu0 %vm580_vm0, %v16347_v2  ;;  %13043 = vmatprep.mubr.msk.bf16.mxu1 %vm580_vm0, %v16347_v2  ;;  %v16405_v2 = vld [vmem:[%s24109_s0 + $0x84] ss:$8 sps:$4 sm:$0xff]  }
  0xb2   :  { %1480 = vmatmul.mubr.bf16.vlgmr.msra.gmra.mrb[0].mxu0 %v16345_v3  ;;  %1673 = vmatmul.mubr.bf16.vlgmr.msra.gmra.mrb[0].mxu1 %v16345_v3  ;;  %v16407_v3 = vld [vmem:[%s24109_s0 + $0x80] ss:$8 sps:$4 sm:$0xff]  }
  0xb3   :  { %2348 = vmatpush1.bf16.msra.mxu0 %v16348_v4  ;;  %2541 = vmatpush1.bf16.msra.mxu1 %v16351_v5  ;;  %v16414_v4 = vld [vmem:[%s24109_s0 + $0x94] ss:$8 sps:$4 sm:$0xff]   ;;  %v16416_v5 = vld [vmem:[%s24109_s0 + $0x90] ss:$8 sps:$4 sm:$0xff]  }
  0xb4   :  { %13028 = vmatprep.mubr.msk.bf16.mxu0 %vm580_vm0, %v16354_v6  ;;  %13044 = vmatprep.mubr.msk.bf16.mxu1 %vm580_vm0, %v16354_v6  ;;  %v16423_v6 = vld [vmem:[%s24109_s0 + $0xa4] ss:$8 sps:$4 sm:$0xff]  }
  0xb5   :  { %2349 = vmatprep.subr.bf16.mxu0 %v16359_v7  ;;  %2542 = vmatprep.subr.bf16.mxu1 %v16362_v8  ;;  %v16425_v7 = vld [vmem:[%s24109_s0 + $0xa0] ss:$8 sps:$4 sm:$0xff]   ;;  %v16432_v8 = vld [vmem:[%s24109_s0 + $0xb4] ss:$8 sps:$4 sm:$0xff]  }
  0xb7   :  { %2350 = vmatpush1.bf16.msra.mxu0 %v16357_v9  ;;  %2543 = vmatpush1.bf16.msra.mxu1 %v16360_v10  ;;  %v16434_v9 = vld [vmem:[%s24109_s0 + $0xb0] ss:$8 sps:$4 sm:$0xff]   ;;  %v16435_v10 = vld [vmem:[%s24109_s0 + $0xc4] ss:$8 sps:$4 sm:$0xff]  }
  0xb8   :  { %2351 = vmatprep.subr.bf16.mxu0 %v16368_v11  ;;  %2544 = vmatprep.subr.bf16.mxu1 %v16371_v13  ;;  %v16437_v11 = vld [vmem:[%s24109_s0 + $0xc0] ss:$8 sps:$4 sm:$0xff]   ;;  %v16446_v13 = vld [vmem:[%s24109_s0 + $0xd0] ss:$8 sps:$4 sm:$0xff]  }
  0xba   :  { %1490 = vmatmul.mubr.bf16.gmra.mrb[4].mxu0 %v16356_v12  ;;  %1683 = vmatmul.mubr.bf16.gmra.mrb[4].mxu1 %v16356_v12  ;;  %v16444_v12 = vld [vmem:[%s24109_s0 + $0xd4] ss:$8 sps:$4 sm:$0xff]  }
  0xbb   :  { %13029 = vmatprep.mubr.msk.bf16.mxu0 %vm580_vm0, %v16363_v14  ;;  %13045 = vmatprep.mubr.msk.bf16.mxu1 %vm580_vm0, %v16363_v14  ;;  %v16453_v14 = vld [vmem:[%s24109_s0 + $0xe4] ss:$8 sps:$4 sm:$0xff]  }
  0xbc   :  { %2352 = vmatpush1.bf16.msra.mxu0 %v16366_v15  ;;  %2545 = vmatpush1.bf16.msra.mxu1 %v16369_v16  ;;  %v16455_v15 = vld [vmem:[%s24109_s0 + $0xe0] ss:$8 sps:$4 sm:$0xff]   ;;  %v16462_v16 = vld [vmem:[%s24109_s0 + $0xf4] ss:$8 sps:$4 sm:$0xff]  }
  0xbd   :  { %2353 = vmatprep.subr.bf16.mxu0 %v16380_v17  ;;  %2546 = vmatprep.subr.bf16.mxu1 %v16383_v18  ;;  %v16464_v17 = vld [vmem:[%s24109_s0 + $0xf0] ss:$8 sps:$4 sm:$0xff]   ;;  %v16467_v18 = vld [vmem:[%s24109_s0 + $0x224] ss:$8 sps:$4 sm:$0xff]  }
  0xc0   :  { %2354 = vmatpush1.bf16.msra.mxu0 %v16378_v19  ;;  %2547 = vmatpush1.bf16.msra.mxu1 %v16381_v20  ;;  %v16465_v19 = vld [vmem:[%s24109_s0 + $0x220] ss:$8 sps:$4 sm:$0xff]  }
  0xc1   :  { %2355 = vmatprep.subr.bf16.mxu0 %v16389_v21  ;;  %2548 = vmatprep.subr.bf16.mxu1 %v16392_v22  ;;  %v16468_v20 = vld [vmem:[%s24108_s1 + $0x480] ss:$16 sps:$4 sm:$0xff]   ;;  %v16471_v21 = vld [vmem:[%s24108_s1 + $0x488] ss:$16 sps:$4 sm:$0xff]   ;;  %v16474_v22 = vld [vmem:[%s24109_s0 + $0x234] ss:$8 sps:$4 sm:$0xff]  }
  0xc2   :  { %1500 = vmatmul.mubr.bf16.gmra.mrb[8].mxu0 %v16365_v23  ;;  %1693 = vmatmul.mubr.bf16.gmra.mrb[8].mxu1 %v16365_v23  ;;  %v16479_v23 = vld [vmem:[%s24108_s1 + $0x4a4] ss:$16 sps:$4 sm:$0xff]  }
  0xc3   :  { %13030 = vmatprep.mubr.msk.bf16.mxu0 %vm580_vm0, %v16372_v24  ;;  %13046 = vmatprep.mubr.msk.bf16.mxu1 %vm580_vm0, %v16372_v24  ;;  %v16482_v24 = vld [vmem:[%s24108_s1 + $0x4ac] ss:$16 sps:$4 sm:$0xff]  }
  0xc4   :  { %2356 = vmatpush1.bf16.msra.mxu0 %v16387_v25  ;;  %2549 = vmatpush1.bf16.msra.mxu1 %v16390_v26  ;;  %v16477_v25 = vld [vmem:[%s24108_s1 + $0x4a0] ss:$16 sps:$4 sm:$0xff]   ;;  %v16480_v26 = vld [vmem:[%s24108_s1 + $0x4a8] ss:$16 sps:$4 sm:$0xff]  }
  0xc5   :  { %2357 = vmatprep.subr.bf16.mxu0 %v16398_v27  ;;  %2550 = vmatprep.subr.bf16.mxu1 %v16401_v28  ;;  %v16488_v27 = vld [vmem:[%s24108_s1 + $0x4c4] ss:$16 sps:$4 sm:$0xff]   ;;  %v16491_v28 = vld [vmem:[%s24108_s1 + $0x4cc] ss:$16 sps:$4 sm:$0xff]  }
  0xc8   :  { %2358 = vmatpush1.bf16.msra.mxu0 %v16396_v29  ;;  %2551 = vmatpush1.bf16.msra.mxu1 %v16399_v30  ;;  %v16476_v29 = vld [vmem:[%s24109_s0 + $0x230] ss:$8 sps:$4 sm:$0xff]   ;;  %v16483_v30 = vld [vmem:[%s24109_s0 + $0x244] ss:$8 sps:$4 sm:$0xff]  }
  0xc9   :  { %2359 = vmatprep.subr.bf16.mxu0 %v16410_v31  ;;  %2552 = vmatprep.subr.bf16.mxu1 %v16413_v32  ;;  %v16486_v31 = vld [vmem:[%s24108_s1 + $0x4c0] ss:$16 sps:$4 sm:$0xff]   ;;  %v16489_v32 = vld [vmem:[%s24108_s1 + $0x4c8] ss:$16 sps:$4 sm:$0xff]  }
  0xca   :  { %1510 = vmatmul.mubr.bf16.gmra.mrb[12].mxu0 %v16374_v33  ;;  %1703 = vmatmul.mubr.bf16.gmra.mrb[12].mxu1 %v16374_v33  ;;  %v16500_v33 = vld [vmem:[%s24108_s1 + $0x4e4] ss:$16 sps:$4 sm:$0xff]  }
  0xcb   :  { %13031 = vmatprep.mubr.msk.bf16.mxu0 %vm580_vm0, %v16375_v34  ;;  %13047 = vmatprep.mubr.msk.bf16.mxu1 %vm580_vm0, %v16375_v34  ;;  %v16503_v34 = vld [vmem:[%s24108_s1 + $0x4ec] ss:$16 sps:$4 sm:$0xff]  }
  0xcc   :  { %2360 = vmatpush1.bf16.msra.mxu0 %v16408_v35  ;;  %2553 = vmatpush1.bf16.msra.mxu1 %v16411_v36  ;;  %v16498_v35 = vld [vmem:[%s24108_s1 + $0x4e0] ss:$16 sps:$4 sm:$0xff]   ;;  %v16501_v36 = vld [vmem:[%s24108_s1 + $0x4e8] ss:$16 sps:$4 sm:$0xff]  }
  0xcd   :  { %2361 = vmatprep.subr.bf16.mxu0 %v16419_v37  ;;  %2554 = vmatprep.subr.bf16.mxu1 %v16422_v38  ;;  %v16509_v37 = vld [vmem:[%s24108_s1 + $0x504] ss:$16 sps:$4 sm:$0xff]   ;;  %v16512_v38 = vld [vmem:[%s24108_s1 + $0x50c] ss:$16 sps:$4 sm:$0xff]  }
  0xd0   :  { %2362 = vmatpush1.bf16.msra.mxu0 %v16417_v39  ;;  %2555 = vmatpush1.bf16.msra.mxu1 %v16420_v40  ;;  %v16485_v39 = vld [vmem:[%s24109_s0 + $0x240] ss:$8 sps:$4 sm:$0xff]   ;;  %v16492_v40 = vld [vmem:[%s24109_s0 + $0x254] ss:$8 sps:$4 sm:$0xff]  }
  0xd1   :  { %2363 = vmatprep.subr.bf16.mxu0 %v16428_v41  ;;  %2556 = vmatprep.subr.bf16.mxu1 %v16431_v42  ;;  %v16507_v41 = vld [vmem:[%s24108_s1 + $0x500] ss:$16 sps:$4 sm:$0xff]   ;;  %v16510_v42 = vld [vmem:[%s24108_s1 + $0x508] ss:$16 sps:$4 sm:$0xff]  }
  0xd2   :  { %1520 = vmatmul.mubr.bf16.gmra.mrb[16].mxu0 %v16377_v43  ;;  %1713 = vmatmul.mubr.bf16.gmra.mrb[16].mxu1 %v16377_v43  ;;  %v16518_v43 = vld [vmem:[%s24108_s1 + $0x524] ss:$16 sps:$4 sm:$0xff]  }
  0xd3   :  { %13032 = vmatprep.mubr.msk.bf16.mxu0 %vm580_vm0, %v16384_v44  ;;  %13048 = vmatprep.mubr.msk.bf16.mxu1 %vm580_vm0, %v16384_v44  ;;  %v16521_v44 = vld [vmem:[%s24108_s1 + $0x52c] ss:$16 sps:$4 sm:$0xff]  }
  0xd4   :  { %2364 = vmatpush1.bf16.msra.mxu0 %v16426_v45  ;;  %2557 = vmatpush1.bf16.msra.mxu1 %v16429_v46  ;;  %v16516_v45 = vld [vmem:[%s24108_s1 + $0x520] ss:$16 sps:$4 sm:$0xff]   ;;  %v16519_v46 = vld [vmem:[%s24108_s1 + $0x528] ss:$16 sps:$4 sm:$0xff]  }
  0xd5   :  { %2365 = vmatprep.subr.bf16.mxu0 %v16440_v47  ;;  %2558 = vmatprep.subr.bf16.mxu1 %v16443_v48  ;;  %v16530_v47 = vld [vmem:[%s24108_s1 + $0x544] ss:$16 sps:$4 sm:$0xff]   ;;  %v16533_v48 = vld [vmem:[%s24108_s1 + $0x54c] ss:$16 sps:$4 sm:$0xff]  }
  0xd8   :  { %2366 = vmatpush1.bf16.msra.mxu0 %v16438_v49  ;;  %2559 = vmatpush1.bf16.msra.mxu1 %v16441_v50  ;;  %v16494_v49 = vld [vmem:[%s24109_s0 + $0x250] ss:$8 sps:$4 sm:$0xff]   ;;  %v16495_v50 = vld [vmem:[%s24109_s0 + $0x264] ss:$8 sps:$4 sm:$0xff]  }
  0xd9   :  { %2367 = vmatprep.subr.bf16.mxu0 %v16449_v51  ;;  %2560 = vmatprep.subr.bf16.mxu1 %v16452_v52  ;;  %v16528_v51 = vld [vmem:[%s24108_s1 + $0x540] ss:$16 sps:$4 sm:$0xff]   ;;  %v16531_v52 = vld [vmem:[%s24108_s1 + $0x548] ss:$16 sps:$4 sm:$0xff]  }
  0xda   :  { %1530 = vmatmul.mubr.bf16.gmra.mrb[20].mxu0 %v16386_v53  ;;  %1723 = vmatmul.mubr.bf16.gmra.mrb[20].mxu1 %v16386_v53  ;;  %v16539_v53 = vld [vmem:[%s24108_s1 + $0x564] ss:$16 sps:$4 sm:$0xff]  }
  0xdb   :  { %13033 = vmatprep.mubr.msk.bf16.mxu0 %vm580_vm0, %v16393_v54  ;;  %13049 = vmatprep.mubr.msk.bf16.mxu1 %vm580_vm0, %v16393_v54  ;;  %v16542_v54 = vld [vmem:[%s24108_s1 + $0x56c] ss:$16 sps:$4 sm:$0xff]  }
  0xdc   :  { %2368 = vmatpush1.bf16.msra.mxu0 %v16447_v55  ;;  %2561 = vmatpush1.bf16.msra.mxu1 %v16450_v56  ;;  %v16537_v55 = vld [vmem:[%s24108_s1 + $0x560] ss:$16 sps:$4 sm:$0xff]   ;;  %v16540_v56 = vld [vmem:[%s24108_s1 + $0x568] ss:$16 sps:$4 sm:$0xff]  }
  0xdd   :  { %2369 = vmatprep.subr.bf16.mxu0 %v16458_v57  ;;  %2562 = vmatprep.subr.bf16.mxu1 %v16461_v58  ;;  %v16548_v57 = vld [vmem:[%s24108_s1 + $0x584] ss:$16 sps:$4 sm:$0xff]   ;;  %v16551_v58 = vld [vmem:[%s24108_s1 + $0x58c] ss:$16 sps:$4 sm:$0xff]  }
  0xe0   :  { %2370 = vmatpush1.bf16.msra.mxu0 %v16456_v59  ;;  %2563 = vmatpush1.bf16.msra.mxu1 %v16459_v60  ;;  %v16497_v59 = vld [vmem:[%s24109_s0 + $0x260] ss:$8 sps:$4 sm:$0xff]   ;;  %v16504_v60 = vld [vmem:[%s24109_s0 + $0x274] ss:$8 sps:$4 sm:$0xff]  }
  0xe1   :  { %3375 = vmatprep.subr.bf16.mxu0 %v16470_v61  ;;  %3568 = vmatprep.subr.bf16.mxu1 %v16473_v62  ;;  %v16546_v61 = vld [vmem:[%s24108_s1 + $0x580] ss:$16 sps:$4 sm:$0xff]   ;;  %v16549_v62 = vld [vmem:[%s24108_s1 + $0x588] ss:$16 sps:$4 sm:$0xff]  }
  0xe2   :  { %1540 = vmatmul.mubr.bf16.gmra.mrb[24].mxu0 %v16395_v63  ;;  %1733 = vmatmul.mubr.bf16.gmra.mrb[24].mxu1 %v16395_v63  ;;  %v16560_v63 = vld [vmem:[%s24108_s1 + $0x5a4] ss:$16 sps:$4 sm:$0xff]  }
  0xe3   :  { %13034 = vmatprep.mubr.msk.bf16.mxu0 %vm580_vm0, %v16402_v0  ;;  %13050 = vmatprep.mubr.msk.bf16.mxu1 %vm580_vm0, %v16402_v0  ;;  %v16563_v0 = vld [vmem:[%s24108_s1 + $0x5ac] ss:$16 sps:$4 sm:$0xff]  }
  0xea   :  { %1550 = vmatmul.mubr.bf16.gmra.mrb[28].mxu0 %v16404_v1  ;;  %1743 = vmatmul.mubr.bf16.gmra.mrb[28].mxu1 %v16404_v1  ;;  %v16558_v1 = vld [vmem:[%s24108_s1 + $0x5a0] ss:$16 sps:$4 sm:$0xff]  }
  0xeb   :  { %13035 = vmatprep.mubr.msk.bf16.mxu0 %vm580_vm0, %v16405_v2  ;;  %13051 = vmatprep.mubr.msk.bf16.mxu1 %vm580_vm0, %v16405_v2  ;;  %v16561_v2 = vld [vmem:[%s24108_s1 + $0x5a8] ss:$16 sps:$4 sm:$0xff]  }
  0xf2   :  { %1560 = vmatmul.mubr.bf16.gmra.mrb[32].mxu0 %v16407_v3  ;;  %1753 = vmatmul.mubr.bf16.gmra.mrb[32].mxu1 %v16407_v3  ;;  %v16569_v3 = vld [vmem:[%s24108_s1 + $0x5c4] ss:$16 sps:$4 sm:$0xff]  }
  0xf3   :  { %13036 = vmatprep.mubr.msk.bf16.mxu0 %vm580_vm0, %v16414_v4  ;;  %13052 = vmatprep.mubr.msk.bf16.mxu1 %vm580_vm0, %v16414_v4  ;;  %v16572_v4 = vld [vmem:[%s24108_s1 + $0x5cc] ss:$16 sps:$4 sm:$0xff]  }
  0xfa   :  { %1570 = vmatmul.mubr.bf16.gmra.mrb[36].mxu0 %v16416_v5  ;;  %1763 = vmatmul.mubr.bf16.gmra.mrb[36].mxu1 %v16416_v5  ;;  %v16506_v5 = vld [vmem:[%s24109_s0 + $0x270] ss:$8 sps:$4 sm:$0xff]  }
  0xfb   :  { %13037 = vmatprep.mubr.msk.bf16.mxu0 %vm580_vm0, %v16423_v6  ;;  %13053 = vmatprep.mubr.msk.bf16.mxu1 %vm580_vm0, %v16423_v6  ;;  %v16513_v6 = vld [vmem:[%s24109_s0 + $0x284] ss:$8 sps:$4 sm:$0xff]  }
 0x102   :  { %1580 = vmatmul.mubr.bf16.gmra.mrb[40].mxu0 %v16425_v7  ;;  %1773 = vmatmul.mubr.bf16.gmra.mrb[40].mxu1 %v16425_v7  ;;  %v16567_v7 = vld [vmem:[%s24108_s1 + $0x5c0] ss:$16 sps:$4 sm:$0xff]  }
 0x103   :  { %13038 = vmatprep.mubr.msk.bf16.mxu0 %vm580_vm0, %v16432_v8  ;;  %13054 = vmatprep.mubr.msk.bf16.mxu1 %vm580_vm0, %v16432_v8  ;;  %v16570_v8 = vld [vmem:[%s24108_s1 + $0x5c8] ss:$16 sps:$4 sm:$0xff]  }
 0x10a   :  { %1590 = vmatmul.mubr.bf16.gmra.mrb[44].mxu0 %v16434_v9  ;;  %1783 = vmatmul.mubr.bf16.gmra.mrb[44].mxu1 %v16434_v9  ;;  %v16578_v9 = vld [vmem:[%s24108_s1 + $0x5e4] ss:$16 sps:$4 sm:$0xff]  }
 0x10b   :  { %13039 = vmatprep.mubr.msk.bf16.mxu0 %vm580_vm0, %v16435_v10  ;;  %13055 = vmatprep.mubr.msk.bf16.mxu1 %vm580_vm0, %v16435_v10  ;;  %v16581_v10 = vld [vmem:[%s24108_s1 + $0x5ec] ss:$16 sps:$4 sm:$0xff]  }
 0x112   :  { %1600 = vmatmul.mubr.bf16.gmra.mrb[48].mxu0 %v16437_v11  ;;  %1793 = vmatmul.mubr.bf16.gmra.mrb[48].mxu1 %v16437_v11  ;;  %v16576_v11 = vld [vmem:[%s24108_s1 + $0x5e0] ss:$16 sps:$4 sm:$0xff]  }
 0x113   :  { %13040 = vmatprep.mubr.msk.bf16.mxu0 %vm580_vm0, %v16444_v12  ;;  %13056 = vmatprep.mubr.msk.bf16.mxu1 %vm580_vm0, %v16444_v12  ;;  %v16579_v12 = vld [vmem:[%s24108_s1 + $0x5e8] ss:$16 sps:$4 sm:$0xff]  }
 0x11a   :  { %1610 = vmatmul.mubr.bf16.gmra.mrb[52].mxu0 %v16446_v13  ;;  %1803 = vmatmul.mubr.bf16.gmra.mrb[52].mxu1 %v16446_v13  ;;  %v16590_v13 = vld [vmem:[%s24108_s1 + $0x604] ss:$16 sps:$4 sm:$0xff]  }
 0x11b   :  { %13041 = vmatprep.mubr.msk.bf16.mxu0 %vm580_vm0, %v16453_v14  ;;  %13057 = vmatprep.mubr.msk.bf16.mxu1 %vm580_vm0, %v16453_v14  ;;  %v16593_v14 = vld [vmem:[%s24108_s1 + $0x60c] ss:$16 sps:$4 sm:$0xff]  }
 0x122   :  { %1620 = vmatmul.mubr.bf16.gmra.mrb[56].mxu0 %v16455_v15  ;;  %1813 = vmatmul.mubr.bf16.gmra.mrb[56].mxu1 %v16455_v15  ;;  %v16515_v15 = vld [vmem:[%s24109_s0 + $0x280] ss:$8 sps:$4 sm:$0xff]  }
 0x123   :  { %13042 = vmatprep.mubr.msk.bf16.mxu0 %vm580_vm0, %v16462_v16  ;;  %13058 = vmatprep.mubr.msk.bf16.mxu1 %vm580_vm0, %v16462_v16  ;;  %v16522_v16 = vld [vmem:[%s24109_s0 + $0x294] ss:$8 sps:$4 sm:$0xff]  }
 0x12a   :  { %1630 = vmatmul.mubr.bf16.gmra.mrb[60].mxu0 %v16464_v17  ;;  %1823 = vmatmul.mubr.bf16.gmra.mrb[60].mxu1 %v16464_v17  ;;  %v16524_v17 = vld [vmem:[%s24109_s0 + $0x290] ss:$8 sps:$4 sm:$0xff]  }
 0x12b   :  { %13219 = vmatprep.mubr.msk.bf16.mxu0 %vm580_vm0, %v16467_v18  ;;  %13235 = vmatprep.mubr.msk.bf16.mxu1 %vm580_vm0, %v16467_v18  ;;  %v16525_v18 = vld [vmem:[%s24109_s0 + $0x2a4] ss:$8 sps:$4 sm:$0xff]  }
 0x132   :  { %2380 = vmatmul.mubr.bf16.vlgmr.msra.gmra.mrb[0].mxu0 %v16465_v19  ;;  %2573 = vmatmul.mubr.bf16.vlgmr.msra.gmra.mrb[0].mxu1 %v16465_v19  ;;  %v16527_v19 = vld [vmem:[%s24109_s0 + $0x2a0] ss:$8 sps:$4 sm:$0xff]  }
 0x133   :  { %3376 = vmatpush1.bf16.msra.mxu0 %v16468_v20  ;;  %3569 = vmatpush1.bf16.msra.mxu1 %v16471_v21  ;;  %v16534_v20 = vld [vmem:[%s24109_s0 + $0x2b4] ss:$8 sps:$4 sm:$0xff]   ;;  %v16536_v21 = vld [vmem:[%s24109_s0 + $0x2b0] ss:$8 sps:$4 sm:$0xff]  }
 0x134   :  { %13220 = vmatprep.mubr.msk.bf16.mxu0 %vm580_vm0, %v16474_v22  ;;  %13236 = vmatprep.mubr.msk.bf16.mxu1 %vm580_vm0, %v16474_v22  ;;  %v16543_v22 = vld [vmem:[%s24109_s0 + $0x2c4] ss:$8 sps:$4 sm:$0xff]  }
 0x135   :  { %3377 = vmatprep.subr.bf16.mxu0 %v16479_v23  ;;  %3570 = vmatprep.subr.bf16.mxu1 %v16482_v24  ;;  %v16545_v23 = vld [vmem:[%s24109_s0 + $0x2c0] ss:$8 sps:$4 sm:$0xff]   ;;  %v16552_v24 = vld [vmem:[%s24109_s0 + $0x2d4] ss:$8 sps:$4 sm:$0xff]  }
 0x137   :  { %3378 = vmatpush1.bf16.msra.mxu0 %v16477_v25  ;;  %3571 = vmatpush1.bf16.msra.mxu1 %v16480_v26  ;;  %v16554_v25 = vld [vmem:[%s24109_s0 + $0x2d0] ss:$8 sps:$4 sm:$0xff]   ;;  %v16555_v26 = vld [vmem:[%s24109_s0 + $0x2e4] ss:$8 sps:$4 sm:$0xff]  }
 0x138   :  { %3379 = vmatprep.subr.bf16.mxu0 %v16488_v27  ;;  %3572 = vmatprep.subr.bf16.mxu1 %v16491_v28  ;;  %v16557_v27 = vld [vmem:[%s24109_s0 + $0x2e0] ss:$8 sps:$4 sm:$0xff]   ;;  %v16564_v28 = vld [vmem:[%s24109_s0 + $0x2f4] ss:$8 sps:$4 sm:$0xff]  }
 0x13a   :  { %2390 = vmatmul.mubr.bf16.gmra.mrb[4].mxu0 %v16476_v29  ;;  %2583 = vmatmul.mubr.bf16.gmra.mrb[4].mxu1 %v16476_v29  ;;  %v16566_v29 = vld [vmem:[%s24109_s0 + $0x2f0] ss:$8 sps:$4 sm:$0xff]  }
 0x13b   :  { %13221 = vmatprep.mubr.msk.bf16.mxu0 %vm580_vm0, %v16483_v30  ;;  %13237 = vmatprep.mubr.msk.bf16.mxu1 %vm580_vm0, %v16483_v30  ;;  %v16573_v30 = vld [vmem:[%s24109_s0 + $0x304] ss:$8 sps:$4 sm:$0xff]  }
 0x13c   :  { %3380 = vmatpush1.bf16.msra.mxu0 %v16486_v31  ;;  %3573 = vmatpush1.bf16.msra.mxu1 %v16489_v32  ;;  %v16575_v31 = vld [vmem:[%s24109_s0 + $0x300] ss:$8 sps:$4 sm:$0xff]   ;;  %v16582_v32 = vld [vmem:[%s24109_s0 + $0x314] ss:$8 sps:$4 sm:$0xff]  }
 0x13d   :  { %3381 = vmatprep.subr.bf16.mxu0 %v16500_v33  ;;  %3574 = vmatprep.subr.bf16.mxu1 %v16503_v34  ;;  %v16584_v33 = vld [vmem:[%s24109_s0 + $0x310] ss:$8 sps:$4 sm:$0xff]   ;;  %v18973_v34 = vld [vmem:[%s24109_s0 + $0x334] ss:$8 sps:$4 sm:$0xff]  }
 0x140   :  { %3382 = vmatpush1.bf16.msra.mxu0 %v16498_v35  ;;  %3575 = vmatpush1.bf16.msra.mxu1 %v16501_v36  ;;  %v18982_v35 = vld [vmem:[%s24109_s0 + $0x330] ss:$8 sps:$4 sm:$0xff]  }
 0x141   :  { %3383 = vmatprep.subr.bf16.mxu0 %v16509_v37  ;;  %3576 = vmatprep.subr.bf16.mxu1 %v16512_v38  ;;  %v16588_v36 = vld [vmem:[%s24108_s1 + $0x600] ss:$16 sps:$4 sm:$0xff]   ;;  %v16591_v37 = vld [vmem:[%s24108_s1 + $0x608] ss:$16 sps:$4 sm:$0xff]   ;;  %v18993_v38 = vld [vmem:[%s24109_s0 + $0x344] ss:$8 sps:$4 sm:$0xff]  }
 0x142   :  { %2400 = vmatmul.mubr.bf16.gmra.mrb[8].mxu0 %v16485_v39  ;;  %2593 = vmatmul.mubr.bf16.gmra.mrb[8].mxu1 %v16485_v39  ;;  %v16599_v39 = vld [vmem:[%s24108_s1 + $0x624] ss:$16 sps:$4 sm:$0xff]  }
 0x143   :  { %13222 = vmatprep.mubr.msk.bf16.mxu0 %vm580_vm0, %v16492_v40  ;;  %13238 = vmatprep.mubr.msk.bf16.mxu1 %vm580_vm0, %v16492_v40  ;;  %v16602_v40 = vld [vmem:[%s24108_s1 + $0x62c] ss:$16 sps:$4 sm:$0xff]  }
 0x144   :  { %3384 = vmatpush1.bf16.msra.mxu0 %v16507_v41  ;;  %3577 = vmatpush1.bf16.msra.mxu1 %v16510_v42  ;;  %v16597_v41 = vld [vmem:[%s24108_s1 + $0x620] ss:$16 sps:$4 sm:$0xff]   ;;  %v16600_v42 = vld [vmem:[%s24108_s1 + $0x628] ss:$16 sps:$4 sm:$0xff]  }
 0x145   :  { %3385 = vmatprep.subr.bf16.mxu0 %v16518_v43  ;;  %3578 = vmatprep.subr.bf16.mxu1 %v16521_v44  ;;  %v16608_v43 = vld [vmem:[%s24108_s1 + $0x644] ss:$16 sps:$4 sm:$0xff]   ;;  %v16611_v44 = vld [vmem:[%s24108_s1 + $0x64c] ss:$16 sps:$4 sm:$0xff]  }
 0x148   :  { %3386 = vmatpush1.bf16.msra.mxu0 %v16516_v45  ;;  %3579 = vmatpush1.bf16.msra.mxu1 %v16519_v46  ;;  %v19022_v45 = vld [vmem:[%s24109_s0 + $0x340] ss:$8 sps:$4 sm:$0xff]   ;;  %v19027_v46 = vld [vmem:[%s24109_s0 + $0x354] ss:$8 sps:$4 sm:$0xff]  }
 0x149   :  { %3387 = vmatprep.subr.bf16.mxu0 %v16530_v47  ;;  %3580 = vmatprep.subr.bf16.mxu1 %v16533_v48  ;;  %v16606_v47 = vld [vmem:[%s24108_s1 + $0x640] ss:$16 sps:$4 sm:$0xff]   ;;  %v16609_v48 = vld [vmem:[%s24108_s1 + $0x648] ss:$16 sps:$4 sm:$0xff]  }
 0x14a   :  { %2410 = vmatmul.mubr.bf16.gmra.mrb[12].mxu0 %v16494_v49  ;;  %2603 = vmatmul.mubr.bf16.gmra.mrb[12].mxu1 %v16494_v49  ;;  %v16620_v49 = vld [vmem:[%s24108_s1 + $0x664] ss:$16 sps:$4 sm:$0xff]  }
 0x14b   :  { %13223 = vmatprep.mubr.msk.bf16.mxu0 %vm580_vm0, %v16495_v50  ;;  %13239 = vmatprep.mubr.msk.bf16.mxu1 %vm580_vm0, %v16495_v50  ;;  %v16623_v50 = vld [vmem:[%s24108_s1 + $0x66c] ss:$16 sps:$4 sm:$0xff]  }
 0x14c   :  { %3388 = vmatpush1.bf16.msra.mxu0 %v16528_v51  ;;  %3581 = vmatpush1.bf16.msra.mxu1 %v16531_v52  ;;  %v16618_v51 = vld [vmem:[%s24108_s1 + $0x660] ss:$16 sps:$4 sm:$0xff]   ;;  %v16621_v52 = vld [vmem:[%s24108_s1 + $0x668] ss:$16 sps:$4 sm:$0xff]  }
 0x14d   :  { %3389 = vmatprep.subr.bf16.mxu0 %v16539_v53  ;;  %3582 = vmatprep.subr.bf16.mxu1 %v16542_v54  ;;  %v16629_v53 = vld [vmem:[%s24108_s1 + $0x684] ss:$16 sps:$4 sm:$0xff]   ;;  %v16632_v54 = vld [vmem:[%s24108_s1 + $0x68c] ss:$16 sps:$4 sm:$0xff]  }
 0x150   :  { %3390 = vmatpush1.bf16.msra.mxu0 %v16537_v55  ;;  %3583 = vmatpush1.bf16.msra.mxu1 %v16540_v56  ;;  %v19062_v55 = vld [vmem:[%s24109_s0 + $0x350] ss:$8 sps:$4 sm:$0xff]   ;;  %v19067_v56 = vld [vmem:[%s24109_s0 + $0x364] ss:$8 sps:$4 sm:$0xff]  }
 0x151   :  { %3391 = vmatprep.subr.bf16.mxu0 %v16548_v57  ;;  %3584 = vmatprep.subr.bf16.mxu1 %v16551_v58  ;;  %v16627_v57 = vld [vmem:[%s24108_s1 + $0x680] ss:$16 sps:$4 sm:$0xff]   ;;  %v16630_v58 = vld [vmem:[%s24108_s1 + $0x688] ss:$16 sps:$4 sm:$0xff]  }
 0x152   :  { %2420 = vmatmul.mubr.bf16.gmra.mrb[16].mxu0 %v16497_v59  ;;  %2613 = vmatmul.mubr.bf16.gmra.mrb[16].mxu1 %v16497_v59  ;;  %v16638_v59 = vld [vmem:[%s24108_s1 + $0x6a4] ss:$16 sps:$4 sm:$0xff]  }
 0x153   :  { %13224 = vmatprep.mubr.msk.bf16.mxu0 %vm580_vm0, %v16504_v60  ;;  %13240 = vmatprep.mubr.msk.bf16.mxu1 %vm580_vm0, %v16504_v60  ;;  %v16641_v60 = vld [vmem:[%s24108_s1 + $0x6ac] ss:$16 sps:$4 sm:$0xff]  }
 0x154   :  { %3392 = vmatpush1.bf16.msra.mxu0 %v16546_v61  ;;  %3585 = vmatpush1.bf16.msra.mxu1 %v16549_v62  ;;  %v16636_v61 = vld [vmem:[%s24108_s1 + $0x6a0] ss:$16 sps:$4 sm:$0xff]   ;;  %v16639_v62 = vld [vmem:[%s24108_s1 + $0x6a8] ss:$16 sps:$4 sm:$0xff]  }
 0x155   :  { %3393 = vmatprep.subr.bf16.mxu0 %v16560_v63  ;;  %3586 = vmatprep.subr.bf16.mxu1 %v16563_v0  ;;  %v16650_v63 = vld [vmem:[%s24108_s1 + $0x6c4] ss:$16 sps:$4 sm:$0xff]   ;;  %v16653_v0 = vld [vmem:[%s24108_s1 + $0x6cc] ss:$16 sps:$4 sm:$0xff]  }
 0x158   :  { %3394 = vmatpush1.bf16.msra.mxu0 %v16558_v1  ;;  %3587 = vmatpush1.bf16.msra.mxu1 %v16561_v2  ;;  %v19102_v1 = vld [vmem:[%s24109_s0 + $0x360] ss:$8 sps:$4 sm:$0xff]   ;;  %v19107_v2 = vld [vmem:[%s24109_s0 + $0x374] ss:$8 sps:$4 sm:$0xff]  }
 0x159   :  { %3395 = vmatprep.subr.bf16.mxu0 %v16569_v3  ;;  %3588 = vmatprep.subr.bf16.mxu1 %v16572_v4  ;;  %v16648_v3 = vld [vmem:[%s24108_s1 + $0x6c0] ss:$16 sps:$4 sm:$0xff]   ;;  %v16651_v4 = vld [vmem:[%s24108_s1 + $0x6c8] ss:$16 sps:$4 sm:$0xff]  }
 0x15a   :  { %2430 = vmatmul.mubr.bf16.gmra.mrb[20].mxu0 %v16506_v5  ;;  %2623 = vmatmul.mubr.bf16.gmra.mrb[20].mxu1 %v16506_v5  ;;  %v16659_v5 = vld [vmem:[%s24108_s1 + $0x6e4] ss:$16 sps:$4 sm:$0xff]  }
 0x15b   :  { %13225 = vmatprep.mubr.msk.bf16.mxu0 %vm580_vm0, %v16513_v6  ;;  %13241 = vmatprep.mubr.msk.bf16.mxu1 %vm580_vm0, %v16513_v6  ;;  %v16662_v6 = vld [vmem:[%s24108_s1 + $0x6ec] ss:$16 sps:$4 sm:$0xff]  }
 0x15c   :  { %3396 = vmatpush1.bf16.msra.mxu0 %v16567_v7  ;;  %3589 = vmatpush1.bf16.msra.mxu1 %v16570_v8  ;;  %v16657_v7 = vld [vmem:[%s24108_s1 + $0x6e0] ss:$16 sps:$4 sm:$0xff]   ;;  %v16660_v8 = vld [vmem:[%s24108_s1 + $0x6e8] ss:$16 sps:$4 sm:$0xff]  }
 0x15d   :  { %3397 = vmatprep.subr.bf16.mxu0 %v16578_v9  ;;  %3590 = vmatprep.subr.bf16.mxu1 %v16581_v10  ;;  %v16668_v9 = vld [vmem:[%s24108_s1 + $0x704] ss:$16 sps:$4 sm:$0xff]   ;;  %v16671_v10 = vld [vmem:[%s24108_s1 + $0x70c] ss:$16 sps:$4 sm:$0xff]  }
 0x160   :  { %3398 = vmatpush1.bf16.msra.mxu0 %v16576_v11  ;;  %3591 = vmatpush1.bf16.msra.mxu1 %v16579_v12  ;;  %v19142_v11 = vld [vmem:[%s24109_s0 + $0x370] ss:$8 sps:$4 sm:$0xff]   ;;  %v19147_v12 = vld [vmem:[%s24109_s0 + $0x384] ss:$8 sps:$4 sm:$0xff]  }
 0x161   :  { %4402 = vmatprep.subr.bf16.mxu0 %v16590_v13  ;;  %4595 = vmatprep.subr.bf16.mxu1 %v16593_v14  ;;  %v16666_v13 = vld [vmem:[%s24108_s1 + $0x700] ss:$16 sps:$4 sm:$0xff]   ;;  %v16669_v14 = vld [vmem:[%s24108_s1 + $0x708] ss:$16 sps:$4 sm:$0xff]  }
 0x162   :  { %2440 = vmatmul.mubr.bf16.gmra.mrb[24].mxu0 %v16515_v15  ;;  %2633 = vmatmul.mubr.bf16.gmra.mrb[24].mxu1 %v16515_v15  ;;  %v16680_v15 = vld [vmem:[%s24108_s1 + $0x724] ss:$16 sps:$4 sm:$0xff]  }
 0x163   :  { %13226 = vmatprep.mubr.msk.bf16.mxu0 %vm580_vm0, %v16522_v16  ;;  %13242 = vmatprep.mubr.msk.bf16.mxu1 %vm580_vm0, %v16522_v16  ;;  %v16683_v16 = vld [vmem:[%s24108_s1 + $0x72c] ss:$16 sps:$4 sm:$0xff]  }
 0x16a   :  { %2450 = vmatmul.mubr.bf16.gmra.mrb[28].mxu0 %v16524_v17  ;;  %2643 = vmatmul.mubr.bf16.gmra.mrb[28].mxu1 %v16524_v17  ;;  %v16678_v17 = vld [vmem:[%s24108_s1 + $0x720] ss:$16 sps:$4 sm:$0xff]  }
 0x16b   :  { %13227 = vmatprep.mubr.msk.bf16.mxu0 %vm580_vm0, %v16525_v18  ;;  %13243 = vmatprep.mubr.msk.bf16.mxu1 %vm580_vm0, %v16525_v18  ;;  %v16681_v18 = vld [vmem:[%s24108_s1 + $0x728] ss:$16 sps:$4 sm:$0xff]  }
 0x172   :  { %2460 = vmatmul.mubr.bf16.gmra.mrb[32].mxu0 %v16527_v19  ;;  %2653 = vmatmul.mubr.bf16.gmra.mrb[32].mxu1 %v16527_v19  ;;  %v16689_v19 = vld [vmem:[%s24108_s1 + $0x744] ss:$16 sps:$4 sm:$0xff]  }
 0x173   :  { %13228 = vmatprep.mubr.msk.bf16.mxu0 %vm580_vm0, %v16534_v20  ;;  %13244 = vmatprep.mubr.msk.bf16.mxu1 %vm580_vm0, %v16534_v20  ;;  %v16692_v20 = vld [vmem:[%s24108_s1 + $0x74c] ss:$16 sps:$4 sm:$0xff]  }
 0x17a   :  { %2470 = vmatmul.mubr.bf16.gmra.mrb[36].mxu0 %v16536_v21  ;;  %2663 = vmatmul.mubr.bf16.gmra.mrb[36].mxu1 %v16536_v21  ;;  %v19182_v21 = vld [vmem:[%s24109_s0 + $0x380] ss:$8 sps:$4 sm:$0xff]  }
 0x17b   :  { %13229 = vmatprep.mubr.msk.bf16.mxu0 %vm580_vm0, %v16543_v22  ;;  %13245 = vmatprep.mubr.msk.bf16.mxu1 %vm580_vm0, %v16543_v22  ;;  %v19187_v22 = vld [vmem:[%s24109_s0 + $0x394] ss:$8 sps:$4 sm:$0xff]  }
 0x182   :  { %2480 = vmatmul.mubr.bf16.gmra.mrb[40].mxu0 %v16545_v23  ;;  %2673 = vmatmul.mubr.bf16.gmra.mrb[40].mxu1 %v16545_v23  ;;  %v16687_v23 = vld [vmem:[%s24108_s1 + $0x740] ss:$16 sps:$4 sm:$0xff]  }
 0x183   :  { %13230 = vmatprep.mubr.msk.bf16.mxu0 %vm580_vm0, %v16552_v24  ;;  %13246 = vmatprep.mubr.msk.bf16.mxu1 %vm580_vm0, %v16552_v24  ;;  %v16690_v24 = vld [vmem:[%s24108_s1 + $0x748] ss:$16 sps:$4 sm:$0xff]  }
 0x18a   :  { %2490 = vmatmul.mubr.bf16.gmra.mrb[44].mxu0 %v16554_v25  ;;  %2683 = vmatmul.mubr.bf16.gmra.mrb[44].mxu1 %v16554_v25  ;;  %v16698_v25 = vld [vmem:[%s24108_s1 + $0x764] ss:$16 sps:$4 sm:$0xff]  }
 0x18b   :  { %13231 = vmatprep.mubr.msk.bf16.mxu0 %vm580_vm0, %v16555_v26  ;;  %13247 = vmatprep.mubr.msk.bf16.mxu1 %vm580_vm0, %v16555_v26  ;;  %v16701_v26 = vld [vmem:[%s24108_s1 + $0x76c] ss:$16 sps:$4 sm:$0xff]  }
 0x192   :  { %2500 = vmatmul.mubr.bf16.gmra.mrb[48].mxu0 %v16557_v27  ;;  %2693 = vmatmul.mubr.bf16.gmra.mrb[48].mxu1 %v16557_v27  ;;  %v16696_v27 = vld [vmem:[%s24108_s1 + $0x760] ss:$16 sps:$4 sm:$0xff]  }
 0x193   :  { %13232 = vmatprep.mubr.msk.bf16.mxu0 %vm580_vm0, %v16564_v28  ;;  %13248 = vmatprep.mubr.msk.bf16.mxu1 %vm580_vm0, %v16564_v28  ;;  %v16699_v28 = vld [vmem:[%s24108_s1 + $0x768] ss:$16 sps:$4 sm:$0xff]  }
 0x19a   :  { %2510 = vmatmul.mubr.bf16.gmra.mrb[52].mxu0 %v16566_v29  ;;  %2703 = vmatmul.mubr.bf16.gmra.mrb[52].mxu1 %v16566_v29  ;;  %v19216_v29 = vld [vmem:[%s24109_s0 + $0x390] ss:$8 sps:$4 sm:$0xff]  }
 0x19b   :  { %13233 = vmatprep.mubr.msk.bf16.mxu0 %vm580_vm0, %v16573_v30  ;;  %13249 = vmatprep.mubr.msk.bf16.mxu1 %vm580_vm0, %v16573_v30  ;;  %v19221_v30 = vld [vmem:[%s24109_s0 + $0x3a4] ss:$8 sps:$4 sm:$0xff]  }
 0x1a2   :  { %2520 = vmatmul.mubr.bf16.gmra.mrb[56].mxu0 %v16575_v31  ;;  %2713 = vmatmul.mubr.bf16.gmra.mrb[56].mxu1 %v16575_v31  ;;  %v17329_v31 = vld [vmem:[%s24108_s1 + $0x184] ss:$16 sps:$4 sm:$0xff]  }
 0x1a3   :  { %13234 = vmatprep.mubr.msk.bf16.mxu0 %vm580_vm0, %v16582_v32  ;;  %13250 = vmatprep.mubr.msk.bf16.mxu1 %vm580_vm0, %v16582_v32  ;;  %v17330_v32 = vld [vmem:[%s24108_s1 + $0x18c] ss:$16 sps:$4 sm:$0xff]  }
 0x1aa   :  { %2530 = vmatmul.mubr.bf16.gmra.mrb[60].mxu0 %v16584_v33  ;;  %2723 = vmatmul.mubr.bf16.gmra.mrb[60].mxu1 %v16584_v33  ;;  %v19238_v33 = vld [vmem:[%s24109_s0 + $0x3a0] ss:$8 sps:$4 sm:$0xff]  }
 0x1ab   :  { %13411 = vmatprep.mubr.msk.bf16.mxu0 %vm580_vm0, %v18973_v34  ;;  %13427 = vmatprep.mubr.msk.bf16.mxu1 %vm580_vm0, %v18973_v34 }
 0x1b2   :  { %3408 = vmatmul.mubr.bf16.vlgmr.msra.gmra.mrb[0].mxu0 %v18982_v35  ;;  %3601 = vmatmul.mubr.bf16.vlgmr.msra.gmra.mrb[0].mxu1 %v18982_v35 }
 0x1b3   :  { %4403 = vmatpush1.bf16.msra.mxu0 %v16588_v36  ;;  %4596 = vmatpush1.bf16.msra.mxu1 %v16591_v37  ;;  %v19243_v36 = vld [vmem:[%s24109_s0 + $0x3b4] ss:$8 sps:$4 sm:$0xff]   ;;  %v19254_v37 = vld [vmem:[%s24109_s0 + $0x3b0] ss:$8 sps:$4 sm:$0xff]  }
 0x1b4   :  { %13412 = vmatprep.mubr.msk.bf16.mxu0 %vm580_vm0, %v18993_v38  ;;  %13428 = vmatprep.mubr.msk.bf16.mxu1 %vm580_vm0, %v18993_v38 }
 0x1b5   :  { %4404 = vmatprep.subr.bf16.mxu0 %v16599_v39  ;;  %4597 = vmatprep.subr.bf16.mxu1 %v16602_v40  ;;  %v19259_v39 = vld [vmem:[%s24109_s0 + $0x3c4] ss:$8 sps:$4 sm:$0xff]   ;;  %v19270_v40 = vld [vmem:[%s24109_s0 + $0x3c0] ss:$8 sps:$4 sm:$0xff]  }
 0x1b7   :  { %4405 = vmatpush1.bf16.msra.mxu0 %v16597_v41  ;;  %4598 = vmatpush1.bf16.msra.mxu1 %v16600_v42  ;;  %v19275_v41 = vld [vmem:[%s24109_s0 + $0x3d4] ss:$8 sps:$4 sm:$0xff]   ;;  %v19286_v42 = vld [vmem:[%s24109_s0 + $0x3d0] ss:$8 sps:$4 sm:$0xff]  }
 0x1b8   :  { %4406 = vmatprep.subr.bf16.mxu0 %v16608_v43  ;;  %4599 = vmatprep.subr.bf16.mxu1 %v16611_v44  ;;  %v19291_v43 = vld [vmem:[%s24109_s0 + $0x3e4] ss:$8 sps:$4 sm:$0xff]   ;;  %v19302_v44 = vld [vmem:[%s24109_s0 + $0x3e0] ss:$8 sps:$4 sm:$0xff]  }
 0x1ba   :  { %3418 = vmatmul.mubr.bf16.gmra.mrb[4].mxu0 %v19022_v45  ;;  %3611 = vmatmul.mubr.bf16.gmra.mrb[4].mxu1 %v19022_v45 }
 0x1bb   :  { %13413 = vmatprep.mubr.msk.bf16.mxu0 %vm580_vm0, %v19027_v46  ;;  %13429 = vmatprep.mubr.msk.bf16.mxu1 %vm580_vm0, %v19027_v46 }
 0x1bc   :  { %4407 = vmatpush1.bf16.msra.mxu0 %v16606_v47  ;;  %4600 = vmatpush1.bf16.msra.mxu1 %v16609_v48  ;;  %v19307_v47 = vld [vmem:[%s24109_s0 + $0x3f4] ss:$8 sps:$4 sm:$0xff]   ;;  %v19318_v48 = vld [vmem:[%s24109_s0 + $0x3f0] ss:$8 sps:$4 sm:$0xff]  }
 0x1bd   :  { %4408 = vmatprep.subr.bf16.mxu0 %v16620_v49  ;;  %4601 = vmatprep.subr.bf16.mxu1 %v16623_v50  ;;  %v19323_v49 = vld [vmem:[%s24109_s0 + $0x404] ss:$8 sps:$4 sm:$0xff]   ;;  %v19334_v50 = vld [vmem:[%s24109_s0 + $0x400] ss:$8 sps:$4 sm:$0xff]  }
 0x1c0   :  { %4409 = vmatpush1.bf16.msra.mxu0 %v16618_v51  ;;  %4602 = vmatpush1.bf16.msra.mxu1 %v16621_v52  ;;  %v19339_v51 = vld [vmem:[%s24109_s0 + $0x414] ss:$8 sps:$4 sm:$0xff]   ;;  %v19350_v52 = vld [vmem:[%s24109_s0 + $0x410] ss:$8 sps:$4 sm:$0xff]  }
 0x1c1   :  { %4410 = vmatprep.subr.bf16.mxu0 %v16629_v53  ;;  %4603 = vmatprep.subr.bf16.mxu1 %v16632_v54  ;;  %v19355_v53 = vld [vmem:[%s24109_s0 + $0x424] ss:$8 sps:$4 sm:$0xff]   ;;  %v19366_v54 = vld [vmem:[%s24109_s0 + $0x420] ss:$8 sps:$4 sm:$0xff]  }
 0x1c2   :  { %3428 = vmatmul.mubr.bf16.gmra.mrb[8].mxu0 %v19062_v55  ;;  %3621 = vmatmul.mubr.bf16.gmra.mrb[8].mxu1 %v19062_v55 }
 0x1c3   :  { %13414 = vmatprep.mubr.msk.bf16.mxu0 %vm580_vm0, %v19067_v56  ;;  %13430 = vmatprep.mubr.msk.bf16.mxu1 %vm580_vm0, %v19067_v56 }
 0x1c4   :  { %4411 = vmatpush1.bf16.msra.mxu0 %v16627_v57  ;;  %4604 = vmatpush1.bf16.msra.mxu1 %v16630_v58  ;;  %v16707_v57 = vld [vmem:[%s24109_s0 + $0x14] ss:$8 sps:$4 sm:$0xff]   ;;  %v16705_v58 = vld [vmem:[%s24109_s0 + $0x10] ss:$8 sps:$4 sm:$0xff]  }
 0x1c5   :  { %4412 = vmatprep.subr.bf16.mxu0 %v16638_v59  ;;  %4605 = vmatprep.subr.bf16.mxu1 %v16641_v60  ;;  %v16708_v59 = vld [vmem:[%s24109_s0 + $0x24] ss:$8 sps:$4 sm:$0xff]   ;;  %v17331_v60 = vld [vmem:[%s24108_s1 + $0x180] ss:$16 sps:$4 sm:$0xff]  }
 0x1c8   :  { %4413 = vmatpush1.bf16.msra.mxu0 %v16636_v61  ;;  %4606 = vmatpush1.bf16.msra.mxu1 %v16639_v62  ;;  %v17332_v61 = vld [vmem:[%s24108_s1 + $0x188] ss:$16 sps:$4 sm:$0xff]   ;;  %v17333_v62 = vld [vmem:[%s24108_s1 + $0x1a4] ss:$16 sps:$4 sm:$0xff]  }
 0x1c9   :  { %4414 = vmatprep.subr.bf16.mxu0 %v16650_v63  ;;  %4607 = vmatprep.subr.bf16.mxu1 %v16653_v0  ;;  %v17334_v63 = vld [vmem:[%s24108_s1 + $0x1ac] ss:$16 sps:$4 sm:$0xff]   ;;  %v16710_v0 = vld [vmem:[%s24109_s0 + $0x20] ss:$8 sps:$4 sm:$0xff]  }
 0x1ca   :  { %3438 = vmatmul.mubr.bf16.gmra.mrb[12].mxu0 %v19102_v1  ;;  %3631 = vmatmul.mubr.bf16.gmra.mrb[12].mxu1 %v19102_v1 }
 0x1cb   :  { %13415 = vmatprep.mubr.msk.bf16.mxu0 %vm580_vm0, %v19107_v2  ;;  %13431 = vmatprep.mubr.msk.bf16.mxu1 %vm580_vm0, %v19107_v2 }
 0x1cc   :  { %4415 = vmatpush1.bf16.msra.mxu0 %v16648_v3  ;;  %4608 = vmatpush1.bf16.msra.mxu1 %v16651_v4  ;;  %v17335_v3 = vld [vmem:[%s24108_s1 + $0x1a0] ss:$16 sps:$4 sm:$0xff]   ;;  %v17336_v4 = vld [vmem:[%s24108_s1 + $0x1a8] ss:$16 sps:$4 sm:$0xff]  }
 0x1cd   :  { %4416 = vmatprep.subr.bf16.mxu0 %v16659_v5  ;;  %4609 = vmatprep.subr.bf16.mxu1 %v16662_v6  ;;  %v16711_v5 = vld [vmem:[%s24109_s0 + $0x34] ss:$8 sps:$4 sm:$0xff]  }
 0x1ce   :  { %v17337_v6 = vld [vmem:[%s24108_s1 + $0x1c4] ss:$16 sps:$4 sm:$0xff]  }
 0x1d0   :  { %4417 = vmatpush1.bf16.msra.mxu0 %v16657_v7  ;;  %4610 = vmatpush1.bf16.msra.mxu1 %v16660_v8  ;;  %v17338_v7 = vld [vmem:[%s24108_s1 + $0x1cc] ss:$16 sps:$4 sm:$0xff]   ;;  %v17339_v8 = vld [vmem:[%s24108_s1 + $0x1c0] ss:$16 sps:$4 sm:$0xff]  }
 0x1d1   :  { %4418 = vmatprep.subr.bf16.mxu0 %v16668_v9  ;;  %4611 = vmatprep.subr.bf16.mxu1 %v16671_v10  ;;  %v17340_v9 = vld [vmem:[%s24108_s1 + $0x1c8] ss:$16 sps:$4 sm:$0xff]   ;;  %v17341_v10 = vld [vmem:[%s24108_s1 + $0x1e4] ss:$16 sps:$4 sm:$0xff]  }
 0x1d2   :  { %3448 = vmatmul.mubr.bf16.gmra.mrb[16].mxu0 %v19142_v11  ;;  %3641 = vmatmul.mubr.bf16.gmra.mrb[16].mxu1 %v19142_v11 }
 0x1d3   :  { %13416 = vmatprep.mubr.msk.bf16.mxu0 %vm580_vm0, %v19147_v12  ;;  %13432 = vmatprep.mubr.msk.bf16.mxu1 %vm580_vm0, %v19147_v12 }
 0x1d4   :  { %4419 = vmatpush1.bf16.msra.mxu0 %v16666_v13  ;;  %4612 = vmatpush1.bf16.msra.mxu1 %v16669_v14  ;;  %v17342_v13 = vld [vmem:[%s24108_s1 + $0x1ec] ss:$16 sps:$4 sm:$0xff]   ;;  %v16713_v14 = vld [vmem:[%s24109_s0 + $0x30] ss:$8 sps:$4 sm:$0xff]  }
 0x1d5   :  { %4420 = vmatprep.subr.bf16.mxu0 %v16680_v15  ;;  %4613 = vmatprep.subr.bf16.mxu1 %v16683_v16  ;;  %v16714_v15 = vld [vmem:[%s24109_s0 + $0x44] ss:$8 sps:$4 sm:$0xff]   ;;  %v17343_v16 = vld [vmem:[%s24108_s1 + $0x1e0] ss:$16 sps:$4 sm:$0xff]  }
 0x1d8   :  { %4421 = vmatpush1.bf16.msra.mxu0 %v16678_v17  ;;  %4614 = vmatpush1.bf16.msra.mxu1 %v16681_v18  ;;  %v17344_v17 = vld [vmem:[%s24108_s1 + $0x1e8] ss:$16 sps:$4 sm:$0xff]   ;;  %v17345_v18 = vld [vmem:[%s24108_s1 + $0x204] ss:$16 sps:$4 sm:$0xff]  }
 0x1d9   :  { %4422 = vmatprep.subr.bf16.mxu0 %v16689_v19  ;;  %4615 = vmatprep.subr.bf16.mxu1 %v16692_v20  ;;  %v17346_v19 = vld [vmem:[%s24108_s1 + $0x20c] ss:$16 sps:$4 sm:$0xff]   ;;  %v17347_v20 = vld [vmem:[%s24108_s1 + $0x200] ss:$16 sps:$4 sm:$0xff]  }
 0x1da   :  { %3458 = vmatmul.mubr.bf16.gmra.mrb[20].mxu0 %v19182_v21  ;;  %3651 = vmatmul.mubr.bf16.gmra.mrb[20].mxu1 %v19182_v21 }
 0x1db   :  { %13417 = vmatprep.mubr.msk.bf16.mxu0 %vm580_vm0, %v19187_v22  ;;  %13433 = vmatprep.mubr.msk.bf16.mxu1 %vm580_vm0, %v19187_v22 }
 0x1dc   :  { %4423 = vmatpush1.bf16.msra.mxu0 %v16687_v23  ;;  %4616 = vmatpush1.bf16.msra.mxu1 %v16690_v24  ;;  %v17348_v23 = vld [vmem:[%s24108_s1 + $0x208] ss:$16 sps:$4 sm:$0xff]   ;;  %v17349_v24 = vld [vmem:[%s24108_s1 + $0x224] ss:$16 sps:$4 sm:$0xff]  }
 0x1dd   :  { %4424 = vmatprep.subr.bf16.mxu0 %v16698_v25  ;;  %4617 = vmatprep.subr.bf16.mxu1 %v16701_v26  ;;  %v17350_v25 = vld [vmem:[%s24108_s1 + $0x22c] ss:$16 sps:$4 sm:$0xff]   ;;  %v16716_v26 = vld [vmem:[%s24109_s0 + $0x40] ss:$8 sps:$4 sm:$0xff]  }
 0x1e0   :  { %4425 = vmatpush1.bf16.msra.mxu0 %v16696_v27  ;;  %4618 = vmatpush1.bf16.msra.mxu1 %v16699_v28  ;;  %v16717_v27 = vld [vmem:[%s24109_s0 + $0x54] ss:$8 sps:$4 sm:$0xff]   ;;  %v17351_v28 = vld [vmem:[%s24108_s1 + $0x220] ss:$16 sps:$4 sm:$0xff]  }
 0x1e1   :  { %5193 = vmatprep.subr.bf16.mxu0 %v17329_v31  ;;  %5386 = vmatprep.subr.bf16.mxu1 %v17330_v32  ;;  %v17352_v31 = vld [vmem:[%s24108_s1 + $0x228] ss:$16 sps:$4 sm:$0xff]   ;;  %v17353_v32 = vld [vmem:[%s24108_s1 + $0x244] ss:$16 sps:$4 sm:$0xff]  }
 0x1e2   :  { %3468 = vmatmul.mubr.bf16.gmra.mrb[24].mxu0 %v19216_v29  ;;  %3661 = vmatmul.mubr.bf16.gmra.mrb[24].mxu1 %v19216_v29 }
 0x1e3   :  { %13418 = vmatprep.mubr.msk.bf16.mxu0 %vm580_vm0, %v19221_v30  ;;  %13434 = vmatprep.mubr.msk.bf16.mxu1 %vm580_vm0, %v19221_v30 }
 0x1ea   :  { %3478 = vmatmul.mubr.bf16.gmra.mrb[28].mxu0 %v19238_v33  ;;  %3671 = vmatmul.mubr.bf16.gmra.mrb[28].mxu1 %v19238_v33 }
 0x1eb   :  { %13419 = vmatprep.mubr.msk.bf16.mxu0 %vm580_vm0, %v19243_v36  ;;  %13435 = vmatprep.mubr.msk.bf16.mxu1 %vm580_vm0, %v19243_v36 }
 0x1f2   :  { %3488 = vmatmul.mubr.bf16.gmra.mrb[32].mxu0 %v19254_v37  ;;  %3681 = vmatmul.mubr.bf16.gmra.mrb[32].mxu1 %v19254_v37 }
 0x1f3   :  { %13420 = vmatprep.mubr.msk.bf16.mxu0 %vm580_vm0, %v19259_v39  ;;  %13436 = vmatprep.mubr.msk.bf16.mxu1 %vm580_vm0, %v19259_v39 }
 0x1fa   :  { %3498 = vmatmul.mubr.bf16.gmra.mrb[36].mxu0 %v19270_v40  ;;  %3691 = vmatmul.mubr.bf16.gmra.mrb[36].mxu1 %v19270_v40 }
 0x1fb   :  { %13421 = vmatprep.mubr.msk.bf16.mxu0 %vm580_vm0, %v19275_v41  ;;  %13437 = vmatprep.mubr.msk.bf16.mxu1 %vm580_vm0, %v19275_v41 }
 0x202   :  { %3508 = vmatmul.mubr.bf16.gmra.mrb[40].mxu0 %v19286_v42  ;;  %3701 = vmatmul.mubr.bf16.gmra.mrb[40].mxu1 %v19286_v42 }
 0x203   :  { %13422 = vmatprep.mubr.msk.bf16.mxu0 %vm580_vm0, %v19291_v43  ;;  %13438 = vmatprep.mubr.msk.bf16.mxu1 %vm580_vm0, %v19291_v43 }
 0x20a   :  { %3518 = vmatmul.mubr.bf16.gmra.mrb[44].mxu0 %v19302_v44  ;;  %3711 = vmatmul.mubr.bf16.gmra.mrb[44].mxu1 %v19302_v44 }
 0x20b   :  { %13423 = vmatprep.mubr.msk.bf16.mxu0 %vm580_vm0, %v19307_v47  ;;  %13439 = vmatprep.mubr.msk.bf16.mxu1 %vm580_vm0, %v19307_v47 }
 0x212   :  { %3528 = vmatmul.mubr.bf16.gmra.mrb[48].mxu0 %v19318_v48  ;;  %3721 = vmatmul.mubr.bf16.gmra.mrb[48].mxu1 %v19318_v48 }
 0x213   :  { %13424 = vmatprep.mubr.msk.bf16.mxu0 %vm580_vm0, %v19323_v49  ;;  %13440 = vmatprep.mubr.msk.bf16.mxu1 %vm580_vm0, %v19323_v49 }
 0x21a   :  { %3538 = vmatmul.mubr.bf16.gmra.mrb[52].mxu0 %v19334_v50  ;;  %3731 = vmatmul.mubr.bf16.gmra.mrb[52].mxu1 %v19334_v50 }
 0x21b   :  { %13425 = vmatprep.mubr.msk.bf16.mxu0 %vm580_vm0, %v19339_v51  ;;  %13441 = vmatprep.mubr.msk.bf16.mxu1 %vm580_vm0, %v19339_v51 }
 0x222   :  { %3548 = vmatmul.mubr.bf16.gmra.mrb[56].mxu0 %v19350_v52  ;;  %3741 = vmatmul.mubr.bf16.gmra.mrb[56].mxu1 %v19350_v52 }
 0x223   :  { %13426 = vmatprep.mubr.msk.bf16.mxu0 %vm580_vm0, %v19355_v53  ;;  %13442 = vmatprep.mubr.msk.bf16.mxu1 %vm580_vm0, %v19355_v53 }
 0x22a   :  { %3558 = vmatmul.mubr.bf16.gmra.mrb[60].mxu0 %v19366_v54  ;;  %3751 = vmatmul.mubr.bf16.gmra.mrb[60].mxu1 %v19366_v54 }
 0x22b   :  { %13571 = vmatprep.mubr.msk.bf16.mxu0 %vm580_vm0, %v16707_v57  ;;  %13587 = vmatprep.mubr.msk.bf16.mxu1 %vm580_vm0, %v16707_v57  ;;  %v17354_v57 = vld [vmem:[%s24108_s1 + $0x24c] ss:$16 sps:$4 sm:$0xff]  }
 0x232   :  { %4435 = vmatmul.mubr.bf16.vlgmr.msra.gmra.mrb[0].mxu0 %v16705_v58  ;;  %4628 = vmatmul.mubr.bf16.vlgmr.msra.gmra.mrb[0].mxu1 %v16705_v58  ;;  %v17355_v58 = vld [vmem:[%s24108_s1 + $0x240] ss:$16 sps:$4 sm:$0xff]  }
 0x233   :  { %5194 = vmatpush1.bf16.msra.mxu0 %v17331_v60  ;;  %5387 = vmatpush1.bf16.msra.mxu1 %v17332_v61  ;;  %v17357_v60 = vld [vmem:[%s24108_s1 + $0x264] ss:$16 sps:$4 sm:$0xff]   ;;  %v17358_v61 = vld [vmem:[%s24108_s1 + $0x26c] ss:$16 sps:$4 sm:$0xff]  }
 0x234   :  { %13572 = vmatprep.mubr.msk.bf16.mxu0 %vm580_vm0, %v16708_v59  ;;  %13588 = vmatprep.mubr.msk.bf16.mxu1 %vm580_vm0, %v16708_v59  ;;  %v17356_v59 = vld [vmem:[%s24108_s1 + $0x248] ss:$16 sps:$4 sm:$0xff]  }
 0x235   :  { %5195 = vmatprep.subr.bf16.mxu0 %v17333_v62  ;;  %5388 = vmatprep.subr.bf16.mxu1 %v17334_v63  ;;  %v16719_v62 = vld [vmem:[%s24109_s0 + $0x50] ss:$8 sps:$4 sm:$0xff]   ;;  %v16720_v63 = vld [vmem:[%s24109_s0 + $0x64] ss:$8 sps:$4 sm:$0xff]  }
 0x237   :  { %5196 = vmatpush1.bf16.msra.mxu0 %v17335_v3  ;;  %5389 = vmatpush1.bf16.msra.mxu1 %v17336_v4  ;;  %v17360_v3 = vld [vmem:[%s24108_s1 + $0x268] ss:$16 sps:$4 sm:$0xff]   ;;  %v17361_v4 = vld [vmem:[%s24108_s1 + $0x284] ss:$16 sps:$4 sm:$0xff]  }
 0x238   :  { %5197 = vmatprep.subr.bf16.mxu0 %v17337_v6  ;;  %5390 = vmatprep.subr.bf16.mxu1 %v17338_v7  ;;  %v17363_v6 = vld [vmem:[%s24108_s1 + $0x280] ss:$16 sps:$4 sm:$0xff]   ;;  %v17364_v7 = vld [vmem:[%s24108_s1 + $0x288] ss:$16 sps:$4 sm:$0xff]  }
 0x23a   :  { %4445 = vmatmul.mubr.bf16.gmra.mrb[4].mxu0 %v16710_v0  ;;  %4638 = vmatmul.mubr.bf16.gmra.mrb[4].mxu1 %v16710_v0  ;;  %v17359_v0 = vld [vmem:[%s24108_s1 + $0x260] ss:$16 sps:$4 sm:$0xff]  }
 0x23b   :  { %13573 = vmatprep.mubr.msk.bf16.mxu0 %vm580_vm0, %v16711_v5  ;;  %13589 = vmatprep.mubr.msk.bf16.mxu1 %vm580_vm0, %v16711_v5  ;;  %v17362_v5 = vld [vmem:[%s24108_s1 + $0x28c] ss:$16 sps:$4 sm:$0xff]  }
 0x23c   :  { %5198 = vmatpush1.bf16.msra.mxu0 %v17339_v8  ;;  %5391 = vmatpush1.bf16.msra.mxu1 %v17340_v9  ;;  %v17365_v8 = vld [vmem:[%s24108_s1 + $0x2a4] ss:$16 sps:$4 sm:$0xff]   ;;  %v17366_v9 = vld [vmem:[%s24108_s1 + $0x2ac] ss:$16 sps:$4 sm:$0xff]  }
 0x23d   :  { %5199 = vmatprep.subr.bf16.mxu0 %v17341_v10  ;;  %5392 = vmatprep.subr.bf16.mxu1 %v17342_v13  ;;  %v16722_v10 = vld [vmem:[%s24109_s0 + $0x60] ss:$8 sps:$4 sm:$0xff]   ;;  %v16723_v13 = vld [vmem:[%s24109_s0 + $0x74] ss:$8 sps:$4 sm:$0xff]  }
 0x240   :  { %5200 = vmatpush1.bf16.msra.mxu0 %v17343_v16  ;;  %5393 = vmatpush1.bf16.msra.mxu1 %v17344_v17  ;;  %v17369_v16 = vld [vmem:[%s24108_s1 + $0x2c4] ss:$16 sps:$4 sm:$0xff]   ;;  %v17370_v17 = vld [vmem:[%s24108_s1 + $0x2cc] ss:$16 sps:$4 sm:$0xff]  }
 0x241   :  { %5201 = vmatprep.subr.bf16.mxu0 %v17345_v18  ;;  %5394 = vmatprep.subr.bf16.mxu1 %v17346_v19  ;;  %v17371_v18 = vld [vmem:[%s24108_s1 + $0x2c0] ss:$16 sps:$4 sm:$0xff]   ;;  %v17372_v19 = vld [vmem:[%s24108_s1 + $0x2c8] ss:$16 sps:$4 sm:$0xff]  }
 0x242   :  { %4455 = vmatmul.mubr.bf16.gmra.mrb[8].mxu0 %v16713_v14  ;;  %4648 = vmatmul.mubr.bf16.gmra.mrb[8].mxu1 %v16713_v14  ;;  %v17367_v14 = vld [vmem:[%s24108_s1 + $0x2a0] ss:$16 sps:$4 sm:$0xff]  }
 0x243   :  { %13574 = vmatprep.mubr.msk.bf16.mxu0 %vm580_vm0, %v16714_v15  ;;  %13590 = vmatprep.mubr.msk.bf16.mxu1 %vm580_vm0, %v16714_v15  ;;  %v17368_v15 = vld [vmem:[%s24108_s1 + $0x2a8] ss:$16 sps:$4 sm:$0xff]  }
 0x244   :  { %5202 = vmatpush1.bf16.msra.mxu0 %v17347_v20  ;;  %5395 = vmatpush1.bf16.msra.mxu1 %v17348_v23  ;;  %v17373_v20 = vld [vmem:[%s24108_s1 + $0x2e4] ss:$16 sps:$4 sm:$0xff]   ;;  %v17374_v23 = vld [vmem:[%s24108_s1 + $0x2ec] ss:$16 sps:$4 sm:$0xff]  }
 0x245   :  { %5203 = vmatprep.subr.bf16.mxu0 %v17349_v24  ;;  %5396 = vmatprep.subr.bf16.mxu1 %v17350_v25  ;;  %v16725_v24 = vld [vmem:[%s24109_s0 + $0x70] ss:$8 sps:$4 sm:$0xff]   ;;  %v16726_v25 = vld [vmem:[%s24109_s0 + $0x84] ss:$8 sps:$4 sm:$0xff]  }
 0x248   :  { %5204 = vmatpush1.bf16.msra.mxu0 %v17351_v28  ;;  %5397 = vmatpush1.bf16.msra.mxu1 %v17352_v31  ;;  %v17377_v28 = vld [vmem:[%s24108_s1 + $0x4] ss:$16 sps:$4 sm:$0xff]   ;;  %v17378_v31 = vld [vmem:[%s24108_s1 + $0xc] ss:$16 sps:$4 sm:$0xff]  }
 0x249   :  { %5205 = vmatprep.subr.bf16.mxu0 %v17353_v32  ;;  %5398 = vmatprep.subr.bf16.mxu1 %v17354_v57  ;;  %v16728_v32 = vld [vmem:[%s24109_s0 + $0x80] ss:$8 sps:$4 sm:$0xff]   ;;  %v16729_v57 = vld [vmem:[%s24109_s0 + $0x94] ss:$8 sps:$4 sm:$0xff]  }
 0x24a   :  { %4465 = vmatmul.mubr.bf16.gmra.mrb[12].mxu0 %v16716_v26  ;;  %4658 = vmatmul.mubr.bf16.gmra.mrb[12].mxu1 %v16716_v26  ;;  %v17375_v26 = vld [vmem:[%s24108_s1 + $0x2e0] ss:$16 sps:$4 sm:$0xff]  }
 0x24b   :  { %13575 = vmatprep.mubr.msk.bf16.mxu0 %vm580_vm0, %v16717_v27  ;;  %13591 = vmatprep.mubr.msk.bf16.mxu1 %vm580_vm0, %v16717_v27  ;;  %v17376_v27 = vld [vmem:[%s24108_s1 + $0x2e8] ss:$16 sps:$4 sm:$0xff]  }
 0x24c   :  { %5206 = vmatpush1.bf16.msra.mxu0 %v17355_v58  ;;  %5399 = vmatpush1.bf16.msra.mxu1 %v17356_v59  ;;  %v16731_v58 = vld [vmem:[%s24109_s0 + $0x90] ss:$8 sps:$4 sm:$0xff]   ;;  %v16732_v59 = vld [vmem:[%s24109_s0 + $0xa4] ss:$8 sps:$4 sm:$0xff]  }
 0x24d   :  { %5207 = vmatprep.subr.bf16.mxu0 %v17357_v60  ;;  %5400 = vmatprep.subr.bf16.mxu1 %v17358_v61  ;;  %v16734_v60 = vld [vmem:[%s24109_s0 + $0xa0] ss:$8 sps:$4 sm:$0xff]   ;;  %v16735_v61 = vld [vmem:[%s24109_s0 + $0xb4] ss:$8 sps:$4 sm:$0xff]  }
 0x250   :  { %5208 = vmatpush1.bf16.msra.mxu0 %v17359_v0  ;;  %5401 = vmatpush1.bf16.msra.mxu1 %v17360_v3  ;;  %v16740_v0 = vld [vmem:[%s24109_s0 + $0xc0] ss:$8 sps:$4 sm:$0xff]   ;;  %v16741_v3 = vld [vmem:[%s24109_s0 + $0xd4] ss:$8 sps:$4 sm:$0xff]  }
 0x251   :  { %5209 = vmatprep.subr.bf16.mxu0 %v17361_v4  ;;  %5402 = vmatprep.subr.bf16.mxu1 %v17362_v5  ;;  %v16743_v4 = vld [vmem:[%s24109_s0 + $0xd0] ss:$8 sps:$4 sm:$0xff]   ;;  %v16744_v5 = vld [vmem:[%s24109_s0 + $0xe4] ss:$8 sps:$4 sm:$0xff]  }
 0x252   :  { %4475 = vmatmul.mubr.bf16.gmra.mrb[16].mxu0 %v16719_v62  ;;  %4668 = vmatmul.mubr.bf16.gmra.mrb[16].mxu1 %v16719_v62  ;;  %v16737_v62 = vld [vmem:[%s24109_s0 + $0xb0] ss:$8 sps:$4 sm:$0xff]  }
 0x253   :  { %13576 = vmatprep.mubr.msk.bf16.mxu0 %vm580_vm0, %v16720_v63  ;;  %13592 = vmatprep.mubr.msk.bf16.mxu1 %vm580_vm0, %v16720_v63  ;;  %v16738_v63 = vld [vmem:[%s24109_s0 + $0xc4] ss:$8 sps:$4 sm:$0xff]  }
 0x254   :  { %5210 = vmatpush1.bf16.msra.mxu0 %v17363_v6  ;;  %5403 = vmatpush1.bf16.msra.mxu1 %v17364_v7  ;;  %v16746_v6 = vld [vmem:[%s24109_s0 + $0xe0] ss:$8 sps:$4 sm:$0xff]   ;;  %v16747_v7 = vld [vmem:[%s24109_s0 + $0xf4] ss:$8 sps:$4 sm:$0xff]  }
 0x255   :  { %5211 = vmatprep.subr.bf16.mxu0 %v17365_v8  ;;  %5404 = vmatprep.subr.bf16.mxu1 %v17366_v9  ;;  %v16749_v8 = vld [vmem:[%s24109_s0 + $0xf0] ss:$8 sps:$4 sm:$0xff]   ;;  %v16750_v9 = vld [vmem:[%s24109_s0 + $0x104] ss:$8 sps:$4 sm:$0xff]  }
 0x258   :  { %5212 = vmatpush1.bf16.msra.mxu0 %v17367_v14  ;;  %5405 = vmatpush1.bf16.msra.mxu1 %v17368_v15  ;;  %v17380_v14 = vld [vmem:[%s24108_s1 + $0x8] ss:$16 sps:$4 sm:$0xff]   ;;  %v17383_v15 = vld [vmem:[%s24108_s1 + $0x20] ss:$16 sps:$4 sm:$0xff]  }
 0x259   :  { %5213 = vmatprep.subr.bf16.mxu0 %v17369_v16  ;;  %5406 = vmatprep.subr.bf16.mxu1 %v17370_v17  ;;  %v17384_v16 = vld [vmem:[%s24108_s1 + $0x28] ss:$16 sps:$4 sm:$0xff]   ;;  %v17386_v17 = vld [vmem:[%s24108_s1 + $0x4c] ss:$16 sps:$4 sm:$0xff]  }
 0x25a   :  { %4485 = vmatmul.mubr.bf16.gmra.mrb[20].mxu0 %v16722_v10  ;;  %4678 = vmatmul.mubr.bf16.gmra.mrb[20].mxu1 %v16722_v10  ;;  %v16752_v10 = vld [vmem:[%s24109_s0 + $0x100] ss:$8 sps:$4 sm:$0xff]  }
 0x25b   :  { %13577 = vmatprep.mubr.msk.bf16.mxu0 %vm580_vm0, %v16723_v13  ;;  %13593 = vmatprep.mubr.msk.bf16.mxu1 %vm580_vm0, %v16723_v13  ;;  %v17379_v13 = vld [vmem:[%s24108_s1] ss:$16 sps:$4 sm:$0xff]  }
 0x25c   :  { %5214 = vmatpush1.bf16.msra.mxu0 %v17371_v18  ;;  %5407 = vmatpush1.bf16.msra.mxu1 %v17372_v19  ;;  %v17387_v18 = vld [vmem:[%s24108_s1 + $0x40] ss:$16 sps:$4 sm:$0xff]   ;;  %v17388_v19 = vld [vmem:[%s24108_s1 + $0x48] ss:$16 sps:$4 sm:$0xff]  }
 0x25d   :  { %5215 = vmatprep.subr.bf16.mxu0 %v17373_v20  ;;  %5408 = vmatprep.subr.bf16.mxu1 %v17374_v23  ;;  %v17390_v20 = vld [vmem:[%s24108_s1 + $0x6c] ss:$16 sps:$4 sm:$0xff]   ;;  %v17392_v23 = vld [vmem:[%s24108_s1 + $0x68] ss:$16 sps:$4 sm:$0xff]  }
 0x260   :  { %5216 = vmatpush1.bf16.msra.mxu0 %v17375_v26  ;;  %5409 = vmatpush1.bf16.msra.mxu1 %v17376_v27  ;;  %v17395_v26 = vld [vmem:[%s24108_s1 + $0x80] ss:$16 sps:$4 sm:$0xff]   ;;  %v17396_v27 = vld [vmem:[%s24108_s1 + $0x88] ss:$16 sps:$4 sm:$0xff]  }
 0x261   :  { %5579 = vmatprep.subr.bf16.mxu0 %v17377_v28  ;;  %5772 = vmatprep.subr.bf16.mxu1 %v17378_v31  ;;  %v17398_v28 = vld [vmem:[%s24108_s1 + $0xac] ss:$16 sps:$4 sm:$0xff]   ;;  %v17400_v31 = vld [vmem:[%s24108_s1 + $0xa8] ss:$16 sps:$4 sm:$0xff]  }
 0x262   :  { %4495 = vmatmul.mubr.bf16.gmra.mrb[24].mxu0 %v16725_v24  ;;  %4688 = vmatmul.mubr.bf16.gmra.mrb[24].mxu1 %v16725_v24  ;;  %v17393_v24 = vld [vmem:[%s24108_s1 + $0x84] ss:$16 sps:$4 sm:$0xff]  }
 0x263   :  { %13578 = vmatprep.mubr.msk.bf16.mxu0 %vm580_vm0, %v16726_v25  ;;  %13594 = vmatprep.mubr.msk.bf16.mxu1 %vm580_vm0, %v16726_v25  ;;  %v17394_v25 = vld [vmem:[%s24108_s1 + $0x8c] ss:$16 sps:$4 sm:$0xff]  }
 0x26a   :  { %4505 = vmatmul.mubr.bf16.gmra.mrb[28].mxu0 %v16728_v32  ;;  %4698 = vmatmul.mubr.bf16.gmra.mrb[28].mxu1 %v16728_v32  ;;  %v17401_v32 = vld [vmem:[%s24108_s1 + $0xc4] ss:$16 sps:$4 sm:$0xff]  }
 0x26b   :  { %13579 = vmatprep.mubr.msk.bf16.mxu0 %vm580_vm0, %v16729_v57  ;;  %13595 = vmatprep.mubr.msk.bf16.mxu1 %vm580_vm0, %v16729_v57  ;;  %v17402_v57 = vld [vmem:[%s24108_s1 + $0xcc] ss:$16 sps:$4 sm:$0xff]  }
 0x272   :  { %4515 = vmatmul.mubr.bf16.gmra.mrb[32].mxu0 %v16731_v58  ;;  %4708 = vmatmul.mubr.bf16.gmra.mrb[32].mxu1 %v16731_v58  ;;  %v17403_v58 = vld [vmem:[%s24108_s1 + $0xc0] ss:$16 sps:$4 sm:$0xff]  }
 0x273   :  { %13580 = vmatprep.mubr.msk.bf16.mxu0 %vm580_vm0, %v16732_v59  ;;  %13596 = vmatprep.mubr.msk.bf16.mxu1 %vm580_vm0, %v16732_v59  ;;  %v17404_v59 = vld [vmem:[%s24108_s1 + $0xc8] ss:$16 sps:$4 sm:$0xff]  }
 0x27a   :  { %4525 = vmatmul.mubr.bf16.gmra.mrb[36].mxu0 %v16734_v60  ;;  %4718 = vmatmul.mubr.bf16.gmra.mrb[36].mxu1 %v16734_v60  ;;  %v17406_v60 = vld [vmem:[%s24108_s1 + $0xec] ss:$16 sps:$4 sm:$0xff]  }
 0x27b   :  { %13581 = vmatprep.mubr.msk.bf16.mxu0 %vm580_vm0, %v16735_v61  ;;  %13597 = vmatprep.mubr.msk.bf16.mxu1 %vm580_vm0, %v16735_v61  ;;  %v17408_v61 = vld [vmem:[%s24108_s1 + $0xe8] ss:$16 sps:$4 sm:$0xff]  }
 0x282   :  { %4535 = vmatmul.mubr.bf16.gmra.mrb[40].mxu0 %v16737_v62  ;;  %4728 = vmatmul.mubr.bf16.gmra.mrb[40].mxu1 %v16737_v62  ;;  %v17409_v62 = vld [vmem:[%s24108_s1 + $0x104] ss:$16 sps:$4 sm:$0xff]  }
 0x283   :  { %13582 = vmatprep.mubr.msk.bf16.mxu0 %vm580_vm0, %v16738_v63  ;;  %13598 = vmatprep.mubr.msk.bf16.mxu1 %vm580_vm0, %v16738_v63  ;;  %v17410_v63 = vld [vmem:[%s24108_s1 + $0x10c] ss:$16 sps:$4 sm:$0xff]  }
 0x28a   :  { %4545 = vmatmul.mubr.bf16.gmra.mrb[44].mxu0 %v16740_v0  ;;  %4738 = vmatmul.mubr.bf16.gmra.mrb[44].mxu1 %v16740_v0  ;;  %v17411_v0 = vld [vmem:[%s24108_s1 + $0x100] ss:$16 sps:$4 sm:$0xff]  }
 0x28b   :  { %13583 = vmatprep.mubr.msk.bf16.mxu0 %vm580_vm0, %v16741_v3  ;;  %13599 = vmatprep.mubr.msk.bf16.mxu1 %vm580_vm0, %v16741_v3  ;;  %v17412_v3 = vld [vmem:[%s24108_s1 + $0x108] ss:$16 sps:$4 sm:$0xff]  }
 0x292   :  { %4555 = vmatmul.mubr.bf16.gmra.mrb[48].mxu0 %v16743_v4  ;;  %4748 = vmatmul.mubr.bf16.gmra.mrb[48].mxu1 %v16743_v4  ;;  %v17414_v4 = vld [vmem:[%s24108_s1 + $0x12c] ss:$16 sps:$4 sm:$0xff]  }
 0x293   :  { %13584 = vmatprep.mubr.msk.bf16.mxu0 %vm580_vm0, %v16744_v5  ;;  %13600 = vmatprep.mubr.msk.bf16.mxu1 %vm580_vm0, %v16744_v5  ;;  %v17416_v5 = vld [vmem:[%s24108_s1 + $0x128] ss:$16 sps:$4 sm:$0xff]  }
 0x29a   :  { %4565 = vmatmul.mubr.bf16.gmra.mrb[52].mxu0 %v16746_v6  ;;  %4758 = vmatmul.mubr.bf16.gmra.mrb[52].mxu1 %v16746_v6  ;;  %v17417_v6 = vld [vmem:[%s24108_s1 + $0x144] ss:$16 sps:$4 sm:$0xff]  }
 0x29b   :  { %13585 = vmatprep.mubr.msk.bf16.mxu0 %vm580_vm0, %v16747_v7  ;;  %13601 = vmatprep.mubr.msk.bf16.mxu1 %vm580_vm0, %v16747_v7  ;;  %v17418_v7 = vld [vmem:[%s24108_s1 + $0x14c] ss:$16 sps:$4 sm:$0xff]  }
 0x2a2   :  { %4575 = vmatmul.mubr.bf16.gmra.mrb[56].mxu0 %v16749_v8  ;;  %4768 = vmatmul.mubr.bf16.gmra.mrb[56].mxu1 %v16749_v8  ;;  %v17419_v8 = vld [vmem:[%s24108_s1 + $0x140] ss:$16 sps:$4 sm:$0xff]  }
 0x2a3   :  { %13586 = vmatprep.mubr.msk.bf16.mxu0 %vm580_vm0, %v16750_v9  ;;  %13602 = vmatprep.mubr.msk.bf16.mxu1 %vm580_vm0, %v16750_v9  ;;  %v17420_v9 = vld [vmem:[%s24108_s1 + $0x148] ss:$16 sps:$4 sm:$0xff]  }
 0x2aa   :  { %4585 = vmatmul.mubr.bf16.gmra.mrb[60].mxu0 %v16752_v10  ;;  %4778 = vmatmul.mubr.bf16.gmra.mrb[60].mxu1 %v16752_v10  ;;  %v17422_v10 = vld [vmem:[%s24108_s1 + $0x16c] ss:$16 sps:$4 sm:$0xff]  }
 0x2ab   :  { %13603 = vmatprep.mubr.msk.bf16.mxu0 %vm580_vm0, %v18973_v34  ;;  %13619 = vmatprep.mubr.msk.bf16.mxu1 %vm580_vm0, %v18973_v34  ;;  %v17381_v34 = vld [vmem:[%s24108_s1 + $0x24] ss:$16 sps:$4 sm:$0xff]  }
 0x2b2   :  { %5226 = vmatmul.mubr.bf16.vlgmr.msra.gmra.mrb[64].mxu0 %v18982_v35  ;;  %5419 = vmatmul.mubr.bf16.vlgmr.msra.gmra.mrb[64].mxu1 %v18982_v35  ;;  %v17382_v35 = vld [vmem:[%s24108_s1 + $0x2c] ss:$16 sps:$4 sm:$0xff]  }
 0x2b3   :  { %5580 = vmatpush1.bf16.msra.mxu0 %v17379_v13  ;;  %5773 = vmatpush1.bf16.msra.mxu1 %v17380_v14  ;;  %v17424_v13 = vld [vmem:[%s24108_s1 + $0x168] ss:$16 sps:$4 sm:$0xff]   ;;  %v17425_v14 = vld [vmem:[%s24108_s1 + $0x304] ss:$16 sps:$4 sm:$0xff]  }
 0x2b4   :  { %13604 = vmatprep.mubr.msk.bf16.mxu0 %vm580_vm0, %v18993_v38  ;;  %13620 = vmatprep.mubr.msk.bf16.mxu1 %vm580_vm0, %v18993_v38  ;;  %v17385_v38 = vld [vmem:[%s24108_s1 + $0x44] ss:$16 sps:$4 sm:$0xff]  }
 0x2b5   :  { %5581 = vmatprep.subr.bf16.mxu0 %v17381_v34  ;;  %5774 = vmatprep.subr.bf16.mxu1 %v17382_v35  ;;  %v17426_v34 = vld [vmem:[%s24108_s1 + $0x30c] ss:$16 sps:$4 sm:$0xff]  }
 0x2b7   :  { %5582 = vmatpush1.bf16.msra.mxu0 %v17383_v15  ;;  %5775 = vmatpush1.bf16.msra.mxu1 %v17384_v16 }
 0x2b8   :  { %5583 = vmatprep.subr.bf16.mxu0 %v17385_v38  ;;  %5776 = vmatprep.subr.bf16.mxu1 %v17386_v17 }
 0x2ba   :  { %5236 = vmatmul.mubr.bf16.gmra.mrb[68].mxu0 %v19022_v45  ;;  %5429 = vmatmul.mubr.bf16.gmra.mrb[68].mxu1 %v19022_v45  ;;  %v17389_v45 = vld [vmem:[%s24108_s1 + $0x64] ss:$16 sps:$4 sm:$0xff]  }
 0x2bb   :  { %13605 = vmatprep.mubr.msk.bf16.mxu0 %vm580_vm0, %v19027_v46  ;;  %13621 = vmatprep.mubr.msk.bf16.mxu1 %vm580_vm0, %v19027_v46  ;;  %v17391_v46 = vld [vmem:[%s24108_s1 + $0x60] ss:$16 sps:$4 sm:$0xff]  }
 0x2bc   :  { %5584 = vmatpush1.bf16.msra.mxu0 %v17387_v18  ;;  %5777 = vmatpush1.bf16.msra.mxu1 %v17388_v19 }
 0x2bd   :  { %5585 = vmatprep.subr.bf16.mxu0 %v17389_v45  ;;  %5778 = vmatprep.subr.bf16.mxu1 %v17390_v20 }
 0x2c0   :  { %5586 = vmatpush1.bf16.msra.mxu0 %v17391_v46  ;;  %5779 = vmatpush1.bf16.msra.mxu1 %v17392_v23 }
 0x2c1   :  { %5587 = vmatprep.subr.bf16.mxu0 %v17393_v24  ;;  %5780 = vmatprep.subr.bf16.mxu1 %v17394_v25 }
 0x2c2   :  { %5246 = vmatmul.mubr.bf16.gmra.mrb[72].mxu0 %v19062_v55  ;;  %5439 = vmatmul.mubr.bf16.gmra.mrb[72].mxu1 %v19062_v55  ;;  %v17397_v55 = vld [vmem:[%s24108_s1 + $0xa4] ss:$16 sps:$4 sm:$0xff]  }
 0x2c3   :  { %13606 = vmatprep.mubr.msk.bf16.mxu0 %vm580_vm0, %v19067_v56  ;;  %13622 = vmatprep.mubr.msk.bf16.mxu1 %vm580_vm0, %v19067_v56  ;;  %v17399_v56 = vld [vmem:[%s24108_s1 + $0xa0] ss:$16 sps:$4 sm:$0xff]  }
 0x2c4   :  { %5588 = vmatpush1.bf16.msra.mxu0 %v17395_v26  ;;  %5781 = vmatpush1.bf16.msra.mxu1 %v17396_v27 }
 0x2c5   :  { %5589 = vmatprep.subr.bf16.mxu0 %v17397_v55  ;;  %5782 = vmatprep.subr.bf16.mxu1 %v17398_v28 }
 0x2c8   :  { %5590 = vmatpush1.bf16.msra.mxu0 %v17399_v56  ;;  %5783 = vmatpush1.bf16.msra.mxu1 %v17400_v31 }
 0x2c9   :  { %5591 = vmatprep.subr.bf16.mxu0 %v17401_v32  ;;  %5784 = vmatprep.subr.bf16.mxu1 %v17402_v57 }
 0x2ca   :  { %5256 = vmatmul.mubr.bf16.gmra.mrb[76].mxu0 %v19102_v1  ;;  %5449 = vmatmul.mubr.bf16.gmra.mrb[76].mxu1 %v19102_v1  ;;  %v17405_v1 = vld [vmem:[%s24108_s1 + $0xe4] ss:$16 sps:$4 sm:$0xff]  }
 0x2cb   :  { %13607 = vmatprep.mubr.msk.bf16.mxu0 %vm580_vm0, %v19107_v2  ;;  %13623 = vmatprep.mubr.msk.bf16.mxu1 %vm580_vm0, %v19107_v2  ;;  %v17407_v2 = vld [vmem:[%s24108_s1 + $0xe0] ss:$16 sps:$4 sm:$0xff]  }
 0x2cc   :  { %5592 = vmatpush1.bf16.msra.mxu0 %v17403_v58  ;;  %5785 = vmatpush1.bf16.msra.mxu1 %v17404_v59 }
 0x2cd   :  { %5593 = vmatprep.subr.bf16.mxu0 %v17405_v1  ;;  %5786 = vmatprep.subr.bf16.mxu1 %v17406_v60 }
 0x2d0   :  { %5594 = vmatpush1.bf16.msra.mxu0 %v17407_v2  ;;  %5787 = vmatpush1.bf16.msra.mxu1 %v17408_v61 }
 0x2d1   :  { %5595 = vmatprep.subr.bf16.mxu0 %v17409_v62  ;;  %5788 = vmatprep.subr.bf16.mxu1 %v17410_v63 }
 0x2d2   :  { %5266 = vmatmul.mubr.bf16.gmra.mrb[80].mxu0 %v19142_v11  ;;  %5459 = vmatmul.mubr.bf16.gmra.mrb[80].mxu1 %v19142_v11  ;;  %v17413_v11 = vld [vmem:[%s24108_s1 + $0x124] ss:$16 sps:$4 sm:$0xff]  }
 0x2d3   :  { %13608 = vmatprep.mubr.msk.bf16.mxu0 %vm580_vm0, %v19147_v12  ;;  %13624 = vmatprep.mubr.msk.bf16.mxu1 %vm580_vm0, %v19147_v12  ;;  %v17415_v12 = vld [vmem:[%s24108_s1 + $0x120] ss:$16 sps:$4 sm:$0xff]  }
 0x2d4   :  { %5596 = vmatpush1.bf16.msra.mxu0 %v17411_v0  ;;  %5789 = vmatpush1.bf16.msra.mxu1 %v17412_v3 }
 0x2d5   :  { %5597 = vmatprep.subr.bf16.mxu0 %v17413_v11  ;;  %5790 = vmatprep.subr.bf16.mxu1 %v17414_v4 }
 0x2d8   :  { %5598 = vmatpush1.bf16.msra.mxu0 %v17415_v12  ;;  %5791 = vmatpush1.bf16.msra.mxu1 %v17416_v5 }
 0x2d9   :  { %5599 = vmatprep.subr.bf16.mxu0 %v17417_v6  ;;  %5792 = vmatprep.subr.bf16.mxu1 %v17418_v7 }
 0x2da   :  { %5276 = vmatmul.mubr.bf16.gmra.mrb[84].mxu0 %v19182_v21  ;;  %5469 = vmatmul.mubr.bf16.gmra.mrb[84].mxu1 %v19182_v21  ;;  %v17421_v21 = vld [vmem:[%s24108_s1 + $0x164] ss:$16 sps:$4 sm:$0xff]  }
 0x2db   :  { %13609 = vmatprep.mubr.msk.bf16.mxu0 %vm580_vm0, %v19187_v22  ;;  %13625 = vmatprep.mubr.msk.bf16.mxu1 %vm580_vm0, %v19187_v22  ;;  %v17423_v22 = vld [vmem:[%s24108_s1 + $0x160] ss:$16 sps:$4 sm:$0xff]  }
 0x2dc   :  { %5600 = vmatpush1.bf16.msra.mxu0 %v17419_v8  ;;  %5793 = vmatpush1.bf16.msra.mxu1 %v17420_v9 }
 0x2dd   :  { %5601 = vmatprep.subr.bf16.mxu0 %v17421_v21  ;;  %5794 = vmatprep.subr.bf16.mxu1 %v17422_v10 }
 0x2e0   :  { %5602 = vmatpush1.bf16.msra.mxu0 %v17423_v22  ;;  %5795 = vmatpush1.bf16.msra.mxu1 %v17424_v13 }
 0x2e1   :  { %5965 = vmatprep.subr.bf16.mxu0 %v17425_v14  ;;  %6158 = vmatprep.subr.bf16.mxu1 %v17426_v34 }
 0x2e2   :  { %5286 = vmatmul.mubr.bf16.gmra.mrb[88].mxu0 %v19216_v29  ;;  %5479 = vmatmul.mubr.bf16.gmra.mrb[88].mxu1 %v19216_v29  ;;  %v4917_v29 = vlaneseq }
 0x2e3   :  { %13610 = vmatprep.mubr.msk.bf16.mxu0 %vm580_vm0, %v19221_v30  ;;  %13626 = vmatprep.mubr.msk.bf16.mxu1 %vm580_vm0, %v19221_v30 }
 0x2e4   :  { %v19846_v30 = vshrl.u32 %v4917_v29, 7 }
 0x2e6   :  { %24126 = vst [vmem:[#allocation2_spill] sm:$0xff] %v19846_v30 }
 0x2ea   :  { %5296 = vmatmul.mubr.bf16.gmra.mrb[92].mxu0 %v19238_v33  ;;  %5489 = vmatmul.mubr.bf16.gmra.mrb[92].mxu1 %v19238_v33  ;;  %v24121_v33 = vsub.s32 0, %v19846_v30 }
 0x2eb   :  { %13611 = vmatprep.mubr.msk.bf16.mxu0 %vm580_vm0, %v19243_v36  ;;  %13627 = vmatprep.mubr.msk.bf16.mxu1 %vm580_vm0, %v19243_v36  ;;  %v24120_v36 = vsub.s32 2, %v19846_v30 }
 0x2f2   :  { %5306 = vmatmul.mubr.bf16.gmra.mrb[96].mxu0 %v19254_v37  ;;  %5499 = vmatmul.mubr.bf16.gmra.mrb[96].mxu1 %v19254_v37  ;;  %v33_v37 = vld [vmem:[%s24110_s4] sm:$0xf] }
 0x2f3   :  { %13612 = vmatprep.mubr.msk.bf16.mxu0 %vm580_vm0, %v19259_v39  ;;  %13628 = vmatprep.mubr.msk.bf16.mxu1 %vm580_vm0, %v19259_v39  ;;  %v24119_v39 = vsub.s32 1, %v19846_v30  ;;  %v19863_v35 = vrot.slane %v33_v37, %v24121_v33 }
 0x2f5   :  { %v19871_v15 = vrot.slane %v33_v37, %v24119_v39 }
 0x2fa   :  { %5316 = vmatmul.mubr.bf16.gmra.mrb[100].mxu0 %v19270_v40  ;;  %5509 = vmatmul.mubr.bf16.gmra.mrb[100].mxu1 %v19270_v40  ;;  %v24118_v40 = vsub.s32 3, %v19846_v30 }
 0x2fb   :  { %13613 = vmatprep.mubr.msk.bf16.mxu0 %vm580_vm0, %v19275_v41  ;;  %13629 = vmatprep.mubr.msk.bf16.mxu1 %vm580_vm0, %v19275_v41  ;;  %v19867_v41 = vrot.slane %v33_v37, %v24120_v36 }
 0x2fc   :  { %v19875_v16 = vrot.slane %v33_v37, %v24118_v40 }
 0x302   :  { %5326 = vmatmul.mubr.bf16.gmra.mrb[104].mxu0 %v19286_v42  ;;  %5519 = vmatmul.mubr.bf16.gmra.mrb[104].mxu1 %v19286_v42 }
 0x303   :  { %13614 = vmatprep.mubr.msk.bf16.mxu0 %vm580_vm0, %v19291_v43  ;;  %13630 = vmatprep.mubr.msk.bf16.mxu1 %vm580_vm0, %v19291_v43 }
 0x305   :  { %v4436_v42 = vpop.f32.mrb[0].mxu0  ;;  %v4629_v38 = vpop.f32.mrb[0].mxu1 }
 0x306   :  { %v4937_v17 = vadd.f32 %v19863_v35, %v4436_v42  ;;  %v4939_v18 = vadd.f32 %v19867_v41, %v4629_v38  ;;  %v4438_v19 = vpop.f32.mrb[1].mxu0  ;;  %v4631_v45 = vpop.f32.mrb[1].mxu1 }
 0x307   :  { %v4938_v20 = vadd.f32 %v19871_v15, %v4438_v19  ;;  %v4940_v46 = vadd.f32 %v19875_v16, %v4631_v45  ;;  %v4440_v23 = vpop.f32.mrb[2].mxu0  ;;  %v4633_v24 = vpop.f32.mrb[2].mxu1 }
 0x308   :  { %v5065_v25 = vmax.f32 %v4937_v17, 0.0  ;;  %v5067_v26 = vmax.f32 %v4939_v18, 0.0  ;;  %v4941_v27 = vadd.f32 %v19863_v35, %v4440_v23  ;;  %v4943_v43 = vadd.f32 %v19867_v41, %v4633_v24  ;;  %v4442_v55 = vpop.f32.mrb[3].mxu0  ;;  %v4635_v28 = vpop.f32.mrb[3].mxu1 }
 0x309   :  { %v5066_v56 = vmax.f32 %v4938_v20, 0.0  ;;  %v5068_v31 = vmax.f32 %v4940_v46, 0.0  ;;  %v4942_v32 = vadd.f32 %v19871_v15, %v4442_v55  ;;  %v4944_v57 = vadd.f32 %v19875_v16, %v4635_v28 }
 0x30a   :  { %v19889_v58 = vmax.f32 %v5065_v25, %v5067_v26  ;;  %v5069_v59 = vmax.f32 %v4941_v27, 0.0  ;;  %v5071_v1 = vmax.f32 %v4943_v43, 0.0  ;;  %5336 = vmatmul.mubr.bf16.gmra.mrb[108].mxu0 %v19302_v44  ;;  %5529 = vmatmul.mubr.bf16.gmra.mrb[108].mxu1 %v19302_v44 }
 0x30b   :  { %v19893_v60 = vmax.f32 %v5066_v56, %v5068_v31  ;;  %v5070_v2 = vmax.f32 %v4942_v32, 0.0  ;;  %v5072_v61 = vmax.f32 %v4944_v57, 0.0  ;;  %13615 = vmatprep.mubr.msk.bf16.mxu0 %vm580_vm0, %v19307_v47  ;;  %13631 = vmatprep.mubr.msk.bf16.mxu1 %vm580_vm0, %v19307_v47 }
 0x30c   :  { %v19899_v62 = vmax.f32 %v5069_v59, %v5071_v1 }
 0x30d   :  { %v19901_v63 = vmax.f32 %v5070_v2, %v5072_v61  ;;  %v4446_v0 = vpop.f32.mrb[4].mxu0  ;;  %v4639_v3 = vpop.f32.mrb[4].mxu1 }
 0x30e   :  { %v4945_v11 = vadd.f32 %v19863_v35, %v4446_v0  ;;  %v4947_v44 = vadd.f32 %v19867_v41, %v4639_v3  ;;  %v4448_v4 = vpop.f32.mrb[5].mxu0  ;;  %v4641_v12 = vpop.f32.mrb[5].mxu1 }
 0x30f   :  { %v4946_v5 = vadd.f32 %v19871_v15, %v4448_v4  ;;  %v4948_v6 = vadd.f32 %v19875_v16, %v4641_v12  ;;  %v4450_v7 = vpop.f32.mrb[6].mxu0  ;;  %v4643_v8 = vpop.f32.mrb[6].mxu1 }
 0x310   :  { %v5073_v9 = vmax.f32 %v4945_v11, 0.0  ;;  %v5075_v47 = vmax.f32 %v4947_v44, 0.0  ;;  %v4949_v21 = vadd.f32 %v19863_v35, %v4450_v7  ;;  %v4951_v10 = vadd.f32 %v19867_v41, %v4643_v8  ;;  %v4452_v22 = vpop.f32.mrb[7].mxu0  ;;  %v4645_v13 = vpop.f32.mrb[7].mxu1 }
 0x311   :  { %v5074_v14 = vmax.f32 %v4946_v5, 0.0  ;;  %v5076_v34 = vmax.f32 %v4948_v6, 0.0  ;;  %v4950_v29 = vadd.f32 %v19871_v15, %v4452_v22  ;;  %v4952_v37 = vadd.f32 %v19875_v16, %v4645_v13 }
 0x312   :  { %v19911_v42 = vmax.f32 %v5073_v9, %v5075_v47  ;;  %v5077_v38 = vmax.f32 %v4949_v21, 0.0  ;;  %v5079_v17 = vmax.f32 %v4951_v10, 0.0  ;;  %5346 = vmatmul.mubr.bf16.gmra.mrb[112].mxu0 %v19318_v48  ;;  %5539 = vmatmul.mubr.bf16.gmra.mrb[112].mxu1 %v19318_v48 }
 0x313   :  { %v19915_v18 = vmax.f32 %v5074_v14, %v5076_v34  ;;  %v5078_v19 = vmax.f32 %v4950_v29, 0.0  ;;  %v5080_v45 = vmax.f32 %v4952_v37, 0.0  ;;  %13616 = vmatprep.mubr.msk.bf16.mxu0 %vm580_vm0, %v19323_v49  ;;  %13632 = vmatprep.mubr.msk.bf16.mxu1 %vm580_vm0, %v19323_v49 }
 0x314   :  { %v19921_v20 = vmax.f32 %v5077_v38, %v5079_v17 }
 0x315   :  { %v19923_v46 = vmax.f32 %v5078_v19, %v5080_v45  ;;  %v4456_v23 = vpop.f32.mrb[8].mxu0  ;;  %v4649_v24 = vpop.f32.mrb[8].mxu1 }
 0x316   :  { %v4953_v25 = vadd.f32 %v19863_v35, %v4456_v23  ;;  %v4955_v48 = vadd.f32 %v19867_v41, %v4649_v24  ;;  %v4458_v26 = vpop.f32.mrb[9].mxu0  ;;  %v4651_v27 = vpop.f32.mrb[9].mxu1 }
 0x317   :  { %v4954_v43 = vadd.f32 %v19871_v15, %v4458_v26  ;;  %v4956_v55 = vadd.f32 %v19875_v16, %v4651_v27  ;;  %v4460_v28 = vpop.f32.mrb[10].mxu0  ;;  %v4653_v56 = vpop.f32.mrb[10].mxu1 }
 0x318   :  { %v5081_v31 = vmax.f32 %v4953_v25, 0.0  ;;  %v5083_v49 = vmax.f32 %v4955_v48, 0.0  ;;  %v4957_v32 = vadd.f32 %v19863_v35, %v4460_v28  ;;  %v4959_v57 = vadd.f32 %v19867_v41, %v4653_v56  ;;  %v4462_v59 = vpop.f32.mrb[11].mxu0  ;;  %v4655_v1 = vpop.f32.mrb[11].mxu1 }
 0x319   :  { %v5082_v2 = vmax.f32 %v4954_v43, 0.0  ;;  %v5084_v61 = vmax.f32 %v4956_v55, 0.0  ;;  %v4958_v0 = vadd.f32 %v19871_v15, %v4462_v59  ;;  %v4960_v3 = vadd.f32 %v19875_v16, %v4655_v1 }
 0x31a   :  { %v19933_v11 = vmax.f32 %v5081_v31, %v5083_v49  ;;  %v5085_v44 = vmax.f32 %v4957_v32, 0.0  ;;  %v5087_v4 = vmax.f32 %v4959_v57, 0.0  ;;  %5356 = vmatmul.mubr.bf16.gmra.mrb[116].mxu0 %v19334_v50  ;;  %5549 = vmatmul.mubr.bf16.gmra.mrb[116].mxu1 %v19334_v50 }
 0x31b   :  { %v19937_v12 = vmax.f32 %v5082_v2, %v5084_v61  ;;  %v5086_v5 = vmax.f32 %v4958_v0, 0.0  ;;  %v5088_v6 = vmax.f32 %v4960_v3, 0.0  ;;  %13617 = vmatprep.mubr.msk.bf16.mxu0 %vm580_vm0, %v19339_v51  ;;  %13633 = vmatprep.mubr.msk.bf16.mxu1 %vm580_vm0, %v19339_v51 }
 0x31c   :  { %v19943_v7 = vmax.f32 %v5085_v44, %v5087_v4 }
 0x31d   :  { %v19945_v8 = vmax.f32 %v5086_v5, %v5088_v6  ;;  %v4466_v9 = vpop.f32.mrb[12].mxu0  ;;  %v4659_v47 = vpop.f32.mrb[12].mxu1 }
 0x31e   :  { %v4961_v21 = vadd.f32 %v19863_v35, %v4466_v9  ;;  %v4963_v50 = vadd.f32 %v19867_v41, %v4659_v47  ;;  %v4468_v10 = vpop.f32.mrb[13].mxu0  ;;  %v4661_v22 = vpop.f32.mrb[13].mxu1 }
 0x31f   :  { %v4962_v13 = vadd.f32 %v19871_v15, %v4468_v10  ;;  %v4964_v14 = vadd.f32 %v19875_v16, %v4661_v22  ;;  %v4470_v34 = vpop.f32.mrb[14].mxu0  ;;  %v4663_v29 = vpop.f32.mrb[14].mxu1 }
 0x320   :  { %v5089_v37 = vmax.f32 %v4961_v21, 0.0  ;;  %v5091_v51 = vmax.f32 %v4963_v50, 0.0  ;;  %v4965_v38 = vadd.f32 %v19863_v35, %v4470_v34  ;;  %v4967_v17 = vadd.f32 %v19867_v41, %v4663_v29  ;;  %v4472_v19 = vpop.f32.mrb[15].mxu0  ;;  %v4665_v45 = vpop.f32.mrb[15].mxu1 }
 0x321   :  { %v5090_v23 = vmax.f32 %v4962_v13, 0.0  ;;  %v5092_v24 = vmax.f32 %v4964_v14, 0.0  ;;  %v4966_v25 = vadd.f32 %v19871_v15, %v4472_v19  ;;  %v4968_v48 = vadd.f32 %v19875_v16, %v4665_v45 }
 0x322   :  { %v19955_v26 = vmax.f32 %v5089_v37, %v5091_v51  ;;  %v5093_v27 = vmax.f32 %v4965_v38, 0.0  ;;  %v5095_v43 = vmax.f32 %v4967_v17, 0.0  ;;  %5366 = vmatmul.mubr.bf16.gmra.mrb[120].mxu0 %v19350_v52  ;;  %5559 = vmatmul.mubr.bf16.gmra.mrb[120].mxu1 %v19350_v52  ;;  %v17427_v38 = vld [vmem:[%s24109_s0 + $0x224] ss:$8 sps:$4 sm:$0xff]  }
 0x323   :  { %v19959_v55 = vmax.f32 %v5090_v23, %v5092_v24  ;;  %v5094_v28 = vmax.f32 %v4966_v25, 0.0  ;;  %v5096_v56 = vmax.f32 %v4968_v48, 0.0  ;;  %13618 = vmatprep.mubr.msk.bf16.mxu0 %vm580_vm0, %v19355_v53  ;;  %13634 = vmatprep.mubr.msk.bf16.mxu1 %vm580_vm0, %v19355_v53 }
 0x324   :  { %v19965_v31 = vmax.f32 %v5093_v27, %v5095_v43 }
 0x325   :  { %v19967_v49 = vmax.f32 %v5094_v28, %v5096_v56  ;;  %v4476_v32 = vpop.f32.mrb[16].mxu0  ;;  %v4669_v57 = vpop.f32.mrb[16].mxu1 }
 0x326   :  { %v4969_v59 = vadd.f32 %v19863_v35, %v4476_v32  ;;  %v4971_v52 = vadd.f32 %v19867_v41, %v4669_v57  ;;  %v4478_v1 = vpop.f32.mrb[17].mxu0  ;;  %v4671_v2 = vpop.f32.mrb[17].mxu1 }
 0x327   :  { %v4970_v61 = vadd.f32 %v19871_v15, %v4478_v1  ;;  %v4972_v0 = vadd.f32 %v19875_v16, %v4671_v2  ;;  %v4480_v3 = vpop.f32.mrb[18].mxu0  ;;  %v4673_v44 = vpop.f32.mrb[18].mxu1 }
 0x328   :  { %v5097_v4 = vmax.f32 %v4969_v59, 0.0  ;;  %v5099_v53 = vmax.f32 %v4971_v52, 0.0  ;;  %v4973_v5 = vadd.f32 %v19863_v35, %v4480_v3  ;;  %v4975_v6 = vadd.f32 %v19867_v41, %v4673_v44  ;;  %v4482_v9 = vpop.f32.mrb[19].mxu0  ;;  %v4675_v47 = vpop.f32.mrb[19].mxu1 }
 0x329   :  { %v5098_v21 = vmax.f32 %v4970_v61, 0.0  ;;  %v5100_v50 = vmax.f32 %v4972_v0, 0.0  ;;  %v4974_v10 = vadd.f32 %v19871_v15, %v4482_v9  ;;  %v4976_v22 = vadd.f32 %v19875_v16, %v4675_v47 }
 0x32a   :  { %v19977_v13 = vmax.f32 %v5097_v4, %v5099_v53  ;;  %v5101_v14 = vmax.f32 %v4973_v5, 0.0  ;;  %v5103_v34 = vmax.f32 %v4975_v6, 0.0  ;;  %5376 = vmatmul.mubr.bf16.gmra.mrb[124].mxu0 %v19366_v54  ;;  %5569 = vmatmul.mubr.bf16.gmra.mrb[124].mxu1 %v19366_v54  ;;  %v17428_v6 = vld [vmem:[%s24109_s0 + $0x220] ss:$8 sps:$4 sm:$0xff]  }
 0x32b   :  { %v19981_v29 = vmax.f32 %v5098_v21, %v5100_v50  ;;  %v5102_v37 = vmax.f32 %v4974_v10, 0.0  ;;  %v5104_v51 = vmax.f32 %v4976_v22, 0.0  ;;  %13635 = vmatprep.mubr.msk.bf16.mxu0 %vm580_vm0, %v17427_v38  ;;  %13651 = vmatprep.mubr.msk.bf16.mxu1 %vm580_vm0, %v17427_v38  ;;  %v17429_v50 = vld [vmem:[%s24108_s1 + $0x300] ss:$16 sps:$4 sm:$0xff]   ;;  %v17430_v10 = vld [vmem:[%s24108_s1 + $0x308] ss:$16 sps:$4 sm:$0xff]  }
 0x32c   :  { %v19988_v17 = vmax.f32 %v5101_v14, %v5103_v34  ;;  %v17431_v14 = vld [vmem:[%s24109_s0 + $0x234] ss:$8 sps:$4 sm:$0xff]  }
 0x32d   :  { %v19990_v19 = vmax.f32 %v5102_v37, %v5104_v51  ;;  %v4486_v45 = vpop.f32.mrb[20].mxu0  ;;  %v4679_v23 = vpop.f32.mrb[20].mxu1  ;;  %v17432_v38 = vld [vmem:[%s24108_s1 + $0x324] ss:$16 sps:$4 sm:$0xff]  }
 0x32e   :  { %v4977_v54 = vadd.f32 %v19863_v35, %v4486_v45  ;;  %v4979_v24 = vadd.f32 %v19867_v41, %v4679_v23  ;;  %v4488_v25 = vpop.f32.mrb[21].mxu0  ;;  %v4681_v48 = vpop.f32.mrb[21].mxu1  ;;  %v17433_v45 = vld [vmem:[%s24108_s1 + $0x32c] ss:$16 sps:$4 sm:$0xff]  }
 0x32f   :  { %v4978_v27 = vadd.f32 %v19871_v15, %v4488_v25  ;;  %v4980_v43 = vadd.f32 %v19875_v16, %v4681_v48  ;;  %v4490_v28 = vpop.f32.mrb[22].mxu0  ;;  %v4683_v56 = vpop.f32.mrb[22].mxu1 }
 0x330   :  { %v5105_v32 = vmax.f32 %v4977_v54, 0.0  ;;  %v5107_v57 = vmax.f32 %v4979_v24, 0.0  ;;  %v4981_v59 = vadd.f32 %v19863_v35, %v4490_v28  ;;  %v4983_v52 = vadd.f32 %v19867_v41, %v4683_v56  ;;  %v4492_v1 = vpop.f32.mrb[23].mxu0  ;;  %v4685_v2 = vpop.f32.mrb[23].mxu1  ;;  %v17434_v56 = vld [vmem:[%s24108_s1 + $0x320] ss:$16 sps:$4 sm:$0xff]  }
 0x331   :  { %v5106_v61 = vmax.f32 %v4978_v27, 0.0  ;;  %v5108_v0 = vmax.f32 %v4980_v43, 0.0  ;;  %v4982_v3 = vadd.f32 %v19871_v15, %v4492_v1  ;;  %v4984_v44 = vadd.f32 %v19875_v16, %v4685_v2 }
 0x332   :  { %v20000_v4 = vmax.f32 %v5105_v32, %v5107_v57  ;;  %v5109_v53 = vmax.f32 %v4981_v59, 0.0  ;;  %v5111_v5 = vmax.f32 %v4983_v52, 0.0  ;;  %5612 = vmatmul.mubr.bf16.vlgmr.msra.gmra.mrb[64].mxu0 %v17428_v6  ;;  %5805 = vmatmul.mubr.bf16.vlgmr.msra.gmra.mrb[64].mxu1 %v17428_v6  ;;  %v17435_v32 = vld [vmem:[%s24108_s1 + $0x328] ss:$16 sps:$4 sm:$0xff]  }
 0x333   :  { %v20005_v9 = vmax.f32 %v5106_v61, %v5108_v0  ;;  %v5110_v47 = vmax.f32 %v4982_v3, 0.0  ;;  %v5112_v21 = vmax.f32 %v4984_v44, 0.0  ;;  %5966 = vmatpush1.bf16.msra.mxu0 %v17429_v50  ;;  %6159 = vmatpush1.bf16.msra.mxu1 %v17430_v10  ;;  %v17436_v0 = vld [vmem:[%s24108_s1 + $0x344] ss:$16 sps:$4 sm:$0xff]   ;;  %v17437_v3 = vld [vmem:[%s24108_s1 + $0x34c] ss:$16 sps:$4 sm:$0xff]  }
 0x334   :  { %v20013_v22 = vmax.f32 %v5109_v53, %v5111_v5  ;;  %13636 = vmatprep.mubr.msk.bf16.mxu0 %vm580_vm0, %v17431_v14  ;;  %13652 = vmatprep.mubr.msk.bf16.mxu1 %vm580_vm0, %v17431_v14  ;;  %v17438_v10 = vld [vmem:[%s24109_s0 + $0x230] ss:$8 sps:$4 sm:$0xff]  }
 0x335   :  { %v20020_v34 = vmax.f32 %v5110_v47, %v5112_v21  ;;  %v4496_v37 = vpop.f32.mrb[24].mxu0  ;;  %v4689_v51 = vpop.f32.mrb[24].mxu1  ;;  %5967 = vmatprep.subr.bf16.mxu0 %v17432_v38  ;;  %6160 = vmatprep.subr.bf16.mxu1 %v17433_v45  ;;  %v17439_v38 = vld [vmem:[%s24109_s0 + $0x244] ss:$8 sps:$4 sm:$0xff]  }
 0x336   :  { %v4985_v23 = vadd.f32 %v19863_v35, %v4496_v37  ;;  %v4987_v54 = vadd.f32 %v19867_v41, %v4689_v51  ;;  %v4498_v24 = vpop.f32.mrb[25].mxu0  ;;  %v4691_v25 = vpop.f32.mrb[25].mxu1 }
 0x337   :  { %v4986_v48 = vadd.f32 %v19871_v15, %v4498_v24  ;;  %v4988_v27 = vadd.f32 %v19875_v16, %v4691_v25  ;;  %v4500_v43 = vpop.f32.mrb[26].mxu0  ;;  %v4693_v28 = vpop.f32.mrb[26].mxu1  ;;  %5968 = vmatpush1.bf16.msra.mxu0 %v17434_v56  ;;  %6161 = vmatpush1.bf16.msra.mxu1 %v17435_v32 }
 0x338   :  { %v5113_v57 = vmax.f32 %v4985_v23, 0.0  ;;  %v5115_v59 = vmax.f32 %v4987_v54, 0.0  ;;  %v4989_v52 = vadd.f32 %v19863_v35, %v4500_v43  ;;  %v4991_v1 = vadd.f32 %v19867_v41, %v4693_v28  ;;  %v4502_v2 = vpop.f32.mrb[27].mxu0  ;;  %v4695_v61 = vpop.f32.mrb[27].mxu1  ;;  %5969 = vmatprep.subr.bf16.mxu0 %v17436_v0  ;;  %6162 = vmatprep.subr.bf16.mxu1 %v17437_v3  ;;  %v17440_v23 = vld [vmem:[%s24108_s1 + $0x340] ss:$16 sps:$4 sm:$0xff]  }
 0x339   :  { %v5114_v44 = vmax.f32 %v4986_v48, 0.0  ;;  %v5116_v53 = vmax.f32 %v4988_v27, 0.0  ;;  %v4990_v5 = vadd.f32 %v19871_v15, %v4502_v2  ;;  %v4992_v6 = vadd.f32 %v19875_v16, %v4695_v61  ;;  %v17441_v54 = vld [vmem:[%s24108_s1 + $0x348] ss:$16 sps:$4 sm:$0xff]   ;;  %v17442_v27 = vld [vmem:[%s24108_s1 + $0x364] ss:$16 sps:$4 sm:$0xff]  }
 0x33a   :  { %v20048_v47 = vmax.f32 %v5113_v57, %v5115_v59  ;;  %v5117_v21 = vmax.f32 %v4989_v52, 0.0  ;;  %v5119_v50 = vmax.f32 %v4991_v1, 0.0  ;;  %5622 = vmatmul.mubr.bf16.gmra.mrb[68].mxu0 %v17438_v10  ;;  %5815 = vmatmul.mubr.bf16.gmra.mrb[68].mxu1 %v17438_v10  ;;  %v17443_v43 = vld [vmem:[%s24108_s1 + $0x36c] ss:$16 sps:$4 sm:$0xff]  }
 0x33b   :  { %v20053_v14 = vmax.f32 %v5114_v44, %v5116_v53  ;;  %v5118_v37 = vmax.f32 %v4990_v5, 0.0  ;;  %v5120_v51 = vmax.f32 %v4992_v6, 0.0  ;;  %13637 = vmatprep.mubr.msk.bf16.mxu0 %vm580_vm0, %v17439_v38  ;;  %13653 = vmatprep.mubr.msk.bf16.mxu1 %vm580_vm0, %v17439_v38  ;;  %v17444_v6 = vld [vmem:[%s24108_s1 + $0x360] ss:$16 sps:$4 sm:$0xff]   ;;  %v17446_v38 = vld [vmem:[%s24108_s1 + $0x384] ss:$16 sps:$4 sm:$0xff]  }
 0x33c   :  { %v20060_v45 = vmax.f32 %v5117_v21, %v5119_v50  ;;  %5970 = vmatpush1.bf16.msra.mxu0 %v17440_v23  ;;  %6163 = vmatpush1.bf16.msra.mxu1 %v17441_v54  ;;  %v17445_v21 = vld [vmem:[%s24108_s1 + $0x368] ss:$16 sps:$4 sm:$0xff]   ;;  %v17447_v23 = vld [vmem:[%s24108_s1 + $0x38c] ss:$16 sps:$4 sm:$0xff]  }
 0x33d   :  { %v20068_v24 = vmax.f32 %v5118_v37, %v5120_v51  ;;  %v4506_v25 = vpop.f32.mrb[28].mxu0  ;;  %v4699_v48 = vpop.f32.mrb[28].mxu1  ;;  %5971 = vmatprep.subr.bf16.mxu0 %v17442_v27  ;;  %6164 = vmatprep.subr.bf16.mxu1 %v17443_v43  ;;  %v17448_v27 = vld [vmem:[%s24109_s0 + $0x240] ss:$8 sps:$4 sm:$0xff]  }
 0x33e   :  { %v4993_v28 = vadd.f32 %v19863_v35, %v4506_v25  ;;  %v4995_v56 = vadd.f32 %v19867_v41, %v4699_v48  ;;  %v4508_v32 = vpop.f32.mrb[29].mxu0  ;;  %v4701_v57 = vpop.f32.mrb[29].mxu1 }
 0x33f   :  { %v4994_v59 = vadd.f32 %v19871_v15, %v4508_v32  ;;  %v4996_v52 = vadd.f32 %v19875_v16, %v4701_v57  ;;  %v4510_v1 = vpop.f32.mrb[30].mxu0  ;;  %v4703_v2 = vpop.f32.mrb[30].mxu1  ;;  %v17449_v32 = vld [vmem:[%s24109_s0 + $0x254] ss:$8 sps:$4 sm:$0xff]  }
 0x340   :  { %v5121_v61 = vmax.f32 %v4993_v28, 0.0  ;;  %v5123_v0 = vmax.f32 %v4995_v56, 0.0  ;;  %v4997_v3 = vadd.f32 %v19863_v35, %v4510_v1  ;;  %v4999_v44 = vadd.f32 %v19867_v41, %v4703_v2  ;;  %v4512_v53 = vpop.f32.mrb[31].mxu0  ;;  %v4705_v5 = vpop.f32.mrb[31].mxu1  ;;  %5972 = vmatpush1.bf16.msra.mxu0 %v17444_v6  ;;  %6165 = vmatpush1.bf16.msra.mxu1 %v17445_v21 }
 0x341   :  { %v5122_v50 = vmax.f32 %v4994_v59, 0.0  ;;  %v5124_v10 = vmax.f32 %v4996_v52, 0.0  ;;  %v4998_v37 = vadd.f32 %v19871_v15, %v4512_v53  ;;  %v5000_v51 = vadd.f32 %v19875_v16, %v4705_v5  ;;  %5973 = vmatprep.subr.bf16.mxu0 %v17446_v38  ;;  %6166 = vmatprep.subr.bf16.mxu1 %v17447_v23  ;;  %v17450_v59 = vld [vmem:[%s24108_s1 + $0x380] ss:$16 sps:$4 sm:$0xff]   ;;  %v17451_v52 = vld [vmem:[%s24108_s1 + $0x388] ss:$16 sps:$4 sm:$0xff]  }
 0x342   :  { %v20096_v54 = vmax.f32 %v5121_v61, %v5123_v0  ;;  %v5125_v25 = vmax.f32 %v4997_v3, 0.0  ;;  %v5127_v48 = vmax.f32 %v4999_v44, 0.0  ;;  %5632 = vmatmul.mubr.bf16.gmra.mrb[72].mxu0 %v17448_v27  ;;  %5825 = vmatmul.mubr.bf16.gmra.mrb[72].mxu1 %v17448_v27  ;;  %v17452_v0 = vld [vmem:[%s24108_s1 + $0x3a4] ss:$16 sps:$4 sm:$0xff]   ;;  %v17453_v3 = vld [vmem:[%s24108_s1 + $0x3ac] ss:$16 sps:$4 sm:$0xff]  }
 0x343   :  { %v20101_v43 = vmax.f32 %v5122_v50, %v5124_v10  ;;  %v5126_v28 = vmax.f32 %v4998_v37, 0.0  ;;  %v5128_v56 = vmax.f32 %v5000_v51, 0.0  ;;  %13638 = vmatprep.mubr.msk.bf16.mxu0 %vm580_vm0, %v17449_v32  ;;  %13654 = vmatprep.mubr.msk.bf16.mxu1 %vm580_vm0, %v17449_v32 }
 0x344   :  { %v20108_v57 = vmax.f32 %v5125_v25, %v5127_v48  ;;  %5974 = vmatpush1.bf16.msra.mxu0 %v17450_v59  ;;  %6167 = vmatpush1.bf16.msra.mxu1 %v17451_v52 }
 0x345   :  { %v20116_v1 = vmax.f32 %v5126_v28, %v5128_v56  ;;  %v4516_v2 = vpop.f32.mrb[32].mxu0  ;;  %v4709_v61 = vpop.f32.mrb[32].mxu1  ;;  %5975 = vmatprep.subr.bf16.mxu0 %v17452_v0  ;;  %6168 = vmatprep.subr.bf16.mxu1 %v17453_v3  ;;  %v17454_v28 = vld [vmem:[%s24108_s1 + $0x3a0] ss:$16 sps:$4 sm:$0xff]   ;;  %v17455_v56 = vld [vmem:[%s24108_s1 + $0x3a8] ss:$16 sps:$4 sm:$0xff]  }
 0x346   :  { %v5001_v44 = vadd.f32 %v19863_v35, %v4516_v2  ;;  %v5003_v53 = vadd.f32 %v19867_v41, %v4709_v61  ;;  %v4518_v5 = vpop.f32.mrb[33].mxu0  ;;  %v4711_v6 = vpop.f32.mrb[33].mxu1  ;;  %v17456_v61 = vld [vmem:[%s24108_s1 + $0x3c4] ss:$16 sps:$4 sm:$0xff]   ;;  %v17457_v0 = vld [vmem:[%s24108_s1 + $0x3cc] ss:$16 sps:$4 sm:$0xff]  }
 0x347   :  { %v5002_v21 = vadd.f32 %v19871_v15, %v4518_v5  ;;  %v5004_v50 = vadd.f32 %v19875_v16, %v4711_v6  ;;  %v4520_v10 = vpop.f32.mrb[34].mxu0  ;;  %v4713_v37 = vpop.f32.mrb[34].mxu1  ;;  %v17458_v5 = vld [vmem:[%s24109_s0 + $0x250] ss:$8 sps:$4 sm:$0xff]  }
 0x348   :  { %v5129_v51 = vmax.f32 %v5001_v44, 0.0  ;;  %v5131_v38 = vmax.f32 %v5003_v53, 0.0  ;;  %v5005_v23 = vadd.f32 %v19863_v35, %v4520_v10  ;;  %v5007_v25 = vadd.f32 %v19867_v41, %v4713_v37  ;;  %v4522_v48 = vpop.f32.mrb[35].mxu0  ;;  %v4715_v27 = vpop.f32.mrb[35].mxu1  ;;  %5976 = vmatpush1.bf16.msra.mxu0 %v17454_v28  ;;  %6169 = vmatpush1.bf16.msra.mxu1 %v17455_v56  ;;  %v17459_v10 = vld [vmem:[%s24109_s0 + $0x264] ss:$8 sps:$4 sm:$0xff]  }
 0x349   :  { %v5130_v32 = vmax.f32 %v5002_v21, 0.0  ;;  %v5132_v59 = vmax.f32 %v5004_v50, 0.0  ;;  %v5006_v52 = vadd.f32 %v19871_v15, %v4522_v48  ;;  %v5008_v2 = vadd.f32 %v19875_v16, %v4715_v27  ;;  %5977 = vmatprep.subr.bf16.mxu0 %v17456_v61  ;;  %6170 = vmatprep.subr.bf16.mxu1 %v17457_v0  ;;  %v17462_v27 = vld [vmem:[%s24108_s1 + $0x3e4] ss:$16 sps:$4 sm:$0xff]   ;;  %v17463_v28 = vld [vmem:[%s24108_s1 + $0x3ec] ss:$16 sps:$4 sm:$0xff]  }
 0x34a   :  { %v20144_v3 = vmax.f32 %v5129_v51, %v5131_v38  ;;  %v5133_v44 = vmax.f32 %v5005_v23, 0.0  ;;  %v5135_v53 = vmax.f32 %v5007_v25, 0.0  ;;  %5642 = vmatmul.mubr.bf16.gmra.mrb[76].mxu0 %v17458_v5  ;;  %5835 = vmatmul.mubr.bf16.gmra.mrb[76].mxu1 %v17458_v5  ;;  %v17460_v51 = vld [vmem:[%s24108_s1 + $0x3c0] ss:$16 sps:$4 sm:$0xff]   ;;  %v17461_v38 = vld [vmem:[%s24108_s1 + $0x3c8] ss:$16 sps:$4 sm:$0xff]  }
 0x34b   :  { %v20149_v6 = vmax.f32 %v5130_v32, %v5132_v59  ;;  %v5134_v21 = vmax.f32 %v5006_v52, 0.0  ;;  %v5136_v50 = vmax.f32 %v5008_v2, 0.0  ;;  %13639 = vmatprep.mubr.msk.bf16.mxu0 %vm580_vm0, %v17459_v10  ;;  %13655 = vmatprep.mubr.msk.bf16.mxu1 %vm580_vm0, %v17459_v10 }
 0x34c   :  { %v20156_v37 = vmax.f32 %v5133_v44, %v5135_v53  ;;  %5978 = vmatpush1.bf16.msra.mxu0 %v17460_v51  ;;  %6171 = vmatpush1.bf16.msra.mxu1 %v17461_v38  ;;  %v17464_v38 = vld [vmem:[%s24108_s1 + $0x3e0] ss:$16 sps:$4 sm:$0xff]  }
 0x34d   :  { %v20164_v23 = vmax.f32 %v5134_v21, %v5136_v50  ;;  %v4526_v25 = vpop.f32.mrb[36].mxu0  ;;  %v4719_v48 = vpop.f32.mrb[36].mxu1  ;;  %5979 = vmatprep.subr.bf16.mxu0 %v17462_v27  ;;  %6172 = vmatprep.subr.bf16.mxu1 %v17463_v28 }
 0x34e   :  { %v5009_v56 = vadd.f32 %v19863_v35, %v4526_v25  ;;  %v5011_v32 = vadd.f32 %v19867_v41, %v4719_v48  ;;  %v4528_v59 = vpop.f32.mrb[37].mxu0  ;;  %v4721_v52 = vpop.f32.mrb[37].mxu1  ;;  %v17465_v25 = vld [vmem:[%s24108_s1 + $0x3e8] ss:$16 sps:$4 sm:$0xff]  }
 0x34f   :  { %v5010_v2 = vadd.f32 %v19871_v15, %v4528_v59  ;;  %v5012_v61 = vadd.f32 %v19875_v16, %v4721_v52  ;;  %v4530_v0 = vpop.f32.mrb[38].mxu0  ;;  %v4723_v44 = vpop.f32.mrb[38].mxu1  ;;  %v17467_v59 = vld [vmem:[%s24108_s1 + $0x40c] ss:$16 sps:$4 sm:$0xff]  }
 0x350   :  { %v5137_v53 = vmax.f32 %v5009_v56, 0.0  ;;  %v5139_v5 = vmax.f32 %v5011_v32, 0.0  ;;  %v5013_v21 = vadd.f32 %v19863_v35, %v4530_v0  ;;  %v5015_v50 = vadd.f32 %v19867_v41, %v4723_v44  ;;  %v4532_v10 = vpop.f32.mrb[39].mxu0  ;;  %v4725_v51 = vpop.f32.mrb[39].mxu1  ;;  %5980 = vmatpush1.bf16.msra.mxu0 %v17464_v38  ;;  %6173 = vmatpush1.bf16.msra.mxu1 %v17465_v25  ;;  %v17466_v32 = vld [vmem:[%s24108_s1 + $0x404] ss:$16 sps:$4 sm:$0xff]  }
 0x351   :  { %v5138_v48 = vmax.f32 %v5010_v2, 0.0  ;;  %v5140_v27 = vmax.f32 %v5012_v61, 0.0  ;;  %v5014_v28 = vadd.f32 %v19871_v15, %v4532_v10  ;;  %v5016_v56 = vadd.f32 %v19875_v16, %v4725_v51  ;;  %5981 = vmatprep.subr.bf16.mxu0 %v17466_v32  ;;  %6174 = vmatprep.subr.bf16.mxu1 %v17467_v59  ;;  %v17468_v2 = vld [vmem:[%s24109_s0 + $0x260] ss:$8 sps:$4 sm:$0xff]   ;;  %v17469_v38 = vld [vmem:[%s24109_s0 + $0x274] ss:$8 sps:$4 sm:$0xff]  }
 0x352   :  { %v20192_v52 = vmax.f32 %v5137_v53, %v5139_v5  ;;  %v5141_v0 = vmax.f32 %v5013_v21, 0.0  ;;  %v5143_v44 = vmax.f32 %v5015_v50, 0.0  ;;  %5652 = vmatmul.mubr.bf16.gmra.mrb[80].mxu0 %v17468_v2  ;;  %5845 = vmatmul.mubr.bf16.gmra.mrb[80].mxu1 %v17468_v2  ;;  %v17470_v5 = vld [vmem:[%s24108_s1 + $0x400] ss:$16 sps:$4 sm:$0xff]   ;;  %v17471_v21 = vld [vmem:[%s24108_s1 + $0x408] ss:$16 sps:$4 sm:$0xff]  }
 0x353   :  { %v20197_v61 = vmax.f32 %v5138_v48, %v5140_v27  ;;  %v5142_v10 = vmax.f32 %v5014_v28, 0.0  ;;  %v5144_v51 = vmax.f32 %v5016_v56, 0.0  ;;  %13640 = vmatprep.mubr.msk.bf16.mxu0 %vm580_vm0, %v17469_v38  ;;  %13656 = vmatprep.mubr.msk.bf16.mxu1 %vm580_vm0, %v17469_v38  ;;  %v17472_v27 = vld [vmem:[%s24108_s1 + $0x424] ss:$16 sps:$4 sm:$0xff]   ;;  %v17473_v28 = vld [vmem:[%s24108_s1 + $0x42c] ss:$16 sps:$4 sm:$0xff]  }
 0x354   :  { %24127 = vst [vmem:[#allocation3_spill] sm:$0xff] %v20192_v52  ;;  %v20204_v53 = vmax.f32 %v5141_v0, %v5143_v44  ;;  %5982 = vmatpush1.bf16.msra.mxu0 %v17470_v5  ;;  %6175 = vmatpush1.bf16.msra.mxu1 %v17471_v21 }
 0x355   :  { %24128 = vst [vmem:[#allocation4_spill] sm:$0xff] %v20197_v61  ;;  %v20212_v50 = vmax.f32 %v5142_v10, %v5144_v51  ;;  %v4536_v25 = vpop.f32.mrb[40].mxu0  ;;  %v4729_v48 = vpop.f32.mrb[40].mxu1  ;;  %5983 = vmatprep.subr.bf16.mxu0 %v17472_v27  ;;  %6176 = vmatprep.subr.bf16.mxu1 %v17473_v28 }
 0x356   :  { %24129 = vst [vmem:[#allocation5_spill] sm:$0xff] %v20204_v53  ;;  %v5017_v56 = vadd.f32 %v19863_v35, %v4536_v25  ;;  %v5019_v32 = vadd.f32 %v19867_v41, %v4729_v48  ;;  %v4538_v59 = vpop.f32.mrb[41].mxu0  ;;  %v4731_v0 = vpop.f32.mrb[41].mxu1  ;;  %v17474_v25 = vld [vmem:[%s24108_s1 + $0x420] ss:$16 sps:$4 sm:$0xff]  }
 0x357   :  { %24130 = vst [vmem:[#allocation6_spill] sm:$0xff] %v20212_v50  ;;  %v5018_v44 = vadd.f32 %v19871_v15, %v4538_v59  ;;  %v5020_v2 = vadd.f32 %v19875_v16, %v4731_v0  ;;  %v4540_v10 = vpop.f32.mrb[42].mxu0  ;;  %v4733_v51 = vpop.f32.mrb[42].mxu1  ;;  %v17475_v48 = vld [vmem:[%s24108_s1 + $0x428] ss:$16 sps:$4 sm:$0xff]  }
 0x358   :  { %v5145_v38 = vmax.f32 %v5017_v56, 0.0  ;;  %v5147_v5 = vmax.f32 %v5019_v32, 0.0  ;;  %v5021_v21 = vadd.f32 %v19863_v35, %v4540_v10  ;;  %v5023_v27 = vadd.f32 %v19867_v41, %v4733_v51  ;;  %v4542_v40 = vpop.f32.mrb[43].mxu0  ;;  %v4735_v28 = vpop.f32.mrb[43].mxu1  ;;  %5984 = vmatpush1.bf16.msra.mxu0 %v17474_v25  ;;  %6177 = vmatpush1.bf16.msra.mxu1 %v17475_v48  ;;  %v17476_v10 = vld [vmem:[%s24108_s1 + $0x444] ss:$16 sps:$4 sm:$0xff]  }
 0x359   :  { %v5146_v59 = vmax.f32 %v5018_v44, 0.0  ;;  %v5148_v0 = vmax.f32 %v5020_v2, 0.0  ;;  %v5022_v56 = vadd.f32 %v19871_v15, %v4542_v40  ;;  %v5024_v32 = vadd.f32 %v19875_v16, %v4735_v28  ;;  %5985 = vmatprep.subr.bf16.mxu0 %v17476_v10  ;;  %v17477_v51 = vld [vmem:[%s24108_s1 + $0x44c] ss:$16 sps:$4 sm:$0xff]   ;;  %v17478_v40 = vld [vmem:[%s24109_s0 + $0x270] ss:$8 sps:$4 sm:$0xff]  }
 0x35a   :  { %6178 = vmatprep.subr.bf16.mxu1 %v17477_v51  ;;  %v20240_v25 = vmax.f32 %v5145_v38, %v5147_v5  ;;  %v5149_v39 = vmax.f32 %v5021_v21, 0.0  ;;  %v5151_v48 = vmax.f32 %v5023_v27, 0.0  ;;  %5662 = vmatmul.mubr.bf16.gmra.mrb[84].mxu0 %v17478_v40  ;;  %v17479_v10 = vld [vmem:[%s24109_s0 + $0x284] ss:$8 sps:$4 sm:$0xff]   ;;  %v17480_v5 = vld [vmem:[%s24108_s1 + $0x440] ss:$16 sps:$4 sm:$0xff]  }
 0x35b   :  { %5855 = vmatmul.mubr.bf16.gmra.mrb[84].mxu1 %v17478_v40  ;;  %v20245_v44 = vmax.f32 %v5146_v59, %v5148_v0  ;;  %v5150_v2 = vmax.f32 %v5022_v56, 0.0  ;;  %v5152_v28 = vmax.f32 %v5024_v32, 0.0  ;;  %13641 = vmatprep.mubr.msk.bf16.mxu0 %vm580_vm0, %v17479_v10  ;;  %v17481_v21 = vld [vmem:[%s24108_s1 + $0x448] ss:$16 sps:$4 sm:$0xff]   ;;  %v17482_v56 = vld [vmem:[%s24108_s1 + $0x464] ss:$16 sps:$4 sm:$0xff]  }
 0x35c   :  { %24131 = vst [vmem:[#allocation7_spill] sm:$0xff] %v20240_v25  ;;  %13657 = vmatprep.mubr.msk.bf16.mxu1 %vm580_vm0, %v17479_v10  ;;  %v20252_v38 = vmax.f32 %v5149_v39, %v5151_v48  ;;  %5986 = vmatpush1.bf16.msra.mxu0 %v17480_v5  ;;  %v17483_v39 = vld [vmem:[%s24108_s1 + $0x46c] ss:$16 sps:$4 sm:$0xff]  }
 0x35d   :  { %24132 = vst [vmem:[#allocation8_spill] sm:$0xff] %v20245_v44  ;;  %6179 = vmatpush1.bf16.msra.mxu1 %v17481_v21  ;;  %v20260_v27 = vmax.f32 %v5150_v2, %v5152_v28  ;;  %v4546_v59 = vpop.f32.mrb[44].mxu0  ;;  %v4739_v0 = vpop.f32.mrb[44].mxu1  ;;  %5987 = vmatprep.subr.bf16.mxu0 %v17482_v56 }
 0x35e   :  { %24133 = vst [vmem:[#allocation9_spill] sm:$0xff] %v20252_v38  ;;  %6180 = vmatprep.subr.bf16.mxu1 %v17483_v39  ;;  %v5025_v32 = vadd.f32 %v19863_v35, %v4546_v59  ;;  %v5027_v51 = vadd.f32 %v19867_v41, %v4739_v0  ;;  %v4548_v48 = vpop.f32.mrb[45].mxu0  ;;  %v4741_v40 = vpop.f32.mrb[45].mxu1  ;;  %v17484_v59 = vld [vmem:[%s24108_s1 + $0x460] ss:$16 sps:$4 sm:$0xff]  }
 0x35f   :  { %24134 = vst [vmem:[#allocation10_spill] sm:$0xff] %v20260_v27  ;;  %v5026_v2 = vadd.f32 %v19871_v15, %v4548_v48  ;;  %v5028_v28 = vadd.f32 %v19875_v16, %v4741_v40  ;;  %v4550_v10 = vpop.f32.mrb[46].mxu0  ;;  %v4743_v5 = vpop.f32.mrb[46].mxu1  ;;  %v17485_v0 = vld [vmem:[%s24108_s1 + $0x468] ss:$16 sps:$4 sm:$0xff]  }
 0x360   :  { %v5153_v21 = vmax.f32 %v5025_v32, 0.0  ;;  %v5155_v36 = vmax.f32 %v5027_v51, 0.0  ;;  %v5029_v56 = vadd.f32 %v19863_v35, %v4550_v10  ;;  %v5031_v33 = vadd.f32 %v19867_v41, %v4743_v5  ;;  %v4552_v30 = vpop.f32.mrb[47].mxu0  ;;  %v4745_v39 = vpop.f32.mrb[47].mxu1  ;;  %5988 = vmatpush1.bf16.msra.mxu0 %v17484_v59  ;;  %v17486_v10 = vld [vmem:[%s24108_s1 + $0x484] ss:$16 sps:$4 sm:$0xff]  }
 0x361   :  { %6181 = vmatpush1.bf16.msra.mxu1 %v17485_v0  ;;  %v5154_v48 = vmax.f32 %v5026_v2, 0.0  ;;  %v5156_v40 = vmax.f32 %v5028_v28, 0.0  ;;  %v5030_v32 = vadd.f32 %v19871_v15, %v4552_v30  ;;  %v5032_v51 = vadd.f32 %v19875_v16, %v4745_v39  ;;  %6703 = vmatprep.subr.bf16.mxu0 %v17486_v10  ;;  %v17487_v5 = vld [vmem:[%s24108_s1 + $0x48c] ss:$16 sps:$4 sm:$0xff]   ;;  %v17488_v30 = vld [vmem:[%s24109_s0 + $0x280] ss:$8 sps:$4 sm:$0xff]  }
 0x362   :  { %6896 = vmatprep.subr.bf16.mxu1 %v17487_v5  ;;  %v20288_v59 = vmax.f32 %v5153_v21, %v5155_v36  ;;  %v5157_v27 = vmax.f32 %v5029_v56, 0.0  ;;  %v5159_v0 = vmax.f32 %v5031_v33, 0.0  ;;  %5672 = vmatmul.mubr.bf16.gmra.mrb[88].mxu0 %v17488_v30  ;;  %v17489_v10 = vld [vmem:[%s24109_s0 + $0x294] ss:$8 sps:$4 sm:$0xff]  }
 0x363   :  { %5865 = vmatmul.mubr.bf16.gmra.mrb[88].mxu1 %v17488_v30  ;;  %v20293_v2 = vmax.f32 %v5154_v48, %v5156_v40  ;;  %v5158_v28 = vmax.f32 %v5030_v32, 0.0  ;;  %v5160_v39 = vmax.f32 %v5032_v51, 0.0  ;;  %13642 = vmatprep.mubr.msk.bf16.mxu0 %vm580_vm0, %v17489_v10 }
 0x364   :  { %24135 = vst [vmem:[#allocation11_spill] sm:$0xff] %v20288_v59  ;;  %13658 = vmatprep.mubr.msk.bf16.mxu1 %vm580_vm0, %v17489_v10  ;;  %v20300_v36 = vmax.f32 %v5157_v27, %v5159_v0 }
 0x365   :  { %24136 = vst [vmem:[#allocation12_spill] sm:$0xff] %v20293_v2  ;;  %v20302_v33 = vmax.f32 %v5158_v28, %v5160_v39  ;;  %v4556_v21 = vpop.f32.mrb[48].mxu0  ;;  %v4749_v56 = vpop.f32.mrb[48].mxu1 }
 0x366   :  { %24137 = vst [vmem:[#allocation13_spill] sm:$0xff] %v20300_v36  ;;  %v5033_v5 = vadd.f32 %v19863_v35, %v4556_v21  ;;  %v5035_v48 = vadd.f32 %v19867_v41, %v4749_v56  ;;  %v4558_v40 = vpop.f32.mrb[49].mxu0  ;;  %v4751_v32 = vpop.f32.mrb[49].mxu1 }
 0x367   :  { %24138 = vst [vmem:[#allocation14_spill] sm:$0xff] %v20302_v33  ;;  %v5034_v51 = vadd.f32 %v19871_v15, %v4558_v40  ;;  %v5036_v30 = vadd.f32 %v19875_v16, %v4751_v32  ;;  %v4560_v2 = vpop.f32.mrb[50].mxu0  ;;  %v4753_v59 = vpop.f32.mrb[50].mxu1 }
 0x368   :  { %v5161_v38 = vmax.f32 %v5033_v5, 0.0  ;;  %v5163_v10 = vmax.f32 %v5035_v48, 0.0  ;;  %v5037_v27 = vadd.f32 %v19863_v35, %v4560_v2  ;;  %v5039_v0 = vadd.f32 %v19867_v41, %v4753_v59  ;;  %v4562_v28 = vpop.f32.mrb[51].mxu0  ;;  %v4755_v39 = vpop.f32.mrb[51].mxu1  ;;  %v17490_v5 = vld [vmem:[%s24109_s0 + $0x290] ss:$8 sps:$4 sm:$0xff]  }
 0x369   :  { %v5162_v33 = vmax.f32 %v5034_v51, 0.0  ;;  %v5164_v21 = vmax.f32 %v5036_v30, 0.0  ;;  %v5038_v56 = vadd.f32 %v19871_v15, %v4562_v28  ;;  %v5040_v36 = vadd.f32 %v19875_v16, %v4755_v39  ;;  %v17491_v51 = vld [vmem:[%s24109_s0 + $0x2a4] ss:$8 sps:$4 sm:$0xff]  }
 0x36a   :  { %v20312_v44 = vmax.f32 %v5161_v38, %v5163_v10  ;;  %v5165_v40 = vmax.f32 %v5037_v27, 0.0  ;;  %v5167_v32 = vmax.f32 %v5039_v0, 0.0  ;;  %5682 = vmatmul.mubr.bf16.gmra.mrb[92].mxu0 %v17490_v5 }
 0x36b   :  { %5875 = vmatmul.mubr.bf16.gmra.mrb[92].mxu1 %v17490_v5  ;;  %v20317_v2 = vmax.f32 %v5162_v33, %v5164_v21  ;;  %v5166_v59 = vmax.f32 %v5038_v56, 0.0  ;;  %v5168_v48 = vmax.f32 %v5040_v36, 0.0  ;;  %13643 = vmatprep.mubr.msk.bf16.mxu0 %vm580_vm0, %v17491_v51 }
 0x36c   :  { %24139 = vst [vmem:[#allocation15_spill] sm:$0xff] %v20312_v44  ;;  %13659 = vmatprep.mubr.msk.bf16.mxu1 %vm580_vm0, %v17491_v51  ;;  %v20324_v38 = vmax.f32 %v5165_v40, %v5167_v32 }
 0x36d   :  { %24140 = vst [vmem:[#allocation16_spill] sm:$0xff] %v20317_v2  ;;  %v20326_v30 = vmax.f32 %v5166_v59, %v5168_v48  ;;  %v4566_v10 = vpop.f32.mrb[52].mxu0  ;;  %v4759_v27 = vpop.f32.mrb[52].mxu1 }
 0x36e   :  { %24141 = vst [vmem:[#allocation17_spill] sm:$0xff] %v20324_v38  ;;  %v5041_v0 = vadd.f32 %v19863_v35, %v4566_v10  ;;  %v5043_v33 = vadd.f32 %v19867_v41, %v4759_v27  ;;  %v4568_v28 = vpop.f32.mrb[53].mxu0  ;;  %v4761_v36 = vpop.f32.mrb[53].mxu1 }
 0x36f   :  { %24142 = vst [vmem:[#allocation18_spill] sm:$0xff] %v20326_v30  ;;  %v5042_v39 = vadd.f32 %v19871_v15, %v4568_v28  ;;  %v5044_v21 = vadd.f32 %v19875_v16, %v4761_v36  ;;  %v4570_v56 = vpop.f32.mrb[54].mxu0  ;;  %v4763_v5 = vpop.f32.mrb[54].mxu1 }
 0x370   :  { %v5169_v2 = vmax.f32 %v5041_v0, 0.0  ;;  %v5171_v51 = vmax.f32 %v5043_v33, 0.0  ;;  %v5045_v40 = vadd.f32 %v19863_v35, %v4570_v56  ;;  %v5047_v32 = vadd.f32 %v19867_v41, %v4763_v5  ;;  %v4572_v59 = vpop.f32.mrb[55].mxu0  ;;  %v4765_v48 = vpop.f32.mrb[55].mxu1  ;;  %v17492_v0 = vld [vmem:[%s24109_s0 + $0x2a0] ss:$8 sps:$4 sm:$0xff]  }
 0x371   :  { %v5170_v30 = vmax.f32 %v5042_v39, 0.0  ;;  %v5172_v10 = vmax.f32 %v5044_v21, 0.0  ;;  %v5046_v27 = vadd.f32 %v19871_v15, %v4572_v59  ;;  %v5048_v38 = vadd.f32 %v19875_v16, %v4765_v48  ;;  %v17493_v39 = vld [vmem:[%s24109_s0 + $0x2b4] ss:$8 sps:$4 sm:$0xff]  }
 0x372   :  { %v20336_v44 = vmax.f32 %v5169_v2, %v5171_v51  ;;  %v5173_v28 = vmax.f32 %v5045_v40, 0.0  ;;  %v5175_v36 = vmax.f32 %v5047_v32, 0.0  ;;  %5692 = vmatmul.mubr.bf16.gmra.mrb[96].mxu0 %v17492_v0 }
 0x373   :  { %5885 = vmatmul.mubr.bf16.gmra.mrb[96].mxu1 %v17492_v0  ;;  %v20341_v33 = vmax.f32 %v5170_v30, %v5172_v10  ;;  %v5174_v56 = vmax.f32 %v5046_v27, 0.0  ;;  %v5176_v5 = vmax.f32 %v5048_v38, 0.0  ;;  %13644 = vmatprep.mubr.msk.bf16.mxu0 %vm580_vm0, %v17493_v39 }
 0x374   :  { %24143 = vst [vmem:[#allocation19_spill] sm:$0xff] %v20336_v44  ;;  %13660 = vmatprep.mubr.msk.bf16.mxu1 %vm580_vm0, %v17493_v39  ;;  %v20348_v2 = vmax.f32 %v5173_v28, %v5175_v36 }
 0x375   :  { %24144 = vst [vmem:[#allocation20_spill] sm:$0xff] %v20341_v33  ;;  %v20350_v21 = vmax.f32 %v5174_v56, %v5176_v5  ;;  %v4576_v51 = vpop.f32.mrb[56].mxu0  ;;  %v4769_v40 = vpop.f32.mrb[56].mxu1 }
 0x376   :  { %24145 = vst [vmem:[#allocation21_spill] sm:$0xff] %v20348_v2  ;;  %v5049_v32 = vadd.f32 %v19863_v35, %v4576_v51  ;;  %v5051_v30 = vadd.f32 %v19867_v41, %v4769_v40  ;;  %v4578_v59 = vpop.f32.mrb[57].mxu0  ;;  %v4771_v38 = vpop.f32.mrb[57].mxu1 }
 0x377   :  { %24146 = vst [vmem:[#allocation22_spill] sm:$0xff] %v20350_v21  ;;  %v5050_v48 = vadd.f32 %v19871_v15, %v4578_v59  ;;  %v5052_v10 = vadd.f32 %v19875_v16, %v4771_v38  ;;  %v4580_v27 = vpop.f32.mrb[58].mxu0  ;;  %v4773_v0 = vpop.f32.mrb[58].mxu1 }
 0x378   :  { %v5177_v33 = vmax.f32 %v5049_v32, 0.0  ;;  %v5179_v39 = vmax.f32 %v5051_v30, 0.0  ;;  %v5053_v28 = vadd.f32 %v19863_v35, %v4580_v27  ;;  %v5055_v36 = vadd.f32 %v19867_v41, %v4773_v0  ;;  %v4582_v56 = vpop.f32.mrb[59].mxu0  ;;  %v4775_v5 = vpop.f32.mrb[59].mxu1  ;;  %v17494_v32 = vld [vmem:[%s24109_s0 + $0x2b0] ss:$8 sps:$4 sm:$0xff]  }
 0x379   :  { %v5178_v21 = vmax.f32 %v5050_v48, 0.0  ;;  %v5180_v51 = vmax.f32 %v5052_v10, 0.0  ;;  %v5054_v40 = vadd.f32 %v19871_v15, %v4582_v56  ;;  %v5056_v2 = vadd.f32 %v19875_v16, %v4775_v5  ;;  %v17495_v48 = vld [vmem:[%s24109_s0 + $0x2c4] ss:$8 sps:$4 sm:$0xff]  }
 0x37a   :  { %v20360_v44 = vmax.f32 %v5177_v33, %v5179_v39  ;;  %v5181_v59 = vmax.f32 %v5053_v28, 0.0  ;;  %v5183_v38 = vmax.f32 %v5055_v36, 0.0  ;;  %5702 = vmatmul.mubr.bf16.gmra.mrb[100].mxu0 %v17494_v32 }
 0x37b   :  { %5895 = vmatmul.mubr.bf16.gmra.mrb[100].mxu1 %v17494_v32  ;;  %v20365_v30 = vmax.f32 %v5178_v21, %v5180_v51  ;;  %v5182_v27 = vmax.f32 %v5054_v40, 0.0  ;;  %v5184_v0 = vmax.f32 %v5056_v2, 0.0  ;;  %13645 = vmatprep.mubr.msk.bf16.mxu0 %vm580_vm0, %v17495_v48 }
 0x37c   :  { %24147 = vst [vmem:[#allocation23_spill] sm:$0xff] %v20360_v44  ;;  %13661 = vmatprep.mubr.msk.bf16.mxu1 %vm580_vm0, %v17495_v48  ;;  %v20372_v33 = vmax.f32 %v5181_v59, %v5183_v38 }
 0x37d   :  { %24148 = vst [vmem:[#allocation24_spill] sm:$0xff] %v20365_v30  ;;  %v20374_v10 = vmax.f32 %v5182_v27, %v5184_v0  ;;  %v4586_v39 = vpop.f32.mrb[60].mxu0  ;;  %v4779_v28 = vpop.f32.mrb[60].mxu1 }
 0x37e   :  { %24149 = vst [vmem:[#allocation25_spill] sm:$0xff] %v20372_v33  ;;  %v5057_v36 = vadd.f32 %v19863_v35, %v4586_v39  ;;  %v5059_v21 = vadd.f32 %v19867_v41, %v4779_v28  ;;  %v4588_v56 = vpop.f32.mrb[61].mxu0  ;;  %v4781_v2 = vpop.f32.mrb[61].mxu1 }
 0x37f   :  { %24150 = vst [vmem:[#allocation26_spill] sm:$0xff] %v20374_v10  ;;  %v5058_v5 = vadd.f32 %v19871_v15, %v4588_v56  ;;  %v5060_v51 = vadd.f32 %v19875_v16, %v4781_v2  ;;  %v4590_v40 = vpop.f32.mrb[62].mxu0  ;;  %v4783_v32 = vpop.f32.mrb[62].mxu1 }
 0x380   :  { %v5185_v30 = vmax.f32 %v5057_v36, 0.0  ;;  %v5187_v48 = vmax.f32 %v5059_v21, 0.0  ;;  %v5061_v59 = vadd.f32 %v19863_v35, %v4590_v40  ;;  %v5063_v38 = vadd.f32 %v19867_v41, %v4783_v32  ;;  %v4592_v27 = vpop.f32.mrb[63].mxu0  ;;  %v4785_v0 = vpop.f32.mrb[63].mxu1  ;;  %v17496_v36 = vld [vmem:[%s24109_s0 + $0x2c0] ss:$8 sps:$4 sm:$0xff]  }
 0x381   :  { %v5186_v10 = vmax.f32 %v5058_v5, 0.0  ;;  %v5188_v39 = vmax.f32 %v5060_v51, 0.0  ;;  %v5062_v28 = vadd.f32 %v19871_v15, %v4592_v27  ;;  %v5064_v33 = vadd.f32 %v19875_v16, %v4785_v0  ;;  %v17497_v5 = vld [vmem:[%s24109_s0 + $0x2d4] ss:$8 sps:$4 sm:$0xff]   ;;  %v17503_v27 = vld [vmem:[%s24109_s0 + $0x304] ss:$8 sps:$4 sm:$0xff]  }
 0x382   :  { %v20384_v44 = vmax.f32 %v5185_v30, %v5187_v48  ;;  %v5189_v56 = vmax.f32 %v5061_v59, 0.0  ;;  %v5191_v2 = vmax.f32 %v5063_v38, 0.0  ;;  %5712 = vmatmul.mubr.bf16.gmra.mrb[104].mxu0 %v17496_v36  ;;  %v17498_v48 = vld [vmem:[%s24109_s0 + $0x2d0] ss:$8 sps:$4 sm:$0xff]   ;;  %v17501_v59 = vld [vmem:[%s24109_s0 + $0x2f4] ss:$8 sps:$4 sm:$0xff]  }
 0x383   :  { %5905 = vmatmul.mubr.bf16.gmra.mrb[104].mxu1 %v17496_v36  ;;  %v20389_v21 = vmax.f32 %v5186_v10, %v5188_v39  ;;  %v5190_v40 = vmax.f32 %v5062_v28, 0.0  ;;  %v5192_v32 = vmax.f32 %v5064_v33, 0.0  ;;  %13646 = vmatprep.mubr.msk.bf16.mxu0 %vm580_vm0, %v17497_v5  ;;  %v17499_v33 = vld [vmem:[%s24109_s0 + $0x2e4] ss:$8 sps:$4 sm:$0xff]   ;;  %v17500_v10 = vld [vmem:[%s24109_s0 + $0x2e0] ss:$8 sps:$4 sm:$0xff]  }
 0x384   :  { %24151 = vst [vmem:[#allocation27_spill] sm:$0xff] %v20384_v44  ;;  %13662 = vmatprep.mubr.msk.bf16.mxu1 %vm580_vm0, %v17497_v5  ;;  %v20396_v30 = vmax.f32 %v5189_v56, %v5191_v2  ;;  %v17502_v38 = vld [vmem:[%s24109_s0 + $0x2f0] ss:$8 sps:$4 sm:$0xff]   ;;  %v17504_v0 = vld [vmem:[%s24109_s0 + $0x300] ss:$8 sps:$4 sm:$0xff]  }
 0x385   :  { %24152 = vst [vmem:[#allocation28_spill] sm:$0xff] %v20389_v21  ;;  %v20398_v51 = vmax.f32 %v5190_v40, %v5192_v32  ;;  %v17505_v39 = vld [vmem:[%s24109_s0 + $0x314] ss:$8 sps:$4 sm:$0xff]   ;;  %v17506_v28 = vld [vmem:[%s24109_s0 + $0x310] ss:$8 sps:$4 sm:$0xff]  }
 0x386   :  { %24153 = vst [vmem:[#allocation29_spill] sm:$0xff] %v20396_v30  ;;  %v17507_v56 = vld [vmem:[%s24109_s0 + $0x14] ss:$8 sps:$4 sm:$0xff]   ;;  %v17508_v2 = vld [vmem:[%s24109_s0 + $0x10] ss:$8 sps:$4 sm:$0xff]  }
 0x387   :  { %24154 = vst [vmem:[#allocation30_spill] sm:$0xff] %v20398_v51  ;;  %v17509_v36 = vld [vmem:[%s24108_s1 + $0x480] ss:$16 sps:$4 sm:$0xff]   ;;  %v17510_v40 = vld [vmem:[%s24108_s1 + $0x488] ss:$16 sps:$4 sm:$0xff]  }
 0x388   :  { %v17511_v32 = vld [vmem:[%s24109_s0 + $0x24] ss:$8 sps:$4 sm:$0xff]  }
 0x389   :  { %v17512_v5 = vld [vmem:[%s24108_s1 + $0x4a4] ss:$16 sps:$4 sm:$0xff]  }
 0x38a   :  { %5722 = vmatmul.mubr.bf16.gmra.mrb[108].mxu0 %v17498_v48 }
 0x38b   :  { %5915 = vmatmul.mubr.bf16.gmra.mrb[108].mxu1 %v17498_v48  ;;  %13647 = vmatprep.mubr.msk.bf16.mxu0 %vm580_vm0, %v17499_v33  ;;  %v17513_v48 = vld [vmem:[%s24108_s1 + $0x4ac] ss:$16 sps:$4 sm:$0xff]  }
 0x38c   :  { %13663 = vmatprep.mubr.msk.bf16.mxu1 %vm580_vm0, %v17499_v33  ;;  %v17514_v33 = vld [vmem:[%s24108_s1 + $0x4a0] ss:$16 sps:$4 sm:$0xff]  }
 0x392   :  { %5732 = vmatmul.mubr.bf16.gmra.mrb[112].mxu0 %v17500_v10 }
 0x393   :  { %5925 = vmatmul.mubr.bf16.gmra.mrb[112].mxu1 %v17500_v10  ;;  %13648 = vmatprep.mubr.msk.bf16.mxu0 %vm580_vm0, %v17501_v59  ;;  %v17515_v10 = vld [vmem:[%s24108_s1 + $0x4a8] ss:$16 sps:$4 sm:$0xff]  }
 0x394   :  { %13664 = vmatprep.mubr.msk.bf16.mxu1 %vm580_vm0, %v17501_v59  ;;  %v17516_v59 = vld [vmem:[%s24108_s1 + $0x4c4] ss:$16 sps:$4 sm:$0xff]  }
 0x39a   :  { %5742 = vmatmul.mubr.bf16.gmra.mrb[116].mxu0 %v17502_v38 }
 0x39b   :  { %5935 = vmatmul.mubr.bf16.gmra.mrb[116].mxu1 %v17502_v38  ;;  %13649 = vmatprep.mubr.msk.bf16.mxu0 %vm580_vm0, %v17503_v27  ;;  %v17517_v38 = vld [vmem:[%s24108_s1 + $0x4cc] ss:$16 sps:$4 sm:$0xff]  }
 0x39c   :  { %13665 = vmatprep.mubr.msk.bf16.mxu1 %vm580_vm0, %v17503_v27  ;;  %v17518_v27 = vld [vmem:[%s24109_s0 + $0x20] ss:$8 sps:$4 sm:$0xff]  }
 0x3a2   :  { %5752 = vmatmul.mubr.bf16.gmra.mrb[120].mxu0 %v17504_v0 }
 0x3a3   :  { %5945 = vmatmul.mubr.bf16.gmra.mrb[120].mxu1 %v17504_v0  ;;  %13650 = vmatprep.mubr.msk.bf16.mxu0 %vm580_vm0, %v17505_v39  ;;  %v17519_v0 = vld [vmem:[%s24109_s0 + $0x34] ss:$8 sps:$4 sm:$0xff]  }
 0x3a4   :  { %13666 = vmatprep.mubr.msk.bf16.mxu1 %vm580_vm0, %v17505_v39  ;;  %v17520_v39 = vld [vmem:[%s24108_s1 + $0x4c0] ss:$16 sps:$4 sm:$0xff]  }
 0x3aa   :  { %5762 = vmatmul.mubr.bf16.gmra.mrb[124].mxu0 %v17506_v28 }
 0x3ab   :  { %5955 = vmatmul.mubr.bf16.gmra.mrb[124].mxu1 %v17506_v28  ;;  %13667 = vmatprep.mubr.msk.bf16.mxu0 %vm580_vm0, %v17507_v56  ;;  %v17521_v28 = vld [vmem:[%s24108_s1 + $0x4c8] ss:$16 sps:$4 sm:$0xff]  }
 0x3ac   :  { %13683 = vmatprep.mubr.msk.bf16.mxu1 %vm580_vm0, %v17507_v56  ;;  %v17522_v56 = vld [vmem:[%s24108_s1 + $0x4e4] ss:$16 sps:$4 sm:$0xff]  }
 0x3b2   :  { %5998 = vmatmul.mubr.bf16.vlgmr.msra.gmra.mrb[64].mxu0 %v17508_v2 }
 0x3b3   :  { %6191 = vmatmul.mubr.bf16.vlgmr.msra.gmra.mrb[64].mxu1 %v17508_v2  ;;  %6704 = vmatpush1.bf16.msra.mxu0 %v17509_v36  ;;  %v17523_v2 = vld [vmem:[%s24108_s1 + $0x4ec] ss:$16 sps:$4 sm:$0xff]   ;;  %v17524_v36 = vld [vmem:[%s24108_s1 + $0x4e0] ss:$16 sps:$4 sm:$0xff]  }
 0x3b4   :  { %6897 = vmatpush1.bf16.msra.mxu1 %v17510_v40  ;;  %13668 = vmatprep.mubr.msk.bf16.mxu0 %vm580_vm0, %v17511_v32  ;;  %v17525_v40 = vld [vmem:[%s24108_s1 + $0x4e8] ss:$16 sps:$4 sm:$0xff]  }
 0x3b5   :  { %13684 = vmatprep.mubr.msk.bf16.mxu1 %vm580_vm0, %v17511_v32  ;;  %6705 = vmatprep.subr.bf16.mxu0 %v17512_v5  ;;  %v17526_v32 = vld [vmem:[%s24108_s1 + $0x504] ss:$16 sps:$4 sm:$0xff]   ;;  %v17527_v5 = vld [vmem:[%s24108_s1 + $0x50c] ss:$16 sps:$4 sm:$0xff]  }
 0x3b6   :  { %6898 = vmatprep.subr.bf16.mxu1 %v17513_v48  ;;  %v17528_v48 = vld [vmem:[%s24109_s0 + $0x30] ss:$8 sps:$4 sm:$0xff]  }
 0x3b7   :  { %6706 = vmatpush1.bf16.msra.mxu0 %v17514_v33  ;;  %v17529_v33 = vld [vmem:[%s24109_s0 + $0x44] ss:$8 sps:$4 sm:$0xff]  }
 0x3b8   :  { %6899 = vmatpush1.bf16.msra.mxu1 %v17515_v10  ;;  %6707 = vmatprep.subr.bf16.mxu0 %v17516_v59  ;;  %v17530_v10 = vld [vmem:[%s24108_s1 + $0x500] ss:$16 sps:$4 sm:$0xff]   ;;  %v17531_v59 = vld [vmem:[%s24108_s1 + $0x508] ss:$16 sps:$4 sm:$0xff]  }
 0x3b9   :  { %6900 = vmatprep.subr.bf16.mxu1 %v17517_v38  ;;  %v17532_v38 = vld [vmem:[%s24108_s1 + $0x524] ss:$16 sps:$4 sm:$0xff]  }
 0x3ba   :  { %6008 = vmatmul.mubr.bf16.gmra.mrb[68].mxu0 %v17518_v27 }
 0x3bb   :  { %6201 = vmatmul.mubr.bf16.gmra.mrb[68].mxu1 %v17518_v27  ;;  %13669 = vmatprep.mubr.msk.bf16.mxu0 %vm580_vm0, %v17519_v0  ;;  %v17533_v27 = vld [vmem:[%s24108_s1 + $0x52c] ss:$16 sps:$4 sm:$0xff]  }
 0x3bc   :  { %13685 = vmatprep.mubr.msk.bf16.mxu1 %vm580_vm0, %v17519_v0  ;;  %6708 = vmatpush1.bf16.msra.mxu0 %v17520_v39  ;;  %v17534_v0 = vld [vmem:[%s24108_s1 + $0x520] ss:$16 sps:$4 sm:$0xff]   ;;  %v17535_v39 = vld [vmem:[%s24108_s1 + $0x528] ss:$16 sps:$4 sm:$0xff]  }
 0x3bd   :  { %6901 = vmatpush1.bf16.msra.mxu1 %v17521_v28  ;;  %6709 = vmatprep.subr.bf16.mxu0 %v17522_v56  ;;  %v17536_v28 = vld [vmem:[%s24108_s1 + $0x544] ss:$16 sps:$4 sm:$0xff]   ;;  %v17537_v56 = vld [vmem:[%s24108_s1 + $0x54c] ss:$16 sps:$4 sm:$0xff]  }
 0x3be   :  { %6902 = vmatprep.subr.bf16.mxu1 %v17523_v2  ;;  %v17538_v2 = vld [vmem:[%s24109_s0 + $0x40] ss:$8 sps:$4 sm:$0xff]  }
 0x3c0   :  { %6710 = vmatpush1.bf16.msra.mxu0 %v17524_v36  ;;  %v17539_v36 = vld [vmem:[%s24109_s0 + $0x54] ss:$8 sps:$4 sm:$0xff]  }
 0x3c1   :  { %6903 = vmatpush1.bf16.msra.mxu1 %v17525_v40  ;;  %6711 = vmatprep.subr.bf16.mxu0 %v17526_v32  ;;  %v17540_v40 = vld [vmem:[%s24108_s1 + $0x540] ss:$16 sps:$4 sm:$0xff]   ;;  %v17541_v32 = vld [vmem:[%s24108_s1 + $0x548] ss:$16 sps:$4 sm:$0xff]  }
 0x3c2   :  { %6904 = vmatprep.subr.bf16.mxu1 %v17527_v5  ;;  %6018 = vmatmul.mubr.bf16.gmra.mrb[72].mxu0 %v17528_v48  ;;  %v17542_v5 = vld [vmem:[%s24108_s1 + $0x564] ss:$16 sps:$4 sm:$0xff]  }
 0x3c3   :  { %6211 = vmatmul.mubr.bf16.gmra.mrb[72].mxu1 %v17528_v48  ;;  %13670 = vmatprep.mubr.msk.bf16.mxu0 %vm580_vm0, %v17529_v33  ;;  %v17543_v48 = vld [vmem:[%s24108_s1 + $0x56c] ss:$16 sps:$4 sm:$0xff]  }
 0x3c4   :  { %13686 = vmatprep.mubr.msk.bf16.mxu1 %vm580_vm0, %v17529_v33  ;;  %6712 = vmatpush1.bf16.msra.mxu0 %v17530_v10  ;;  %v17544_v33 = vld [vmem:[%s24108_s1 + $0x560] ss:$16 sps:$4 sm:$0xff]   ;;  %v17545_v10 = vld [vmem:[%s24108_s1 + $0x568] ss:$16 sps:$4 sm:$0xff]  }
 0x3c5   :  { %6905 = vmatpush1.bf16.msra.mxu1 %v17531_v59  ;;  %6713 = vmatprep.subr.bf16.mxu0 %v17532_v38  ;;  %v17546_v59 = vld [vmem:[%s24108_s1 + $0x584] ss:$16 sps:$4 sm:$0xff]   ;;  %v17547_v38 = vld [vmem:[%s24108_s1 + $0x58c] ss:$16 sps:$4 sm:$0xff]  }
 0x3c6   :  { %6906 = vmatprep.subr.bf16.mxu1 %v17533_v27  ;;  %v17548_v27 = vld [vmem:[%s24109_s0 + $0x50] ss:$8 sps:$4 sm:$0xff]  }
 0x3c8   :  { %6714 = vmatpush1.bf16.msra.mxu0 %v17534_v0  ;;  %v17549_v0 = vld [vmem:[%s24109_s0 + $0x64] ss:$8 sps:$4 sm:$0xff]  }
 0x3c9   :  { %6907 = vmatpush1.bf16.msra.mxu1 %v17535_v39  ;;  %6715 = vmatprep.subr.bf16.mxu0 %v17536_v28  ;;  %v17550_v39 = vld [vmem:[%s24108_s1 + $0x580] ss:$16 sps:$4 sm:$0xff]   ;;  %v17551_v28 = vld [vmem:[%s24108_s1 + $0x588] ss:$16 sps:$4 sm:$0xff]  }
 0x3ca   :  { %6908 = vmatprep.subr.bf16.mxu1 %v17537_v56  ;;  %6028 = vmatmul.mubr.bf16.gmra.mrb[76].mxu0 %v17538_v2  ;;  %v17552_v56 = vld [vmem:[%s24108_s1 + $0x5a4] ss:$16 sps:$4 sm:$0xff]  }
 0x3cb   :  { %6221 = vmatmul.mubr.bf16.gmra.mrb[76].mxu1 %v17538_v2  ;;  %13671 = vmatprep.mubr.msk.bf16.mxu0 %vm580_vm0, %v17539_v36  ;;  %v17553_v2 = vld [vmem:[%s24108_s1 + $0x5ac] ss:$16 sps:$4 sm:$0xff]  }
 0x3cc   :  { %13687 = vmatprep.mubr.msk.bf16.mxu1 %vm580_vm0, %v17539_v36  ;;  %6716 = vmatpush1.bf16.msra.mxu0 %v17540_v40  ;;  %v17554_v36 = vld [vmem:[%s24108_s1 + $0x5a0] ss:$16 sps:$4 sm:$0xff]   ;;  %v17555_v40 = vld [vmem:[%s24108_s1 + $0x5a8] ss:$16 sps:$4 sm:$0xff]  }
 0x3cd   :  { %6909 = vmatpush1.bf16.msra.mxu1 %v17541_v32  ;;  %6717 = vmatprep.subr.bf16.mxu0 %v17542_v5  ;;  %v17556_v32 = vld [vmem:[%s24108_s1 + $0x5c4] ss:$16 sps:$4 sm:$0xff]   ;;  %v17557_v5 = vld [vmem:[%s24108_s1 + $0x5cc] ss:$16 sps:$4 sm:$0xff]  }
 0x3ce   :  { %6910 = vmatprep.subr.bf16.mxu1 %v17543_v48  ;;  %v17558_v48 = vld [vmem:[%s24109_s0 + $0x60] ss:$8 sps:$4 sm:$0xff]  }
 0x3d0   :  { %6718 = vmatpush1.bf16.msra.mxu0 %v17544_v33  ;;  %v17559_v33 = vld [vmem:[%s24109_s0 + $0x74] ss:$8 sps:$4 sm:$0xff]  }
 0x3d1   :  { %6911 = vmatpush1.bf16.msra.mxu1 %v17545_v10  ;;  %6719 = vmatprep.subr.bf16.mxu0 %v17546_v59  ;;  %v17560_v10 = vld [vmem:[%s24108_s1 + $0x5c0] ss:$16 sps:$4 sm:$0xff]   ;;  %v17561_v59 = vld [vmem:[%s24108_s1 + $0x5c8] ss:$16 sps:$4 sm:$0xff]  }
 0x3d2   :  { %6912 = vmatprep.subr.bf16.mxu1 %v17547_v38  ;;  %6038 = vmatmul.mubr.bf16.gmra.mrb[80].mxu0 %v17548_v27  ;;  %v17562_v38 = vld [vmem:[%s24108_s1 + $0x5e4] ss:$16 sps:$4 sm:$0xff]  }
 0x3d3   :  { %6231 = vmatmul.mubr.bf16.gmra.mrb[80].mxu1 %v17548_v27  ;;  %13672 = vmatprep.mubr.msk.bf16.mxu0 %vm580_vm0, %v17549_v0  ;;  %v17563_v27 = vld [vmem:[%s24108_s1 + $0x5ec] ss:$16 sps:$4 sm:$0xff]  }
 0x3d4   :  { %13688 = vmatprep.mubr.msk.bf16.mxu1 %vm580_vm0, %v17549_v0  ;;  %6720 = vmatpush1.bf16.msra.mxu0 %v17550_v39  ;;  %v17564_v0 = vld [vmem:[%s24108_s1 + $0x5e0] ss:$16 sps:$4 sm:$0xff]   ;;  %v17565_v39 = vld [vmem:[%s24108_s1 + $0x5e8] ss:$16 sps:$4 sm:$0xff]  }
 0x3d5   :  { %6913 = vmatpush1.bf16.msra.mxu1 %v17551_v28  ;;  %6721 = vmatprep.subr.bf16.mxu0 %v17552_v56  ;;  %v17566_v28 = vld [vmem:[%s24108_s1 + $0x604] ss:$16 sps:$4 sm:$0xff]   ;;  %v17567_v56 = vld [vmem:[%s24108_s1 + $0x60c] ss:$16 sps:$4 sm:$0xff]  }
 0x3d6   :  { %6914 = vmatprep.subr.bf16.mxu1 %v17553_v2  ;;  %v17568_v2 = vld [vmem:[%s24109_s0 + $0x70] ss:$8 sps:$4 sm:$0xff]  }
 0x3d8   :  { %6722 = vmatpush1.bf16.msra.mxu0 %v17554_v36  ;;  %v17569_v36 = vld [vmem:[%s24109_s0 + $0x84] ss:$8 sps:$4 sm:$0xff]  }
 0x3d9   :  { %6915 = vmatpush1.bf16.msra.mxu1 %v17555_v40  ;;  %6723 = vmatprep.subr.bf16.mxu0 %v17556_v32  ;;  %v17570_v40 = vld [vmem:[%s24109_s0 + $0x80] ss:$8 sps:$4 sm:$0xff]   ;;  %v17571_v32 = vld [vmem:[%s24109_s0 + $0x94] ss:$8 sps:$4 sm:$0xff]  }
 0x3da   :  { %6916 = vmatprep.subr.bf16.mxu1 %v17557_v5  ;;  %6048 = vmatmul.mubr.bf16.gmra.mrb[84].mxu0 %v17558_v48  ;;  %v17572_v5 = vld [vmem:[%s24109_s0 + $0x90] ss:$8 sps:$4 sm:$0xff]  }
 0x3db   :  { %6241 = vmatmul.mubr.bf16.gmra.mrb[84].mxu1 %v17558_v48  ;;  %13673 = vmatprep.mubr.msk.bf16.mxu0 %vm580_vm0, %v17559_v33  ;;  %v17573_v48 = vld [vmem:[%s24109_s0 + $0xa4] ss:$8 sps:$4 sm:$0xff]  }
 0x3dc   :  { %13689 = vmatprep.mubr.msk.bf16.mxu1 %vm580_vm0, %v17559_v33  ;;  %6724 = vmatpush1.bf16.msra.mxu0 %v17560_v10  ;;  %v17574_v33 = vld [vmem:[%s24109_s0 + $0xa0] ss:$8 sps:$4 sm:$0xff]   ;;  %v17575_v10 = vld [vmem:[%s24109_s0 + $0xb4] ss:$8 sps:$4 sm:$0xff]  }
 0x3dd   :  { %6917 = vmatpush1.bf16.msra.mxu1 %v17561_v59  ;;  %6725 = vmatprep.subr.bf16.mxu0 %v17562_v38  ;;  %v17576_v59 = vld [vmem:[%s24109_s0 + $0xb0] ss:$8 sps:$4 sm:$0xff]   ;;  %v17577_v38 = vld [vmem:[%s24109_s0 + $0xc4] ss:$8 sps:$4 sm:$0xff]  }
 0x3de   :  { %6918 = vmatprep.subr.bf16.mxu1 %v17563_v27  ;;  %v17578_v27 = vld [vmem:[%s24109_s0 + $0xc0] ss:$8 sps:$4 sm:$0xff]  }
 0x3e0   :  { %6726 = vmatpush1.bf16.msra.mxu0 %v17564_v0  ;;  %v17579_v0 = vld [vmem:[%s24109_s0 + $0xd4] ss:$8 sps:$4 sm:$0xff]  }
 0x3e1   :  { %6919 = vmatpush1.bf16.msra.mxu1 %v17565_v39  ;;  %7441 = vmatprep.subr.bf16.mxu0 %v17566_v28  ;;  %v17580_v39 = vld [vmem:[%s24109_s0 + $0xd0] ss:$8 sps:$4 sm:$0xff]   ;;  %v17581_v28 = vld [vmem:[%s24109_s0 + $0xe4] ss:$8 sps:$4 sm:$0xff]  }
 0x3e2   :  { %7634 = vmatprep.subr.bf16.mxu1 %v17567_v56  ;;  %6058 = vmatmul.mubr.bf16.gmra.mrb[88].mxu0 %v17568_v2  ;;  %v17582_v56 = vld [vmem:[%s24109_s0 + $0xe0] ss:$8 sps:$4 sm:$0xff]  }
 0x3e3   :  { %6251 = vmatmul.mubr.bf16.gmra.mrb[88].mxu1 %v17568_v2  ;;  %13674 = vmatprep.mubr.msk.bf16.mxu0 %vm580_vm0, %v17569_v36  ;;  %v17583_v2 = vld [vmem:[%s24109_s0 + $0xf4] ss:$8 sps:$4 sm:$0xff]  }
 0x3e4   :  { %13690 = vmatprep.mubr.msk.bf16.mxu1 %vm580_vm0, %v17569_v36  ;;  %v17584_v36 = vld [vmem:[%s24109_s0 + $0xf0] ss:$8 sps:$4 sm:$0xff]  }
 0x3ea   :  { %6068 = vmatmul.mubr.bf16.gmra.mrb[92].mxu0 %v17570_v40 }
 0x3eb   :  { %6261 = vmatmul.mubr.bf16.gmra.mrb[92].mxu1 %v17570_v40  ;;  %13675 = vmatprep.mubr.msk.bf16.mxu0 %vm580_vm0, %v17571_v32  ;;  %v17585_v40 = vld [vmem:[%s24109_s0 + $0x104] ss:$8 sps:$4 sm:$0xff]  }
 0x3ec   :  { %13691 = vmatprep.mubr.msk.bf16.mxu1 %vm580_vm0, %v17571_v32  ;;  %v16755_v32 = vld [vmem:[%s24109_s0 + $0x124] ss:$8 sps:$4 sm:$0xff]  }
 0x3f2   :  { %6078 = vmatmul.mubr.bf16.gmra.mrb[96].mxu0 %v17572_v5 }
 0x3f3   :  { %6271 = vmatmul.mubr.bf16.gmra.mrb[96].mxu1 %v17572_v5  ;;  %13676 = vmatprep.mubr.msk.bf16.mxu0 %vm580_vm0, %v17573_v48  ;;  %v17586_v5 = vld [vmem:[%s24109_s0 + $0x100] ss:$8 sps:$4 sm:$0xff]  }
 0x3f4   :  { %13692 = vmatprep.mubr.msk.bf16.mxu1 %vm580_vm0, %v17573_v48  ;;  %v16753_v48 = vld [vmem:[%s24109_s0 + $0x120] ss:$8 sps:$4 sm:$0xff]  }
 0x3fa   :  { %6088 = vmatmul.mubr.bf16.gmra.mrb[100].mxu0 %v17574_v33 }
 0x3fb   :  { %6281 = vmatmul.mubr.bf16.gmra.mrb[100].mxu1 %v17574_v33  ;;  %13677 = vmatprep.mubr.msk.bf16.mxu0 %vm580_vm0, %v17575_v10  ;;  %v16756_v33 = vld [vmem:[%s24109_s0 + $0x134] ss:$8 sps:$4 sm:$0xff]  }
 0x3fc   :  { %13693 = vmatprep.mubr.msk.bf16.mxu1 %vm580_vm0, %v17575_v10  ;;  %v17587_v10 = vld [vmem:[%s24108_s1 + $0x600] ss:$16 sps:$4 sm:$0xff]  }
 0x402   :  { %6098 = vmatmul.mubr.bf16.gmra.mrb[104].mxu0 %v17576_v59 }
 0x403   :  { %6291 = vmatmul.mubr.bf16.gmra.mrb[104].mxu1 %v17576_v59  ;;  %13678 = vmatprep.mubr.msk.bf16.mxu0 %vm580_vm0, %v17577_v38  ;;  %v17588_v59 = vld [vmem:[%s24108_s1 + $0x608] ss:$16 sps:$4 sm:$0xff]  }
 0x404   :  { %13694 = vmatprep.mubr.msk.bf16.mxu1 %vm580_vm0, %v17577_v38  ;;  %v17589_v38 = vld [vmem:[%s24108_s1 + $0x624] ss:$16 sps:$4 sm:$0xff]  }
 0x40a   :  { %6108 = vmatmul.mubr.bf16.gmra.mrb[108].mxu0 %v17578_v27 }
 0x40b   :  { %6301 = vmatmul.mubr.bf16.gmra.mrb[108].mxu1 %v17578_v27  ;;  %13679 = vmatprep.mubr.msk.bf16.mxu0 %vm580_vm0, %v17579_v0  ;;  %v17590_v27 = vld [vmem:[%s24108_s1 + $0x62c] ss:$16 sps:$4 sm:$0xff]  }
 0x40c   :  { %13695 = vmatprep.mubr.msk.bf16.mxu1 %vm580_vm0, %v17579_v0  ;;  %v16758_v0 = vld [vmem:[%s24109_s0 + $0x130] ss:$8 sps:$4 sm:$0xff]  }
 0x412   :  { %6118 = vmatmul.mubr.bf16.gmra.mrb[112].mxu0 %v17580_v39 }
 0x413   :  { %6311 = vmatmul.mubr.bf16.gmra.mrb[112].mxu1 %v17580_v39  ;;  %13680 = vmatprep.mubr.msk.bf16.mxu0 %vm580_vm0, %v17581_v28  ;;  %v17591_v39 = vld [vmem:[%s24108_s1 + $0x620] ss:$16 sps:$4 sm:$0xff]  }
 0x414   :  { %13696 = vmatprep.mubr.msk.bf16.mxu1 %vm580_vm0, %v17581_v28  ;;  %v17592_v28 = vld [vmem:[%s24108_s1 + $0x628] ss:$16 sps:$4 sm:$0xff]  }
 0x41a   :  { %6128 = vmatmul.mubr.bf16.gmra.mrb[116].mxu0 %v17582_v56 }
 0x41b   :  { %6321 = vmatmul.mubr.bf16.gmra.mrb[116].mxu1 %v17582_v56  ;;  %13681 = vmatprep.mubr.msk.bf16.mxu0 %vm580_vm0, %v17583_v2  ;;  %v16759_v56 = vld [vmem:[%s24109_s0 + $0x144] ss:$8 sps:$4 sm:$0xff]  }
 0x41c   :  { %13697 = vmatprep.mubr.msk.bf16.mxu1 %vm580_vm0, %v17583_v2  ;;  %v17593_v2 = vld [vmem:[%s24108_s1 + $0x644] ss:$16 sps:$4 sm:$0xff]  }
 0x422   :  { %6138 = vmatmul.mubr.bf16.gmra.mrb[120].mxu0 %v17584_v36 }
 0x423   :  { %6331 = vmatmul.mubr.bf16.gmra.mrb[120].mxu1 %v17584_v36  ;;  %13682 = vmatprep.mubr.msk.bf16.mxu0 %vm580_vm0, %v17585_v40  ;;  %v17594_v36 = vld [vmem:[%s24108_s1 + $0x64c] ss:$16 sps:$4 sm:$0xff]  }
 0x424   :  { %13698 = vmatprep.mubr.msk.bf16.mxu1 %vm580_vm0, %v17585_v40  ;;  %v17595_v40 = vld [vmem:[%s24108_s1 + $0x640] ss:$16 sps:$4 sm:$0xff]  }
 0x42a   :  { %6148 = vmatmul.mubr.bf16.gmra.mrb[124].mxu0 %v17586_v5 }
 0x42b   :  { %6341 = vmatmul.mubr.bf16.gmra.mrb[124].mxu1 %v17586_v5  ;;  %13763 = vmatprep.mubr.msk.bf16.mxu0 %vm580_vm0, %v16755_v32  ;;  %v17597_v5 = vld [vmem:[%s24108_s1 + $0x664] ss:$16 sps:$4 sm:$0xff]  }
 0x42c   :  { %13779 = vmatprep.mubr.msk.bf16.mxu1 %vm580_vm0, %v16755_v32  ;;  %v17596_v32 = vld [vmem:[%s24108_s1 + $0x648] ss:$16 sps:$4 sm:$0xff]  }
 0x432   :  { %6736 = vmatmul.mubr.bf16.vlgmr.msra.gmra.mrb[64].mxu0 %v16753_v48 }
 0x433   :  { %6929 = vmatmul.mubr.bf16.vlgmr.msra.gmra.mrb[64].mxu1 %v16753_v48  ;;  %7442 = vmatpush1.bf16.msra.mxu0 %v17587_v10  ;;  %v17598_v48 = vld [vmem:[%s24108_s1 + $0x66c] ss:$16 sps:$4 sm:$0xff]  }
 0x434   :  { %7635 = vmatpush1.bf16.msra.mxu1 %v17588_v59  ;;  %13764 = vmatprep.mubr.msk.bf16.mxu0 %vm580_vm0, %v16756_v33  ;;  %v16762_v10 = vld [vmem:[%s24109_s0 + $0x154] ss:$8 sps:$4 sm:$0xff]   ;;  %v17599_v59 = vld [vmem:[%s24108_s1 + $0x660] ss:$16 sps:$4 sm:$0xff]  }
 0x435   :  { %13780 = vmatprep.mubr.msk.bf16.mxu1 %vm580_vm0, %v16756_v33  ;;  %7443 = vmatprep.subr.bf16.mxu0 %v17589_v38  ;;  %v16761_v33 = vld [vmem:[%s24109_s0 + $0x140] ss:$8 sps:$4 sm:$0xff]  }
 0x436   :  { %7636 = vmatprep.subr.bf16.mxu1 %v17590_v27  ;;  %v17600_v38 = vld [vmem:[%s24108_s1 + $0x668] ss:$16 sps:$4 sm:$0xff]   ;;  %v17601_v27 = vld [vmem:[%s24108_s1 + $0x684] ss:$16 sps:$4 sm:$0xff]  }
 0x437   :  { %7444 = vmatpush1.bf16.msra.mxu0 %v17591_v39  ;;  %v17603_v39 = vld [vmem:[%s24108_s1 + $0x680] ss:$16 sps:$4 sm:$0xff]  }
 0x438   :  { %7637 = vmatpush1.bf16.msra.mxu1 %v17592_v28  ;;  %7445 = vmatprep.subr.bf16.mxu0 %v17593_v2  ;;  %v17604_v28 = vld [vmem:[%s24108_s1 + $0x688] ss:$16 sps:$4 sm:$0xff]   ;;  %v17606_v2 = vld [vmem:[%s24108_s1 + $0x6ac] ss:$16 sps:$4 sm:$0xff]  }
 0x439   :  { %7638 = vmatprep.subr.bf16.mxu1 %v17594_v36  ;;  %v16764_v36 = vld [vmem:[%s24109_s0 + $0x150] ss:$8 sps:$4 sm:$0xff]  }
 0x43a   :  { %6746 = vmatmul.mubr.bf16.gmra.mrb[68].mxu0 %v16758_v0 }
 0x43b   :  { %6939 = vmatmul.mubr.bf16.gmra.mrb[68].mxu1 %v16758_v0  ;;  %13765 = vmatprep.mubr.msk.bf16.mxu0 %vm580_vm0, %v16759_v56  ;;  %v17602_v0 = vld [vmem:[%s24108_s1 + $0x68c] ss:$16 sps:$4 sm:$0xff]  }
 0x43c   :  { %13781 = vmatprep.mubr.msk.bf16.mxu1 %vm580_vm0, %v16759_v56  ;;  %7446 = vmatpush1.bf16.msra.mxu0 %v17595_v40  ;;  %v17605_v56 = vld [vmem:[%s24108_s1 + $0x6a4] ss:$16 sps:$4 sm:$0xff]  }
 0x43d   :  { %7639 = vmatpush1.bf16.msra.mxu1 %v17596_v32  ;;  %7447 = vmatprep.subr.bf16.mxu0 %v17597_v5  ;;  %v16765_v40 = vld [vmem:[%s24109_s0 + $0x164] ss:$8 sps:$4 sm:$0xff]   ;;  %v17607_v32 = vld [vmem:[%s24108_s1 + $0x6a0] ss:$16 sps:$4 sm:$0xff]   ;;  %v17608_v5 = vld [vmem:[%s24108_s1 + $0x6a8] ss:$16 sps:$4 sm:$0xff]  }
 0x43e   :  { %7640 = vmatprep.subr.bf16.mxu1 %v17598_v48  ;;  %v17609_v48 = vld [vmem:[%s24108_s1 + $0x6c4] ss:$16 sps:$4 sm:$0xff]  }
 0x440   :  { %7448 = vmatpush1.bf16.msra.mxu0 %v17599_v59  ;;  %v17612_v59 = vld [vmem:[%s24108_s1 + $0x6c8] ss:$16 sps:$4 sm:$0xff]  }
 0x441   :  { %7641 = vmatpush1.bf16.msra.mxu1 %v17600_v38  ;;  %7449 = vmatprep.subr.bf16.mxu0 %v17601_v27  ;;  %v17613_v38 = vld [vmem:[%s24108_s1 + $0x6e4] ss:$16 sps:$4 sm:$0xff]   ;;  %v17614_v27 = vld [vmem:[%s24108_s1 + $0x6ec] ss:$16 sps:$4 sm:$0xff]  }
 0x442   :  { %7642 = vmatprep.subr.bf16.mxu1 %v17602_v0  ;;  %6756 = vmatmul.mubr.bf16.gmra.mrb[72].mxu0 %v16761_v33  ;;  %v16767_v0 = vld [vmem:[%s24109_s0 + $0x160] ss:$8 sps:$4 sm:$0xff]  }
 0x443   :  { %6949 = vmatmul.mubr.bf16.gmra.mrb[72].mxu1 %v16761_v33  ;;  %13766 = vmatprep.mubr.msk.bf16.mxu0 %vm580_vm0, %v16762_v10  ;;  %v17610_v33 = vld [vmem:[%s24108_s1 + $0x6cc] ss:$16 sps:$4 sm:$0xff]  }
 0x444   :  { %13782 = vmatprep.mubr.msk.bf16.mxu1 %vm580_vm0, %v16762_v10  ;;  %7450 = vmatpush1.bf16.msra.mxu0 %v17603_v39  ;;  %v17611_v10 = vld [vmem:[%s24108_s1 + $0x6c0] ss:$16 sps:$4 sm:$0xff]   ;;  %v16768_v39 = vld [vmem:[%s24109_s0 + $0x174] ss:$8 sps:$4 sm:$0xff]  }
 0x445   :  { %7643 = vmatpush1.bf16.msra.mxu1 %v17604_v28  ;;  %7451 = vmatprep.subr.bf16.mxu0 %v17605_v56  ;;  %v17615_v28 = vld [vmem:[%s24108_s1 + $0x6e0] ss:$16 sps:$4 sm:$0xff]   ;;  %v17616_v56 = vld [vmem:[%s24108_s1 + $0x6e8] ss:$16 sps:$4 sm:$0xff]  }
 0x446   :  { %7644 = vmatprep.subr.bf16.mxu1 %v17606_v2  ;;  %v17617_v2 = vld [vmem:[%s24108_s1 + $0x704] ss:$16 sps:$4 sm:$0xff]  }
 0x448   :  { %7452 = vmatpush1.bf16.msra.mxu0 %v17607_v32  ;;  %v17620_v32 = vld [vmem:[%s24108_s1 + $0x708] ss:$16 sps:$4 sm:$0xff]  }
 0x449   :  { %7645 = vmatpush1.bf16.msra.mxu1 %v17608_v5  ;;  %7453 = vmatprep.subr.bf16.mxu0 %v17609_v48  ;;  %v17621_v5 = vld [vmem:[%s24108_s1 + $0x724] ss:$16 sps:$4 sm:$0xff]   ;;  %v17622_v48 = vld [vmem:[%s24108_s1 + $0x72c] ss:$16 sps:$4 sm:$0xff]  }
 0x44a   :  { %7646 = vmatprep.subr.bf16.mxu1 %v17610_v33  ;;  %6766 = vmatmul.mubr.bf16.gmra.mrb[76].mxu0 %v16764_v36  ;;  %v16770_v33 = vld [vmem:[%s24109_s0 + $0x170] ss:$8 sps:$4 sm:$0xff]  }
 0x44b   :  { %6959 = vmatmul.mubr.bf16.gmra.mrb[76].mxu1 %v16764_v36  ;;  %13767 = vmatprep.mubr.msk.bf16.mxu0 %vm580_vm0, %v16765_v40  ;;  %v17618_v36 = vld [vmem:[%s24108_s1 + $0x70c] ss:$16 sps:$4 sm:$0xff]  }
 0x44c   :  { %13783 = vmatprep.mubr.msk.bf16.mxu1 %vm580_vm0, %v16765_v40  ;;  %7454 = vmatpush1.bf16.msra.mxu0 %v17611_v10  ;;  %v17619_v40 = vld [vmem:[%s24108_s1 + $0x700] ss:$16 sps:$4 sm:$0xff]   ;;  %v16771_v10 = vld [vmem:[%s24109_s0 + $0x184] ss:$8 sps:$4 sm:$0xff]  }
 0x44d   :  { %7647 = vmatpush1.bf16.msra.mxu1 %v17612_v59  ;;  %7455 = vmatprep.subr.bf16.mxu0 %v17613_v38  ;;  %v17623_v59 = vld [vmem:[%s24108_s1 + $0x720] ss:$16 sps:$4 sm:$0xff]   ;;  %v17624_v38 = vld [vmem:[%s24108_s1 + $0x728] ss:$16 sps:$4 sm:$0xff]  }
 0x44e   :  { %7648 = vmatprep.subr.bf16.mxu1 %v17614_v27  ;;  %v17625_v27 = vld [vmem:[%s24108_s1 + $0x744] ss:$16 sps:$4 sm:$0xff]  }
 0x450   :  { %7456 = vmatpush1.bf16.msra.mxu0 %v17615_v28  ;;  %v17628_v28 = vld [vmem:[%s24108_s1 + $0x748] ss:$16 sps:$4 sm:$0xff]  }
 0x451   :  { %7649 = vmatpush1.bf16.msra.mxu1 %v17616_v56  ;;  %7457 = vmatprep.subr.bf16.mxu0 %v17617_v2  ;;  %v17629_v56 = vld [vmem:[%s24108_s1 + $0x764] ss:$16 sps:$4 sm:$0xff]   ;;  %v17630_v2 = vld [vmem:[%s24108_s1 + $0x76c] ss:$16 sps:$4 sm:$0xff]  }
 0x452   :  { %7650 = vmatprep.subr.bf16.mxu1 %v17618_v36  ;;  %6776 = vmatmul.mubr.bf16.gmra.mrb[80].mxu0 %v16767_v0  ;;  %v16773_v36 = vld [vmem:[%s24109_s0 + $0x180] ss:$8 sps:$4 sm:$0xff]  }
 0x453   :  { %6969 = vmatmul.mubr.bf16.gmra.mrb[80].mxu1 %v16767_v0  ;;  %13768 = vmatprep.mubr.msk.bf16.mxu0 %vm580_vm0, %v16768_v39  ;;  %v17626_v0 = vld [vmem:[%s24108_s1 + $0x74c] ss:$16 sps:$4 sm:$0xff]  }
 0x454   :  { %13784 = vmatprep.mubr.msk.bf16.mxu1 %vm580_vm0, %v16768_v39  ;;  %7458 = vmatpush1.bf16.msra.mxu0 %v17619_v40  ;;  %v17627_v39 = vld [vmem:[%s24108_s1 + $0x740] ss:$16 sps:$4 sm:$0xff]   ;;  %v16774_v40 = vld [vmem:[%s24109_s0 + $0x194] ss:$8 sps:$4 sm:$0xff]  }
 0x455   :  { %7651 = vmatpush1.bf16.msra.mxu1 %v17620_v32  ;;  %7459 = vmatprep.subr.bf16.mxu0 %v17621_v5  ;;  %v17631_v32 = vld [vmem:[%s24108_s1 + $0x760] ss:$16 sps:$4 sm:$0xff]   ;;  %v17632_v5 = vld [vmem:[%s24108_s1 + $0x768] ss:$16 sps:$4 sm:$0xff]  }
 0x456   :  { %7652 = vmatprep.subr.bf16.mxu1 %v17622_v48  ;;  %v16776_v48 = vld [vmem:[%s24109_s0 + $0x190] ss:$8 sps:$4 sm:$0xff]  }
 0x458   :  { %7460 = vmatpush1.bf16.msra.mxu0 %v17623_v59  ;;  %v16780_v59 = vld [vmem:[%s24109_s0 + $0x1b4] ss:$8 sps:$4 sm:$0xff]  }
 0x459   :  { %7653 = vmatpush1.bf16.msra.mxu1 %v17624_v38  ;;  %7461 = vmatprep.subr.bf16.mxu0 %v17625_v27  ;;  %v16782_v38 = vld [vmem:[%s24109_s0 + $0x1b0] ss:$8 sps:$4 sm:$0xff]   ;;  %v16783_v27 = vld [vmem:[%s24109_s0 + $0x1c4] ss:$8 sps:$4 sm:$0xff]  }
 0x45a   :  { %7654 = vmatprep.subr.bf16.mxu1 %v17626_v0  ;;  %6786 = vmatmul.mubr.bf16.gmra.mrb[84].mxu0 %v16770_v33  ;;  %v16785_v0 = vld [vmem:[%s24109_s0 + $0x1c0] ss:$8 sps:$4 sm:$0xff]  }
 0x45b   :  { %6979 = vmatmul.mubr.bf16.gmra.mrb[84].mxu1 %v16770_v33  ;;  %13769 = vmatprep.mubr.msk.bf16.mxu0 %vm580_vm0, %v16771_v10  ;;  %v16777_v33 = vld [vmem:[%s24109_s0 + $0x1a4] ss:$8 sps:$4 sm:$0xff]  }
 0x45c   :  { %13785 = vmatprep.mubr.msk.bf16.mxu1 %vm580_vm0, %v16771_v10  ;;  %7462 = vmatpush1.bf16.msra.mxu0 %v17627_v39  ;;  %v16779_v10 = vld [vmem:[%s24109_s0 + $0x1a0] ss:$8 sps:$4 sm:$0xff]   ;;  %v16786_v39 = vld [vmem:[%s24109_s0 + $0x1d4] ss:$8 sps:$4 sm:$0xff]  }
 0x45d   :  { %7655 = vmatpush1.bf16.msra.mxu1 %v17628_v28  ;;  %7463 = vmatprep.subr.bf16.mxu0 %v17629_v56  ;;  %v16788_v28 = vld [vmem:[%s24109_s0 + $0x1d0] ss:$8 sps:$4 sm:$0xff]   ;;  %v16789_v56 = vld [vmem:[%s24109_s0 + $0x1e4] ss:$8 sps:$4 sm:$0xff]  }
 0x45e   :  { %7656 = vmatprep.subr.bf16.mxu1 %v17630_v2  ;;  %v16791_v2 = vld [vmem:[%s24109_s0 + $0x1e0] ss:$8 sps:$4 sm:$0xff]  }
 0x460   :  { %7464 = vmatpush1.bf16.msra.mxu0 %v17631_v32  ;;  %v16795_v32 = vld [vmem:[%s24109_s0 + $0x204] ss:$8 sps:$4 sm:$0xff]  }
 0x461   :  { %7657 = vmatpush1.bf16.msra.mxu1 %v17632_v5  ;;  %v16797_v5 = vld [vmem:[%s24109_s0 + $0x200] ss:$8 sps:$4 sm:$0xff]  }
 0x462   :  { %6796 = vmatmul.mubr.bf16.gmra.mrb[88].mxu0 %v16773_v36 }
 0x463   :  { %6989 = vmatmul.mubr.bf16.gmra.mrb[88].mxu1 %v16773_v36  ;;  %13770 = vmatprep.mubr.msk.bf16.mxu0 %vm580_vm0, %v16774_v40  ;;  %v16792_v36 = vld [vmem:[%s24109_s0 + $0x1f4] ss:$8 sps:$4 sm:$0xff]  }
 0x464   :  { %13786 = vmatprep.mubr.msk.bf16.mxu1 %vm580_vm0, %v16774_v40  ;;  %v16794_v40 = vld [vmem:[%s24109_s0 + $0x1f0] ss:$8 sps:$4 sm:$0xff]  }
 0x46a   :  { %6806 = vmatmul.mubr.bf16.gmra.mrb[92].mxu0 %v16776_v48 }
 0x46b   :  { %6999 = vmatmul.mubr.bf16.gmra.mrb[92].mxu1 %v16776_v48  ;;  %13771 = vmatprep.mubr.msk.bf16.mxu0 %vm580_vm0, %v16777_v33  ;;  %v16798_v48 = vld [vmem:[%s24109_s0 + $0x214] ss:$8 sps:$4 sm:$0xff]  }
 0x46c   :  { %13787 = vmatprep.mubr.msk.bf16.mxu1 %vm580_vm0, %v16777_v33  ;;  %v16800_v33 = vld [vmem:[%s24109_s0 + $0x210] ss:$8 sps:$4 sm:$0xff]  }
 0x472   :  { %6816 = vmatmul.mubr.bf16.gmra.mrb[96].mxu0 %v16779_v10 }
 0x473   :  { %7009 = vmatmul.mubr.bf16.gmra.mrb[96].mxu1 %v16779_v10  ;;  %13772 = vmatprep.mubr.msk.bf16.mxu0 %vm580_vm0, %v16780_v59  ;;  %v16803_v10 = vld [vmem:[%s24109_s0 + $0x234] ss:$8 sps:$4 sm:$0xff]  }
 0x474   :  { %13788 = vmatprep.mubr.msk.bf16.mxu1 %vm580_vm0, %v16780_v59  ;;  %v16851_v59 = vld [vmem:[%s24111_s2 + $0x204] ss:$16 sps:$4 sm:$0xff]  }
 0x475   :  { %8885 = vmatprep.subr.bf16.mxu0 %v16851_v59  ;;  %v16864_v59 = vld [vmem:[%s24111_s2 + $0x248] ss:$16 sps:$4 sm:$0xff]  }
 0x47a   :  { %6826 = vmatmul.mubr.bf16.gmra.mrb[100].mxu0 %v16782_v38 }
 0x47b   :  { %7019 = vmatmul.mubr.bf16.gmra.mrb[100].mxu1 %v16782_v38  ;;  %13773 = vmatprep.mubr.msk.bf16.mxu0 %vm580_vm0, %v16783_v27  ;;  %v16854_v38 = vld [vmem:[%s24111_s2 + $0x20c] ss:$16 sps:$4 sm:$0xff]  }
 0x47c   :  { %13789 = vmatprep.mubr.msk.bf16.mxu1 %vm580_vm0, %v16783_v27  ;;  %v16801_v27 = vld [vmem:[%s24109_s0 + $0x230] ss:$8 sps:$4 sm:$0xff]   ;;  %8958 = vmatprep.subr.bf16.mxu1 %v16854_v38  ;;  %v16869_v38 = vld [vmem:[%s24111_s2 + $0x264] ss:$16 sps:$4 sm:$0xff]  }
 0x482   :  { %6836 = vmatmul.mubr.bf16.gmra.mrb[104].mxu0 %v16785_v0 }
 0x483   :  { %7029 = vmatmul.mubr.bf16.gmra.mrb[104].mxu1 %v16785_v0  ;;  %13774 = vmatprep.mubr.msk.bf16.mxu0 %vm580_vm0, %v16786_v39  ;;  %v16804_v0 = vld [vmem:[%s24109_s0 + $0x244] ss:$8 sps:$4 sm:$0xff]  }
 0x484   :  { %13790 = vmatprep.mubr.msk.bf16.mxu1 %vm580_vm0, %v16786_v39  ;;  %v16849_v39 = vld [vmem:[%s24111_s2 + $0x200] ss:$16 sps:$4 sm:$0xff]  }
 0x48a   :  { %6846 = vmatmul.mubr.bf16.gmra.mrb[108].mxu0 %v16788_v28 }
 0x48b   :  { %7039 = vmatmul.mubr.bf16.gmra.mrb[108].mxu1 %v16788_v28  ;;  %13775 = vmatprep.mubr.msk.bf16.mxu0 %vm580_vm0, %v16789_v56  ;;  %v16852_v28 = vld [vmem:[%s24111_s2 + $0x208] ss:$16 sps:$4 sm:$0xff]  }
 0x48c   :  { %13791 = vmatprep.mubr.msk.bf16.mxu1 %vm580_vm0, %v16789_v56  ;;  %v16857_v56 = vld [vmem:[%s24111_s2 + $0x224] ss:$16 sps:$4 sm:$0xff]  }
 0x492   :  { %6856 = vmatmul.mubr.bf16.gmra.mrb[112].mxu0 %v16791_v2 }
 0x493   :  { %7049 = vmatmul.mubr.bf16.gmra.mrb[112].mxu1 %v16791_v2  ;;  %13776 = vmatprep.mubr.msk.bf16.mxu0 %vm580_vm0, %v16792_v36  ;;  %v16860_v2 = vld [vmem:[%s24111_s2 + $0x22c] ss:$16 sps:$4 sm:$0xff]  }
 0x494   :  { %13792 = vmatprep.mubr.msk.bf16.mxu1 %vm580_vm0, %v16792_v36  ;;  %v16855_v36 = vld [vmem:[%s24111_s2 + $0x220] ss:$16 sps:$4 sm:$0xff]  }
 0x49a   :  { %6866 = vmatmul.mubr.bf16.gmra.mrb[116].mxu0 %v16794_v40 }
 0x49b   :  { %7059 = vmatmul.mubr.bf16.gmra.mrb[116].mxu1 %v16794_v40  ;;  %13777 = vmatprep.mubr.msk.bf16.mxu0 %vm580_vm0, %v16795_v32  ;;  %v16858_v40 = vld [vmem:[%s24111_s2 + $0x228] ss:$16 sps:$4 sm:$0xff]  }
 0x49c   :  { %13793 = vmatprep.mubr.msk.bf16.mxu1 %vm580_vm0, %v16795_v32  ;;  %v16863_v32 = vld [vmem:[%s24111_s2 + $0x244] ss:$16 sps:$4 sm:$0xff]  }
 0x4a2   :  { %6876 = vmatmul.mubr.bf16.gmra.mrb[120].mxu0 %v16797_v5 }
 0x4a3   :  { %7069 = vmatmul.mubr.bf16.gmra.mrb[120].mxu1 %v16797_v5  ;;  %13778 = vmatprep.mubr.msk.bf16.mxu0 %vm580_vm0, %v16798_v48  ;;  %v16866_v5 = vld [vmem:[%s24111_s2 + $0x24c] ss:$16 sps:$4 sm:$0xff]  }
 0x4a4   :  { %13794 = vmatprep.mubr.msk.bf16.mxu1 %vm580_vm0, %v16798_v48  ;;  %v16806_v48 = vld [vmem:[%s24109_s0 + $0x240] ss:$8 sps:$4 sm:$0xff]  }
 0x4aa   :  { %6886 = vmatmul.mubr.bf16.gmra.mrb[124].mxu0 %v16800_v33 }
 0x4ab   :  { %7079 = vmatmul.mubr.bf16.gmra.mrb[124].mxu1 %v16800_v33  ;;  %13859 = vmatprep.mubr.msk.bf16.mxu0 %vm580_vm0, %v16803_v10  ;;  %v16807_v33 = vld [vmem:[%s24109_s0 + $0x254] ss:$8 sps:$4 sm:$0xff]  }
 0x4ac   :  { %13875 = vmatprep.mubr.msk.bf16.mxu1 %vm580_vm0, %v16803_v10  ;;  %v16861_v10 = vld [vmem:[%s24111_s2 + $0x240] ss:$16 sps:$4 sm:$0xff]  }
 0x4b2   :  { %7474 = vmatmul.mubr.bf16.vlgmr.msra.gmra.mrb[64].mxu0 %v16801_v27 }
 0x4b3   :  { %7667 = vmatmul.mubr.bf16.vlgmr.msra.gmra.mrb[64].mxu1 %v16801_v27  ;;  %13860 = vmatprep.mubr.msk.bf16.mxu0 %vm580_vm0, %v16804_v0  ;;  %v16872_v27 = vld [vmem:[%s24111_s2 + $0x26c] ss:$16 sps:$4 sm:$0xff]  }
 0x4b4   :  { %13876 = vmatprep.mubr.msk.bf16.mxu1 %vm580_vm0, %v16804_v0  ;;  %8886 = vmatpush1.bf16.msra.mxu0 %v16849_v39  ;;  %v16867_v0 = vld [vmem:[%s24111_s2 + $0x260] ss:$16 sps:$4 sm:$0xff]   ;;  %v16870_v39 = vld [vmem:[%s24111_s2 + $0x268] ss:$16 sps:$4 sm:$0xff]  }
 0x4b5   :  { %8959 = vmatpush1.bf16.msra.mxu1 %v16852_v28  ;;  %8887 = vmatprep.subr.bf16.mxu0 %v16857_v56  ;;  %v16875_v28 = vld [vmem:[%s24111_s2 + $0x284] ss:$16 sps:$4 sm:$0xff]   ;;  %v16878_v56 = vld [vmem:[%s24111_s2 + $0x28c] ss:$16 sps:$4 sm:$0xff]  }
 0x4b6   :  { %8960 = vmatprep.subr.bf16.mxu1 %v16860_v2  ;;  %v16809_v2 = vld [vmem:[%s24109_s0 + $0x250] ss:$8 sps:$4 sm:$0xff]  }
 0x4b8   :  { %8888 = vmatpush1.bf16.msra.mxu0 %v16855_v36  ;;  %v16810_v36 = vld [vmem:[%s24109_s0 + $0x264] ss:$8 sps:$4 sm:$0xff]  }
 0x4b9   :  { %8961 = vmatpush1.bf16.msra.mxu1 %v16858_v40  ;;  %8889 = vmatprep.subr.bf16.mxu0 %v16863_v32  ;;  %v16873_v40 = vld [vmem:[%s24111_s2 + $0x280] ss:$16 sps:$4 sm:$0xff]   ;;  %v16876_v32 = vld [vmem:[%s24111_s2 + $0x288] ss:$16 sps:$4 sm:$0xff]  }
 0x4ba   :  { %8962 = vmatprep.subr.bf16.mxu1 %v16866_v5  ;;  %7484 = vmatmul.mubr.bf16.gmra.mrb[68].mxu0 %v16806_v48  ;;  %v16881_v5 = vld [vmem:[%s24111_s2 + $0x2a4] ss:$16 sps:$4 sm:$0xff]  }
 0x4bb   :  { %7677 = vmatmul.mubr.bf16.gmra.mrb[68].mxu1 %v16806_v48  ;;  %13861 = vmatprep.mubr.msk.bf16.mxu0 %vm580_vm0, %v16807_v33  ;;  %v16884_v48 = vld [vmem:[%s24111_s2 + $0x2ac] ss:$16 sps:$4 sm:$0xff]  }
 0x4bc   :  { %13877 = vmatprep.mubr.msk.bf16.mxu1 %vm580_vm0, %v16807_v33  ;;  %8890 = vmatpush1.bf16.msra.mxu0 %v16861_v10  ;;  %v16879_v33 = vld [vmem:[%s24111_s2 + $0x2a0] ss:$16 sps:$4 sm:$0xff]  }
 0x4bd   :  { %8963 = vmatpush1.bf16.msra.mxu1 %v16864_v59  ;;  %8891 = vmatprep.subr.bf16.mxu0 %v16869_v38  ;;  %v16812_v10 = vld [vmem:[%s24109_s0 + $0x260] ss:$8 sps:$4 sm:$0xff]   ;;  %v16813_v38 = vld [vmem:[%s24109_s0 + $0x274] ss:$8 sps:$4 sm:$0xff]  }
 0x4be   :  { %8964 = vmatprep.subr.bf16.mxu1 %v16872_v27  ;;  %v16882_v59 = vld [vmem:[%s24111_s2 + $0x2a8] ss:$16 sps:$4 sm:$0xff]   ;;  %v16887_v27 = vld [vmem:[%s24111_s2 + $0x2c4] ss:$16 sps:$4 sm:$0xff]  }
 0x4c0   :  { %8892 = vmatpush1.bf16.msra.mxu0 %v16867_v0  ;;  %v16890_v0 = vld [vmem:[%s24111_s2 + $0x2cc] ss:$16 sps:$4 sm:$0xff]  }
 0x4c1   :  { %8965 = vmatpush1.bf16.msra.mxu1 %v16870_v39  ;;  %8893 = vmatprep.subr.bf16.mxu0 %v16875_v28  ;;  %v16885_v39 = vld [vmem:[%s24111_s2 + $0x2c0] ss:$16 sps:$4 sm:$0xff]   ;;  %v16888_v28 = vld [vmem:[%s24111_s2 + $0x2c8] ss:$16 sps:$4 sm:$0xff]  }
 0x4c2   :  { %8966 = vmatprep.subr.bf16.mxu1 %v16878_v56  ;;  %7494 = vmatmul.mubr.bf16.gmra.mrb[72].mxu0 %v16809_v2  ;;  %v16893_v56 = vld [vmem:[%s24111_s2 + $0x2e4] ss:$16 sps:$4 sm:$0xff]  }
 0x4c3   :  { %7687 = vmatmul.mubr.bf16.gmra.mrb[72].mxu1 %v16809_v2  ;;  %13862 = vmatprep.mubr.msk.bf16.mxu0 %vm580_vm0, %v16810_v36  ;;  %v16896_v2 = vld [vmem:[%s24111_s2 + $0x2ec] ss:$16 sps:$4 sm:$0xff]  }
 0x4c4   :  { %13878 = vmatprep.mubr.msk.bf16.mxu1 %vm580_vm0, %v16810_v36  ;;  %8894 = vmatpush1.bf16.msra.mxu0 %v16873_v40  ;;  %v16891_v36 = vld [vmem:[%s24111_s2 + $0x2e0] ss:$16 sps:$4 sm:$0xff]   ;;  %v16894_v40 = vld [vmem:[%s24111_s2 + $0x2e8] ss:$16 sps:$4 sm:$0xff]  }
 0x4c5   :  { %8967 = vmatpush1.bf16.msra.mxu1 %v16876_v32  ;;  %8895 = vmatprep.subr.bf16.mxu0 %v16881_v5  ;;  %v16899_v32 = vld [vmem:[%s24111_s2 + $0x304] ss:$16 sps:$4 sm:$0xff]   ;;  %v16902_v5 = vld [vmem:[%s24111_s2 + $0x30c] ss:$16 sps:$4 sm:$0xff]  }
 0x4c6   :  { %8968 = vmatprep.subr.bf16.mxu1 %v16884_v48  ;;  %v16815_v48 = vld [vmem:[%s24109_s0 + $0x270] ss:$8 sps:$4 sm:$0xff]  }
 0x4c8   :  { %8896 = vmatpush1.bf16.msra.mxu0 %v16879_v33  ;;  %v16816_v33 = vld [vmem:[%s24109_s0 + $0x284] ss:$8 sps:$4 sm:$0xff]  }
 0x4c9   :  { %8969 = vmatpush1.bf16.msra.mxu1 %v16882_v59  ;;  %8897 = vmatprep.subr.bf16.mxu0 %v16887_v27  ;;  %v16900_v59 = vld [vmem:[%s24111_s2 + $0x308] ss:$16 sps:$4 sm:$0xff]   ;;  %v16908_v27 = vld [vmem:[%s24111_s2 + $0x32c] ss:$16 sps:$4 sm:$0xff]  }
 0x4ca   :  { %8970 = vmatprep.subr.bf16.mxu1 %v16890_v0  ;;  %7504 = vmatmul.mubr.bf16.gmra.mrb[76].mxu0 %v16812_v10  ;;  %v16903_v0 = vld [vmem:[%s24111_s2 + $0x320] ss:$16 sps:$4 sm:$0xff]  }
 0x4cb   :  { %7697 = vmatmul.mubr.bf16.gmra.mrb[76].mxu1 %v16812_v10  ;;  %13863 = vmatprep.mubr.msk.bf16.mxu0 %vm580_vm0, %v16813_v38  ;;  %v16897_v10 = vld [vmem:[%s24111_s2 + $0x300] ss:$16 sps:$4 sm:$0xff]  }
 0x4cc   :  { %13879 = vmatprep.mubr.msk.bf16.mxu1 %vm580_vm0, %v16813_v38  ;;  %8898 = vmatpush1.bf16.msra.mxu0 %v16885_v39  ;;  %v16905_v38 = vld [vmem:[%s24111_s2 + $0x324] ss:$16 sps:$4 sm:$0xff]   ;;  %v16906_v39 = vld [vmem:[%s24111_s2 + $0x328] ss:$16 sps:$4 sm:$0xff]  }
 0x4cd   :  { %8971 = vmatpush1.bf16.msra.mxu1 %v16888_v28  ;;  %8899 = vmatprep.subr.bf16.mxu0 %v16893_v56  ;;  %v16911_v28 = vld [vmem:[%s24111_s2 + $0x344] ss:$16 sps:$4 sm:$0xff]   ;;  %v16914_v56 = vld [vmem:[%s24111_s2 + $0x34c] ss:$16 sps:$4 sm:$0xff]  }
 0x4ce   :  { %8972 = vmatprep.subr.bf16.mxu1 %v16896_v2  ;;  %v16818_v2 = vld [vmem:[%s24109_s0 + $0x280] ss:$8 sps:$4 sm:$0xff]  }
 0x4d0   :  { %8900 = vmatpush1.bf16.msra.mxu0 %v16891_v36  ;;  %v16819_v36 = vld [vmem:[%s24109_s0 + $0x294] ss:$8 sps:$4 sm:$0xff]  }
 0x4d1   :  { %8973 = vmatpush1.bf16.msra.mxu1 %v16894_v40  ;;  %8901 = vmatprep.subr.bf16.mxu0 %v16899_v32  ;;  %v16909_v40 = vld [vmem:[%s24111_s2 + $0x340] ss:$16 sps:$4 sm:$0xff]   ;;  %v16912_v32 = vld [vmem:[%s24111_s2 + $0x348] ss:$16 sps:$4 sm:$0xff]  }
 0x4d2   :  { %8974 = vmatprep.subr.bf16.mxu1 %v16902_v5  ;;  %7514 = vmatmul.mubr.bf16.gmra.mrb[80].mxu0 %v16815_v48  ;;  %v16821_v5 = vld [vmem:[%s24109_s0 + $0x290] ss:$8 sps:$4 sm:$0xff]  }
 0x4d3   :  { %7707 = vmatmul.mubr.bf16.gmra.mrb[80].mxu1 %v16815_v48  ;;  %13864 = vmatprep.mubr.msk.bf16.mxu0 %vm580_vm0, %v16816_v33  ;;  %v16822_v48 = vld [vmem:[%s24109_s0 + $0x2a4] ss:$8 sps:$4 sm:$0xff]  }
 0x4d4   :  { %13880 = vmatprep.mubr.msk.bf16.mxu1 %vm580_vm0, %v16816_v33  ;;  %8902 = vmatpush1.bf16.msra.mxu0 %v16897_v10  ;;  %v16824_v33 = vld [vmem:[%s24109_s0 + $0x2a0] ss:$8 sps:$4 sm:$0xff]   ;;  %v16825_v10 = vld [vmem:[%s24109_s0 + $0x2b4] ss:$8 sps:$4 sm:$0xff]  }
 0x4d5   :  { %8975 = vmatpush1.bf16.msra.mxu1 %v16900_v59  ;;  %8903 = vmatprep.subr.bf16.mxu0 %v16905_v38  ;;  %v16827_v59 = vld [vmem:[%s24109_s0 + $0x2b0] ss:$8 sps:$4 sm:$0xff]   ;;  %v16828_v38 = vld [vmem:[%s24109_s0 + $0x2c4] ss:$8 sps:$4 sm:$0xff]  }
 0x4d6   :  { %8976 = vmatprep.subr.bf16.mxu1 %v16908_v27  ;;  %v16830_v27 = vld [vmem:[%s24109_s0 + $0x2c0] ss:$8 sps:$4 sm:$0xff]  }
 0x4d8   :  { %8904 = vmatpush1.bf16.msra.mxu0 %v16903_v0  ;;  %v16831_v0 = vld [vmem:[%s24109_s0 + $0x2d4] ss:$8 sps:$4 sm:$0xff]  }
 0x4d9   :  { %8977 = vmatpush1.bf16.msra.mxu1 %v16906_v39  ;;  %8905 = vmatprep.subr.bf16.mxu0 %v16911_v28  ;;  %v16833_v39 = vld [vmem:[%s24109_s0 + $0x2d0] ss:$8 sps:$4 sm:$0xff]   ;;  %v16834_v28 = vld [vmem:[%s24109_s0 + $0x2e4] ss:$8 sps:$4 sm:$0xff]  }
 0x4da   :  { %8978 = vmatprep.subr.bf16.mxu1 %v16914_v56  ;;  %7524 = vmatmul.mubr.bf16.gmra.mrb[84].mxu0 %v16818_v2  ;;  %v16836_v56 = vld [vmem:[%s24109_s0 + $0x2e0] ss:$8 sps:$4 sm:$0xff]  }
 0x4db   :  { %7717 = vmatmul.mubr.bf16.gmra.mrb[84].mxu1 %v16818_v2  ;;  %13865 = vmatprep.mubr.msk.bf16.mxu0 %vm580_vm0, %v16819_v36  ;;  %v16837_v2 = vld [vmem:[%s24109_s0 + $0x2f4] ss:$8 sps:$4 sm:$0xff]  }
 0x4dc   :  { %13881 = vmatprep.mubr.msk.bf16.mxu1 %vm580_vm0, %v16819_v36  ;;  %8906 = vmatpush1.bf16.msra.mxu0 %v16909_v40  ;;  %v16839_v36 = vld [vmem:[%s24109_s0 + $0x2f0] ss:$8 sps:$4 sm:$0xff]   ;;  %v16840_v40 = vld [vmem:[%s24109_s0 + $0x304] ss:$8 sps:$4 sm:$0xff]  }
 0x4dd   :  { %8979 = vmatpush1.bf16.msra.mxu1 %v16912_v32  ;;  %v16917_v32 = vld [vmem:[%s24111_s2 + $0x364] ss:$16 sps:$4 sm:$0xff]  }
 0x4de   :  { %8907 = vmatprep.subr.bf16.mxu0 %v16917_v32  ;;  %v16935_v32 = vld [vmem:[%s24111_s2 + $0x3c4] ss:$16 sps:$4 sm:$0xff]  }
 0x4e2   :  { %7534 = vmatmul.mubr.bf16.gmra.mrb[88].mxu0 %v16821_v5 }
 0x4e3   :  { %7727 = vmatmul.mubr.bf16.gmra.mrb[88].mxu1 %v16821_v5  ;;  %13866 = vmatprep.mubr.msk.bf16.mxu0 %vm580_vm0, %v16822_v48  ;;  %v16920_v5 = vld [vmem:[%s24111_s2 + $0x36c] ss:$16 sps:$4 sm:$0xff]  }
 0x4e4   :  { %13882 = vmatprep.mubr.msk.bf16.mxu1 %vm580_vm0, %v16822_v48  ;;  %v16915_v48 = vld [vmem:[%s24111_s2 + $0x360] ss:$16 sps:$4 sm:$0xff]   ;;  %8980 = vmatprep.subr.bf16.mxu1 %v16920_v5  ;;  %v16938_v5 = vld [vmem:[%s24111_s2 + $0x3cc] ss:$16 sps:$4 sm:$0xff]  }
 0x4e5   :  { %8908 = vmatpush1.bf16.msra.mxu0 %v16915_v48  ;;  %v16846_v48 = vld [vmem:[%s24109_s0 + $0x324] ss:$8 sps:$4 sm:$0xff]  }
 0x4ea   :  { %7544 = vmatmul.mubr.bf16.gmra.mrb[92].mxu0 %v16824_v33 }
 0x4eb   :  { %7737 = vmatmul.mubr.bf16.gmra.mrb[92].mxu1 %v16824_v33  ;;  %13867 = vmatprep.mubr.msk.bf16.mxu0 %vm580_vm0, %v16825_v10  ;;  %v16918_v33 = vld [vmem:[%s24111_s2 + $0x368] ss:$16 sps:$4 sm:$0xff]  }
 0x4ec   :  { %13883 = vmatprep.mubr.msk.bf16.mxu1 %vm580_vm0, %v16825_v10  ;;  %8981 = vmatpush1.bf16.msra.mxu1 %v16918_v33  ;;  %v16923_v10 = vld [vmem:[%s24111_s2 + $0x384] ss:$16 sps:$4 sm:$0xff]   ;;  %v16933_v33 = vld [vmem:[%s24111_s2 + $0x3c0] ss:$16 sps:$4 sm:$0xff]  }
 0x4ed   :  { %8909 = vmatprep.subr.bf16.mxu0 %v16923_v10  ;;  %v16936_v10 = vld [vmem:[%s24111_s2 + $0x3c8] ss:$16 sps:$4 sm:$0xff]  }
 0x4f2   :  { %7554 = vmatmul.mubr.bf16.gmra.mrb[96].mxu0 %v16827_v59 }
 0x4f3   :  { %7747 = vmatmul.mubr.bf16.gmra.mrb[96].mxu1 %v16827_v59  ;;  %13868 = vmatprep.mubr.msk.bf16.mxu0 %vm580_vm0, %v16828_v38  ;;  %v16926_v59 = vld [vmem:[%s24111_s2 + $0x38c] ss:$16 sps:$4 sm:$0xff]  }
 0x4f4   :  { %13884 = vmatprep.mubr.msk.bf16.mxu1 %vm580_vm0, %v16828_v38  ;;  %v16842_v38 = vld [vmem:[%s24109_s0 + $0x300] ss:$8 sps:$4 sm:$0xff]   ;;  %8982 = vmatprep.subr.bf16.mxu1 %v16926_v59  ;;  %v16941_v59 = vld [vmem:[%s24111_s2 + $0x3e4] ss:$16 sps:$4 sm:$0xff]  }
 0x4fa   :  { %7564 = vmatmul.mubr.bf16.gmra.mrb[100].mxu0 %v16830_v27 }
 0x4fb   :  { %7757 = vmatmul.mubr.bf16.gmra.mrb[100].mxu1 %v16830_v27  ;;  %13869 = vmatprep.mubr.msk.bf16.mxu0 %vm580_vm0, %v16831_v0  ;;  %v16921_v27 = vld [vmem:[%s24111_s2 + $0x380] ss:$16 sps:$4 sm:$0xff]  }
 0x4fc   :  { %13885 = vmatprep.mubr.msk.bf16.mxu1 %vm580_vm0, %v16831_v0  ;;  %v16924_v0 = vld [vmem:[%s24111_s2 + $0x388] ss:$16 sps:$4 sm:$0xff]   ;;  %8910 = vmatpush1.bf16.msra.mxu0 %v16921_v27  ;;  %v16939_v27 = vld [vmem:[%s24111_s2 + $0x3e0] ss:$16 sps:$4 sm:$0xff]  }
 0x4fd   :  { %8983 = vmatpush1.bf16.msra.mxu1 %v16924_v0  ;;  %v16942_v0 = vld [vmem:[%s24111_s2 + $0x3e8] ss:$16 sps:$4 sm:$0xff]  }
 0x502   :  { %7574 = vmatmul.mubr.bf16.gmra.mrb[104].mxu0 %v16833_v39 }
 0x503   :  { %7767 = vmatmul.mubr.bf16.gmra.mrb[104].mxu1 %v16833_v39  ;;  %13870 = vmatprep.mubr.msk.bf16.mxu0 %vm580_vm0, %v16834_v28  ;;  %v16843_v39 = vld [vmem:[%s24109_s0 + $0x314] ss:$8 sps:$4 sm:$0xff]  }
 0x504   :  { %13886 = vmatprep.mubr.msk.bf16.mxu1 %vm580_vm0, %v16834_v28  ;;  %v16929_v28 = vld [vmem:[%s24111_s2 + $0x3a4] ss:$16 sps:$4 sm:$0xff]  }
 0x505   :  { %8911 = vmatprep.subr.bf16.mxu0 %v16929_v28  ;;  %v24124_v28 = vmov 0  }
 0x50a   :  { %7584 = vmatmul.mubr.bf16.gmra.mrb[108].mxu0 %v16836_v56 }
 0x50b   :  { %7777 = vmatmul.mubr.bf16.gmra.mrb[108].mxu1 %v16836_v56  ;;  %13871 = vmatprep.mubr.msk.bf16.mxu0 %vm580_vm0, %v16837_v2  ;;  %v16932_v56 = vld [vmem:[%s24111_s2 + $0x3ac] ss:$16 sps:$4 sm:$0xff]  }
 0x50c   :  { %13887 = vmatprep.mubr.msk.bf16.mxu1 %vm580_vm0, %v16837_v2  ;;  %v16927_v2 = vld [vmem:[%s24111_s2 + $0x3a0] ss:$16 sps:$4 sm:$0xff]   ;;  %8984 = vmatprep.subr.bf16.mxu1 %v16932_v56  ;;  %v16947_v56 = vld [vmem:[%s24111_s2 + $0x4] ss:$16 sps:$4 sm:$0xff]  }
 0x50d   :  { %8912 = vmatpush1.bf16.msra.mxu0 %v16927_v2  ;;  %v16950_v2 = vld [vmem:[%s24111_s2 + $0xc] ss:$16 sps:$4 sm:$0xff]  }
 0x50e   :  { %8913 = vmatprep.subr.bf16.mxu0 %v16935_v32  ;;  %v16953_v32 = vld [vmem:[%s24111_s2 + $0x24] ss:$16 sps:$4 sm:$0xff]  }
 0x511   :  { %8914 = vmatpush1.bf16.msra.mxu0 %v16933_v33  ;;  %v16954_v33 = vld [vmem:[%s24111_s2 + $0x28] ss:$16 sps:$4 sm:$0xff]  }
 0x512   :  { %7594 = vmatmul.mubr.bf16.gmra.mrb[112].mxu0 %v16839_v36  ;;  %8915 = vmatprep.subr.bf16.mxu0 %v16941_v59  ;;  %v16962_v59 = vld [vmem:[%s24111_s2 + $0x4c] ss:$16 sps:$4 sm:$0xff]  }
 0x513   :  { %7787 = vmatmul.mubr.bf16.gmra.mrb[112].mxu1 %v16839_v36  ;;  %13872 = vmatprep.mubr.msk.bf16.mxu0 %vm580_vm0, %v16840_v40  ;;  %v16930_v36 = vld [vmem:[%s24111_s2 + $0x3a8] ss:$16 sps:$4 sm:$0xff]  }
 0x514   :  { %13888 = vmatprep.mubr.msk.bf16.mxu1 %vm580_vm0, %v16840_v40  ;;  %v16845_v40 = vld [vmem:[%s24109_s0 + $0x310] ss:$8 sps:$4 sm:$0xff]   ;;  %8985 = vmatpush1.bf16.msra.mxu1 %v16930_v36 }
 0x515   :  { %8986 = vmatprep.subr.bf16.mxu1 %v16938_v5  ;;  %8916 = vmatpush1.bf16.msra.mxu0 %v16939_v27  ;;  %v16945_v36 = vld [vmem:[%s24111_s2] ss:$16 sps:$4 sm:$0xff]   ;;  %v16956_v5 = vld [vmem:[%s24111_s2 + $0x2c] ss:$16 sps:$4 sm:$0xff]   ;;  %v16960_v27 = vld [vmem:[%s24111_s2 + $0x48] ss:$16 sps:$4 sm:$0xff]  }
 0x516   :  { %9351 = vmatprep.subr.bf16.mxu0 %v16947_v56  ;;  %v16963_v56 = vld [vmem:[%s24111_s2 + $0x60] ss:$16 sps:$4 sm:$0xff]  }
 0x518   :  { %8987 = vmatpush1.bf16.msra.mxu1 %v16936_v10  ;;  %v16959_v10 = vld [vmem:[%s24111_s2 + $0x44] ss:$16 sps:$4 sm:$0xff]  }
 0x51a   :  { %7604 = vmatmul.mubr.bf16.gmra.mrb[116].mxu0 %v16842_v38 }
 0x51b   :  { %7797 = vmatmul.mubr.bf16.gmra.mrb[116].mxu1 %v16842_v38  ;;  %13873 = vmatprep.mubr.msk.bf16.mxu0 %vm580_vm0, %v16843_v39  ;;  %v16944_v38 = vld [vmem:[%s24111_s2 + $0x3ec] ss:$16 sps:$4 sm:$0xff]  }
 0x51c   :  { %13889 = vmatprep.mubr.msk.bf16.mxu1 %vm580_vm0, %v16843_v39  ;;  %v16848_v39 = vld [vmem:[%s24109_s0 + $0x320] ss:$8 sps:$4 sm:$0xff]   ;;  %8988 = vmatprep.subr.bf16.mxu1 %v16944_v38 }
 0x51d   :  { %8989 = vmatpush1.bf16.msra.mxu1 %v16942_v0  ;;  %v16957_v38 = vld [vmem:[%s24111_s2 + $0x40] ss:$16 sps:$4 sm:$0xff]   ;;  %v16965_v0 = vld [vmem:[%s24111_s2 + $0x64] ss:$16 sps:$4 sm:$0xff]  }
 0x51e   :  { %9424 = vmatprep.subr.bf16.mxu1 %v16950_v2  ;;  %v16966_v2 = vld [vmem:[%s24111_s2 + $0x68] ss:$16 sps:$4 sm:$0xff]  }
 0x522   :  { %7614 = vmatmul.mubr.bf16.gmra.mrb[120].mxu0 %v16845_v40 }
 0x523   :  { %7807 = vmatmul.mubr.bf16.gmra.mrb[120].mxu1 %v16845_v40  ;;  %13874 = vmatprep.mubr.msk.bf16.mxu0 %vm580_vm0, %v16846_v48  ;;  %v16948_v40 = vld [vmem:[%s24111_s2 + $0x8] ss:$16 sps:$4 sm:$0xff]  }
 0x524   :  { %13890 = vmatprep.mubr.msk.bf16.mxu1 %vm580_vm0, %v16846_v48  ;;  %v16951_v48 = vld [vmem:[%s24111_s2 + $0x20] ss:$16 sps:$4 sm:$0xff]  }
 0x52a   :  { %7624 = vmatmul.mubr.bf16.gmra.mrb[124].mxu0 %v16848_v39 }
 0x52b   :  { %7817 = vmatmul.mubr.bf16.gmra.mrb[124].mxu1 %v16848_v39  ;;  %8917 = vmatprep.mubr.bf16.mxu0 %v24124_v28  ;;  %v16968_v39 = vld [vmem:[%s24111_s2 + $0x6c] ss:$16 sps:$4 sm:$0xff]  }
 0x52c   :  { %8990 = vmatprep.mubr.bf16.mxu1 %v24124_v28 }
 0x532   :  { %8918 = vmatmul.mubr.bf16.vlgmr.msra.gmra.mrb[128].mxu0 %v24124_v28 }
 0x533   :  { %8991 = vmatmul.mubr.bf16.vlgmr.msra.gmra.mrb[128].mxu1 %v24124_v28  ;;  %9352 = vmatpush1.bf16.msra.mxu0 %v16945_v36  ;;  %v16971_v36 = vld [vmem:[%s24111_s2 + $0x84] ss:$16 sps:$4 sm:$0xff]  }
 0x534   :  { %9425 = vmatpush1.bf16.msra.mxu1 %v16948_v40  ;;  %9353 = vmatprep.subr.bf16.mxu0 %v16953_v32  ;;  %v16974_v40 = vld [vmem:[%s24111_s2 + $0x8c] ss:$16 sps:$4 sm:$0xff]   ;;  %v16969_v32 = vld [vmem:[%s24111_s2 + $0x80] ss:$16 sps:$4 sm:$0xff]  }
 0x535   :  { %9426 = vmatprep.subr.bf16.mxu1 %v16956_v5  ;;  %v16972_v5 = vld [vmem:[%s24111_s2 + $0x88] ss:$16 sps:$4 sm:$0xff]  }
 0x537   :  { %9354 = vmatpush1.bf16.msra.mxu0 %v16951_v48  ;;  %v16977_v48 = vld [vmem:[%s24111_s2 + $0xa4] ss:$16 sps:$4 sm:$0xff]  }
 0x538   :  { %9427 = vmatpush1.bf16.msra.mxu1 %v16954_v33  ;;  %9355 = vmatprep.subr.bf16.mxu0 %v16959_v10  ;;  %v16980_v33 = vld [vmem:[%s24111_s2 + $0xac] ss:$16 sps:$4 sm:$0xff]   ;;  %v16975_v10 = vld [vmem:[%s24111_s2 + $0xa0] ss:$16 sps:$4 sm:$0xff]  }
 0x539   :  { %9428 = vmatprep.subr.bf16.mxu1 %v16962_v59  ;;  %v16978_v59 = vld [vmem:[%s24111_s2 + $0xa8] ss:$16 sps:$4 sm:$0xff]  }
 0x53b   :  { %9356 = vmatpush1.bf16.msra.mxu0 %v16957_v38  ;;  %v16983_v38 = vld [vmem:[%s24111_s2 + $0xc4] ss:$16 sps:$4 sm:$0xff]  }
 0x53c   :  { %9429 = vmatpush1.bf16.msra.mxu1 %v16960_v27  ;;  %9357 = vmatprep.subr.bf16.mxu0 %v16965_v0  ;;  %v16986_v27 = vld [vmem:[%s24111_s2 + $0xcc] ss:$16 sps:$4 sm:$0xff]   ;;  %v16981_v0 = vld [vmem:[%s24111_s2 + $0xc0] ss:$16 sps:$4 sm:$0xff]  }
 0x53d   :  { %9430 = vmatprep.subr.bf16.mxu1 %v16968_v39  ;;  %v16984_v39 = vld [vmem:[%s24111_s2 + $0xc8] ss:$16 sps:$4 sm:$0xff]  }
 0x53f   :  { %9358 = vmatpush1.bf16.msra.mxu0 %v16963_v56  ;;  %v16989_v56 = vld [vmem:[%s24111_s2 + $0xe4] ss:$16 sps:$4 sm:$0xff]  }
 0x540   :  { %9431 = vmatpush1.bf16.msra.mxu1 %v16966_v2  ;;  %9359 = vmatprep.subr.bf16.mxu0 %v16971_v36  ;;  %v16992_v2 = vld [vmem:[%s24111_s2 + $0xec] ss:$16 sps:$4 sm:$0xff]   ;;  %v16987_v36 = vld [vmem:[%s24111_s2 + $0xe0] ss:$16 sps:$4 sm:$0xff]  }
 0x541   :  { %9432 = vmatprep.subr.bf16.mxu1 %v16974_v40  ;;  %v16990_v40 = vld [vmem:[%s24111_s2 + $0xe8] ss:$16 sps:$4 sm:$0xff]  }
 0x543   :  { %9360 = vmatpush1.bf16.msra.mxu0 %v16969_v32  ;;  %v16995_v32 = vld [vmem:[%s24111_s2 + $0x104] ss:$16 sps:$4 sm:$0xff]  }
 0x544   :  { %9433 = vmatpush1.bf16.msra.mxu1 %v16972_v5  ;;  %9361 = vmatprep.subr.bf16.mxu0 %v16977_v48  ;;  %v16998_v5 = vld [vmem:[%s24111_s2 + $0x10c] ss:$16 sps:$4 sm:$0xff]   ;;  %v16993_v48 = vld [vmem:[%s24111_s2 + $0x100] ss:$16 sps:$4 sm:$0xff]  }
 0x545   :  { %9434 = vmatprep.subr.bf16.mxu1 %v16980_v33  ;;  %v16996_v33 = vld [vmem:[%s24111_s2 + $0x108] ss:$16 sps:$4 sm:$0xff]  }
 0x547   :  { %9362 = vmatpush1.bf16.msra.mxu0 %v16975_v10  ;;  %v17001_v10 = vld [vmem:[%s24111_s2 + $0x124] ss:$16 sps:$4 sm:$0xff]  }
 0x548   :  { %9435 = vmatpush1.bf16.msra.mxu1 %v16978_v59  ;;  %9363 = vmatprep.subr.bf16.mxu0 %v16983_v38  ;;  %v17004_v59 = vld [vmem:[%s24111_s2 + $0x12c] ss:$16 sps:$4 sm:$0xff]   ;;  %v16999_v38 = vld [vmem:[%s24111_s2 + $0x120] ss:$16 sps:$4 sm:$0xff]  }
 0x549   :  { %9436 = vmatprep.subr.bf16.mxu1 %v16986_v27  ;;  %v17002_v27 = vld [vmem:[%s24111_s2 + $0x128] ss:$16 sps:$4 sm:$0xff]  }
 0x54b   :  { %9364 = vmatpush1.bf16.msra.mxu0 %v16981_v0  ;;  %v17007_v0 = vld [vmem:[%s24111_s2 + $0x144] ss:$16 sps:$4 sm:$0xff]  }
 0x54c   :  { %9437 = vmatpush1.bf16.msra.mxu1 %v16984_v39  ;;  %9365 = vmatprep.subr.bf16.mxu0 %v16989_v56  ;;  %v17010_v39 = vld [vmem:[%s24111_s2 + $0x14c] ss:$16 sps:$4 sm:$0xff]   ;;  %v17005_v56 = vld [vmem:[%s24111_s2 + $0x140] ss:$16 sps:$4 sm:$0xff]  }
 0x54d   :  { %9438 = vmatprep.subr.bf16.mxu1 %v16992_v2  ;;  %v17008_v2 = vld [vmem:[%s24111_s2 + $0x148] ss:$16 sps:$4 sm:$0xff]  }
 0x54f   :  { %9366 = vmatpush1.bf16.msra.mxu0 %v16987_v36  ;;  %v17013_v36 = vld [vmem:[%s24111_s2 + $0x164] ss:$16 sps:$4 sm:$0xff]  }
 0x550   :  { %9439 = vmatpush1.bf16.msra.mxu1 %v16990_v40  ;;  %9367 = vmatprep.subr.bf16.mxu0 %v16995_v32  ;;  %v17016_v40 = vld [vmem:[%s24111_s2 + $0x16c] ss:$16 sps:$4 sm:$0xff]   ;;  %v17011_v32 = vld [vmem:[%s24111_s2 + $0x160] ss:$16 sps:$4 sm:$0xff]  }
 0x551   :  { %9440 = vmatprep.subr.bf16.mxu1 %v16998_v5  ;;  %v17014_v5 = vld [vmem:[%s24111_s2 + $0x168] ss:$16 sps:$4 sm:$0xff]  }
 0x553   :  { %9368 = vmatpush1.bf16.msra.mxu0 %v16993_v48  ;;  %v17019_v48 = vld [vmem:[%s24111_s2 + $0x184] ss:$16 sps:$4 sm:$0xff]  }
 0x554   :  { %9441 = vmatpush1.bf16.msra.mxu1 %v16996_v33  ;;  %9369 = vmatprep.subr.bf16.mxu0 %v17001_v10  ;;  %v17022_v33 = vld [vmem:[%s24111_s2 + $0x18c] ss:$16 sps:$4 sm:$0xff]   ;;  %v17017_v10 = vld [vmem:[%s24111_s2 + $0x180] ss:$16 sps:$4 sm:$0xff]  }
 0x555   :  { %9442 = vmatprep.subr.bf16.mxu1 %v17004_v59  ;;  %v17020_v59 = vld [vmem:[%s24111_s2 + $0x188] ss:$16 sps:$4 sm:$0xff]  }
 0x557   :  { %9370 = vmatpush1.bf16.msra.mxu0 %v16999_v38  ;;  %v17025_v38 = vld [vmem:[%s24111_s2 + $0x1a4] ss:$16 sps:$4 sm:$0xff]  }
 0x558   :  { %9443 = vmatpush1.bf16.msra.mxu1 %v17002_v27  ;;  %9371 = vmatprep.subr.bf16.mxu0 %v17007_v0  ;;  %v17028_v27 = vld [vmem:[%s24111_s2 + $0x1ac] ss:$16 sps:$4 sm:$0xff]   ;;  %v17023_v0 = vld [vmem:[%s24111_s2 + $0x1a0] ss:$16 sps:$4 sm:$0xff]  }
 0x559   :  { %9444 = vmatprep.subr.bf16.mxu1 %v17010_v39  ;;  %v17026_v39 = vld [vmem:[%s24111_s2 + $0x1a8] ss:$16 sps:$4 sm:$0xff]  }
 0x55b   :  { %9372 = vmatpush1.bf16.msra.mxu0 %v17005_v56  ;;  %v17031_v56 = vld [vmem:[%s24111_s2 + $0x1c4] ss:$16 sps:$4 sm:$0xff]  }
 0x55c   :  { %9445 = vmatpush1.bf16.msra.mxu1 %v17008_v2  ;;  %9373 = vmatprep.subr.bf16.mxu0 %v17013_v36  ;;  %v17034_v2 = vld [vmem:[%s24111_s2 + $0x1cc] ss:$16 sps:$4 sm:$0xff]   ;;  %v17029_v36 = vld [vmem:[%s24111_s2 + $0x1c0] ss:$16 sps:$4 sm:$0xff]  }
 0x55d   :  { %9446 = vmatprep.subr.bf16.mxu1 %v17016_v40  ;;  %v17032_v40 = vld [vmem:[%s24111_s2 + $0x1c8] ss:$16 sps:$4 sm:$0xff]  }
 0x55f   :  { %9374 = vmatpush1.bf16.msra.mxu0 %v17011_v32  ;;  %v17037_v32 = vld [vmem:[%s24111_s2 + $0x1e4] ss:$16 sps:$4 sm:$0xff]  }
 0x560   :  { %9447 = vmatpush1.bf16.msra.mxu1 %v17014_v5  ;;  %9375 = vmatprep.subr.bf16.mxu0 %v17019_v48  ;;  %v17040_v5 = vld [vmem:[%s24111_s2 + $0x1ec] ss:$16 sps:$4 sm:$0xff]   ;;  %v17035_v48 = vld [vmem:[%s24111_s2 + $0x1e0] ss:$16 sps:$4 sm:$0xff]  }
 0x561   :  { %9448 = vmatprep.subr.bf16.mxu1 %v17022_v33  ;;  %v17038_v33 = vld [vmem:[%s24111_s2 + $0x1e8] ss:$16 sps:$4 sm:$0xff]  }
 0x563   :  { %9376 = vmatpush1.bf16.msra.mxu0 %v17017_v10  ;;  %v17043_v10 = vld [vmem:[%s24111_s2 + $0x404] ss:$16 sps:$4 sm:$0xff]  }
 0x564   :  { %9449 = vmatpush1.bf16.msra.mxu1 %v17020_v59  ;;  %9377 = vmatprep.subr.bf16.mxu0 %v17025_v38  ;;  %v17046_v59 = vld [vmem:[%s24111_s2 + $0x40c] ss:$16 sps:$4 sm:$0xff]  }
 0x565   :  { %9450 = vmatprep.subr.bf16.mxu1 %v17028_v27 }
 0x567   :  { %9378 = vmatpush1.bf16.msra.mxu0 %v17023_v0 }
 0x568   :  { %9451 = vmatpush1.bf16.msra.mxu1 %v17026_v39  ;;  %9379 = vmatprep.subr.bf16.mxu0 %v17031_v56 }
 0x569   :  { %9452 = vmatprep.subr.bf16.mxu1 %v17034_v2 }
 0x56b   :  { %9380 = vmatpush1.bf16.msra.mxu0 %v17029_v36 }
 0x56c   :  { %9453 = vmatpush1.bf16.msra.mxu1 %v17032_v40  ;;  %9381 = vmatprep.subr.bf16.mxu0 %v17037_v32 }
 0x56d   :  { %9454 = vmatprep.subr.bf16.mxu1 %v17040_v5 }
 0x56f   :  { %9382 = vmatpush1.bf16.msra.mxu0 %v17035_v48 }
 0x570   :  { %9455 = vmatpush1.bf16.msra.mxu1 %v17038_v33  ;;  %9882 = vmatprep.subr.bf16.mxu0 %v17043_v10 }
 0x571   :  { %9955 = vmatprep.subr.bf16.mxu1 %v17046_v59 }
 0x585   :  { %v7475_v38 = vpop.f32.mrb[64].mxu0 }
 0x586   :  { %v7668_v27 = vpop.f32.mrb[64].mxu1  ;;  %v7955_v0 = vadd.f32 %v7475_v38, %v19863_v35  ;;  %v7477_v56 = vpop.f32.mrb[65].mxu0 }
 0x587   :  { %v7957_v39 = vadd.f32 %v7668_v27, %v19867_v41  ;;  %v7670_v2 = vpop.f32.mrb[65].mxu1  ;;  %v7956_v36 = vadd.f32 %v7477_v56, %v19871_v15  ;;  %v7479_v32 = vpop.f32.mrb[66].mxu0 }
 0x588   :  { %v7958_v40 = vadd.f32 %v7670_v2, %v19875_v16  ;;  %v7672_v5 = vpop.f32.mrb[66].mxu1  ;;  %v8083_v48 = vmax.f32 %v7955_v0, 0.0  ;;  %v7959_v28 = vadd.f32 %v7479_v32, %v19863_v35  ;;  %v7481_v59 = vpop.f32.mrb[67].mxu0 }
 0x589   :  { %v8085_v33 = vmax.f32 %v7957_v39, 0.0  ;;  %v7961_v10 = vadd.f32 %v7672_v5, %v19867_v41  ;;  %v7674_v51 = vpop.f32.mrb[67].mxu1  ;;  %v8084_v30 = vmax.f32 %v7956_v36, 0.0  ;;  %v7960_v27 = vadd.f32 %v7481_v59, %v19871_v15 }
 0x58a   :  { %v8086_v38 = vmax.f32 %v7958_v40, 0.0  ;;  %v7962_v21 = vadd.f32 %v7674_v51, %v19875_v16  ;;  %v8087_v56 = vmax.f32 %v7959_v28, 0.0 }
 0x58b   :  { %v8275_v44 = vmax.f32 %v8083_v48, %v8085_v33  ;;  %v8089_v25 = vmax.f32 %v7961_v10, 0.0  ;;  %v8088_v50 = vmax.f32 %v7960_v27, 0.0 }
 0x58c   :  { %v8276_v2 = vmax.f32 %v8084_v30, %v8086_v38  ;;  %v8090_v53 = vmax.f32 %v7962_v21, 0.0 }
 0x58d   :  { %v8339_v0 = vmax.f32 %v19889_v58, %v8275_v44  ;;  %v8277_v39 = vmax.f32 %v8087_v56, %v8089_v25  ;;  %v7485_v61 = vpop.f32.mrb[68].mxu0 }
 0x58e   :  { %v8340_v32 = vmax.f32 %v19893_v60, %v8276_v2  ;;  %v8278_v5 = vmax.f32 %v8088_v50, %v8090_v53  ;;  %v7678_v52 = vpop.f32.mrb[68].mxu1  ;;  %v7963_v40 = vadd.f32 %v7485_v61, %v19863_v35  ;;  %v7487_v48 = vpop.f32.mrb[69].mxu0 }
 0x58f   :  { %v8341_v36 = vmax.f32 %v19899_v62, %v8277_v39  ;;  %v7965_v51 = vadd.f32 %v7678_v52, %v19867_v41  ;;  %v7680_v28 = vpop.f32.mrb[69].mxu1  ;;  %v7964_v21 = vadd.f32 %v7487_v48, %v19871_v15  ;;  %v7489_v25 = vpop.f32.mrb[70].mxu0 }
 0x590   :  { %v8342_v30 = vmax.f32 %v19901_v63, %v8278_v5  ;;  %v7966_v58 = vadd.f32 %v7680_v28, %v19875_v16  ;;  %v7682_v44 = vpop.f32.mrb[70].mxu1  ;;  %v8091_v53 = vmax.f32 %v7963_v40, 0.0  ;;  %v7967_v62 = vadd.f32 %v7489_v25, %v19863_v35  ;;  %v7491_v33 = vpop.f32.mrb[71].mxu0 }
 0x591   :  { %v21511_v60 = vpack.c.bf16 %v8341_v36, %v8339_v0  ;;  %v8093_v50 = vmax.f32 %v7965_v51, 0.0  ;;  %v7684_v61 = vpop.f32.mrb[71].mxu1  ;;  %v8092_v52 = vmax.f32 %v7964_v21, 0.0  ;;  %v7969_v63 = vadd.f32 %v7682_v44, %v19867_v41 }
 0x592   :  { %v21514_v10 = vpack.c.bf16 %v8342_v30, %v8340_v32  ;;  %v8094_v59 = vmax.f32 %v7966_v58, 0.0  ;;  %v8095_v27 = vmax.f32 %v7967_v62, 0.0  ;;  %v7968_v56 = vadd.f32 %v7491_v33, %v19871_v15 }
 0x593   :  { %v8279_v38 = vmax.f32 %v8091_v53, %v8093_v50  ;;  %v7970_v2 = vadd.f32 %v7684_v61, %v19875_v16  ;;  %v8097_v39 = vmax.f32 %v7969_v63, 0.0 }
 0x594   :  { %v8280_v0 = vmax.f32 %v8092_v52, %v8094_v59  ;;  %v8096_v36 = vmax.f32 %v7968_v56, 0.0 }
 0x595   :  { %v8343_v5 = vmax.f32 %v19911_v42, %v8279_v38  ;;  %v8098_v40 = vmax.f32 %v7970_v2, 0.0  ;;  %v8281_v32 = vmax.f32 %v8095_v27, %v8097_v39  ;;  %v7495_v48 = vpop.f32.mrb[72].mxu0 }
 0x596   :  { %v8344_v51 = vmax.f32 %v19915_v18, %v8280_v0  ;;  %v7688_v28 = vpop.f32.mrb[72].mxu1  ;;  %v7971_v21 = vadd.f32 %v7495_v48, %v19863_v35  ;;  %v7497_v25 = vpop.f32.mrb[73].mxu0 }
 0x597   :  { %v8282_v30 = vmax.f32 %v8096_v36, %v8098_v40  ;;  %v7973_v58 = vadd.f32 %v7688_v28, %v19867_v41  ;;  %v7690_v44 = vpop.f32.mrb[73].mxu1  ;;  %v8345_v53 = vmax.f32 %v19921_v20, %v8281_v32  ;;  %v7972_v50 = vadd.f32 %v7497_v25, %v19871_v15  ;;  %v7499_v62 = vpop.f32.mrb[74].mxu0 }
 0x598   :  { %v7974_v42 = vadd.f32 %v7690_v44, %v19875_v16  ;;  %v7692_v33 = vpop.f32.mrb[74].mxu1  ;;  %v8099_v61 = vmax.f32 %v7971_v21, 0.0  ;;  %v7975_v59 = vadd.f32 %v7499_v62, %v19863_v35  ;;  %v7501_v63 = vpop.f32.mrb[75].mxu0 }
 0x599   :  { %v8346_v18 = vmax.f32 %v19923_v46, %v8282_v30  ;;  %v8101_v52 = vmax.f32 %v7973_v58, 0.0  ;;  %v7694_v38 = vpop.f32.mrb[75].mxu1  ;;  %v21528_v27 = vpack.c.bf16 %v8345_v53, %v8343_v5  ;;  %v8100_v56 = vmax.f32 %v7972_v50, 0.0 }
 0x59a   :  { %v8102_v2 = vmax.f32 %v7974_v42, 0.0  ;;  %v7977_v20 = vadd.f32 %v7692_v33, %v19867_v41  ;;  %v8103_v36 = vmax.f32 %v7975_v59, 0.0  ;;  %v7976_v40 = vadd.f32 %v7501_v63, %v19871_v15 }
 0x59b   :  { %v21531_v0 = vpack.c.bf16 %v8346_v18, %v8344_v51  ;;  %v8283_v39 = vmax.f32 %v8099_v61, %v8101_v52  ;;  %v7978_v48 = vadd.f32 %v7694_v38, %v19875_v16 }
 0x59c   :  { %v8284_v32 = vmax.f32 %v8100_v56, %v8102_v2  ;;  %v8105_v46 = vmax.f32 %v7977_v20, 0.0  ;;  %v8104_v30 = vmax.f32 %v7976_v40, 0.0 }
 0x59d   :  { %v8347_v28 = vmax.f32 %v19933_v11, %v8283_v39  ;;  %v8106_v58 = vmax.f32 %v7978_v48, 0.0  ;;  %v7505_v25 = vpop.f32.mrb[76].mxu0 }
 0x59e   :  { %v8348_v5 = vmax.f32 %v19937_v12, %v8284_v32  ;;  %v8285_v21 = vmax.f32 %v8103_v36, %v8105_v46  ;;  %v7698_v44 = vpop.f32.mrb[76].mxu1  ;;  %v7979_v51 = vadd.f32 %v7505_v25, %v19863_v35  ;;  %v7507_v50 = vpop.f32.mrb[77].mxu0 }
 0x59f   :  { %v7981_v53 = vadd.f32 %v7698_v44, %v19867_v41  ;;  %v7700_v42 = vpop.f32.mrb[77].mxu1  ;;  %v8286_v33 = vmax.f32 %v8104_v30, %v8106_v58  ;;  %v7980_v18 = vadd.f32 %v7507_v50, %v19871_v15  ;;  %v7509_v61 = vpop.f32.mrb[78].mxu0 }
 0x5a0   :  { %v8349_v62 = vmax.f32 %v19943_v7, %v8285_v21  ;;  %v7982_v11 = vadd.f32 %v7700_v42, %v19875_v16  ;;  %v7702_v52 = vpop.f32.mrb[78].mxu1  ;;  %v8107_v12 = vmax.f32 %v7979_v51, 0.0  ;;  %v7983_v63 = vadd.f32 %v7509_v61, %v19863_v35  ;;  %v7511_v56 = vpop.f32.mrb[79].mxu0 }
 0x5a1   :  { %v8109_v59 = vmax.f32 %v7981_v53, 0.0  ;;  %v7985_v38 = vadd.f32 %v7702_v52, %v19867_v41  ;;  %v7704_v2 = vpop.f32.mrb[79].mxu1  ;;  %v8350_v39 = vmax.f32 %v19945_v8, %v8286_v33  ;;  %v8108_v7 = vmax.f32 %v7980_v18, 0.0 }
 0x5a2   :  { %v21544_v20 = vpack.c.bf16 %v8349_v62, %v8347_v28  ;;  %v8110_v36 = vmax.f32 %v7982_v11, 0.0  ;;  %v8111_v32 = vmax.f32 %v7983_v63, 0.0  ;;  %v7984_v48 = vadd.f32 %v7511_v56, %v19871_v15 }
 0x5a3   :  { %v8287_v40 = vmax.f32 %v8107_v12, %v8109_v59  ;;  %v8113_v46 = vmax.f32 %v7985_v38, 0.0  ;;  %v21548_v30 = vpack.c.bf16 %v8350_v39, %v8348_v5  ;;  %v7986_v58 = vadd.f32 %v7704_v2, %v19875_v16 }
 0x5a4   :  { %v8288_v21 = vmax.f32 %v8108_v7, %v8110_v36  ;;  %v8112_v51 = vmax.f32 %v7984_v48, 0.0 }
 0x5a5   :  { %v8351_v25 = vmax.f32 %v19955_v26, %v8287_v40  ;;  %v8289_v44 = vmax.f32 %v8111_v32, %v8113_v46  ;;  %v8114_v53 = vmax.f32 %v7986_v58, 0.0  ;;  %v7515_v8 = vpop.f32.mrb[80].mxu0 }
 0x5a6   :  { %v8352_v28 = vmax.f32 %v19959_v55, %v8288_v21  ;;  %v7708_v50 = vpop.f32.mrb[80].mxu1  ;;  %v7987_v62 = vadd.f32 %v7515_v8, %v19863_v35  ;;  %v7517_v5 = vpop.f32.mrb[81].mxu0 }
 0x5a7   :  { %v8353_v42 = vmax.f32 %v19965_v31, %v8289_v44  ;;  %v7989_v33 = vadd.f32 %v7708_v50, %v19867_v41  ;;  %v7710_v18 = vpop.f32.mrb[81].mxu1  ;;  %v8290_v11 = vmax.f32 %v8112_v51, %v8114_v53  ;;  %v7988_v61 = vadd.f32 %v7517_v5, %v19871_v15  ;;  %v7519_v52 = vpop.f32.mrb[82].mxu0 }
 0x5a8   :  { %v7990_v26 = vadd.f32 %v7710_v18, %v19875_v16  ;;  %v7712_v12 = vpop.f32.mrb[82].mxu1  ;;  %v8115_v55 = vmax.f32 %v7987_v62, 0.0  ;;  %v7991_v38 = vadd.f32 %v7519_v52, %v19863_v35  ;;  %v7521_v31 = vpop.f32.mrb[83].mxu0 }
 0x5a9   :  { %v21558_v59 = vpack.c.bf16 %v8353_v42, %v8351_v25  ;;  %v8117_v63 = vmax.f32 %v7989_v33, 0.0  ;;  %v7714_v56 = vpop.f32.mrb[83].mxu1  ;;  %v8354_v2 = vmax.f32 %v19967_v49, %v8290_v11  ;;  %v8116_v39 = vmax.f32 %v7988_v61, 0.0 }
 0x5aa   :  { %v8118_v7 = vmax.f32 %v7990_v26, 0.0  ;;  %v7993_v36 = vadd.f32 %v7712_v12, %v19867_v41  ;;  %v8119_v32 = vmax.f32 %v7991_v38, 0.0  ;;  %v7992_v46 = vadd.f32 %v7521_v31, %v19871_v15 }
 0x5ab   :  { %v8291_v40 = vmax.f32 %v8115_v55, %v8117_v63  ;;  %v7994_v48 = vadd.f32 %v7714_v56, %v19875_v16  ;;  %v21565_v21 = vpack.c.bf16 %v8354_v2, %v8352_v28 }
 0x5ac   :  { %v8292_v58 = vmax.f32 %v8116_v39, %v8118_v7  ;;  %v8121_v25 = vmax.f32 %v7993_v36, 0.0  ;;  %v8120_v51 = vmax.f32 %v7992_v46, 0.0 }
 0x5ad   :  { %v8355_v44 = vmax.f32 %v19977_v13, %v8291_v40  ;;  %v8122_v53 = vmax.f32 %v7994_v48, 0.0  ;;  %8927 = vmatprep.mubr.bf16.mxu0 %v21565_v21  ;;  %9000 = vmatprep.mubr.bf16.mxu1 %v21565_v21  ;;  %v7525_v50 = vpop.f32.mrb[84].mxu0 }
 0x5ae   :  { %v8356_v49 = vmax.f32 %v19981_v29, %v8292_v58  ;;  %v8293_v8 = vmax.f32 %v8119_v32, %v8121_v25  ;;  %v7718_v42 = vpop.f32.mrb[84].mxu1  ;;  %8928 = vmatmul.mubr.bf16.gmra.mrb[132].mxu0 %v21558_v59  ;;  %9001 = vmatmul.mubr.bf16.gmra.mrb[132].mxu1 %v21558_v59  ;;  %v7995_v28 = vadd.f32 %v7525_v50, %v19863_v35  ;;  %v7527_v33 = vpop.f32.mrb[85].mxu0 }
 0x5af   :  { %v8294_v62 = vmax.f32 %v8120_v51, %v8122_v53  ;;  %v7997_v13 = vadd.f32 %v7718_v42, %v19867_v41  ;;  %v7720_v5 = vpop.f32.mrb[85].mxu1  ;;  %v7996_v18 = vadd.f32 %v7527_v33, %v19871_v15  ;;  %v7529_v61 = vpop.f32.mrb[86].mxu0 }
 0x5b0   :  { %v8357_v29 = vmax.f32 %v19988_v17, %v8293_v8  ;;  %v7998_v11 = vadd.f32 %v7720_v5, %v19875_v16  ;;  %v7722_v26 = vpop.f32.mrb[86].mxu1  ;;  %v8123_v12 = vmax.f32 %v7995_v28, 0.0  ;;  %v7999_v63 = vadd.f32 %v7529_v61, %v19863_v35  ;;  %v7531_v38 = vpop.f32.mrb[87].mxu0 }
 0x5b1   :  { %v8358_v52 = vmax.f32 %v19990_v19, %v8294_v62  ;;  %v8125_v55 = vmax.f32 %v7997_v13, 0.0  ;;  %v7724_v31 = vpop.f32.mrb[87].mxu1  ;;  %v8124_v2 = vmax.f32 %v7996_v18, 0.0  ;;  %v8001_v17 = vadd.f32 %v7722_v26, %v19867_v41 }
 0x5b2   :  { %v21580_v56 = vpack.c.bf16 %v8357_v29, %v8355_v44  ;;  %v8126_v39 = vmax.f32 %v7998_v11, 0.0  ;;  %v8127_v40 = vmax.f32 %v7999_v63, 0.0  ;;  %v8000_v32 = vadd.f32 %v7531_v38, %v19871_v15 }
 0x5b3   :  { %v21583_v7 = vpack.c.bf16 %v8358_v52, %v8356_v49  ;;  %v8295_v36 = vmax.f32 %v8123_v12, %v8125_v55  ;;  %v8129_v19 = vmax.f32 %v8001_v17, 0.0  ;;  %v8002_v48 = vadd.f32 %v7724_v31, %v19875_v16 }
 0x5b4   :  { %v8296_v46 = vmax.f32 %v8124_v2, %v8126_v39  ;;  %v8128_v25 = vmax.f32 %v8000_v32, 0.0 }
 0x5b5   :  { %v8359_v58 = vmax.f32 %v20000_v4, %v8295_v36  ;;  %v8297_v51 = vmax.f32 %v8127_v40, %v8129_v19  ;;  %v8130_v53 = vmax.f32 %v8002_v48, 0.0  ;;  %v7535_v8 = vpop.f32.mrb[88].mxu0 }
 0x5b6   :  { %v8360_v44 = vmax.f32 %v20005_v9, %v8296_v46  ;;  %v7728_v50 = vpop.f32.mrb[88].mxu1  ;;  %v8003_v49 = vadd.f32 %v7535_v8, %v19863_v35  ;;  %v7537_v62 = vpop.f32.mrb[89].mxu0 }
 0x5b7   :  { %v8005_v42 = vadd.f32 %v7728_v50, %v19867_v41  ;;  %v7730_v28 = vpop.f32.mrb[89].mxu1  ;;  %v8361_v13 = vmax.f32 %v20013_v22, %v8297_v51  ;;  %v8298_v33 = vmax.f32 %v8128_v25, %v8130_v53  ;;  %v8004_v5 = vadd.f32 %v7537_v62, %v19871_v15  ;;  %v7539_v29 = vpop.f32.mrb[90].mxu0 }
 0x5b8   :  { %v8006_v4 = vadd.f32 %v7730_v28, %v19875_v16  ;;  %v7732_v18 = vpop.f32.mrb[90].mxu1  ;;  %v8131_v9 = vmax.f32 %v8003_v49, 0.0  ;;  %v8007_v61 = vadd.f32 %v7539_v29, %v19863_v35  ;;  %v7541_v52 = vpop.f32.mrb[91].mxu0 }
 0x5b9   :  { %v8133_v11 = vmax.f32 %v8005_v42, 0.0  ;;  %v8009_v26 = vadd.f32 %v7732_v18, %v19867_v41  ;;  %v7734_v12 = vpop.f32.mrb[91].mxu1  ;;  %v21596_v55 = vpack.c.bf16 %v8361_v13, %v8359_v58  ;;  %v8362_v63 = vmax.f32 %v20020_v34, %v8298_v33 }
 0x5ba   :  { %v8132_v22 = vmax.f32 %v8004_v5, 0.0  ;;  %v8134_v38 = vmax.f32 %v8006_v4, 0.0  ;;  %v8135_v2 = vmax.f32 %v8007_v61, 0.0  ;;  %v8008_v17 = vadd.f32 %v7541_v52, %v19871_v15 }
 0x5bb   :  { %v8299_v31 = vmax.f32 %v8131_v9, %v8133_v11  ;;  %v8137_v39 = vmax.f32 %v8009_v26, 0.0  ;;  %v21600_v36 = vpack.c.bf16 %v8362_v63, %v8360_v44  ;;  %v8010_v32 = vadd.f32 %v7734_v12, %v19875_v16 }
 0x5bc   :  { %v8300_v40 = vmax.f32 %v8132_v22, %v8134_v38  ;;  %v8136_v48 = vmax.f32 %v8008_v17, 0.0 }
 0x5bd   :  { %v8363_v46 = vmax.f32 %v20048_v47, %v8299_v31  ;;  %v8301_v19 = vmax.f32 %v8135_v2, %v8137_v39  ;;  %v8138_v25 = vmax.f32 %v8010_v32, 0.0  ;;  %v7545_v34 = vpop.f32.mrb[92].mxu0 }
 0x5be   :  { %v8364_v58 = vmax.f32 %v20053_v14, %v8300_v40  ;;  %v7738_v51 = vpop.f32.mrb[92].mxu1  ;;  %v8011_v8 = vadd.f32 %v7545_v34, %v19863_v35  ;;  %v7547_v44 = vpop.f32.mrb[93].mxu0 }
 0x5bf   :  { %v8365_v53 = vmax.f32 %v20060_v45, %v8301_v19  ;;  %v8013_v50 = vadd.f32 %v7738_v51, %v19867_v41  ;;  %v7740_v49 = vpop.f32.mrb[93].mxu1  ;;  %v8302_v42 = vmax.f32 %v8136_v48, %v8138_v25  ;;  %v8012_v62 = vadd.f32 %v7547_v44, %v19871_v15  ;;  %v7549_v28 = vpop.f32.mrb[94].mxu0 }
 0x5c0   :  { %v8014_v47 = vadd.f32 %v7740_v49, %v19875_v16  ;;  %v7742_v13 = vpop.f32.mrb[94].mxu1  ;;  %v8139_v14 = vmax.f32 %v8011_v8, 0.0  ;;  %v8015_v4 = vadd.f32 %v7549_v28, %v19863_v35  ;;  %v7551_v45 = vpop.f32.mrb[95].mxu0 }
 0x5c1   :  { %v21610_v33 = vpack.c.bf16 %v8365_v53, %v8363_v46  ;;  %v8141_v5 = vmax.f32 %v8013_v50, 0.0  ;;  %v7744_v29 = vpop.f32.mrb[95].mxu1  ;;  %v8366_v18 = vmax.f32 %v20068_v24, %v8302_v42  ;;  %v8140_v9 = vmax.f32 %v8012_v62, 0.0 }
 0x5c2   :  { %v8142_v11 = vmax.f32 %v8014_v47, 0.0  ;;  %v8017_v61 = vadd.f32 %v7742_v13, %v19867_v41  ;;  %v8143_v52 = vmax.f32 %v8015_v4, 0.0  ;;  %v8016_v12 = vadd.f32 %v7551_v45, %v19871_v15 }
 0x5c3   :  { %v8303_v26 = vmax.f32 %v8139_v14, %v8141_v5  ;;  %v8018_v63 = vadd.f32 %v7744_v29, %v19875_v16  ;;  %v21617_v22 = vpack.c.bf16 %v8366_v18, %v8364_v58 }
 0x5c4   :  { %v8304_v38 = vmax.f32 %v8140_v9, %v8142_v11  ;;  %v8145_v31 = vmax.f32 %v8017_v61, 0.0  ;;  %v8144_v39 = vmax.f32 %v8016_v12, 0.0 }
 0x5c5   :  { %v8367_v2 = vmax.f32 %v20096_v54, %v8303_v26  ;;  %v8146_v17 = vmax.f32 %v8018_v63, 0.0  ;;  %v7555_v32 = vpop.f32.mrb[96].mxu0 }
 0x5c6   :  { %v8368_v24 = vmax.f32 %v20101_v43, %v8304_v38  ;;  %v8305_v40 = vmax.f32 %v8143_v52, %v8145_v31  ;;  %v7748_v46 = vpop.f32.mrb[96].mxu1  ;;  %v8019_v48 = vadd.f32 %v7555_v32, %v19863_v35  ;;  %v7557_v34 = vpop.f32.mrb[97].mxu0 }
 0x5c7   :  { %v8306_v19 = vmax.f32 %v8144_v39, %v8146_v17  ;;  %v8021_v25 = vadd.f32 %v7748_v46, %v19867_v41  ;;  %v7750_v51 = vpop.f32.mrb[97].mxu1  ;;  %v8020_v53 = vadd.f32 %v7557_v34, %v19871_v15  ;;  %v7559_v8 = vpop.f32.mrb[98].mxu0 }
 0x5c8   :  { %v8369_v58 = vmax.f32 %v20108_v57, %v8305_v40  ;;  %v8022_v54 = vadd.f32 %v7750_v51, %v19875_v16  ;;  %v7752_v50 = vpop.f32.mrb[98].mxu1  ;;  %v8147_v44 = vmax.f32 %v8019_v48, 0.0  ;;  %v8023_v42 = vadd.f32 %v7559_v8, %v19863_v35  ;;  %v7561_v62 = vpop.f32.mrb[99].mxu0 }
 0x5c9   :  { %v8370_v43 = vmax.f32 %v20116_v1, %v8306_v19  ;;  %v8149_v49 = vmax.f32 %v8021_v25, 0.0  ;;  %v7754_v47 = vpop.f32.mrb[99].mxu1  ;;  %v8148_v13 = vmax.f32 %v8020_v53, 0.0  ;;  %v8025_v57 = vadd.f32 %v7752_v50, %v19867_v41 }
 0x5ca   :  { %v21628_v28 = vpack.c.bf16 %v8369_v58, %v8367_v2  ;;  %v8150_v14 = vmax.f32 %v8022_v54, 0.0  ;;  %v8151_v45 = vmax.f32 %v8023_v42, 0.0  ;;  %v8024_v29 = vadd.f32 %v7561_v62, %v19871_v15 }
 0x5cb   :  { %v21631_v5 = vpack.c.bf16 %v8370_v43, %v8368_v24  ;;  %v8307_v4 = vmax.f32 %v8147_v44, %v8149_v49  ;;  %v8153_v1 = vmax.f32 %v8025_v57, 0.0  ;;  %v8026_v9 = vadd.f32 %v7754_v47, %v19875_v16 }
 0x5cc   :  { %v8308_v18 = vmax.f32 %v8148_v13, %v8150_v14  ;;  %v8152_v61 = vmax.f32 %v8024_v29, 0.0  ;;  %v24155_v13 = vld [vmem:[#allocation3_spill] sm:$0xff] }
 0x5cd   :  { %v8371_v11 = vmax.f32 %v20144_v3, %v8307_v4  ;;  %8937 = vmatprep.mubr.bf16.mxu0 %v21631_v5  ;;  %9010 = vmatprep.mubr.bf16.mxu1 %v21631_v5  ;;  %v8309_v52 = vmax.f32 %v8151_v45, %v8153_v1  ;;  %v8154_v12 = vmax.f32 %v8026_v9, 0.0  ;;  %v7565_v63 = vpop.f32.mrb[100].mxu0  ;;  %v24156_v45 = vld [vmem:[#allocation4_spill] sm:$0xff]  ;;  %v24157_v9 = vld [vmem:[#allocation5_spill] sm:$0xff] }
 0x5ce   :  { %v8372_v26 = vmax.f32 %v20149_v6, %v8308_v18  ;;  %8938 = vmatmul.mubr.bf16.gmra.mrb[136].mxu0 %v21628_v28  ;;  %9011 = vmatmul.mubr.bf16.gmra.mrb[136].mxu1 %v21628_v28  ;;  %v7758_v38 = vpop.f32.mrb[100].mxu1  ;;  %v8027_v31 = vadd.f32 %v7565_v63, %v19863_v35  ;;  %v7567_v3 = vpop.f32.mrb[101].mxu0 }
 0x5cf   :  { %v8029_v2 = vadd.f32 %v7758_v38, %v19867_v41  ;;  %v7760_v39 = vpop.f32.mrb[101].mxu1  ;;  %v8373_v17 = vmax.f32 %v20156_v37, %v8309_v52  ;;  %v8310_v24 = vmax.f32 %v8152_v61, %v8154_v12  ;;  %v8028_v40 = vadd.f32 %v7567_v3, %v19871_v15  ;;  %v7569_v32 = vpop.f32.mrb[102].mxu0 }
 0x5d0   :  { %v8030_v6 = vadd.f32 %v7760_v39, %v19875_v16  ;;  %v7762_v46 = vpop.f32.mrb[102].mxu1  ;;  %v8155_v19 = vmax.f32 %v8027_v31, 0.0  ;;  %v8031_v25 = vadd.f32 %v7569_v32, %v19863_v35  ;;  %v7571_v51 = vpop.f32.mrb[103].mxu0 }
 0x5d1   :  { %v8157_v48 = vmax.f32 %v8029_v2, 0.0  ;;  %v8033_v34 = vadd.f32 %v7762_v46, %v19867_v41  ;;  %v7764_v58 = vpop.f32.mrb[103].mxu1  ;;  %v21648_v53 = vpack.c.bf16 %v8373_v17, %v8371_v11  ;;  %v8374_v54 = vmax.f32 %v20164_v23, %v8310_v24  ;;  %v24158_v46 = vld [vmem:[#allocation6_spill] sm:$0xff] }
 0x5d2   :  { %v8156_v37 = vmax.f32 %v8028_v40, 0.0  ;;  %v8158_v8 = vmax.f32 %v8030_v6, 0.0  ;;  %v8159_v43 = vmax.f32 %v8031_v25, 0.0  ;;  %v8032_v49 = vadd.f32 %v7571_v51, %v19871_v15 }
 0x5d3   :  { %v8311_v50 = vmax.f32 %v8155_v19, %v8157_v48  ;;  %v8161_v44 = vmax.f32 %v8033_v34, 0.0  ;;  %v21652_v42 = vpack.c.bf16 %v8374_v54, %v8372_v26  ;;  %v8034_v47 = vadd.f32 %v7764_v58, %v19875_v16 }
 0x5d4   :  { %v8312_v62 = vmax.f32 %v8156_v37, %v8158_v8  ;;  %v8160_v4 = vmax.f32 %v8032_v49, 0.0 }
 0x5d5   :  { %v8375_v14 = vmax.f32 %v24155_v13, %v8311_v50  ;;  %v8313_v57 = vmax.f32 %v8159_v43, %v8161_v44  ;;  %v8162_v18 = vmax.f32 %v8034_v47, 0.0  ;;  %v7575_v23 = vpop.f32.mrb[104].mxu0  ;;  %v24159_v44 = vld [vmem:[#allocation7_spill] sm:$0xff]  ;;  %v24160_v13 = vld [vmem:[#allocation8_spill] sm:$0xff] }
 0x5d6   :  { %v8376_v29 = vmax.f32 %v24156_v45, %v8312_v62  ;;  %v7768_v1 = vpop.f32.mrb[104].mxu1  ;;  %v8035_v61 = vadd.f32 %v7575_v23, %v19863_v35  ;;  %v7577_v26 = vpop.f32.mrb[105].mxu0 }
 0x5d7   :  { %v8377_v11 = vmax.f32 %v24157_v9, %v8313_v57  ;;  %v8037_v52 = vadd.f32 %v7768_v1, %v19867_v41  ;;  %v7770_v12 = vpop.f32.mrb[105].mxu1  ;;  %v8314_v63 = vmax.f32 %v8160_v4, %v8162_v18  ;;  %v8036_v38 = vadd.f32 %v7577_v26, %v19871_v15  ;;  %v7579_v2 = vpop.f32.mrb[106].mxu0 }
 0x5d8   :  { %v8038_v31 = vadd.f32 %v7770_v12, %v19875_v16  ;;  %v7772_v3 = vpop.f32.mrb[106].mxu1  ;;  %v8163_v17 = vmax.f32 %v8035_v61, 0.0  ;;  %v8039_v40 = vadd.f32 %v7579_v2, %v19863_v35  ;;  %v7581_v6 = vpop.f32.mrb[107].mxu0 }
 0x5d9   :  { %v21662_v39 = vpack.c.bf16 %v8377_v11, %v8375_v14  ;;  %v8165_v24 = vmax.f32 %v8037_v52, 0.0  ;;  %v7774_v32 = vpop.f32.mrb[107].mxu1  ;;  %v8378_v19 = vmax.f32 %v24158_v46, %v8314_v63  ;;  %v8164_v48 = vmax.f32 %v8036_v38, 0.0  ;;  %v24162_v38 = vld [vmem:[#allocation10_spill] sm:$0xff] }
 0x5da   :  { %v8166_v25 = vmax.f32 %v8038_v31, 0.0  ;;  %v8041_v34 = vadd.f32 %v7772_v3, %v19867_v41  ;;  %v8167_v58 = vmax.f32 %v8039_v40, 0.0  ;;  %v8040_v54 = vadd.f32 %v7581_v6, %v19871_v15 }
 0x5db   :  { %v8315_v51 = vmax.f32 %v8163_v17, %v8165_v24  ;;  %v8042_v37 = vadd.f32 %v7774_v32, %v19875_v16  ;;  %v21669_v8 = vpack.c.bf16 %v8378_v19, %v8376_v29  ;;  %v24161_v29 = vld [vmem:[#allocation9_spill] sm:$0xff] }
 0x5dc   :  { %v8316_v50 = vmax.f32 %v8164_v48, %v8166_v25  ;;  %v8169_v43 = vmax.f32 %v8041_v34, 0.0  ;;  %v8168_v62 = vmax.f32 %v8040_v54, 0.0 }
 0x5dd   :  { %v8379_v49 = vmax.f32 %v24159_v44, %v8315_v51  ;;  %v8170_v47 = vmax.f32 %v8042_v37, 0.0  ;;  %v7585_v4 = vpop.f32.mrb[108].mxu0 }
 0x5de   :  { %v8380_v14 = vmax.f32 %v24160_v13, %v8316_v50  ;;  %v8317_v57 = vmax.f32 %v8167_v58, %v8169_v43  ;;  %v7778_v45 = vpop.f32.mrb[108].mxu1  ;;  %v8043_v23 = vadd.f32 %v7585_v4, %v19863_v35  ;;  %v7587_v9 = vpop.f32.mrb[109].mxu0  ;;  %v24163_v50 = vld [vmem:[#allocation11_spill] sm:$0xff] }
 0x5df   :  { %v8318_v18 = vmax.f32 %v8168_v62, %v8170_v47  ;;  %v8045_v1 = vadd.f32 %v7778_v45, %v19867_v41  ;;  %v7780_v11 = vpop.f32.mrb[109].mxu1  ;;  %v8044_v52 = vadd.f32 %v7587_v9, %v19871_v15  ;;  %v7589_v12 = vpop.f32.mrb[110].mxu0  ;;  %v24164_v62 = vld [vmem:[#allocation12_spill] sm:$0xff] }
 0x5e0   :  { %v8381_v61 = vmax.f32 %v24161_v29, %v8317_v57  ;;  %v8046_v26 = vadd.f32 %v7780_v11, %v19875_v16  ;;  %v7782_v63 = vpop.f32.mrb[110].mxu1  ;;  %v8171_v2 = vmax.f32 %v8043_v23, 0.0  ;;  %v8047_v17 = vadd.f32 %v7589_v12, %v19863_v35  ;;  %v7591_v24 = vpop.f32.mrb[111].mxu0 }
 0x5e1   :  { %v8382_v31 = vmax.f32 %v24162_v38, %v8318_v18  ;;  %v8173_v3 = vmax.f32 %v8045_v1, 0.0  ;;  %v7784_v40 = vpop.f32.mrb[111].mxu1  ;;  %v8172_v32 = vmax.f32 %v8044_v52, 0.0  ;;  %v8049_v19 = vadd.f32 %v7782_v63, %v19867_v41  ;;  %v24165_v1 = vld [vmem:[#allocation13_spill] sm:$0xff] }
 0x5e2   :  { %v21680_v6 = vpack.c.bf16 %v8381_v61, %v8379_v49  ;;  %v8174_v46 = vmax.f32 %v8046_v26, 0.0  ;;  %v8175_v34 = vmax.f32 %v8047_v17, 0.0  ;;  %v8048_v51 = vadd.f32 %v7591_v24, %v19871_v15  ;;  %v24166_v24 = vld [vmem:[#allocation14_spill] sm:$0xff] }
 0x5e3   :  { %v21683_v48 = vpack.c.bf16 %v8382_v31, %v8380_v14  ;;  %v8319_v25 = vmax.f32 %v8171_v2, %v8173_v3  ;;  %v8177_v54 = vmax.f32 %v8049_v19, 0.0  ;;  %v8050_v37 = vadd.f32 %v7784_v40, %v19875_v16 }
 0x5e4   :  { %v8320_v58 = vmax.f32 %v8172_v32, %v8174_v46  ;;  %v8176_v44 = vmax.f32 %v8048_v51, 0.0 }
 0x5e5   :  { %v8383_v43 = vmax.f32 %v24163_v50, %v8319_v25  ;;  %v8321_v47 = vmax.f32 %v8175_v34, %v8177_v54  ;;  %v8178_v13 = vmax.f32 %v8050_v37, 0.0  ;;  %v7595_v57 = vpop.f32.mrb[112].mxu0  ;;  %v24167_v50 = vld [vmem:[#allocation15_spill] sm:$0xff] }
 0x5e6   :  { %v8384_v49 = vmax.f32 %v24164_v62, %v8320_v58  ;;  %v7788_v4 = vpop.f32.mrb[112].mxu1  ;;  %v8051_v14 = vadd.f32 %v7595_v57, %v19863_v35  ;;  %v7597_v18 = vpop.f32.mrb[113].mxu0 }
 0x5e7   :  { %v8053_v45 = vadd.f32 %v7788_v4, %v19867_v41  ;;  %v7790_v23 = vpop.f32.mrb[113].mxu1  ;;  %v8385_v9 = vmax.f32 %v24165_v1, %v8321_v47  ;;  %v8322_v11 = vmax.f32 %v8176_v44, %v8178_v13  ;;  %v8052_v29 = vadd.f32 %v7597_v18, %v19871_v15  ;;  %v7599_v52 = vpop.f32.mrb[114].mxu0 }
 0x5e8   :  { %v8054_v61 = vadd.f32 %v7790_v23, %v19875_v16  ;;  %v7792_v26 = vpop.f32.mrb[114].mxu1  ;;  %v8179_v12 = vmax.f32 %v8051_v14, 0.0  ;;  %v8055_v38 = vadd.f32 %v7599_v52, %v19863_v35  ;;  %v7601_v2 = vpop.f32.mrb[115].mxu0 }
 0x5e9   :  { %v8181_v63 = vmax.f32 %v8053_v45, 0.0  ;;  %v8057_v31 = vadd.f32 %v7792_v26, %v19867_v41  ;;  %v7794_v3 = vpop.f32.mrb[115].mxu1  ;;  %v21696_v17 = vpack.c.bf16 %v8385_v9, %v8383_v43  ;;  %v8386_v40 = vmax.f32 %v24166_v24, %v8322_v11  ;;  %v24168_v43 = vld [vmem:[#allocation16_spill] sm:$0xff]  ;;  %v24169_v45 = vld [vmem:[#allocation17_spill] sm:$0xff] }
 0x5ea   :  { %v8180_v32 = vmax.f32 %v8052_v29, 0.0  ;;  %v8182_v46 = vmax.f32 %v8054_v61, 0.0  ;;  %v8183_v25 = vmax.f32 %v8055_v38, 0.0  ;;  %v8056_v51 = vadd.f32 %v7601_v2, %v19871_v15 }
 0x5eb   :  { %v8323_v19 = vmax.f32 %v8179_v12, %v8181_v63  ;;  %v8185_v34 = vmax.f32 %v8057_v31, 0.0  ;;  %v21700_v58 = vpack.c.bf16 %v8386_v40, %v8384_v49  ;;  %v8058_v37 = vadd.f32 %v7794_v3, %v19875_v16  ;;  %v24171_v40 = vld [vmem:[#allocation18_spill] sm:$0xff] }
 0x5ec   :  { %v8324_v54 = vmax.f32 %v8180_v32, %v8182_v46  ;;  %v8184_v47 = vmax.f32 %v8056_v51, 0.0  ;;  %v24170_v12 = vmov 0  }
 0x5ed   :  { %v8387_v44 = vmax.f32 %v24167_v50, %v8323_v19  ;;  %v8325_v62 = vmax.f32 %v8183_v25, %v8185_v34  ;;  %v8186_v57 = vmax.f32 %v8058_v37, 0.0  ;;  %8947 = vmatprep.mubr.bf16.mxu0 %v21700_v58  ;;  %9020 = vmatprep.mubr.bf16.mxu1 %v21700_v58  ;;  %v7605_v4 = vpop.f32.mrb[116].mxu0 }
 0x5ee   :  { %v8388_v13 = vmax.f32 %v24168_v43, %v8324_v54  ;;  %v7798_v14 = vpop.f32.mrb[116].mxu1  ;;  %8948 = vmatmul.mubr.bf16.gmra.mrb[140].mxu0 %v21696_v17  ;;  %9021 = vmatmul.mubr.bf16.gmra.mrb[140].mxu1 %v21696_v17  ;;  %v8059_v49 = vadd.f32 %v7605_v4, %v19863_v35  ;;  %v7607_v1 = vpop.f32.mrb[117].mxu0  ;;  %v17044_v43 = vld [vmem:[%s24111_s2 + $0x408] ss:$16 sps:$4 sm:$0xff]  }
 0x5ef   :  { %v8389_v18 = vmax.f32 %v24169_v45, %v8325_v62  ;;  %v8061_v23 = vadd.f32 %v7798_v14, %v19867_v41  ;;  %v7800_v9 = vpop.f32.mrb[117].mxu1  ;;  %v8326_v11 = vmax.f32 %v8184_v47, %v8186_v57  ;;  %v8060_v29 = vadd.f32 %v7607_v1, %v19871_v15  ;;  %v7609_v52 = vpop.f32.mrb[118].mxu0  ;;  %9383 = vmatprep.mubr.bf16.mxu0 %v24170_v12  ;;  %v17041_v47 = vld [vmem:[%s24111_s2 + $0x400] ss:$16 sps:$4 sm:$0xff]   ;;  %v24172_v57 = vld [vmem:[#allocation19_spill] sm:$0xff] }
 0x5f0   :  { %v8062_v61 = vadd.f32 %v7800_v9, %v19875_v16  ;;  %v7802_v26 = vpop.f32.mrb[118].mxu1  ;;  %9456 = vmatprep.mubr.bf16.mxu1 %v24170_v12  ;;  %v8187_v38 = vmax.f32 %v8059_v49, 0.0  ;;  %v8063_v2 = vadd.f32 %v7609_v52, %v19863_v35  ;;  %v7611_v3 = vpop.f32.mrb[119].mxu0  ;;  %v17049_v9 = vld [vmem:[%s24111_s2 + $0x424] ss:$16 sps:$4 sm:$0xff]  }
 0x5f1   :  { %v21716_v63 = vpack.c.bf16 %v8389_v18, %v8387_v44  ;;  %v8189_v31 = vmax.f32 %v8061_v23, 0.0  ;;  %v7804_v24 = vpop.f32.mrb[119].mxu1  ;;  %v8390_v32 = vmax.f32 %v24171_v40, %v8326_v11  ;;  %v8188_v46 = vmax.f32 %v8060_v29, 0.0  ;;  %v24173_v18 = vld [vmem:[#allocation20_spill] sm:$0xff]  ;;  %v17052_v11 = vld [vmem:[%s24111_s2 + $0x42c] ss:$16 sps:$4 sm:$0xff]  }
 0x5f2   :  { %v8190_v19 = vmax.f32 %v8062_v61, 0.0  ;;  %v8065_v25 = vadd.f32 %v7802_v26, %v19867_v41  ;;  %v8191_v51 = vmax.f32 %v8063_v2, 0.0  ;;  %v8064_v54 = vadd.f32 %v7611_v3, %v19871_v15  ;;  %v24174_v2 = vld [vmem:[#allocation21_spill] sm:$0xff] }
 0x5f3   :  { %v8327_v34 = vmax.f32 %v8187_v38, %v8189_v31  ;;  %v8066_v37 = vadd.f32 %v7804_v24, %v19875_v16  ;;  %v21723_v50 = vpack.c.bf16 %v8390_v32, %v8388_v13  ;;  %v17047_v31 = vld [vmem:[%s24111_s2 + $0x420] ss:$16 sps:$4 sm:$0xff]  }
 0x5f4   :  { %v8328_v44 = vmax.f32 %v8188_v46, %v8190_v19  ;;  %v8193_v62 = vmax.f32 %v8065_v25, 0.0  ;;  %v8192_v14 = vmax.f32 %v8064_v54, 0.0  ;;  %v17050_v19 = vld [vmem:[%s24111_s2 + $0x428] ss:$16 sps:$4 sm:$0xff]   ;;  %v17055_v25 = vld [vmem:[%s24111_s2 + $0x444] ss:$16 sps:$4 sm:$0xff]  }
 0x5f5   :  { %v8391_v4 = vmax.f32 %v24172_v57, %v8327_v34  ;;  %v8194_v45 = vmax.f32 %v8066_v37, 0.0  ;;  %v7615_v1 = vpop.f32.mrb[120].mxu0  ;;  %v24175_v34 = vld [vmem:[#allocation22_spill] sm:$0xff] }
 0x5f6   :  { %v8392_v49 = vmax.f32 %v24173_v18, %v8328_v44  ;;  %v8329_v23 = vmax.f32 %v8191_v51, %v8193_v62  ;;  %v7808_v13 = vpop.f32.mrb[120].mxu1  ;;  %9384 = vmatmul.mubr.bf16.vlgmr.msra.gmra.mrb[128].mxu0 %v24170_v12  ;;  %9457 = vmatmul.mubr.bf16.vlgmr.msra.gmra.mrb[128].mxu1 %v24170_v12  ;;  %v8067_v61 = vadd.f32 %v7615_v1, %v19863_v35  ;;  %v7617_v26 = vpop.f32.mrb[121].mxu0 }
 0x5f7   :  { %v8330_v29 = vmax.f32 %v8192_v14, %v8194_v45  ;;  %v8069_v52 = vadd.f32 %v7808_v13, %v19867_v41  ;;  %v7810_v38 = vpop.f32.mrb[121].mxu1  ;;  %9883 = vmatpush1.bf16.msra.mxu0 %v17041_v47  ;;  %9956 = vmatpush1.bf16.msra.mxu1 %v17044_v43  ;;  %v8068_v24 = vadd.f32 %v7617_v26, %v19871_v15  ;;  %v7619_v32 = vpop.f32.mrb[122].mxu0  ;;  %v17058_v43 = vld [vmem:[%s24111_s2 + $0x44c] ss:$16 sps:$4 sm:$0xff]  }
 0x5f8   :  { %v8393_v3 = vmax.f32 %v24174_v2, %v8329_v23  ;;  %v8070_v40 = vadd.f32 %v7810_v38, %v19875_v16  ;;  %v7812_v46 = vpop.f32.mrb[122].mxu1  ;;  %v8195_v54 = vmax.f32 %v8067_v61, 0.0  ;;  %9393 = vmatprep.mubr.bf16.mxu0 %v21548_v30  ;;  %9466 = vmatprep.mubr.bf16.mxu1 %v21548_v30  ;;  %v8071_v44 = vadd.f32 %v7619_v32, %v19863_v35  ;;  %v7621_v62 = vpop.f32.mrb[123].mxu0  ;;  %v17061_v2 = vld [vmem:[%s24111_s2 + $0x464] ss:$16 sps:$4 sm:$0xff]  }
 0x5f9   :  { %v8394_v51 = vmax.f32 %v24175_v34, %v8330_v29  ;;  %v8197_v37 = vmax.f32 %v8069_v52, 0.0  ;;  %v7814_v47 = vpop.f32.mrb[123].mxu1  ;;  %v8196_v14 = vmax.f32 %v8068_v24, 0.0  ;;  %v8073_v18 = vadd.f32 %v7812_v46, %v19867_v41  ;;  %9884 = vmatprep.subr.bf16.mxu0 %v17049_v9  ;;  %9957 = vmatprep.subr.bf16.mxu1 %v17052_v11  ;;  %v17056_v9 = vld [vmem:[%s24111_s2 + $0x448] ss:$16 sps:$4 sm:$0xff]  }
 0x5fa   :  { %v21762_v57 = vpack.c.bf16 %v8393_v3, %v8391_v4  ;;  %v8198_v45 = vmax.f32 %v8070_v40, 0.0  ;;  %v8199_v13 = vmax.f32 %v8071_v44, 0.0  ;;  %v8072_v29 = vadd.f32 %v7621_v62, %v19871_v15  ;;  %v17053_v4 = vld [vmem:[%s24111_s2 + $0x440] ss:$16 sps:$4 sm:$0xff]   ;;  %v24178_v44 = vld [vmem:[#allocation25_spill] sm:$0xff] }
 0x5fb   :  { %v21765_v23 = vpack.c.bf16 %v8394_v51, %v8392_v49  ;;  %v8331_v1 = vmax.f32 %v8195_v54, %v8197_v37  ;;  %v8201_v52 = vmax.f32 %v8073_v18, 0.0  ;;  %v8074_v26 = vadd.f32 %v7814_v47, %v19875_v16  ;;  %9885 = vmatpush1.bf16.msra.mxu0 %v17047_v31  ;;  %9958 = vmatpush1.bf16.msra.mxu1 %v17050_v19  ;;  %v24176_v49 = vld [vmem:[#allocation23_spill] sm:$0xff]  ;;  %v24177_v3 = vld [vmem:[#allocation24_spill] sm:$0xff] }
 0x5fc   :  { %v8332_v61 = vmax.f32 %v8196_v14, %v8198_v45  ;;  %v8200_v38 = vmax.f32 %v8072_v29, 0.0  ;;  %9886 = vmatprep.subr.bf16.mxu0 %v17055_v25  ;;  %9959 = vmatprep.subr.bf16.mxu1 %v17058_v43  ;;  %v17064_v19 = vld [vmem:[%s24111_s2 + $0x46c] ss:$16 sps:$4 sm:$0xff]   ;;  %v17059_v37 = vld [vmem:[%s24111_s2 + $0x460] ss:$16 sps:$4 sm:$0xff]  }
 0x5fd   :  { %v8395_v11 = vmax.f32 %v24176_v49, %v8331_v1  ;;  %v8333_v24 = vmax.f32 %v8199_v13, %v8201_v52  ;;  %v8202_v40 = vmax.f32 %v8074_v26, 0.0  ;;  %v7625_v32 = vpop.f32.mrb[124].mxu0  ;;  %v17062_v18 = vld [vmem:[%s24111_s2 + $0x468] ss:$16 sps:$4 sm:$0xff]   ;;  %v17067_v1 = vld [vmem:[%s24111_s2 + $0x484] ss:$16 sps:$4 sm:$0xff]  }
 0x5fe   :  { %v8396_v31 = vmax.f32 %v24177_v3, %v8332_v61  ;;  %v7818_v46 = vpop.f32.mrb[124].mxu1  ;;  %9394 = vmatmul.mubr.bf16.gmra.mrb[132].mxu0 %v21544_v20  ;;  %9467 = vmatmul.mubr.bf16.gmra.mrb[132].mxu1 %v21544_v20  ;;  %v8075_v25 = vadd.f32 %v7625_v32, %v19863_v35  ;;  %v7627_v51 = vpop.f32.mrb[125].mxu0 }
 0x5ff   :  { %v8077_v34 = vadd.f32 %v7818_v46, %v19867_v41  ;;  %v7820_v54 = vpop.f32.mrb[125].mxu1  ;;  %v8397_v62 = vmax.f32 %v24178_v44, %v8333_v24  ;;  %v8334_v47 = vmax.f32 %v8200_v38, %v8202_v40  ;;  %9887 = vmatpush1.bf16.msra.mxu0 %v17053_v4  ;;  %9960 = vmatpush1.bf16.msra.mxu1 %v17056_v9  ;;  %v7629_v14 = vpop.f32.mrb[126].mxu0  ;;  %v17070_v9 = vld [vmem:[%s24111_s2 + $0x48c] ss:$16 sps:$4 sm:$0xff]   ;;  %v24179_v38 = vld [vmem:[#allocation26_spill] sm:$0xff] }
 0x600   :  { %v8076_v43 = vadd.f32 %v7627_v51, %v19871_v15  ;;  %v7822_v45 = vpop.f32.mrb[126].mxu1  ;;  %v8203_v13 = vmax.f32 %v8075_v25, 0.0  ;;  %9403 = vmatprep.mubr.bf16.mxu0 %v21617_v22  ;;  %9476 = vmatprep.mubr.bf16.mxu1 %v21617_v22  ;;  %v8078_v61 = vadd.f32 %v7820_v54, %v19875_v16  ;;  %v8079_v52 = vadd.f32 %v7629_v14, %v19863_v35  ;;  %v7631_v26 = vpop.f32.mrb[127].mxu0  ;;  %v24182_v14 = vld [vmem:[#allocation29_spill] sm:$0xff] }
 0x601   :  { %v8205_v29 = vmax.f32 %v8077_v34, 0.0  ;;  %v7824_v4 = vpop.f32.mrb[127].mxu1  ;;  %v21805_v49 = vpack.c.bf16 %v8397_v62, %v8395_v11  ;;  %v8398_v3 = vmax.f32 %v24179_v38, %v8334_v47  ;;  %v8081_v40 = vadd.f32 %v7822_v45, %v19867_v41  ;;  %9888 = vmatprep.subr.bf16.mxu0 %v17061_v2  ;;  %9961 = vmatprep.subr.bf16.mxu1 %v17064_v19  ;;  %v17065_v11 = vld [vmem:[%s24111_s2 + $0x480] ss:$16 sps:$4 sm:$0xff]   ;;  %v17068_v41 = vld [vmem:[%s24111_s2 + $0x488] ss:$16 sps:$4 sm:$0xff]  }
 0x602   :  { %v8204_v24 = vmax.f32 %v8076_v43, 0.0  ;;  %v8206_v46 = vmax.f32 %v8078_v61, 0.0  ;;  %v8207_v25 = vmax.f32 %v8079_v52, 0.0  ;;  %v8080_v35 = vadd.f32 %v7631_v26, %v19871_v15  ;;  %v24180_v2 = vld [vmem:[#allocation27_spill] sm:$0xff]  ;;  %v24181_v47 = vld [vmem:[#allocation28_spill] sm:$0xff]  ;;  %v24183_v52 = vld [vmem:[#allocation30_spill] sm:$0xff] }
 0x603   :  { %v8335_v32 = vmax.f32 %v8203_v13, %v8205_v29  ;;  %v21810_v34 = vpack.c.bf16 %v8398_v3, %v8396_v31  ;;  %v8209_v51 = vmax.f32 %v8081_v40, 0.0  ;;  %v8082_v54 = vadd.f32 %v7824_v4, %v19875_v16  ;;  %9889 = vmatpush1.bf16.msra.mxu0 %v17059_v37  ;;  %9962 = vmatpush1.bf16.msra.mxu1 %v17062_v18  ;;  %v17073_v16 = vld [vmem:[%s24111_s2 + $0x4a4] ss:$16 sps:$4 sm:$0xff]   ;;  %v17076_v37 = vld [vmem:[%s24111_s2 + $0x4ac] ss:$16 sps:$4 sm:$0xff]  }
 0x604   :  { %v8336_v44 = vmax.f32 %v8204_v24, %v8206_v46  ;;  %v8208_v62 = vmax.f32 %v8080_v35, 0.0  ;;  %9890 = vmatprep.subr.bf16.mxu0 %v17067_v1  ;;  %9963 = vmatprep.subr.bf16.mxu1 %v17070_v9  ;;  %v17071_v1 = vld [vmem:[%s24111_s2 + $0x4a0] ss:$16 sps:$4 sm:$0xff]   ;;  %v17074_v13 = vld [vmem:[%s24111_s2 + $0x4a8] ss:$16 sps:$4 sm:$0xff]  }
 0x605   :  { %v8399_v19 = vmax.f32 %v24180_v2, %v8335_v32  ;;  %v8337_v15 = vmax.f32 %v8207_v25, %v8209_v51  ;;  %v8210_v31 = vmax.f32 %v8082_v54, 0.0  ;;  %v17079_v29 = vld [vmem:[%s24111_s2 + $0x4c4] ss:$16 sps:$4 sm:$0xff]   ;;  %v17082_v61 = vld [vmem:[%s24111_s2 + $0x4cc] ss:$16 sps:$4 sm:$0xff]  }
 0x606   :  { %v8400_v43 = vmax.f32 %v24181_v47, %v8336_v44  ;;  %9404 = vmatmul.mubr.bf16.gmra.mrb[136].mxu0 %v21610_v33  ;;  %9477 = vmatmul.mubr.bf16.gmra.mrb[136].mxu1 %v21610_v33  ;;  %v17077_v9 = vld [vmem:[%s24111_s2 + $0x4c0] ss:$16 sps:$4 sm:$0xff]   ;;  %v17080_v38 = vld [vmem:[%s24111_s2 + $0x4c8] ss:$16 sps:$4 sm:$0xff]   ;;  %v17085_v24 = vld [vmem:[%s24111_s2 + $0x4e4] ss:$16 sps:$4 sm:$0xff]  }
 0x607   :  { %v8401_v45 = vmax.f32 %v24182_v14, %v8337_v15  ;;  %v8338_v18 = vmax.f32 %v8208_v62, %v8210_v31  ;;  %9891 = vmatpush1.bf16.msra.mxu0 %v17065_v11  ;;  %9964 = vmatpush1.bf16.msra.mxu1 %v17068_v41  ;;  %v17088_v40 = vld [vmem:[%s24111_s2 + $0x4ec] ss:$16 sps:$4 sm:$0xff]   ;;  %v17083_v32 = vld [vmem:[%s24111_s2 + $0x4e0] ss:$16 sps:$4 sm:$0xff]   ;;  %v17086_v46 = vld [vmem:[%s24111_s2 + $0x4e8] ss:$16 sps:$4 sm:$0xff]  }
 0x608   :  { %9413 = vmatprep.mubr.bf16.mxu0 %v21683_v48  ;;  %9486 = vmatprep.mubr.bf16.mxu1 %v21683_v48  ;;  %v17091_v25 = vld [vmem:[%s24111_s2 + $0x504] ss:$16 sps:$4 sm:$0xff]   ;;  %v17094_v35 = vld [vmem:[%s24111_s2 + $0x50c] ss:$16 sps:$4 sm:$0xff]   ;;  %v17089_v51 = vld [vmem:[%s24111_s2 + $0x500] ss:$16 sps:$4 sm:$0xff]  }
 0x609   :  { %v8402_v26 = vmax.f32 %v24183_v52, %v8338_v18  ;;  %9892 = vmatprep.subr.bf16.mxu0 %v17073_v16  ;;  %9965 = vmatprep.subr.bf16.mxu1 %v17076_v37  ;;  %v21845_v4 = vpack.c.bf16 %v8401_v45, %v8399_v19  ;;  %v17092_v54 = vld [vmem:[%s24111_s2 + $0x508] ss:$16 sps:$4 sm:$0xff]   ;;  %v17097_v11 = vld [vmem:[%s24111_s2 + $0x524] ss:$16 sps:$4 sm:$0xff]   ;;  %v17100_v41 = vld [vmem:[%s24111_s2 + $0x52c] ss:$16 sps:$4 sm:$0xff]  }
 0x60a   :  { %v17095_v2 = vld [vmem:[%s24111_s2 + $0x520] ss:$16 sps:$4 sm:$0xff]   ;;  %v17098_v19 = vld [vmem:[%s24111_s2 + $0x528] ss:$16 sps:$4 sm:$0xff]   ;;  %v17103_v44 = vld [vmem:[%s24111_s2 + $0x544] ss:$16 sps:$4 sm:$0xff]  }
 0x60b   :  { %9893 = vmatpush1.bf16.msra.mxu0 %v17071_v1  ;;  %9966 = vmatpush1.bf16.msra.mxu1 %v17074_v13  ;;  %v21853_v3 = vpack.c.bf16 %v8402_v26, %v8400_v43  ;;  %v17106_v62 = vld [vmem:[%s24111_s2 + $0x54c] ss:$16 sps:$4 sm:$0xff]   ;;  %v17101_v15 = vld [vmem:[%s24111_s2 + $0x540] ss:$16 sps:$4 sm:$0xff]   ;;  %v17104_v31 = vld [vmem:[%s24111_s2 + $0x548] ss:$16 sps:$4 sm:$0xff]  }
 0x60c   :  { %9894 = vmatprep.subr.bf16.mxu0 %v17079_v29  ;;  %9967 = vmatprep.subr.bf16.mxu1 %v17082_v61  ;;  %v17109_v16 = vld [vmem:[%s24111_s2 + $0x564] ss:$16 sps:$4 sm:$0xff]   ;;  %v17112_v37 = vld [vmem:[%s24111_s2 + $0x56c] ss:$16 sps:$4 sm:$0xff]   ;;  %v17107_v47 = vld [vmem:[%s24111_s2 + $0x560] ss:$16 sps:$4 sm:$0xff]  }
 0x60d   :  { %v17110_v43 = vld [vmem:[%s24111_s2 + $0x568] ss:$16 sps:$4 sm:$0xff]   ;;  %v17115_v14 = vld [vmem:[%s24111_s2 + $0x584] ss:$16 sps:$4 sm:$0xff]   ;;  %v17118_v45 = vld [vmem:[%s24111_s2 + $0x58c] ss:$16 sps:$4 sm:$0xff]  }
 0x60e   :  { %9414 = vmatmul.mubr.bf16.gmra.mrb[140].mxu0 %v21680_v6  ;;  %9487 = vmatmul.mubr.bf16.gmra.mrb[140].mxu1 %v21680_v6  ;;  %v17113_v18 = vld [vmem:[%s24111_s2 + $0x580] ss:$16 sps:$4 sm:$0xff]   ;;  %v17116_v1 = vld [vmem:[%s24111_s2 + $0x588] ss:$16 sps:$4 sm:$0xff]   ;;  %v17121_v13 = vld [vmem:[%s24111_s2 + $0x5a4] ss:$16 sps:$4 sm:$0xff]  }
 0x60f   :  { %9895 = vmatpush1.bf16.msra.mxu0 %v17077_v9  ;;  %9968 = vmatpush1.bf16.msra.mxu1 %v17080_v38  ;;  %v17124_v29 = vld [vmem:[%s24111_s2 + $0x5ac] ss:$16 sps:$4 sm:$0xff]   ;;  %v17119_v61 = vld [vmem:[%s24111_s2 + $0x5a0] ss:$16 sps:$4 sm:$0xff]   ;;  %v17122_v52 = vld [vmem:[%s24111_s2 + $0x5a8] ss:$16 sps:$4 sm:$0xff]  }
 0x610   :  { %9914 = vmatprep.mubr.bf16.mxu0 %v21514_v10  ;;  %9987 = vmatprep.mubr.bf16.mxu1 %v21514_v10  ;;  %v17127_v26 = vld [vmem:[%s24111_s2 + $0x5c4] ss:$16 sps:$4 sm:$0xff]   ;;  %v17130_v9 = vld [vmem:[%s24111_s2 + $0x5cc] ss:$16 sps:$4 sm:$0xff]   ;;  %v17125_v38 = vld [vmem:[%s24111_s2 + $0x5c0] ss:$16 sps:$4 sm:$0xff]  }
 0x611   :  { %9896 = vmatprep.subr.bf16.mxu0 %v17085_v24  ;;  %9969 = vmatprep.subr.bf16.mxu1 %v17088_v40  ;;  %v17128_v24 = vld [vmem:[%s24111_s2 + $0x5c8] ss:$16 sps:$4 sm:$0xff]   ;;  %v17133_v40 = vld [vmem:[%s24111_s2 + $0x5e4] ss:$16 sps:$4 sm:$0xff]  }
 0x613   :  { %9897 = vmatpush1.bf16.msra.mxu0 %v17083_v32  ;;  %9970 = vmatpush1.bf16.msra.mxu1 %v17086_v46  ;;  %v17136_v32 = vld [vmem:[%s24111_s2 + $0x5ec] ss:$16 sps:$4 sm:$0xff]   ;;  %v17131_v46 = vld [vmem:[%s24111_s2 + $0x5e0] ss:$16 sps:$4 sm:$0xff]  }
 0x614   :  { %9898 = vmatprep.subr.bf16.mxu0 %v17091_v25  ;;  %9971 = vmatprep.subr.bf16.mxu1 %v17094_v35  ;;  %v17134_v25 = vld [vmem:[%s24111_s2 + $0x5e8] ss:$16 sps:$4 sm:$0xff]   ;;  %v17139_v35 = vld [vmem:[%s24111_s2 + $0x604] ss:$16 sps:$4 sm:$0xff]  }
 0x617   :  { %9899 = vmatpush1.bf16.msra.mxu0 %v17089_v51  ;;  %9972 = vmatpush1.bf16.msra.mxu1 %v17092_v54  ;;  %v17142_v51 = vld [vmem:[%s24111_s2 + $0x60c] ss:$16 sps:$4 sm:$0xff]   ;;  %v17137_v54 = vld [vmem:[%s24111_s2 + $0x600] ss:$16 sps:$4 sm:$0xff]  }
 0x618   :  { %9900 = vmatprep.subr.bf16.mxu0 %v17097_v11  ;;  %9973 = vmatprep.subr.bf16.mxu1 %v17100_v41  ;;  %v17140_v11 = vld [vmem:[%s24111_s2 + $0x608] ss:$16 sps:$4 sm:$0xff]   ;;  %v17145_v41 = vld [vmem:[%s24111_s2 + $0x624] ss:$16 sps:$4 sm:$0xff]  }
 0x61b   :  { %9901 = vmatpush1.bf16.msra.mxu0 %v17095_v2  ;;  %9974 = vmatpush1.bf16.msra.mxu1 %v17098_v19  ;;  %v17148_v2 = vld [vmem:[%s24111_s2 + $0x62c] ss:$16 sps:$4 sm:$0xff]   ;;  %v17143_v19 = vld [vmem:[%s24111_s2 + $0x620] ss:$16 sps:$4 sm:$0xff]  }
 0x61c   :  { %9902 = vmatprep.subr.bf16.mxu0 %v17103_v44  ;;  %9975 = vmatprep.subr.bf16.mxu1 %v17106_v62  ;;  %v17146_v44 = vld [vmem:[%s24111_s2 + $0x628] ss:$16 sps:$4 sm:$0xff]   ;;  %v17151_v62 = vld [vmem:[%s24111_s2 + $0x644] ss:$16 sps:$4 sm:$0xff]  }
 0x61f   :  { %9903 = vmatpush1.bf16.msra.mxu0 %v17101_v15  ;;  %9976 = vmatpush1.bf16.msra.mxu1 %v17104_v31  ;;  %v17154_v15 = vld [vmem:[%s24111_s2 + $0x64c] ss:$16 sps:$4 sm:$0xff]   ;;  %v17149_v31 = vld [vmem:[%s24111_s2 + $0x640] ss:$16 sps:$4 sm:$0xff]  }
 0x620   :  { %9904 = vmatprep.subr.bf16.mxu0 %v17109_v16  ;;  %9977 = vmatprep.subr.bf16.mxu1 %v17112_v37  ;;  %v17152_v16 = vld [vmem:[%s24111_s2 + $0x648] ss:$16 sps:$4 sm:$0xff]   ;;  %v17157_v37 = vld [vmem:[%s24111_s2 + $0x664] ss:$16 sps:$4 sm:$0xff]  }
 0x623   :  { %9905 = vmatpush1.bf16.msra.mxu0 %v17107_v47  ;;  %9978 = vmatpush1.bf16.msra.mxu1 %v17110_v43  ;;  %v17160_v47 = vld [vmem:[%s24111_s2 + $0x66c] ss:$16 sps:$4 sm:$0xff]   ;;  %v17155_v43 = vld [vmem:[%s24111_s2 + $0x660] ss:$16 sps:$4 sm:$0xff]  }
 0x624   :  { %9906 = vmatprep.subr.bf16.mxu0 %v17115_v14  ;;  %9979 = vmatprep.subr.bf16.mxu1 %v17118_v45  ;;  %v17158_v14 = vld [vmem:[%s24111_s2 + $0x668] ss:$16 sps:$4 sm:$0xff]   ;;  %v17163_v45 = vld [vmem:[%s24111_s2 + $0x684] ss:$16 sps:$4 sm:$0xff]  }
 0x627   :  { %9907 = vmatpush1.bf16.msra.mxu0 %v17113_v18  ;;  %9980 = vmatpush1.bf16.msra.mxu1 %v17116_v1  ;;  %v17166_v18 = vld [vmem:[%s24111_s2 + $0x68c] ss:$16 sps:$4 sm:$0xff]   ;;  %v17161_v1 = vld [vmem:[%s24111_s2 + $0x680] ss:$16 sps:$4 sm:$0xff]  }
 0x628   :  { %9908 = vmatprep.subr.bf16.mxu0 %v17121_v13  ;;  %9981 = vmatprep.subr.bf16.mxu1 %v17124_v29  ;;  %v17164_v13 = vld [vmem:[%s24111_s2 + $0x688] ss:$16 sps:$4 sm:$0xff]   ;;  %v17169_v29 = vld [vmem:[%s24111_s2 + $0x6a4] ss:$16 sps:$4 sm:$0xff]  }
 0x62b   :  { %9909 = vmatpush1.bf16.msra.mxu0 %v17119_v61  ;;  %9982 = vmatpush1.bf16.msra.mxu1 %v17122_v52  ;;  %v17172_v61 = vld [vmem:[%s24111_s2 + $0x6ac] ss:$16 sps:$4 sm:$0xff]   ;;  %v17167_v52 = vld [vmem:[%s24111_s2 + $0x6a0] ss:$16 sps:$4 sm:$0xff]  }
 0x62c   :  { %9910 = vmatprep.subr.bf16.mxu0 %v17127_v26  ;;  %9983 = vmatprep.subr.bf16.mxu1 %v17130_v9  ;;  %v17170_v26 = vld [vmem:[%s24111_s2 + $0x6a8] ss:$16 sps:$4 sm:$0xff]   ;;  %v17175_v9 = vld [vmem:[%s24111_s2 + $0x6c4] ss:$16 sps:$4 sm:$0xff]  }
 0x62f   :  { %9911 = vmatpush1.bf16.msra.mxu0 %v17125_v38  ;;  %9984 = vmatpush1.bf16.msra.mxu1 %v17128_v24  ;;  %v17178_v38 = vld [vmem:[%s24111_s2 + $0x6cc] ss:$16 sps:$4 sm:$0xff]   ;;  %v17173_v24 = vld [vmem:[%s24111_s2 + $0x6c0] ss:$16 sps:$4 sm:$0xff]  }
 0x630   :  { %9912 = vmatprep.subr.bf16.mxu0 %v17133_v40  ;;  %9985 = vmatprep.subr.bf16.mxu1 %v17136_v32  ;;  %v17176_v40 = vld [vmem:[%s24111_s2 + $0x6c8] ss:$16 sps:$4 sm:$0xff]   ;;  %v17181_v32 = vld [vmem:[%s24111_s2 + $0x6e4] ss:$16 sps:$4 sm:$0xff]  }
 0x633   :  { %9913 = vmatpush1.bf16.msra.mxu0 %v17131_v46  ;;  %9986 = vmatpush1.bf16.msra.mxu1 %v17134_v25  ;;  %v17184_v46 = vld [vmem:[%s24111_s2 + $0x6ec] ss:$16 sps:$4 sm:$0xff]   ;;  %v17179_v25 = vld [vmem:[%s24111_s2 + $0x6e0] ss:$16 sps:$4 sm:$0xff]  }
 0x634   :  { %10445 = vmatprep.subr.bf16.mxu0 %v17139_v35  ;;  %10518 = vmatprep.subr.bf16.mxu1 %v17142_v51  ;;  %v17182_v35 = vld [vmem:[%s24111_s2 + $0x6e8] ss:$16 sps:$4 sm:$0xff]   ;;  %v17187_v51 = vld [vmem:[%s24111_s2 + $0x704] ss:$16 sps:$4 sm:$0xff]  }
 0x636   :  { %9915 = vmatmul.mubr.bf16.vlgmr.msra.gmra.mrb[128].mxu0 %v21511_v60  ;;  %9988 = vmatmul.mubr.bf16.vlgmr.msra.gmra.mrb[128].mxu1 %v21511_v60 }
 0x637   :  { %9924 = vmatprep.mubr.bf16.mxu0 %v21583_v7  ;;  %9997 = vmatprep.mubr.bf16.mxu1 %v21583_v7 }
 0x638   :  { %10446 = vmatpush1.bf16.msra.mxu0 %v17137_v54  ;;  %10519 = vmatpush1.bf16.msra.mxu1 %v17140_v11  ;;  %v17190_v54 = vld [vmem:[%s24111_s2 + $0x70c] ss:$16 sps:$4 sm:$0xff]   ;;  %v17185_v11 = vld [vmem:[%s24111_s2 + $0x700] ss:$16 sps:$4 sm:$0xff]  }
 0x639   :  { %10447 = vmatprep.subr.bf16.mxu0 %v17145_v41  ;;  %10520 = vmatprep.subr.bf16.mxu1 %v17148_v2  ;;  %v17188_v41 = vld [vmem:[%s24111_s2 + $0x708] ss:$16 sps:$4 sm:$0xff]   ;;  %v17193_v2 = vld [vmem:[%s24111_s2 + $0x724] ss:$16 sps:$4 sm:$0xff]  }
 0x63c   :  { %10448 = vmatpush1.bf16.msra.mxu0 %v17143_v19  ;;  %10521 = vmatpush1.bf16.msra.mxu1 %v17146_v44  ;;  %v17196_v19 = vld [vmem:[%s24111_s2 + $0x72c] ss:$16 sps:$4 sm:$0xff]   ;;  %v17191_v44 = vld [vmem:[%s24111_s2 + $0x720] ss:$16 sps:$4 sm:$0xff]  }
 0x63d   :  { %10449 = vmatprep.subr.bf16.mxu0 %v17151_v62  ;;  %10522 = vmatprep.subr.bf16.mxu1 %v17154_v15  ;;  %v17194_v62 = vld [vmem:[%s24111_s2 + $0x728] ss:$16 sps:$4 sm:$0xff]   ;;  %v17199_v15 = vld [vmem:[%s24111_s2 + $0x744] ss:$16 sps:$4 sm:$0xff]  }
 0x63e   :  { %9925 = vmatmul.mubr.bf16.gmra.mrb[132].mxu0 %v21580_v56  ;;  %9998 = vmatmul.mubr.bf16.gmra.mrb[132].mxu1 %v21580_v56 }
 0x63f   :  { %9934 = vmatprep.mubr.bf16.mxu0 %v21652_v42  ;;  %10007 = vmatprep.mubr.bf16.mxu1 %v21652_v42 }
 0x640   :  { %10450 = vmatpush1.bf16.msra.mxu0 %v17149_v31  ;;  %10523 = vmatpush1.bf16.msra.mxu1 %v17152_v16  ;;  %v17202_v31 = vld [vmem:[%s24111_s2 + $0x74c] ss:$16 sps:$4 sm:$0xff]   ;;  %v17197_v16 = vld [vmem:[%s24111_s2 + $0x740] ss:$16 sps:$4 sm:$0xff]  }
 0x641   :  { %10451 = vmatprep.subr.bf16.mxu0 %v17157_v37  ;;  %10524 = vmatprep.subr.bf16.mxu1 %v17160_v47  ;;  %v17200_v37 = vld [vmem:[%s24111_s2 + $0x748] ss:$16 sps:$4 sm:$0xff]   ;;  %v17205_v47 = vld [vmem:[%s24111_s2 + $0x764] ss:$16 sps:$4 sm:$0xff]  }
 0x644   :  { %10452 = vmatpush1.bf16.msra.mxu0 %v17155_v43  ;;  %10525 = vmatpush1.bf16.msra.mxu1 %v17158_v14  ;;  %v17208_v43 = vld [vmem:[%s24111_s2 + $0x76c] ss:$16 sps:$4 sm:$0xff]   ;;  %v17203_v14 = vld [vmem:[%s24111_s2 + $0x760] ss:$16 sps:$4 sm:$0xff]  }
 0x645   :  { %10453 = vmatprep.subr.bf16.mxu0 %v17163_v45  ;;  %10526 = vmatprep.subr.bf16.mxu1 %v17166_v18  ;;  %v17206_v45 = vld [vmem:[%s24111_s2 + $0x768] ss:$16 sps:$4 sm:$0xff]   ;;  %v17211_v18 = vld [vmem:[%s24111_s2 + $0x784] ss:$16 sps:$4 sm:$0xff]  }
 0x646   :  { %9935 = vmatmul.mubr.bf16.gmra.mrb[136].mxu0 %v21648_v53  ;;  %10008 = vmatmul.mubr.bf16.gmra.mrb[136].mxu1 %v21648_v53 }
 0x647   :  { %9944 = vmatprep.mubr.bf16.mxu0 %v21723_v50  ;;  %10017 = vmatprep.mubr.bf16.mxu1 %v21723_v50 }
 0x648   :  { %10454 = vmatpush1.bf16.msra.mxu0 %v17161_v1  ;;  %10527 = vmatpush1.bf16.msra.mxu1 %v17164_v13  ;;  %v17214_v1 = vld [vmem:[%s24111_s2 + $0x78c] ss:$16 sps:$4 sm:$0xff]   ;;  %v17209_v13 = vld [vmem:[%s24111_s2 + $0x780] ss:$16 sps:$4 sm:$0xff]  }
 0x649   :  { %10455 = vmatprep.subr.bf16.mxu0 %v17169_v29  ;;  %10528 = vmatprep.subr.bf16.mxu1 %v17172_v61  ;;  %v17212_v29 = vld [vmem:[%s24111_s2 + $0x788] ss:$16 sps:$4 sm:$0xff]   ;;  %v17217_v61 = vld [vmem:[%s24111_s2 + $0x7a4] ss:$16 sps:$4 sm:$0xff]  }
 0x64c   :  { %10456 = vmatpush1.bf16.msra.mxu0 %v17167_v52  ;;  %10529 = vmatpush1.bf16.msra.mxu1 %v17170_v26  ;;  %v17220_v52 = vld [vmem:[%s24111_s2 + $0x7ac] ss:$16 sps:$4 sm:$0xff]   ;;  %v17215_v26 = vld [vmem:[%s24111_s2 + $0x7a0] ss:$16 sps:$4 sm:$0xff]  }
 0x64d   :  { %10457 = vmatprep.subr.bf16.mxu0 %v17175_v9  ;;  %10530 = vmatprep.subr.bf16.mxu1 %v17178_v38  ;;  %v17218_v9 = vld [vmem:[%s24111_s2 + $0x7a8] ss:$16 sps:$4 sm:$0xff]   ;;  %v17223_v38 = vld [vmem:[%s24111_s2 + $0x7c4] ss:$16 sps:$4 sm:$0xff]  }
 0x64e   :  { %9945 = vmatmul.mubr.bf16.gmra.mrb[140].mxu0 %v21716_v63  ;;  %10018 = vmatmul.mubr.bf16.gmra.mrb[140].mxu1 %v21716_v63 }
 0x64f   :  { %10477 = vmatprep.mubr.bf16.mxu0 %v21531_v0  ;;  %10550 = vmatprep.mubr.bf16.mxu1 %v21531_v0 }
 0x650   :  { %10458 = vmatpush1.bf16.msra.mxu0 %v17173_v24  ;;  %10531 = vmatpush1.bf16.msra.mxu1 %v17176_v40  ;;  %v17226_v24 = vld [vmem:[%s24111_s2 + $0x7cc] ss:$16 sps:$4 sm:$0xff]   ;;  %v17221_v40 = vld [vmem:[%s24111_s2 + $0x7c0] ss:$16 sps:$4 sm:$0xff]  }
 0x651   :  { %10459 = vmatprep.subr.bf16.mxu0 %v17181_v32  ;;  %10532 = vmatprep.subr.bf16.mxu1 %v17184_v46  ;;  %v17224_v32 = vld [vmem:[%s24111_s2 + $0x7c8] ss:$16 sps:$4 sm:$0xff]   ;;  %v17229_v46 = vld [vmem:[%s24111_s2 + $0x7e4] ss:$16 sps:$4 sm:$0xff]  }
 0x654   :  { %10460 = vmatpush1.bf16.msra.mxu0 %v17179_v25  ;;  %10533 = vmatpush1.bf16.msra.mxu1 %v17182_v35  ;;  %v17232_v25 = vld [vmem:[%s24111_s2 + $0x7ec] ss:$16 sps:$4 sm:$0xff]   ;;  %v17227_v35 = vld [vmem:[%s24111_s2 + $0x7e0] ss:$16 sps:$4 sm:$0xff]  }
 0x655   :  { %10461 = vmatprep.subr.bf16.mxu0 %v17187_v51  ;;  %10534 = vmatprep.subr.bf16.mxu1 %v17190_v54  ;;  %v17230_v51 = vld [vmem:[%s24111_s2 + $0x7e8] ss:$16 sps:$4 sm:$0xff]   ;;  %v17235_v54 = vld [vmem:[%s24111_s2 + $0x804] ss:$16 sps:$4 sm:$0xff]  }
 0x658   :  { %10462 = vmatpush1.bf16.msra.mxu0 %v17185_v11  ;;  %10535 = vmatpush1.bf16.msra.mxu1 %v17188_v41  ;;  %v17238_v11 = vld [vmem:[%s24111_s2 + $0x80c] ss:$16 sps:$4 sm:$0xff]   ;;  %v17233_v41 = vld [vmem:[%s24111_s2 + $0x800] ss:$16 sps:$4 sm:$0xff]  }
 0x659   :  { %10463 = vmatprep.subr.bf16.mxu0 %v17193_v2  ;;  %10536 = vmatprep.subr.bf16.mxu1 %v17196_v19  ;;  %v17236_v2 = vld [vmem:[%s24111_s2 + $0x808] ss:$16 sps:$4 sm:$0xff]   ;;  %v17241_v19 = vld [vmem:[%s24111_s2 + $0x824] ss:$16 sps:$4 sm:$0xff]  }
 0x65c   :  { %10464 = vmatpush1.bf16.msra.mxu0 %v17191_v44  ;;  %10537 = vmatpush1.bf16.msra.mxu1 %v17194_v62  ;;  %v17244_v44 = vld [vmem:[%s24111_s2 + $0x82c] ss:$16 sps:$4 sm:$0xff]   ;;  %v17239_v62 = vld [vmem:[%s24111_s2 + $0x820] ss:$16 sps:$4 sm:$0xff]  }
 0x65d   :  { %10465 = vmatprep.subr.bf16.mxu0 %v17199_v15  ;;  %10538 = vmatprep.subr.bf16.mxu1 %v17202_v31  ;;  %v17242_v15 = vld [vmem:[%s24111_s2 + $0x828] ss:$16 sps:$4 sm:$0xff]   ;;  %v17247_v31 = vld [vmem:[%s24111_s2 + $0x844] ss:$16 sps:$4 sm:$0xff]  }
 0x660   :  { %10466 = vmatpush1.bf16.msra.mxu0 %v17197_v16  ;;  %10539 = vmatpush1.bf16.msra.mxu1 %v17200_v37  ;;  %v17250_v16 = vld [vmem:[%s24111_s2 + $0x84c] ss:$16 sps:$4 sm:$0xff]   ;;  %v17245_v37 = vld [vmem:[%s24111_s2 + $0x840] ss:$16 sps:$4 sm:$0xff]  }
 0x661   :  { %10467 = vmatprep.subr.bf16.mxu0 %v17205_v47  ;;  %10540 = vmatprep.subr.bf16.mxu1 %v17208_v43  ;;  %v17248_v47 = vld [vmem:[%s24111_s2 + $0x848] ss:$16 sps:$4 sm:$0xff]   ;;  %v17253_v43 = vld [vmem:[%s24111_s2 + $0x864] ss:$16 sps:$4 sm:$0xff]  }
 0x664   :  { %10468 = vmatpush1.bf16.msra.mxu0 %v17203_v14  ;;  %10541 = vmatpush1.bf16.msra.mxu1 %v17206_v45  ;;  %v17256_v14 = vld [vmem:[%s24111_s2 + $0x86c] ss:$16 sps:$4 sm:$0xff]   ;;  %v17251_v45 = vld [vmem:[%s24111_s2 + $0x860] ss:$16 sps:$4 sm:$0xff]  }
 0x665   :  { %10469 = vmatprep.subr.bf16.mxu0 %v17211_v18  ;;  %10542 = vmatprep.subr.bf16.mxu1 %v17214_v1  ;;  %v17254_v18 = vld [vmem:[%s24111_s2 + $0x868] ss:$16 sps:$4 sm:$0xff]   ;;  %v17259_v1 = vld [vmem:[%s24111_s2 + $0x884] ss:$16 sps:$4 sm:$0xff]  }
 0x668   :  { %10470 = vmatpush1.bf16.msra.mxu0 %v17209_v13  ;;  %10543 = vmatpush1.bf16.msra.mxu1 %v17212_v29  ;;  %v17262_v13 = vld [vmem:[%s24111_s2 + $0x88c] ss:$16 sps:$4 sm:$0xff]   ;;  %v17257_v29 = vld [vmem:[%s24111_s2 + $0x880] ss:$16 sps:$4 sm:$0xff]  }
 0x669   :  { %10471 = vmatprep.subr.bf16.mxu0 %v17217_v61  ;;  %10544 = vmatprep.subr.bf16.mxu1 %v17220_v52  ;;  %v17260_v61 = vld [vmem:[%s24111_s2 + $0x888] ss:$16 sps:$4 sm:$0xff]   ;;  %v17265_v52 = vld [vmem:[%s24111_s2 + $0x8a4] ss:$16 sps:$4 sm:$0xff]  }
 0x66c   :  { %10472 = vmatpush1.bf16.msra.mxu0 %v17215_v26  ;;  %10545 = vmatpush1.bf16.msra.mxu1 %v17218_v9  ;;  %v17268_v26 = vld [vmem:[%s24111_s2 + $0x8ac] ss:$16 sps:$4 sm:$0xff]   ;;  %v17263_v9 = vld [vmem:[%s24111_s2 + $0x8a0] ss:$16 sps:$4 sm:$0xff]  }
 0x66d   :  { %10473 = vmatprep.subr.bf16.mxu0 %v17223_v38  ;;  %10546 = vmatprep.subr.bf16.mxu1 %v17226_v24  ;;  %v17266_v38 = vld [vmem:[%s24111_s2 + $0x8a8] ss:$16 sps:$4 sm:$0xff]   ;;  %v17271_v24 = vld [vmem:[%s24111_s2 + $0x8c4] ss:$16 sps:$4 sm:$0xff]  }
 0x670   :  { %10474 = vmatpush1.bf16.msra.mxu0 %v17221_v40  ;;  %10547 = vmatpush1.bf16.msra.mxu1 %v17224_v32  ;;  %v17274_v40 = vld [vmem:[%s24111_s2 + $0x8cc] ss:$16 sps:$4 sm:$0xff]   ;;  %v17269_v32 = vld [vmem:[%s24111_s2 + $0x8c0] ss:$16 sps:$4 sm:$0xff]  }
 0x671   :  { %10475 = vmatprep.subr.bf16.mxu0 %v17229_v46  ;;  %10548 = vmatprep.subr.bf16.mxu1 %v17232_v25  ;;  %v17272_v46 = vld [vmem:[%s24111_s2 + $0x8c8] ss:$16 sps:$4 sm:$0xff]   ;;  %v17277_v25 = vld [vmem:[%s24111_s2 + $0x8e4] ss:$16 sps:$4 sm:$0xff]  }
 0x674   :  { %10476 = vmatpush1.bf16.msra.mxu0 %v17227_v35  ;;  %10549 = vmatpush1.bf16.msra.mxu1 %v17230_v51  ;;  %v17280_v35 = vld [vmem:[%s24111_s2 + $0x8ec] ss:$16 sps:$4 sm:$0xff]   ;;  %v17275_v51 = vld [vmem:[%s24111_s2 + $0x8e0] ss:$16 sps:$4 sm:$0xff]  }
 0x675   :  { %11008 = vmatprep.subr.bf16.mxu0 %v17235_v54  ;;  %11081 = vmatprep.subr.bf16.mxu1 %v17238_v11  ;;  %v17278_v54 = vld [vmem:[%s24111_s2 + $0x8e8] ss:$16 sps:$4 sm:$0xff]   ;;  %v17283_v11 = vld [vmem:[%s24111_s2 + $0x904] ss:$16 sps:$4 sm:$0xff]  }
 0x677   :  { %10478 = vmatmul.mubr.bf16.vlgmr.msra.gmra.mrb[128].mxu0 %v21528_v27  ;;  %10551 = vmatmul.mubr.bf16.vlgmr.msra.gmra.mrb[128].mxu1 %v21528_v27 }
 0x678   :  { %10487 = vmatprep.mubr.bf16.mxu0 %v21600_v36  ;;  %10560 = vmatprep.mubr.bf16.mxu1 %v21600_v36 }
 0x679   :  { %11009 = vmatpush1.bf16.msra.mxu0 %v17233_v41  ;;  %11082 = vmatpush1.bf16.msra.mxu1 %v17236_v2  ;;  %v17286_v41 = vld [vmem:[%s24111_s2 + $0x90c] ss:$16 sps:$4 sm:$0xff]   ;;  %v17281_v2 = vld [vmem:[%s24111_s2 + $0x900] ss:$16 sps:$4 sm:$0xff]  }
 0x67a   :  { %11010 = vmatprep.subr.bf16.mxu0 %v17241_v19  ;;  %11083 = vmatprep.subr.bf16.mxu1 %v17244_v44  ;;  %v17284_v19 = vld [vmem:[%s24111_s2 + $0x908] ss:$16 sps:$4 sm:$0xff]   ;;  %v17289_v44 = vld [vmem:[%s24111_s2 + $0x924] ss:$16 sps:$4 sm:$0xff]  }
 0x67d   :  { %11011 = vmatpush1.bf16.msra.mxu0 %v17239_v62  ;;  %11084 = vmatpush1.bf16.msra.mxu1 %v17242_v15  ;;  %v17292_v62 = vld [vmem:[%s24111_s2 + $0x92c] ss:$16 sps:$4 sm:$0xff]   ;;  %v17287_v15 = vld [vmem:[%s24111_s2 + $0x920] ss:$16 sps:$4 sm:$0xff]  }
 0x67e   :  { %11012 = vmatprep.subr.bf16.mxu0 %v17247_v31  ;;  %11085 = vmatprep.subr.bf16.mxu1 %v17250_v16  ;;  %v17290_v31 = vld [vmem:[%s24111_s2 + $0x928] ss:$16 sps:$4 sm:$0xff]   ;;  %v17295_v16 = vld [vmem:[%s24111_s2 + $0x944] ss:$16 sps:$4 sm:$0xff]  }
 0x67f   :  { %10488 = vmatmul.mubr.bf16.gmra.mrb[132].mxu0 %v21596_v55  ;;  %10561 = vmatmul.mubr.bf16.gmra.mrb[132].mxu1 %v21596_v55 }
 0x680   :  { %10497 = vmatprep.mubr.bf16.mxu0 %v21669_v8  ;;  %10570 = vmatprep.mubr.bf16.mxu1 %v21669_v8 }
 0x681   :  { %11013 = vmatpush1.bf16.msra.mxu0 %v17245_v37  ;;  %11086 = vmatpush1.bf16.msra.mxu1 %v17248_v47  ;;  %v17298_v37 = vld [vmem:[%s24111_s2 + $0x94c] ss:$16 sps:$4 sm:$0xff]   ;;  %v17293_v47 = vld [vmem:[%s24111_s2 + $0x940] ss:$16 sps:$4 sm:$0xff]  }
 0x682   :  { %11014 = vmatprep.subr.bf16.mxu0 %v17253_v43  ;;  %11087 = vmatprep.subr.bf16.mxu1 %v17256_v14  ;;  %v17296_v43 = vld [vmem:[%s24111_s2 + $0x948] ss:$16 sps:$4 sm:$0xff]   ;;  %v17301_v14 = vld [vmem:[%s24111_s2 + $0x964] ss:$16 sps:$4 sm:$0xff]  }
 0x685   :  { %11015 = vmatpush1.bf16.msra.mxu0 %v17251_v45  ;;  %11088 = vmatpush1.bf16.msra.mxu1 %v17254_v18  ;;  %v17304_v45 = vld [vmem:[%s24111_s2 + $0x96c] ss:$16 sps:$4 sm:$0xff]   ;;  %v17299_v18 = vld [vmem:[%s24111_s2 + $0x960] ss:$16 sps:$4 sm:$0xff]  }
 0x686   :  { %11016 = vmatprep.subr.bf16.mxu0 %v17259_v1  ;;  %11089 = vmatprep.subr.bf16.mxu1 %v17262_v13  ;;  %v17302_v1 = vld [vmem:[%s24111_s2 + $0x968] ss:$16 sps:$4 sm:$0xff]   ;;  %v17307_v13 = vld [vmem:[%s24111_s2 + $0x984] ss:$16 sps:$4 sm:$0xff]  }
 0x687   :  { %10498 = vmatmul.mubr.bf16.gmra.mrb[136].mxu0 %v21662_v39  ;;  %10571 = vmatmul.mubr.bf16.gmra.mrb[136].mxu1 %v21662_v39 }
 0x688   :  { %10507 = vmatprep.mubr.bf16.mxu0 %v21765_v23  ;;  %10580 = vmatprep.mubr.bf16.mxu1 %v21765_v23 }
 0x689   :  { %11017 = vmatpush1.bf16.msra.mxu0 %v17257_v29  ;;  %11090 = vmatpush1.bf16.msra.mxu1 %v17260_v61  ;;  %v17310_v29 = vld [vmem:[%s24111_s2 + $0x98c] ss:$16 sps:$4 sm:$0xff]   ;;  %v17305_v61 = vld [vmem:[%s24111_s2 + $0x980] ss:$16 sps:$4 sm:$0xff]  }
 0x68a   :  { %11018 = vmatprep.subr.bf16.mxu0 %v17265_v52  ;;  %11091 = vmatprep.subr.bf16.mxu1 %v17268_v26  ;;  %v17308_v52 = vld [vmem:[%s24111_s2 + $0x988] ss:$16 sps:$4 sm:$0xff]   ;;  %v17313_v26 = vld [vmem:[%s24111_s2 + $0x9a4] ss:$16 sps:$4 sm:$0xff]  }
 0x68d   :  { %11019 = vmatpush1.bf16.msra.mxu0 %v17263_v9  ;;  %11092 = vmatpush1.bf16.msra.mxu1 %v17266_v38  ;;  %v17316_v9 = vld [vmem:[%s24111_s2 + $0x9ac] ss:$16 sps:$4 sm:$0xff]   ;;  %v17311_v38 = vld [vmem:[%s24111_s2 + $0x9a0] ss:$16 sps:$4 sm:$0xff]  }
 0x68e   :  { %11020 = vmatprep.subr.bf16.mxu0 %v17271_v24  ;;  %11093 = vmatprep.subr.bf16.mxu1 %v17274_v40  ;;  %v17314_v24 = vld [vmem:[%s24111_s2 + $0x9a8] ss:$16 sps:$4 sm:$0xff]   ;;  %v17319_v40 = vld [vmem:[%s24111_s2 + $0x9c4] ss:$16 sps:$4 sm:$0xff]  }
 0x68f   :  { %10508 = vmatmul.mubr.bf16.gmra.mrb[140].mxu0 %v21762_v57  ;;  %10581 = vmatmul.mubr.bf16.gmra.mrb[140].mxu1 %v21762_v57 }
 0x690   :  { %11040 = vmatprep.mubr.bf16.mxu0 %v21548_v30  ;;  %11113 = vmatprep.mubr.bf16.mxu1 %v21548_v30 }
 0x691   :  { %11021 = vmatpush1.bf16.msra.mxu0 %v17269_v32  ;;  %11094 = vmatpush1.bf16.msra.mxu1 %v17272_v46  ;;  %v17322_v32 = vld [vmem:[%s24111_s2 + $0x9cc] ss:$16 sps:$4 sm:$0xff]   ;;  %v17317_v46 = vld [vmem:[%s24111_s2 + $0x9c0] ss:$16 sps:$4 sm:$0xff]  }
 0x692   :  { %11022 = vmatprep.subr.bf16.mxu0 %v17277_v25  ;;  %11095 = vmatprep.subr.bf16.mxu1 %v17280_v35  ;;  %v17320_v25 = vld [vmem:[%s24111_s2 + $0x9c8] ss:$16 sps:$4 sm:$0xff]   ;;  %v17325_v35 = vld [vmem:[%s24111_s2 + $0x9e4] ss:$16 sps:$4 sm:$0xff]  }
 0x695   :  { %11023 = vmatpush1.bf16.msra.mxu0 %v17275_v51  ;;  %11096 = vmatpush1.bf16.msra.mxu1 %v17278_v54  ;;  %v17328_v51 = vld [vmem:[%s24111_s2 + $0x9ec] ss:$16 sps:$4 sm:$0xff]   ;;  %v17323_v54 = vld [vmem:[%s24111_s2 + $0x9e0] ss:$16 sps:$4 sm:$0xff]  }
 0x696   :  { %11024 = vmatprep.subr.bf16.mxu0 %v17283_v11  ;;  %11097 = vmatprep.subr.bf16.mxu1 %v17286_v41  ;;  %v17326_v11 = vld [vmem:[%s24111_s2 + $0x9e8] ss:$16 sps:$4 sm:$0xff]   ;;  %v17633_v41 = vld [vmem:[%s24111_s2 + $0x204] ss:$16 sps:$4 sm:$0xff]  }
 0x699   :  { %11025 = vmatpush1.bf16.msra.mxu0 %v17281_v2  ;;  %11098 = vmatpush1.bf16.msra.mxu1 %v17284_v19  ;;  %v17634_v2 = vld [vmem:[%s24111_s2 + $0x20c] ss:$16 sps:$4 sm:$0xff]   ;;  %v17635_v19 = vld [vmem:[%s24111_s2 + $0x200] ss:$16 sps:$4 sm:$0xff]  }
 0x69a   :  { %11026 = vmatprep.subr.bf16.mxu0 %v17289_v44  ;;  %11099 = vmatprep.subr.bf16.mxu1 %v17292_v62  ;;  %v17636_v44 = vld [vmem:[%s24111_s2 + $0x208] ss:$16 sps:$4 sm:$0xff]   ;;  %v17637_v62 = vld [vmem:[%s24111_s2 + $0x224] ss:$16 sps:$4 sm:$0xff]  }
 0x69d   :  { %11027 = vmatpush1.bf16.msra.mxu0 %v17287_v15  ;;  %11100 = vmatpush1.bf16.msra.mxu1 %v17290_v31  ;;  %v17638_v15 = vld [vmem:[%s24111_s2 + $0x22c] ss:$16 sps:$4 sm:$0xff]   ;;  %v17639_v31 = vld [vmem:[%s24111_s2 + $0x220] ss:$16 sps:$4 sm:$0xff]  }
 0x69e   :  { %11028 = vmatprep.subr.bf16.mxu0 %v17295_v16  ;;  %11101 = vmatprep.subr.bf16.mxu1 %v17298_v37  ;;  %v17640_v16 = vld [vmem:[%s24111_s2 + $0x228] ss:$16 sps:$4 sm:$0xff]   ;;  %v17641_v37 = vld [vmem:[%s24111_s2 + $0x244] ss:$16 sps:$4 sm:$0xff]  }
 0x6a1   :  { %11029 = vmatpush1.bf16.msra.mxu0 %v17293_v47  ;;  %11102 = vmatpush1.bf16.msra.mxu1 %v17296_v43  ;;  %v17642_v47 = vld [vmem:[%s24111_s2 + $0x24c] ss:$16 sps:$4 sm:$0xff]   ;;  %v17643_v43 = vld [vmem:[%s24111_s2 + $0x240] ss:$16 sps:$4 sm:$0xff]  }
 0x6a2   :  { %11030 = vmatprep.subr.bf16.mxu0 %v17301_v14  ;;  %11103 = vmatprep.subr.bf16.mxu1 %v17304_v45  ;;  %v17644_v14 = vld [vmem:[%s24111_s2 + $0x248] ss:$16 sps:$4 sm:$0xff]   ;;  %v17645_v45 = vld [vmem:[%s24111_s2 + $0x264] ss:$16 sps:$4 sm:$0xff]  }
 0x6a5   :  { %11031 = vmatpush1.bf16.msra.mxu0 %v17299_v18  ;;  %11104 = vmatpush1.bf16.msra.mxu1 %v17302_v1  ;;  %v17646_v18 = vld [vmem:[%s24111_s2 + $0x26c] ss:$16 sps:$4 sm:$0xff]   ;;  %v17647_v1 = vld [vmem:[%s24111_s2 + $0x260] ss:$16 sps:$4 sm:$0xff]  }
 0x6a6   :  { %11032 = vmatprep.subr.bf16.mxu0 %v17307_v13  ;;  %11105 = vmatprep.subr.bf16.mxu1 %v17310_v29  ;;  %v17648_v13 = vld [vmem:[%s24111_s2 + $0x268] ss:$16 sps:$4 sm:$0xff]   ;;  %v17649_v29 = vld [vmem:[%s24111_s2 + $0x284] ss:$16 sps:$4 sm:$0xff]  }
 0x6a9   :  { %11033 = vmatpush1.bf16.msra.mxu0 %v17305_v61  ;;  %11106 = vmatpush1.bf16.msra.mxu1 %v17308_v52  ;;  %v17650_v61 = vld [vmem:[%s24111_s2 + $0x28c] ss:$16 sps:$4 sm:$0xff]   ;;  %v17651_v52 = vld [vmem:[%s24111_s2 + $0x280] ss:$16 sps:$4 sm:$0xff]  }
 0x6aa   :  { %11034 = vmatprep.subr.bf16.mxu0 %v17313_v26  ;;  %11107 = vmatprep.subr.bf16.mxu1 %v17316_v9  ;;  %v17652_v26 = vld [vmem:[%s24111_s2 + $0x288] ss:$16 sps:$4 sm:$0xff]   ;;  %v17653_v9 = vld [vmem:[%s24111_s2 + $0x2a4] ss:$16 sps:$4 sm:$0xff]  }
 0x6ad   :  { %11035 = vmatpush1.bf16.msra.mxu0 %v17311_v38  ;;  %11108 = vmatpush1.bf16.msra.mxu1 %v17314_v24  ;;  %v17654_v38 = vld [vmem:[%s24111_s2 + $0x2ac] ss:$16 sps:$4 sm:$0xff]   ;;  %v17655_v24 = vld [vmem:[%s24111_s2 + $0x2a0] ss:$16 sps:$4 sm:$0xff]  }
 0x6ae   :  { %11036 = vmatprep.subr.bf16.mxu0 %v17319_v40  ;;  %11109 = vmatprep.subr.bf16.mxu1 %v17322_v32  ;;  %v17656_v40 = vld [vmem:[%s24111_s2 + $0x2a8] ss:$16 sps:$4 sm:$0xff]   ;;  %v17657_v32 = vld [vmem:[%s24111_s2 + $0x2c4] ss:$16 sps:$4 sm:$0xff]  }
 0x6b1   :  { %11037 = vmatpush1.bf16.msra.mxu0 %v17317_v46  ;;  %11110 = vmatpush1.bf16.msra.mxu1 %v17320_v25  ;;  %v17658_v46 = vld [vmem:[%s24111_s2 + $0x2cc] ss:$16 sps:$4 sm:$0xff]   ;;  %v17659_v25 = vld [vmem:[%s24111_s2 + $0x2c0] ss:$16 sps:$4 sm:$0xff]  }
 0x6b2   :  { %11038 = vmatprep.subr.bf16.mxu0 %v17325_v35  ;;  %11111 = vmatprep.subr.bf16.mxu1 %v17328_v51  ;;  %v17660_v35 = vld [vmem:[%s24111_s2 + $0x2c8] ss:$16 sps:$4 sm:$0xff]   ;;  %v17661_v51 = vld [vmem:[%s24111_s2 + $0x2e4] ss:$16 sps:$4 sm:$0xff]  }
 0x6b5   :  { %11039 = vmatpush1.bf16.msra.mxu0 %v17323_v54  ;;  %11112 = vmatpush1.bf16.msra.mxu1 %v17326_v11  ;;  %v17662_v54 = vld [vmem:[%s24111_s2 + $0x2ec] ss:$16 sps:$4 sm:$0xff]   ;;  %v17664_v11 = vld [vmem:[%s24111_s2 + $0x2e8] ss:$16 sps:$4 sm:$0xff]  }
 0x6b6   :  { %11271 = vmatprep.subr.bf16.mxu0 %v17633_v41  ;;  %11344 = vmatprep.subr.bf16.mxu1 %v17634_v2  ;;  %v17665_v41 = vld [vmem:[%s24111_s2 + $0x304] ss:$16 sps:$4 sm:$0xff]   ;;  %v17666_v2 = vld [vmem:[%s24111_s2 + $0x30c] ss:$16 sps:$4 sm:$0xff]  }
 0x6b8   :  { %11041 = vmatmul.mubr.bf16.vlgmr.msra.gmra.mrb[128].mxu0 %v21544_v20  ;;  %11114 = vmatmul.mubr.bf16.vlgmr.msra.gmra.mrb[128].mxu1 %v21544_v20 }
 0x6b9   :  { %11050 = vmatprep.mubr.bf16.mxu0 %v21617_v22  ;;  %11123 = vmatprep.mubr.bf16.mxu1 %v21617_v22 }
 0x6ba   :  { %11272 = vmatpush1.bf16.msra.mxu0 %v17635_v19  ;;  %11345 = vmatpush1.bf16.msra.mxu1 %v17636_v44  ;;  %v17667_v19 = vld [vmem:[%s24111_s2 + $0x300] ss:$16 sps:$4 sm:$0xff]   ;;  %v17668_v44 = vld [vmem:[%s24111_s2 + $0x308] ss:$16 sps:$4 sm:$0xff]  }
 0x6bb   :  { %11273 = vmatprep.subr.bf16.mxu0 %v17637_v62  ;;  %11346 = vmatprep.subr.bf16.mxu1 %v17638_v15  ;;  %v17669_v62 = vld [vmem:[%s24111_s2 + $0x324] ss:$16 sps:$4 sm:$0xff]   ;;  %v17670_v15 = vld [vmem:[%s24111_s2 + $0x32c] ss:$16 sps:$4 sm:$0xff]  }
 0x6be   :  { %11274 = vmatpush1.bf16.msra.mxu0 %v17639_v31  ;;  %11347 = vmatpush1.bf16.msra.mxu1 %v17640_v16  ;;  %v17671_v31 = vld [vmem:[%s24111_s2 + $0x320] ss:$16 sps:$4 sm:$0xff]   ;;  %v17672_v16 = vld [vmem:[%s24111_s2 + $0x328] ss:$16 sps:$4 sm:$0xff]  }
 0x6bf   :  { %11275 = vmatprep.subr.bf16.mxu0 %v17641_v37  ;;  %11348 = vmatprep.subr.bf16.mxu1 %v17642_v47  ;;  %v17673_v37 = vld [vmem:[%s24111_s2 + $0x344] ss:$16 sps:$4 sm:$0xff]   ;;  %v17674_v47 = vld [vmem:[%s24111_s2 + $0x34c] ss:$16 sps:$4 sm:$0xff]  }
 0x6c0   :  { %11051 = vmatmul.mubr.bf16.gmra.mrb[132].mxu0 %v21610_v33  ;;  %11124 = vmatmul.mubr.bf16.gmra.mrb[132].mxu1 %v21610_v33 }
 0x6c1   :  { %11060 = vmatprep.mubr.bf16.mxu0 %v21683_v48  ;;  %11133 = vmatprep.mubr.bf16.mxu1 %v21683_v48 }
 0x6c2   :  { %11276 = vmatpush1.bf16.msra.mxu0 %v17643_v43  ;;  %11349 = vmatpush1.bf16.msra.mxu1 %v17644_v14  ;;  %v17675_v43 = vld [vmem:[%s24111_s2 + $0x340] ss:$16 sps:$4 sm:$0xff]   ;;  %v17676_v14 = vld [vmem:[%s24111_s2 + $0x348] ss:$16 sps:$4 sm:$0xff]  }
 0x6c3   :  { %11277 = vmatprep.subr.bf16.mxu0 %v17645_v45  ;;  %11350 = vmatprep.subr.bf16.mxu1 %v17646_v18  ;;  %v17677_v45 = vld [vmem:[%s24111_s2 + $0x364] ss:$16 sps:$4 sm:$0xff]   ;;  %v17678_v18 = vld [vmem:[%s24111_s2 + $0x36c] ss:$16 sps:$4 sm:$0xff]  }
 0x6c6   :  { %11278 = vmatpush1.bf16.msra.mxu0 %v17647_v1  ;;  %11351 = vmatpush1.bf16.msra.mxu1 %v17648_v13  ;;  %v17679_v1 = vld [vmem:[%s24111_s2 + $0x360] ss:$16 sps:$4 sm:$0xff]   ;;  %v17680_v13 = vld [vmem:[%s24111_s2 + $0x368] ss:$16 sps:$4 sm:$0xff]  }
 0x6c7   :  { %11279 = vmatprep.subr.bf16.mxu0 %v17649_v29  ;;  %11352 = vmatprep.subr.bf16.mxu1 %v17650_v61  ;;  %v17681_v29 = vld [vmem:[%s24111_s2 + $0x384] ss:$16 sps:$4 sm:$0xff]   ;;  %v17682_v61 = vld [vmem:[%s24111_s2 + $0x38c] ss:$16 sps:$4 sm:$0xff]  }
 0x6c8   :  { %11061 = vmatmul.mubr.bf16.gmra.mrb[136].mxu0 %v21680_v6  ;;  %11134 = vmatmul.mubr.bf16.gmra.mrb[136].mxu1 %v21680_v6 }
 0x6c9   :  { %11070 = vmatprep.mubr.bf16.mxu0 %v21810_v34  ;;  %11143 = vmatprep.mubr.bf16.mxu1 %v21810_v34 }
 0x6ca   :  { %11280 = vmatpush1.bf16.msra.mxu0 %v17651_v52  ;;  %11353 = vmatpush1.bf16.msra.mxu1 %v17652_v26  ;;  %v17683_v52 = vld [vmem:[%s24111_s2 + $0x380] ss:$16 sps:$4 sm:$0xff]   ;;  %v17684_v26 = vld [vmem:[%s24111_s2 + $0x388] ss:$16 sps:$4 sm:$0xff]  }
 0x6cb   :  { %11281 = vmatprep.subr.bf16.mxu0 %v17653_v9  ;;  %11354 = vmatprep.subr.bf16.mxu1 %v17654_v38  ;;  %v17685_v9 = vld [vmem:[%s24111_s2 + $0x3a4] ss:$16 sps:$4 sm:$0xff]   ;;  %v17686_v38 = vld [vmem:[%s24111_s2 + $0x3ac] ss:$16 sps:$4 sm:$0xff]  }
 0x6ce   :  { %11282 = vmatpush1.bf16.msra.mxu0 %v17655_v24  ;;  %11355 = vmatpush1.bf16.msra.mxu1 %v17656_v40  ;;  %v17687_v24 = vld [vmem:[%s24111_s2 + $0x3a0] ss:$16 sps:$4 sm:$0xff]   ;;  %v17688_v40 = vld [vmem:[%s24111_s2 + $0x3a8] ss:$16 sps:$4 sm:$0xff]  }
 0x6cf   :  { %11283 = vmatprep.subr.bf16.mxu0 %v17657_v32  ;;  %11356 = vmatprep.subr.bf16.mxu1 %v17658_v46  ;;  %v17689_v32 = vld [vmem:[%s24111_s2 + $0x3c4] ss:$16 sps:$4 sm:$0xff]   ;;  %v17690_v46 = vld [vmem:[%s24111_s2 + $0x3cc] ss:$16 sps:$4 sm:$0xff]  }
 0x6d0   :  { %11071 = vmatmul.mubr.bf16.gmra.mrb[140].mxu0 %v21805_v49  ;;  %11144 = vmatmul.mubr.bf16.gmra.mrb[140].mxu1 %v21805_v49 }
 0x6d1   :  { %11303 = vmatprep.mubr.bf16.mxu0 %v21531_v0  ;;  %11376 = vmatprep.mubr.bf16.mxu1 %v21531_v0  ;;  %v17663_v0 = vld [vmem:[%s24111_s2 + $0x2e0] ss:$16 sps:$4 sm:$0xff]  }
 0x6d2   :  { %11284 = vmatpush1.bf16.msra.mxu0 %v17659_v25  ;;  %11357 = vmatpush1.bf16.msra.mxu1 %v17660_v35  ;;  %v17691_v25 = vld [vmem:[%s24111_s2 + $0x3c0] ss:$16 sps:$4 sm:$0xff]   ;;  %v17692_v35 = vld [vmem:[%s24111_s2 + $0x3c8] ss:$16 sps:$4 sm:$0xff]  }
 0x6d3   :  { %11285 = vmatprep.subr.bf16.mxu0 %v17661_v51  ;;  %11358 = vmatprep.subr.bf16.mxu1 %v17662_v54  ;;  %v17693_v51 = vld [vmem:[%s24111_s2 + $0x3e4] ss:$16 sps:$4 sm:$0xff]   ;;  %v17694_v54 = vld [vmem:[%s24111_s2 + $0x3ec] ss:$16 sps:$4 sm:$0xff]  }
 0x6d6   :  { %11286 = vmatpush1.bf16.msra.mxu0 %v17663_v0  ;;  %11359 = vmatpush1.bf16.msra.mxu1 %v17664_v11  ;;  %v17695_v0 = vld [vmem:[%s24111_s2 + $0x3e0] ss:$16 sps:$4 sm:$0xff]   ;;  %v17696_v11 = vld [vmem:[%s24111_s2 + $0x3e8] ss:$16 sps:$4 sm:$0xff]  }
 0x6d7   :  { %11287 = vmatprep.subr.bf16.mxu0 %v17665_v41  ;;  %11360 = vmatprep.subr.bf16.mxu1 %v17666_v2  ;;  %v17697_v41 = vld [vmem:[%s24111_s2 + $0x4] ss:$16 sps:$4 sm:$0xff]   ;;  %v17698_v2 = vld [vmem:[%s24111_s2 + $0xc] ss:$16 sps:$4 sm:$0xff]  }
 0x6da   :  { %11288 = vmatpush1.bf16.msra.mxu0 %v17667_v19  ;;  %11361 = vmatpush1.bf16.msra.mxu1 %v17668_v44  ;;  %v17699_v19 = vld [vmem:[%s24111_s2] ss:$16 sps:$4 sm:$0xff]   ;;  %v17700_v44 = vld [vmem:[%s24111_s2 + $0x8] ss:$16 sps:$4 sm:$0xff]  }
 0x6db   :  { %11289 = vmatprep.subr.bf16.mxu0 %v17669_v62  ;;  %11362 = vmatprep.subr.bf16.mxu1 %v17670_v15  ;;  %v17701_v62 = vld [vmem:[%s24111_s2 + $0x24] ss:$16 sps:$4 sm:$0xff]   ;;  %v17704_v15 = vld [vmem:[%s24111_s2 + $0x28] ss:$16 sps:$4 sm:$0xff]  }
 0x6de   :  { %11290 = vmatpush1.bf16.msra.mxu0 %v17671_v31  ;;  %11363 = vmatpush1.bf16.msra.mxu1 %v17672_v16  ;;  %v17705_v31 = vld [vmem:[%s24111_s2 + $0x44] ss:$16 sps:$4 sm:$0xff]   ;;  %v17706_v16 = vld [vmem:[%s24111_s2 + $0x4c] ss:$16 sps:$4 sm:$0xff]  }
 0x6df   :  { %11291 = vmatprep.subr.bf16.mxu0 %v17673_v37  ;;  %11364 = vmatprep.subr.bf16.mxu1 %v17674_v47  ;;  %v17707_v37 = vld [vmem:[%s24111_s2 + $0x40] ss:$16 sps:$4 sm:$0xff]   ;;  %v17708_v47 = vld [vmem:[%s24111_s2 + $0x48] ss:$16 sps:$4 sm:$0xff]  }
 0x6e2   :  { %11292 = vmatpush1.bf16.msra.mxu0 %v17675_v43  ;;  %11365 = vmatpush1.bf16.msra.mxu1 %v17676_v14  ;;  %v17709_v43 = vld [vmem:[%s24111_s2 + $0x64] ss:$16 sps:$4 sm:$0xff]   ;;  %v17712_v14 = vld [vmem:[%s24111_s2 + $0x68] ss:$16 sps:$4 sm:$0xff]  }
 0x6e3   :  { %11293 = vmatprep.subr.bf16.mxu0 %v17677_v45  ;;  %11366 = vmatprep.subr.bf16.mxu1 %v17678_v18  ;;  %v17713_v45 = vld [vmem:[%s24111_s2 + $0x84] ss:$16 sps:$4 sm:$0xff]   ;;  %v17714_v18 = vld [vmem:[%s24111_s2 + $0x8c] ss:$16 sps:$4 sm:$0xff]  }
 0x6e6   :  { %11294 = vmatpush1.bf16.msra.mxu0 %v17679_v1  ;;  %11367 = vmatpush1.bf16.msra.mxu1 %v17680_v13  ;;  %v17715_v1 = vld [vmem:[%s24111_s2 + $0x80] ss:$16 sps:$4 sm:$0xff]   ;;  %v17716_v13 = vld [vmem:[%s24111_s2 + $0x88] ss:$16 sps:$4 sm:$0xff]  }
 0x6e7   :  { %11295 = vmatprep.subr.bf16.mxu0 %v17681_v29  ;;  %11368 = vmatprep.subr.bf16.mxu1 %v17682_v61  ;;  %v17717_v29 = vld [vmem:[%s24111_s2 + $0xa4] ss:$16 sps:$4 sm:$0xff]   ;;  %v17720_v61 = vld [vmem:[%s24111_s2 + $0xa8] ss:$16 sps:$4 sm:$0xff]  }
 0x6ea   :  { %11296 = vmatpush1.bf16.msra.mxu0 %v17683_v52  ;;  %11369 = vmatpush1.bf16.msra.mxu1 %v17684_v26  ;;  %v17721_v52 = vld [vmem:[%s24111_s2 + $0xc4] ss:$16 sps:$4 sm:$0xff]   ;;  %v17722_v26 = vld [vmem:[%s24111_s2 + $0xcc] ss:$16 sps:$4 sm:$0xff]  }
 0x6eb   :  { %11297 = vmatprep.subr.bf16.mxu0 %v17685_v9  ;;  %11370 = vmatprep.subr.bf16.mxu1 %v17686_v38  ;;  %v17723_v9 = vld [vmem:[%s24111_s2 + $0xc0] ss:$16 sps:$4 sm:$0xff]   ;;  %v17724_v38 = vld [vmem:[%s24111_s2 + $0xc8] ss:$16 sps:$4 sm:$0xff]  }
 0x6ee   :  { %11298 = vmatpush1.bf16.msra.mxu0 %v17687_v24  ;;  %11371 = vmatpush1.bf16.msra.mxu1 %v17688_v40  ;;  %v17725_v24 = vld [vmem:[%s24111_s2 + $0xe4] ss:$16 sps:$4 sm:$0xff]   ;;  %v17728_v40 = vld [vmem:[%s24111_s2 + $0xe8] ss:$16 sps:$4 sm:$0xff]  }
 0x6ef   :  { %11299 = vmatprep.subr.bf16.mxu0 %v17689_v32  ;;  %11372 = vmatprep.subr.bf16.mxu1 %v17690_v46  ;;  %v17729_v32 = vld [vmem:[%s24111_s2 + $0x104] ss:$16 sps:$4 sm:$0xff]   ;;  %v17730_v46 = vld [vmem:[%s24111_s2 + $0x10c] ss:$16 sps:$4 sm:$0xff]  }
 0x6f2   :  { %11300 = vmatpush1.bf16.msra.mxu0 %v17691_v25  ;;  %11373 = vmatpush1.bf16.msra.mxu1 %v17692_v35  ;;  %v17731_v25 = vld [vmem:[%s24111_s2 + $0x100] ss:$16 sps:$4 sm:$0xff]   ;;  %v17732_v35 = vld [vmem:[%s24111_s2 + $0x108] ss:$16 sps:$4 sm:$0xff]  }
 0x6f3   :  { %11301 = vmatprep.subr.bf16.mxu0 %v17693_v51  ;;  %11374 = vmatprep.subr.bf16.mxu1 %v17694_v54  ;;  %v17733_v51 = vld [vmem:[%s24111_s2 + $0x124] ss:$16 sps:$4 sm:$0xff]   ;;  %v17734_v54 = vld [vmem:[%s24111_s2 + $0x12c] ss:$16 sps:$4 sm:$0xff]  }
 0x6f6   :  { %11302 = vmatpush1.bf16.msra.mxu0 %v17695_v0  ;;  %11375 = vmatpush1.bf16.msra.mxu1 %v17696_v11  ;;  %v17735_v0 = vld [vmem:[%s24111_s2 + $0x120] ss:$16 sps:$4 sm:$0xff]   ;;  %v17736_v11 = vld [vmem:[%s24111_s2 + $0x128] ss:$16 sps:$4 sm:$0xff]  }
 0x6f7   :  { %11417 = vmatprep.subr.bf16.mxu0 %v17697_v41  ;;  %11490 = vmatprep.subr.bf16.mxu1 %v17698_v2  ;;  %v17737_v41 = vld [vmem:[%s24111_s2 + $0x144] ss:$16 sps:$4 sm:$0xff]   ;;  %v17738_v2 = vld [vmem:[%s24111_s2 + $0x14c] ss:$16 sps:$4 sm:$0xff]  }
 0x6f9   :  { %11304 = vmatmul.mubr.bf16.vlgmr.msra.gmra.mrb[144].mxu0 %v21528_v27  ;;  %11377 = vmatmul.mubr.bf16.vlgmr.msra.gmra.mrb[144].mxu1 %v21528_v27  ;;  %v17702_v27 = vld [vmem:[%s24111_s2 + $0x2c] ss:$16 sps:$4 sm:$0xff]  }
 0x6fa   :  { %11313 = vmatprep.mubr.bf16.mxu0 %v21600_v36  ;;  %11386 = vmatprep.mubr.bf16.mxu1 %v21600_v36  ;;  %v17703_v36 = vld [vmem:[%s24111_s2 + $0x20] ss:$16 sps:$4 sm:$0xff]  }
 0x6fb   :  { %11418 = vmatpush1.bf16.msra.mxu0 %v17699_v19  ;;  %11491 = vmatpush1.bf16.msra.mxu1 %v17700_v44  ;;  %v17739_v19 = vld [vmem:[%s24111_s2 + $0x140] ss:$16 sps:$4 sm:$0xff]   ;;  %v17740_v44 = vld [vmem:[%s24111_s2 + $0x148] ss:$16 sps:$4 sm:$0xff]  }
 0x6fc   :  { %11419 = vmatprep.subr.bf16.mxu0 %v17701_v62  ;;  %11492 = vmatprep.subr.bf16.mxu1 %v17702_v27  ;;  %v17741_v62 = vld [vmem:[%s24111_s2 + $0x164] ss:$16 sps:$4 sm:$0xff]   ;;  %v17742_v27 = vld [vmem:[%s24111_s2 + $0x16c] ss:$16 sps:$4 sm:$0xff]  }
 0x6ff   :  { %11420 = vmatpush1.bf16.msra.mxu0 %v17703_v36  ;;  %11493 = vmatpush1.bf16.msra.mxu1 %v17704_v15  ;;  %v17743_v36 = vld [vmem:[%s24111_s2 + $0x160] ss:$16 sps:$4 sm:$0xff]   ;;  %v17744_v15 = vld [vmem:[%s24111_s2 + $0x168] ss:$16 sps:$4 sm:$0xff]  }
 0x700   :  { %11421 = vmatprep.subr.bf16.mxu0 %v17705_v31  ;;  %11494 = vmatprep.subr.bf16.mxu1 %v17706_v16  ;;  %v17745_v31 = vld [vmem:[%s24111_s2 + $0x184] ss:$16 sps:$4 sm:$0xff]   ;;  %v17746_v16 = vld [vmem:[%s24111_s2 + $0x18c] ss:$16 sps:$4 sm:$0xff]  }
 0x701   :  { %11314 = vmatmul.mubr.bf16.gmra.mrb[148].mxu0 %v21596_v55  ;;  %11387 = vmatmul.mubr.bf16.gmra.mrb[148].mxu1 %v21596_v55  ;;  %v17710_v55 = vld [vmem:[%s24111_s2 + $0x6c] ss:$16 sps:$4 sm:$0xff]  }
 0x702   :  { %11323 = vmatprep.mubr.bf16.mxu0 %v21669_v8  ;;  %11396 = vmatprep.mubr.bf16.mxu1 %v21669_v8  ;;  %v17711_v8 = vld [vmem:[%s24111_s2 + $0x60] ss:$16 sps:$4 sm:$0xff]  }
 0x703   :  { %11422 = vmatpush1.bf16.msra.mxu0 %v17707_v37  ;;  %11495 = vmatpush1.bf16.msra.mxu1 %v17708_v47  ;;  %v17747_v37 = vld [vmem:[%s24111_s2 + $0x180] ss:$16 sps:$4 sm:$0xff]   ;;  %v17748_v47 = vld [vmem:[%s24111_s2 + $0x188] ss:$16 sps:$4 sm:$0xff]  }
 0x704   :  { %11423 = vmatprep.subr.bf16.mxu0 %v17709_v43  ;;  %11496 = vmatprep.subr.bf16.mxu1 %v17710_v55  ;;  %v17749_v43 = vld [vmem:[%s24111_s2 + $0x1a4] ss:$16 sps:$4 sm:$0xff]   ;;  %v17750_v55 = vld [vmem:[%s24111_s2 + $0x1ac] ss:$16 sps:$4 sm:$0xff]  }
 0x707   :  { %11424 = vmatpush1.bf16.msra.mxu0 %v17711_v8  ;;  %11497 = vmatpush1.bf16.msra.mxu1 %v17712_v14  ;;  %v17751_v8 = vld [vmem:[%s24111_s2 + $0x1a0] ss:$16 sps:$4 sm:$0xff]   ;;  %v17752_v14 = vld [vmem:[%s24111_s2 + $0x1a8] ss:$16 sps:$4 sm:$0xff]  }
 0x708   :  { %11425 = vmatprep.subr.bf16.mxu0 %v17713_v45  ;;  %11498 = vmatprep.subr.bf16.mxu1 %v17714_v18  ;;  %v17753_v45 = vld [vmem:[%s24111_s2 + $0x1c4] ss:$16 sps:$4 sm:$0xff]   ;;  %v17754_v18 = vld [vmem:[%s24111_s2 + $0x1cc] ss:$16 sps:$4 sm:$0xff]  }
 0x709   :  { %11324 = vmatmul.mubr.bf16.gmra.mrb[152].mxu0 %v21662_v39  ;;  %11397 = vmatmul.mubr.bf16.gmra.mrb[152].mxu1 %v21662_v39  ;;  %v17718_v39 = vld [vmem:[%s24111_s2 + $0xac] ss:$16 sps:$4 sm:$0xff]  }
 0x70a   :  { %11333 = vmatprep.mubr.bf16.mxu0 %v21765_v23  ;;  %11406 = vmatprep.mubr.bf16.mxu1 %v21765_v23  ;;  %v17719_v23 = vld [vmem:[%s24111_s2 + $0xa0] ss:$16 sps:$4 sm:$0xff]  }
 0x70b   :  { %11426 = vmatpush1.bf16.msra.mxu0 %v17715_v1  ;;  %11499 = vmatpush1.bf16.msra.mxu1 %v17716_v13  ;;  %v17755_v1 = vld [vmem:[%s24111_s2 + $0x1c0] ss:$16 sps:$4 sm:$0xff]   ;;  %v17756_v13 = vld [vmem:[%s24111_s2 + $0x1c8] ss:$16 sps:$4 sm:$0xff]  }
 0x70c   :  { %11427 = vmatprep.subr.bf16.mxu0 %v17717_v29  ;;  %11500 = vmatprep.subr.bf16.mxu1 %v17718_v39  ;;  %v17757_v29 = vld [vmem:[%s24111_s2 + $0x1e4] ss:$16 sps:$4 sm:$0xff]   ;;  %v17758_v39 = vld [vmem:[%s24111_s2 + $0x1ec] ss:$16 sps:$4 sm:$0xff]  }
 0x70f   :  { %11428 = vmatpush1.bf16.msra.mxu0 %v17719_v23  ;;  %11501 = vmatpush1.bf16.msra.mxu1 %v17720_v61  ;;  %v17759_v23 = vld [vmem:[%s24111_s2 + $0x1e0] ss:$16 sps:$4 sm:$0xff]   ;;  %v17760_v61 = vld [vmem:[%s24111_s2 + $0x1e8] ss:$16 sps:$4 sm:$0xff]  }
 0x710   :  { %11429 = vmatprep.subr.bf16.mxu0 %v17721_v52  ;;  %11502 = vmatprep.subr.bf16.mxu1 %v17722_v26  ;;  %v17761_v52 = vld [vmem:[%s24111_s2 + $0x404] ss:$16 sps:$4 sm:$0xff]   ;;  %v17762_v26 = vld [vmem:[%s24111_s2 + $0x40c] ss:$16 sps:$4 sm:$0xff]  }
 0x711   :  { %11334 = vmatmul.mubr.bf16.gmra.mrb[156].mxu0 %v21762_v57  ;;  %11407 = vmatmul.mubr.bf16.gmra.mrb[156].mxu1 %v21762_v57  ;;  %v17726_v57 = vld [vmem:[%s24111_s2 + $0xec] ss:$16 sps:$4 sm:$0xff]  }
 0x712   :  { %11449 = vmatprep.mubr.bf16.mxu0 %v21514_v10  ;;  %11522 = vmatprep.mubr.bf16.mxu1 %v21514_v10  ;;  %v17727_v10 = vld [vmem:[%s24111_s2 + $0xe0] ss:$16 sps:$4 sm:$0xff]  }
 0x713   :  { %11430 = vmatpush1.bf16.msra.mxu0 %v17723_v9  ;;  %11503 = vmatpush1.bf16.msra.mxu1 %v17724_v38  ;;  %v17763_v9 = vld [vmem:[%s24111_s2 + $0x400] ss:$16 sps:$4 sm:$0xff]   ;;  %v17764_v38 = vld [vmem:[%s24111_s2 + $0x408] ss:$16 sps:$4 sm:$0xff]  }
 0x714   :  { %11431 = vmatprep.subr.bf16.mxu0 %v17725_v24  ;;  %11504 = vmatprep.subr.bf16.mxu1 %v17726_v57  ;;  %v17765_v24 = vld [vmem:[%s24111_s2 + $0x424] ss:$16 sps:$4 sm:$0xff]   ;;  %v17767_v57 = vld [vmem:[%s24111_s2 + $0x420] ss:$16 sps:$4 sm:$0xff]  }
 0x717   :  { %11432 = vmatpush1.bf16.msra.mxu0 %v17727_v10  ;;  %11505 = vmatpush1.bf16.msra.mxu1 %v17728_v40  ;;  %v17768_v10 = vld [vmem:[%s24111_s2 + $0x428] ss:$16 sps:$4 sm:$0xff]   ;;  %v17769_v40 = vld [vmem:[%s24111_s2 + $0x444] ss:$16 sps:$4 sm:$0xff]  }
 0x718   :  { %11433 = vmatprep.subr.bf16.mxu0 %v17729_v32  ;;  %11506 = vmatprep.subr.bf16.mxu1 %v17730_v46  ;;  %v17770_v32 = vld [vmem:[%s24111_s2 + $0x44c] ss:$16 sps:$4 sm:$0xff]   ;;  %v17771_v46 = vld [vmem:[%s24111_s2 + $0x440] ss:$16 sps:$4 sm:$0xff]  }
 0x71b   :  { %11434 = vmatpush1.bf16.msra.mxu0 %v17731_v25  ;;  %11507 = vmatpush1.bf16.msra.mxu1 %v17732_v35  ;;  %v17772_v25 = vld [vmem:[%s24111_s2 + $0x448] ss:$16 sps:$4 sm:$0xff]   ;;  %v17773_v35 = vld [vmem:[%s24111_s2 + $0x464] ss:$16 sps:$4 sm:$0xff]  }
 0x71c   :  { %11435 = vmatprep.subr.bf16.mxu0 %v17733_v51  ;;  %11508 = vmatprep.subr.bf16.mxu1 %v17734_v54  ;;  %v17774_v51 = vld [vmem:[%s24111_s2 + $0x46c] ss:$16 sps:$4 sm:$0xff]   ;;  %v17775_v54 = vld [vmem:[%s24111_s2 + $0x460] ss:$16 sps:$4 sm:$0xff]  }
 0x71f   :  { %11436 = vmatpush1.bf16.msra.mxu0 %v17735_v0  ;;  %11509 = vmatpush1.bf16.msra.mxu1 %v17736_v11  ;;  %v17776_v0 = vld [vmem:[%s24111_s2 + $0x468] ss:$16 sps:$4 sm:$0xff]   ;;  %v17777_v11 = vld [vmem:[%s24111_s2 + $0x484] ss:$16 sps:$4 sm:$0xff]  }
 0x720   :  { %11437 = vmatprep.subr.bf16.mxu0 %v17737_v41  ;;  %11510 = vmatprep.subr.bf16.mxu1 %v17738_v2  ;;  %v17778_v41 = vld [vmem:[%s24111_s2 + $0x48c] ss:$16 sps:$4 sm:$0xff]   ;;  %v17779_v2 = vld [vmem:[%s24111_s2 + $0x480] ss:$16 sps:$4 sm:$0xff]  }
 0x723   :  { %11438 = vmatpush1.bf16.msra.mxu0 %v17739_v19  ;;  %11511 = vmatpush1.bf16.msra.mxu1 %v17740_v44  ;;  %v17780_v19 = vld [vmem:[%s24111_s2 + $0x488] ss:$16 sps:$4 sm:$0xff]   ;;  %v17781_v44 = vld [vmem:[%s24111_s2 + $0x4a4] ss:$16 sps:$4 sm:$0xff]  }
 0x724   :  { %11439 = vmatprep.subr.bf16.mxu0 %v17741_v62  ;;  %11512 = vmatprep.subr.bf16.mxu1 %v17742_v27  ;;  %v17782_v62 = vld [vmem:[%s24111_s2 + $0x4ac] ss:$16 sps:$4 sm:$0xff]   ;;  %v17783_v27 = vld [vmem:[%s24111_s2 + $0x4a0] ss:$16 sps:$4 sm:$0xff]  }
 0x727   :  { %11440 = vmatpush1.bf16.msra.mxu0 %v17743_v36  ;;  %11513 = vmatpush1.bf16.msra.mxu1 %v17744_v15  ;;  %v17784_v36 = vld [vmem:[%s24111_s2 + $0x4a8] ss:$16 sps:$4 sm:$0xff]   ;;  %v17785_v15 = vld [vmem:[%s24111_s2 + $0x4c4] ss:$16 sps:$4 sm:$0xff]  }
 0x728   :  { %11441 = vmatprep.subr.bf16.mxu0 %v17745_v31  ;;  %11514 = vmatprep.subr.bf16.mxu1 %v17746_v16  ;;  %v17786_v31 = vld [vmem:[%s24111_s2 + $0x4cc] ss:$16 sps:$4 sm:$0xff]   ;;  %v17787_v16 = vld [vmem:[%s24111_s2 + $0x4c0] ss:$16 sps:$4 sm:$0xff]  }
 0x72b   :  { %11442 = vmatpush1.bf16.msra.mxu0 %v17747_v37  ;;  %11515 = vmatpush1.bf16.msra.mxu1 %v17748_v47  ;;  %v17788_v37 = vld [vmem:[%s24111_s2 + $0x4c8] ss:$16 sps:$4 sm:$0xff]   ;;  %v17789_v47 = vld [vmem:[%s24111_s2 + $0x4e4] ss:$16 sps:$4 sm:$0xff]  }
 0x72c   :  { %11443 = vmatprep.subr.bf16.mxu0 %v17749_v43  ;;  %11516 = vmatprep.subr.bf16.mxu1 %v17750_v55  ;;  %v17790_v43 = vld [vmem:[%s24111_s2 + $0x4ec] ss:$16 sps:$4 sm:$0xff]   ;;  %v17792_v55 = vld [vmem:[%s24111_s2 + $0x4e8] ss:$16 sps:$4 sm:$0xff]  }
 0x72f   :  { %11444 = vmatpush1.bf16.msra.mxu0 %v17751_v8  ;;  %11517 = vmatpush1.bf16.msra.mxu1 %v17752_v14  ;;  %v17793_v8 = vld [vmem:[%s24111_s2 + $0x504] ss:$16 sps:$4 sm:$0xff]   ;;  %v17794_v14 = vld [vmem:[%s24111_s2 + $0x50c] ss:$16 sps:$4 sm:$0xff]  }
 0x730   :  { %11445 = vmatprep.subr.bf16.mxu0 %v17753_v45  ;;  %11518 = vmatprep.subr.bf16.mxu1 %v17754_v18  ;;  %v17795_v45 = vld [vmem:[%s24111_s2 + $0x500] ss:$16 sps:$4 sm:$0xff]   ;;  %v17796_v18 = vld [vmem:[%s24111_s2 + $0x508] ss:$16 sps:$4 sm:$0xff]  }
 0x733   :  { %11446 = vmatpush1.bf16.msra.mxu0 %v17755_v1  ;;  %11519 = vmatpush1.bf16.msra.mxu1 %v17756_v13  ;;  %v17797_v1 = vld [vmem:[%s24111_s2 + $0x524] ss:$16 sps:$4 sm:$0xff]   ;;  %v17798_v13 = vld [vmem:[%s24111_s2 + $0x52c] ss:$16 sps:$4 sm:$0xff]  }
 0x734   :  { %11447 = vmatprep.subr.bf16.mxu0 %v17757_v29  ;;  %11520 = vmatprep.subr.bf16.mxu1 %v17758_v39  ;;  %v17799_v29 = vld [vmem:[%s24111_s2 + $0x520] ss:$16 sps:$4 sm:$0xff]   ;;  %v17800_v39 = vld [vmem:[%s24111_s2 + $0x528] ss:$16 sps:$4 sm:$0xff]  }
 0x737   :  { %11448 = vmatpush1.bf16.msra.mxu0 %v17759_v23  ;;  %11521 = vmatpush1.bf16.msra.mxu1 %v17760_v61  ;;  %v17801_v23 = vld [vmem:[%s24111_s2 + $0x544] ss:$16 sps:$4 sm:$0xff]   ;;  %v17802_v61 = vld [vmem:[%s24111_s2 + $0x54c] ss:$16 sps:$4 sm:$0xff]  }
 0x738   :  { %11563 = vmatprep.subr.bf16.mxu0 %v17761_v52  ;;  %11636 = vmatprep.subr.bf16.mxu1 %v17762_v26  ;;  %v17803_v52 = vld [vmem:[%s24111_s2 + $0x540] ss:$16 sps:$4 sm:$0xff]   ;;  %v17804_v26 = vld [vmem:[%s24111_s2 + $0x548] ss:$16 sps:$4 sm:$0xff]  }
 0x73a   :  { %11450 = vmatmul.mubr.bf16.vlgmr.msra.gmra.mrb[144].mxu0 %v21511_v60  ;;  %11523 = vmatmul.mubr.bf16.vlgmr.msra.gmra.mrb[144].mxu1 %v21511_v60  ;;  %v17766_v60 = vld [vmem:[%s24111_s2 + $0x42c] ss:$16 sps:$4 sm:$0xff]  }
 0x73b   :  { %11459 = vmatprep.mubr.bf16.mxu0 %v21583_v7  ;;  %11532 = vmatprep.mubr.bf16.mxu1 %v21583_v7 }
 0x73c   :  { %11564 = vmatpush1.bf16.msra.mxu0 %v17763_v9  ;;  %11637 = vmatpush1.bf16.msra.mxu1 %v17764_v38  ;;  %v17805_v9 = vld [vmem:[%s24111_s2 + $0x564] ss:$16 sps:$4 sm:$0xff]   ;;  %v17806_v38 = vld [vmem:[%s24111_s2 + $0x56c] ss:$16 sps:$4 sm:$0xff]  }
 0x73d   :  { %11565 = vmatprep.subr.bf16.mxu0 %v17765_v24  ;;  %11638 = vmatprep.subr.bf16.mxu1 %v17766_v60  ;;  %v17807_v24 = vld [vmem:[%s24111_s2 + $0x560] ss:$16 sps:$4 sm:$0xff]   ;;  %v17808_v60 = vld [vmem:[%s24111_s2 + $0x568] ss:$16 sps:$4 sm:$0xff]  }
 0x740   :  { %11566 = vmatpush1.bf16.msra.mxu0 %v17767_v57  ;;  %11639 = vmatpush1.bf16.msra.mxu1 %v17768_v10  ;;  %v17809_v57 = vld [vmem:[%s24111_s2 + $0x584] ss:$16 sps:$4 sm:$0xff]   ;;  %v17810_v10 = vld [vmem:[%s24111_s2 + $0x58c] ss:$16 sps:$4 sm:$0xff]  }
 0x741   :  { %11567 = vmatprep.subr.bf16.mxu0 %v17769_v40  ;;  %11640 = vmatprep.subr.bf16.mxu1 %v17770_v32  ;;  %v17811_v40 = vld [vmem:[%s24111_s2 + $0x580] ss:$16 sps:$4 sm:$0xff]   ;;  %v17812_v32 = vld [vmem:[%s24111_s2 + $0x588] ss:$16 sps:$4 sm:$0xff]  }
 0x742   :  { %11460 = vmatmul.mubr.bf16.gmra.mrb[148].mxu0 %v21580_v56  ;;  %11533 = vmatmul.mubr.bf16.gmra.mrb[148].mxu1 %v21580_v56 }
 0x743   :  { %11469 = vmatprep.mubr.bf16.mxu0 %v21652_v42  ;;  %11542 = vmatprep.mubr.bf16.mxu1 %v21652_v42 }
 0x744   :  { %11568 = vmatpush1.bf16.msra.mxu0 %v17771_v46  ;;  %11641 = vmatpush1.bf16.msra.mxu1 %v17772_v25  ;;  %v17813_v46 = vld [vmem:[%s24111_s2 + $0x5a4] ss:$16 sps:$4 sm:$0xff]   ;;  %v17814_v25 = vld [vmem:[%s24111_s2 + $0x5ac] ss:$16 sps:$4 sm:$0xff]  }
 0x745   :  { %11569 = vmatprep.subr.bf16.mxu0 %v17773_v35  ;;  %11642 = vmatprep.subr.bf16.mxu1 %v17774_v51  ;;  %v17815_v35 = vld [vmem:[%s24111_s2 + $0x5a0] ss:$16 sps:$4 sm:$0xff]   ;;  %v17816_v51 = vld [vmem:[%s24111_s2 + $0x5a8] ss:$16 sps:$4 sm:$0xff]  }
 0x748   :  { %11570 = vmatpush1.bf16.msra.mxu0 %v17775_v54  ;;  %11643 = vmatpush1.bf16.msra.mxu1 %v17776_v0  ;;  %v17817_v54 = vld [vmem:[%s24111_s2 + $0x5c4] ss:$16 sps:$4 sm:$0xff]   ;;  %v17818_v0 = vld [vmem:[%s24111_s2 + $0x5cc] ss:$16 sps:$4 sm:$0xff]  }
 0x749   :  { %11571 = vmatprep.subr.bf16.mxu0 %v17777_v11  ;;  %11644 = vmatprep.subr.bf16.mxu1 %v17778_v41  ;;  %v17819_v11 = vld [vmem:[%s24111_s2 + $0x5c0] ss:$16 sps:$4 sm:$0xff]   ;;  %v17820_v41 = vld [vmem:[%s24111_s2 + $0x5c8] ss:$16 sps:$4 sm:$0xff]  }
 0x74a   :  { %11470 = vmatmul.mubr.bf16.gmra.mrb[152].mxu0 %v21648_v53  ;;  %11543 = vmatmul.mubr.bf16.gmra.mrb[152].mxu1 %v21648_v53 }
 0x74b   :  { %11479 = vmatprep.mubr.bf16.mxu0 %v21723_v50  ;;  %11552 = vmatprep.mubr.bf16.mxu1 %v21723_v50 }
 0x74c   :  { %11572 = vmatpush1.bf16.msra.mxu0 %v17779_v2  ;;  %11645 = vmatpush1.bf16.msra.mxu1 %v17780_v19  ;;  %v17821_v2 = vld [vmem:[%s24111_s2 + $0x5e4] ss:$16 sps:$4 sm:$0xff]   ;;  %v17822_v19 = vld [vmem:[%s24111_s2 + $0x5ec] ss:$16 sps:$4 sm:$0xff]  }
 0x74d   :  { %11573 = vmatprep.subr.bf16.mxu0 %v17781_v44  ;;  %11646 = vmatprep.subr.bf16.mxu1 %v17782_v62  ;;  %v17823_v44 = vld [vmem:[%s24111_s2 + $0x5e0] ss:$16 sps:$4 sm:$0xff]   ;;  %v17824_v62 = vld [vmem:[%s24111_s2 + $0x5e8] ss:$16 sps:$4 sm:$0xff]  }
 0x750   :  { %11574 = vmatpush1.bf16.msra.mxu0 %v17783_v27  ;;  %11647 = vmatpush1.bf16.msra.mxu1 %v17784_v36  ;;  %v17825_v27 = vld [vmem:[%s24111_s2 + $0x604] ss:$16 sps:$4 sm:$0xff]   ;;  %v17826_v36 = vld [vmem:[%s24111_s2 + $0x60c] ss:$16 sps:$4 sm:$0xff]  }
 0x751   :  { %11575 = vmatprep.subr.bf16.mxu0 %v17785_v15  ;;  %11648 = vmatprep.subr.bf16.mxu1 %v17786_v31  ;;  %v17827_v15 = vld [vmem:[%s24111_s2 + $0x600] ss:$16 sps:$4 sm:$0xff]   ;;  %v17828_v31 = vld [vmem:[%s24111_s2 + $0x608] ss:$16 sps:$4 sm:$0xff]  }
 0x752   :  { %11480 = vmatmul.mubr.bf16.gmra.mrb[156].mxu0 %v21716_v63  ;;  %11553 = vmatmul.mubr.bf16.gmra.mrb[156].mxu1 %v21716_v63 }
 0x753   :  { %11595 = vmatprep.mubr.bf16.mxu0 %v21548_v30  ;;  %11668 = vmatprep.mubr.bf16.mxu1 %v21548_v30  ;;  %v17791_v30 = vld [vmem:[%s24111_s2 + $0x4e0] ss:$16 sps:$4 sm:$0xff]  }
 0x754   :  { %11576 = vmatpush1.bf16.msra.mxu0 %v17787_v16  ;;  %11649 = vmatpush1.bf16.msra.mxu1 %v17788_v37  ;;  %v17829_v16 = vld [vmem:[%s24111_s2 + $0x624] ss:$16 sps:$4 sm:$0xff]   ;;  %v17832_v37 = vld [vmem:[%s24111_s2 + $0x628] ss:$16 sps:$4 sm:$0xff]  }
 0x755   :  { %11577 = vmatprep.subr.bf16.mxu0 %v17789_v47  ;;  %11650 = vmatprep.subr.bf16.mxu1 %v17790_v43  ;;  %v17833_v47 = vld [vmem:[%s24111_s2 + $0x644] ss:$16 sps:$4 sm:$0xff]   ;;  %v17834_v43 = vld [vmem:[%s24111_s2 + $0x64c] ss:$16 sps:$4 sm:$0xff]  }
 0x758   :  { %11578 = vmatpush1.bf16.msra.mxu0 %v17791_v30  ;;  %11651 = vmatpush1.bf16.msra.mxu1 %v17792_v55  ;;  %v17835_v30 = vld [vmem:[%s24111_s2 + $0x640] ss:$16 sps:$4 sm:$0xff]   ;;  %v17836_v55 = vld [vmem:[%s24111_s2 + $0x648] ss:$16 sps:$4 sm:$0xff]  }
 0x759   :  { %11579 = vmatprep.subr.bf16.mxu0 %v17793_v8  ;;  %11652 = vmatprep.subr.bf16.mxu1 %v17794_v14  ;;  %v8435_v8 = vld [vmem:[%s24112_s5] sm:$0xf] }
 0x75a   :  { %v24184_v14 = vld [vmem:[#allocation2_spill] sm:$0xff] }
 0x75c   :  { %11580 = vmatpush1.bf16.msra.mxu0 %v17795_v45  ;;  %11653 = vmatpush1.bf16.msra.mxu1 %v17796_v18  ;;  %v24185_v45 = vsub.s32 0, %v24184_v14 }
 0x75d   :  { %11581 = vmatprep.subr.bf16.mxu0 %v17797_v1  ;;  %11654 = vmatprep.subr.bf16.mxu1 %v17798_v13  ;;  %v24186_v1 = vsub.s32 2, %v24184_v14 }
 0x75e   :  { %v23062_v18 = vrot.slane %v8435_v8, %v24185_v45 }
 0x75f   :  { %v23066_v13 = vrot.slane %v8435_v8, %v24186_v1 }
 0x760   :  { %11582 = vmatpush1.bf16.msra.mxu0 %v17799_v29  ;;  %11655 = vmatpush1.bf16.msra.mxu1 %v17800_v39  ;;  %v17839_v29 = vld [vmem:[%s24111_s2 + $0x660] ss:$16 sps:$4 sm:$0xff]   ;;  %v17840_v39 = vld [vmem:[%s24111_s2 + $0x668] ss:$16 sps:$4 sm:$0xff]  }
 0x761   :  { %11583 = vmatprep.subr.bf16.mxu0 %v17801_v23  ;;  %11656 = vmatprep.subr.bf16.mxu1 %v17802_v61  ;;  %v24187_v23 = vsub.s32 1, %v24184_v14 }
 0x763   :  { %v23076_v61 = vrot.slane %v8435_v8, %v24187_v23 }
 0x764   :  { %11584 = vmatpush1.bf16.msra.mxu0 %v17803_v52  ;;  %11657 = vmatpush1.bf16.msra.mxu1 %v17804_v26  ;;  %v24188_v52 = vsub.s32 3, %v24184_v14 }
 0x765   :  { %11585 = vmatprep.subr.bf16.mxu0 %v17805_v9  ;;  %11658 = vmatprep.subr.bf16.mxu1 %v17806_v38  ;;  %v17841_v9 = vld [vmem:[%s24111_s2 + $0x684] ss:$16 sps:$4 sm:$0xff]   ;;  %v17842_v38 = vld [vmem:[%s24111_s2 + $0x68c] ss:$16 sps:$4 sm:$0xff]  }
 0x766   :  { %v23080_v26 = vrot.slane %v8435_v8, %v24188_v52 }
 0x768   :  { %11586 = vmatpush1.bf16.msra.mxu0 %v17807_v24  ;;  %11659 = vmatpush1.bf16.msra.mxu1 %v17808_v60 }
 0x769   :  { %11587 = vmatprep.subr.bf16.mxu0 %v17809_v57  ;;  %11660 = vmatprep.subr.bf16.mxu1 %v17810_v10 }
 0x76c   :  { %11588 = vmatpush1.bf16.msra.mxu0 %v17811_v40  ;;  %11661 = vmatpush1.bf16.msra.mxu1 %v17812_v32 }
 0x76d   :  { %11589 = vmatprep.subr.bf16.mxu0 %v17813_v46  ;;  %11662 = vmatprep.subr.bf16.mxu1 %v17814_v25  ;;  %v17843_v46 = vld [vmem:[%s24111_s2 + $0x680] ss:$16 sps:$4 sm:$0xff]  }
 0x770   :  { %11590 = vmatpush1.bf16.msra.mxu0 %v17815_v35  ;;  %11663 = vmatpush1.bf16.msra.mxu1 %v17816_v51 }
 0x771   :  { %11591 = vmatprep.subr.bf16.mxu0 %v17817_v54  ;;  %11664 = vmatprep.subr.bf16.mxu1 %v17818_v0 }
 0x774   :  { %11592 = vmatpush1.bf16.msra.mxu0 %v17819_v11  ;;  %11665 = vmatpush1.bf16.msra.mxu1 %v17820_v41  ;;  %v17845_v11 = vld [vmem:[%s24111_s2 + $0x6a4] ss:$16 sps:$4 sm:$0xff]   ;;  %v17846_v41 = vld [vmem:[%s24111_s2 + $0x6ac] ss:$16 sps:$4 sm:$0xff]  }
 0x775   :  { %11593 = vmatprep.subr.bf16.mxu0 %v17821_v2  ;;  %11666 = vmatprep.subr.bf16.mxu1 %v17822_v19 }
 0x778   :  { %11594 = vmatpush1.bf16.msra.mxu0 %v17823_v44  ;;  %11667 = vmatpush1.bf16.msra.mxu1 %v17824_v62 }
 0x779   :  { %11741 = vmatprep.subr.bf16.mxu0 %v17825_v27  ;;  %11814 = vmatprep.subr.bf16.mxu1 %v17826_v36 }
 0x77b   :  { %11596 = vmatmul.mubr.bf16.vlgmr.msra.gmra.mrb[144].mxu0 %v21544_v20  ;;  %11669 = vmatmul.mubr.bf16.vlgmr.msra.gmra.mrb[144].mxu1 %v21544_v20  ;;  %v17830_v20 = vld [vmem:[%s24111_s2 + $0x62c] ss:$16 sps:$4 sm:$0xff]  }
 0x77c   :  { %11605 = vmatprep.mubr.bf16.mxu0 %v21617_v22  ;;  %11678 = vmatprep.mubr.bf16.mxu1 %v21617_v22  ;;  %v17831_v22 = vld [vmem:[%s24111_s2 + $0x620] ss:$16 sps:$4 sm:$0xff]  }
 0x77d   :  { %11742 = vmatpush1.bf16.msra.mxu0 %v17827_v15  ;;  %11815 = vmatpush1.bf16.msra.mxu1 %v17828_v31 }
 0x77e   :  { %11743 = vmatprep.subr.bf16.mxu0 %v17829_v16  ;;  %11816 = vmatprep.subr.bf16.mxu1 %v17830_v20 }
 0x781   :  { %11744 = vmatpush1.bf16.msra.mxu0 %v17831_v22  ;;  %11817 = vmatpush1.bf16.msra.mxu1 %v17832_v37 }
 0x782   :  { %11745 = vmatprep.subr.bf16.mxu0 %v17833_v47  ;;  %11818 = vmatprep.subr.bf16.mxu1 %v17834_v43  ;;  %v17847_v47 = vld [vmem:[%s24111_s2 + $0x6a0] ss:$16 sps:$4 sm:$0xff]   ;;  %v17848_v43 = vld [vmem:[%s24111_s2 + $0x6a8] ss:$16 sps:$4 sm:$0xff]  }
 0x783   :  { %11606 = vmatmul.mubr.bf16.gmra.mrb[148].mxu0 %v21610_v33  ;;  %11679 = vmatmul.mubr.bf16.gmra.mrb[148].mxu1 %v21610_v33  ;;  %v17837_v33 = vld [vmem:[%s24111_s2 + $0x664] ss:$16 sps:$4 sm:$0xff]  }
 0x784   :  { %11615 = vmatprep.mubr.bf16.mxu0 %v21683_v48  ;;  %11688 = vmatprep.mubr.bf16.mxu1 %v21683_v48  ;;  %v17838_v48 = vld [vmem:[%s24111_s2 + $0x66c] ss:$16 sps:$4 sm:$0xff]  }
 0x785   :  { %11746 = vmatpush1.bf16.msra.mxu0 %v17835_v30  ;;  %11819 = vmatpush1.bf16.msra.mxu1 %v17836_v55 }
 0x786   :  { %11747 = vmatprep.subr.bf16.mxu0 %v17837_v33  ;;  %11820 = vmatprep.subr.bf16.mxu1 %v17838_v48  ;;  %v17849_v33 = vld [vmem:[%s24111_s2 + $0x6c4] ss:$16 sps:$4 sm:$0xff]   ;;  %v17850_v48 = vld [vmem:[%s24111_s2 + $0x6cc] ss:$16 sps:$4 sm:$0xff]  }
 0x789   :  { %11748 = vmatpush1.bf16.msra.mxu0 %v17839_v29  ;;  %11821 = vmatpush1.bf16.msra.mxu1 %v17840_v39 }
 0x78a   :  { %11749 = vmatprep.subr.bf16.mxu0 %v17841_v9  ;;  %11822 = vmatprep.subr.bf16.mxu1 %v17842_v38  ;;  %v17851_v9 = vld [vmem:[%s24111_s2 + $0x6c0] ss:$16 sps:$4 sm:$0xff]  }
 0x78b   :  { %11616 = vmatmul.mubr.bf16.gmra.mrb[152].mxu0 %v21680_v6  ;;  %11689 = vmatmul.mubr.bf16.gmra.mrb[152].mxu1 %v21680_v6  ;;  %v11042_v24 = vpop.f32.mrb[128].mxu0  ;;  %v11115_v60 = vpop.f32.mrb[128].mxu1  ;;  %v17844_v6 = vld [vmem:[%s24111_s2 + $0x688] ss:$16 sps:$4 sm:$0xff]  }
 0x78c   :  { %11625 = vmatprep.mubr.bf16.mxu0 %v21810_v34  ;;  %11698 = vmatprep.mubr.bf16.mxu1 %v21810_v34  ;;  %v11207_v57 = vadd.f32 %v23062_v18, %v11042_v24  ;;  %v11209_v10 = vadd.f32 %v23066_v13, %v11115_v60  ;;  %v11044_v40 = vpop.f32.mrb[129].mxu0  ;;  %v11117_v32 = vpop.f32.mrb[129].mxu1 }
 0x78d   :  { %11750 = vmatpush1.bf16.msra.mxu0 %v17843_v46  ;;  %11823 = vmatpush1.bf16.msra.mxu1 %v17844_v6  ;;  %v11208_v25 = vadd.f32 %v23076_v61, %v11044_v40  ;;  %v11210_v34 = vadd.f32 %v23080_v26, %v11117_v32  ;;  %v11046_v35 = vpop.f32.mrb[130].mxu0  ;;  %v11119_v51 = vpop.f32.mrb[130].mxu1  ;;  %v17853_v40 = vld [vmem:[%s24111_s2 + $0x6e4] ss:$16 sps:$4 sm:$0xff]   ;;  %v17854_v32 = vld [vmem:[%s24111_s2 + $0x6ec] ss:$16 sps:$4 sm:$0xff]  }
 0x78e   :  { %v11239_v54 = vmax.f32 %v11207_v57, 0.0  ;;  %v11241_v0 = vmax.f32 %v11209_v10, 0.0  ;;  %11751 = vmatprep.subr.bf16.mxu0 %v17845_v11  ;;  %11824 = vmatprep.subr.bf16.mxu1 %v17846_v41  ;;  %v11211_v2 = vadd.f32 %v23062_v18, %v11046_v35  ;;  %v11213_v19 = vadd.f32 %v23066_v13, %v11119_v51  ;;  %v11048_v44 = vpop.f32.mrb[131].mxu0  ;;  %v11121_v62 = vpop.f32.mrb[131].mxu1 }
 0x78f   :  { %v11240_v27 = vmax.f32 %v11208_v25, 0.0  ;;  %v11242_v36 = vmax.f32 %v11210_v34, 0.0  ;;  %v11212_v15 = vadd.f32 %v23076_v61, %v11048_v44  ;;  %v11214_v31 = vadd.f32 %v23080_v26, %v11121_v62  ;;  %v17855_v44 = vld [vmem:[%s24111_s2 + $0x6e0] ss:$16 sps:$4 sm:$0xff]   ;;  %v17856_v62 = vld [vmem:[%s24111_s2 + $0x6e8] ss:$16 sps:$4 sm:$0xff]  }
 0x790   :  { %v23112_v16 = vmax.f32 %v11239_v54, %v11241_v0  ;;  %v11243_v20 = vmax.f32 %v11211_v2, 0.0  ;;  %v11245_v22 = vmax.f32 %v11213_v19, 0.0 }
 0x791   :  { %v23114_v37 = vmax.f32 %v11240_v27, %v11242_v36  ;;  %11752 = vmatpush1.bf16.msra.mxu0 %v17847_v47  ;;  %11825 = vmatpush1.bf16.msra.mxu1 %v17848_v43  ;;  %v11244_v30 = vmax.f32 %v11212_v15, 0.0  ;;  %v11246_v55 = vmax.f32 %v11214_v31, 0.0  ;;  %v17857_v31 = vld [vmem:[%s24111_s2 + $0x704] ss:$16 sps:$4 sm:$0xff]  }
 0x792   :  { %v23122_v8 = vmax.f32 %v11243_v20, %v11245_v22  ;;  %11753 = vmatprep.subr.bf16.mxu0 %v17849_v33  ;;  %11826 = vmatprep.subr.bf16.mxu1 %v17850_v48  ;;  %v17858_v20 = vld [vmem:[%s24111_s2 + $0x70c] ss:$16 sps:$4 sm:$0xff]  }
 0x793   :  { %v23130_v14 = vmax.f32 %v11244_v30, %v11246_v55  ;;  %11626 = vmatmul.mubr.bf16.gmra.mrb[156].mxu0 %v21805_v49  ;;  %11699 = vmatmul.mubr.bf16.gmra.mrb[156].mxu1 %v21805_v49  ;;  %v11052_v45 = vpop.f32.mrb[132].mxu0  ;;  %v11125_v1 = vpop.f32.mrb[132].mxu1  ;;  %v17852_v49 = vld [vmem:[%s24111_s2 + $0x6c8] ss:$16 sps:$4 sm:$0xff]  }
 0x794   :  { %11773 = vmatprep.mubr.bf16.mxu0 %v21565_v21  ;;  %11846 = vmatprep.mubr.bf16.mxu1 %v21565_v21  ;;  %v11215_v29 = vadd.f32 %v23062_v18, %v11052_v45  ;;  %v11217_v39 = vadd.f32 %v23066_v13, %v11125_v1  ;;  %v11054_v23 = vpop.f32.mrb[133].mxu0  ;;  %v11127_v52 = vpop.f32.mrb[133].mxu1  ;;  %v17859_v45 = vld [vmem:[%s24111_s2 + $0x700] ss:$16 sps:$4 sm:$0xff]   ;;  %v17860_v1 = vld [vmem:[%s24111_s2 + $0x708] ss:$16 sps:$4 sm:$0xff]  }
 0x795   :  { %11754 = vmatpush1.bf16.msra.mxu0 %v17851_v9  ;;  %11827 = vmatpush1.bf16.msra.mxu1 %v17852_v49  ;;  %v11216_v38 = vadd.f32 %v23076_v61, %v11054_v23  ;;  %v11218_v21 = vadd.f32 %v23080_v26, %v11127_v52  ;;  %v11056_v24 = vpop.f32.mrb[134].mxu0  ;;  %v11129_v60 = vpop.f32.mrb[134].mxu1 }
 0x796   :  { %v11247_v57 = vmax.f32 %v11215_v29, 0.0  ;;  %v11249_v10 = vmax.f32 %v11217_v39, 0.0  ;;  %11755 = vmatprep.subr.bf16.mxu0 %v17853_v40  ;;  %11828 = vmatprep.subr.bf16.mxu1 %v17854_v32  ;;  %v11219_v46 = vadd.f32 %v23062_v18, %v11056_v24  ;;  %v11221_v6 = vadd.f32 %v23066_v13, %v11129_v60  ;;  %v11058_v25 = vpop.f32.mrb[135].mxu0  ;;  %v11131_v34 = vpop.f32.mrb[135].mxu1 }
 0x797   :  { %v11248_v35 = vmax.f32 %v11216_v38, 0.0  ;;  %v11250_v51 = vmax.f32 %v11218_v21, 0.0  ;;  %v11220_v54 = vadd.f32 %v23076_v61, %v11058_v25  ;;  %v11222_v0 = vadd.f32 %v23080_v26, %v11131_v34  ;;  %v17861_v38 = vld [vmem:[%s24111_s2 + $0x724] ss:$16 sps:$4 sm:$0xff]   ;;  %v17862_v21 = vld [vmem:[%s24111_s2 + $0x72c] ss:$16 sps:$4 sm:$0xff]  }
 0x798   :  { %v23156_v11 = vmax.f32 %v11247_v57, %v11249_v10  ;;  %v11251_v41 = vmax.f32 %v11219_v46, 0.0  ;;  %v11253_v2 = vmax.f32 %v11221_v6, 0.0 }
 0x799   :  { %v23158_v19 = vmax.f32 %v11248_v35, %v11250_v51  ;;  %11756 = vmatpush1.bf16.msra.mxu0 %v17855_v44  ;;  %11829 = vmatpush1.bf16.msra.mxu1 %v17856_v62  ;;  %v11252_v27 = vmax.f32 %v11220_v54, 0.0  ;;  %v11254_v36 = vmax.f32 %v11222_v0, 0.0  ;;  %v17863_v54 = vld [vmem:[%s24111_s2 + $0x720] ss:$16 sps:$4 sm:$0xff]   ;;  %v17864_v0 = vld [vmem:[%s24111_s2 + $0x728] ss:$16 sps:$4 sm:$0xff]  }
 0x79a   :  { %v23166_v15 = vmax.f32 %v11251_v41, %v11253_v2  ;;  %11757 = vmatprep.subr.bf16.mxu0 %v17857_v31  ;;  %11830 = vmatprep.subr.bf16.mxu1 %v17858_v20  ;;  %v17865_v62 = vld [vmem:[%s24111_s2 + $0x744] ss:$16 sps:$4 sm:$0xff]  }
 0x79b   :  { %v23174_v22 = vmax.f32 %v11252_v27, %v11254_v36  ;;  %v11062_v47 = vpop.f32.mrb[136].mxu0  ;;  %v11135_v43 = vpop.f32.mrb[136].mxu1  ;;  %v17866_v27 = vld [vmem:[%s24111_s2 + $0x74c] ss:$16 sps:$4 sm:$0xff]  }
 0x79c   :  { %v11223_v30 = vadd.f32 %v23062_v18, %v11062_v47  ;;  %v11225_v55 = vadd.f32 %v23066_v13, %v11135_v43  ;;  %v11064_v33 = vpop.f32.mrb[137].mxu0  ;;  %v11137_v48 = vpop.f32.mrb[137].mxu1 }
 0x79d   :  { %11758 = vmatpush1.bf16.msra.mxu0 %v17859_v45  ;;  %11831 = vmatpush1.bf16.msra.mxu1 %v17860_v1  ;;  %v11224_v29 = vadd.f32 %v23076_v61, %v11064_v33  ;;  %v11226_v39 = vadd.f32 %v23080_v26, %v11137_v48  ;;  %v11066_v23 = vpop.f32.mrb[138].mxu0  ;;  %v11139_v52 = vpop.f32.mrb[138].mxu1  ;;  %v17867_v33 = vld [vmem:[%s24111_s2 + $0x740] ss:$16 sps:$4 sm:$0xff]   ;;  %v17868_v48 = vld [vmem:[%s24111_s2 + $0x748] ss:$16 sps:$4 sm:$0xff]  }
 0x79e   :  { %v11255_v9 = vmax.f32 %v11223_v30, 0.0  ;;  %v11257_v49 = vmax.f32 %v11225_v55, 0.0  ;;  %11759 = vmatprep.subr.bf16.mxu0 %v17861_v38  ;;  %11832 = vmatprep.subr.bf16.mxu1 %v17862_v21  ;;  %v11227_v24 = vadd.f32 %v23062_v18, %v11066_v23  ;;  %v11229_v60 = vadd.f32 %v23066_v13, %v11139_v52  ;;  %v11068_v57 = vpop.f32.mrb[139].mxu0  ;;  %v11141_v10 = vpop.f32.mrb[139].mxu1 }
 0x79f   :  { %v11256_v40 = vmax.f32 %v11224_v29, 0.0  ;;  %v11258_v32 = vmax.f32 %v11226_v39, 0.0  ;;  %v11228_v46 = vadd.f32 %v23076_v61, %v11068_v57  ;;  %v11230_v6 = vadd.f32 %v23080_v26, %v11141_v10 }
 0x7a0   :  { %v23196_v25 = vmax.f32 %v11255_v9, %v11257_v49  ;;  %v11259_v34 = vmax.f32 %v11227_v24, 0.0  ;;  %v11261_v35 = vmax.f32 %v11229_v60, 0.0  ;;  %v17869_v9 = vld [vmem:[%s24111_s2 + $0x764] ss:$16 sps:$4 sm:$0xff]   ;;  %v17870_v49 = vld [vmem:[%s24111_s2 + $0x76c] ss:$16 sps:$4 sm:$0xff]  }
 0x7a1   :  { %v23198_v51 = vmax.f32 %v11256_v40, %v11258_v32  ;;  %11760 = vmatpush1.bf16.msra.mxu0 %v17863_v54  ;;  %11833 = vmatpush1.bf16.msra.mxu1 %v17864_v0  ;;  %v11260_v41 = vmax.f32 %v11228_v46, 0.0  ;;  %v11262_v2 = vmax.f32 %v11230_v6, 0.0  ;;  %v17871_v54 = vld [vmem:[%s24111_s2 + $0x760] ss:$16 sps:$4 sm:$0xff]   ;;  %v17872_v0 = vld [vmem:[%s24111_s2 + $0x768] ss:$16 sps:$4 sm:$0xff]  }
 0x7a2   :  { %v23206_v44 = vmax.f32 %v11259_v34, %v11261_v35  ;;  %11761 = vmatprep.subr.bf16.mxu0 %v17865_v62  ;;  %11834 = vmatprep.subr.bf16.mxu1 %v17866_v27  ;;  %v17873_v27 = vld [vmem:[%s24111_s2 + $0x784] ss:$16 sps:$4 sm:$0xff]  }
 0x7a3   :  { %v23214_v36 = vmax.f32 %v11260_v41, %v11262_v2  ;;  %v11072_v31 = vpop.f32.mrb[140].mxu0  ;;  %v11145_v20 = vpop.f32.mrb[140].mxu1 }
 0x7a4   :  { %v11231_v47 = vadd.f32 %v23062_v18, %v11072_v31  ;;  %v11233_v43 = vadd.f32 %v23066_v13, %v11145_v20  ;;  %v11074_v30 = vpop.f32.mrb[141].mxu0  ;;  %v11147_v55 = vpop.f32.mrb[141].mxu1  ;;  %v17874_v31 = vld [vmem:[%s24111_s2 + $0x78c] ss:$16 sps:$4 sm:$0xff]  }
 0x7a5   :  { %11762 = vmatpush1.bf16.msra.mxu0 %v17867_v33  ;;  %11835 = vmatpush1.bf16.msra.mxu1 %v17868_v48  ;;  %v11232_v45 = vadd.f32 %v23076_v61, %v11074_v30  ;;  %v11234_v1 = vadd.f32 %v23080_v26, %v11147_v55  ;;  %v11076_v29 = vpop.f32.mrb[142].mxu0  ;;  %v11149_v39 = vpop.f32.mrb[142].mxu1  ;;  %v17877_v30 = vld [vmem:[%s24111_s2 + $0x7a4] ss:$16 sps:$4 sm:$0xff]   ;;  %v17878_v55 = vld [vmem:[%s24111_s2 + $0x7ac] ss:$16 sps:$4 sm:$0xff]  }
 0x7a6   :  { %v11263_v23 = vmax.f32 %v11231_v47, 0.0  ;;  %v11265_v52 = vmax.f32 %v11233_v43, 0.0  ;;  %11763 = vmatprep.subr.bf16.mxu0 %v17869_v9  ;;  %11836 = vmatprep.subr.bf16.mxu1 %v17870_v49  ;;  %v11235_v38 = vadd.f32 %v23062_v18, %v11076_v29  ;;  %v11237_v21 = vadd.f32 %v23066_v13, %v11149_v39  ;;  %v11078_v24 = vpop.f32.mrb[143].mxu0  ;;  %v11151_v60 = vpop.f32.mrb[143].mxu1  ;;  %v17875_v47 = vld [vmem:[%s24111_s2 + $0x780] ss:$16 sps:$4 sm:$0xff]  }
 0x7a7   :  { %v11264_v57 = vmax.f32 %v11232_v45, 0.0  ;;  %v11266_v10 = vmax.f32 %v11234_v1, 0.0  ;;  %v11236_v40 = vadd.f32 %v23076_v61, %v11078_v24  ;;  %v11238_v32 = vadd.f32 %v23080_v26, %v11151_v60  ;;  %v17876_v43 = vld [vmem:[%s24111_s2 + $0x788] ss:$16 sps:$4 sm:$0xff]   ;;  %v17879_v33 = vld [vmem:[%s24111_s2 + $0x7a0] ss:$16 sps:$4 sm:$0xff]  }
 0x7a8   :  { %v23236_v46 = vmax.f32 %v11263_v23, %v11265_v52  ;;  %v11267_v6 = vmax.f32 %v11235_v38, 0.0  ;;  %v11269_v34 = vmax.f32 %v11237_v21, 0.0  ;;  %v17880_v48 = vld [vmem:[%s24111_s2 + $0x7a8] ss:$16 sps:$4 sm:$0xff]   ;;  %v17881_v45 = vld [vmem:[%s24111_s2 + $0x7c4] ss:$16 sps:$4 sm:$0xff]  }
 0x7a9   :  { %v23238_v35 = vmax.f32 %v11264_v57, %v11266_v10  ;;  %11764 = vmatpush1.bf16.msra.mxu0 %v17871_v54  ;;  %11837 = vmatpush1.bf16.msra.mxu1 %v17872_v0  ;;  %v11268_v41 = vmax.f32 %v11236_v40, 0.0  ;;  %v11270_v2 = vmax.f32 %v11238_v32, 0.0  ;;  %v17882_v1 = vld [vmem:[%s24111_s2 + $0x7cc] ss:$16 sps:$4 sm:$0xff]   ;;  %v17883_v29 = vld [vmem:[%s24111_s2 + $0x7c0] ss:$16 sps:$4 sm:$0xff]  }
 0x7aa   :  { %v23246_v62 = vmax.f32 %v11267_v6, %v11269_v34  ;;  %11765 = vmatprep.subr.bf16.mxu0 %v17873_v27  ;;  %11838 = vmatprep.subr.bf16.mxu1 %v17874_v31  ;;  %v17884_v39 = vld [vmem:[%s24111_s2 + $0x7c8] ss:$16 sps:$4 sm:$0xff]   ;;  %v17885_v23 = vld [vmem:[%s24111_s2 + $0x7e4] ss:$16 sps:$4 sm:$0xff]   ;;  %v17886_v52 = vld [vmem:[%s24111_s2 + $0x7ec] ss:$16 sps:$4 sm:$0xff]  }
 0x7ab   :  { %v23254_v20 = vmax.f32 %v11268_v41, %v11270_v2  ;;  %v17887_v9 = vld [vmem:[%s24111_s2 + $0x7e0] ss:$16 sps:$4 sm:$0xff]   ;;  %v17888_v49 = vld [vmem:[%s24111_s2 + $0x7e8] ss:$16 sps:$4 sm:$0xff]   ;;  %v17889_v38 = vld [vmem:[%s24111_s2 + $0x804] ss:$16 sps:$4 sm:$0xff]  }
 0x7ac   :  { %v17890_v21 = vld [vmem:[%s24111_s2 + $0x80c] ss:$16 sps:$4 sm:$0xff]   ;;  %v17891_v24 = vld [vmem:[%s24111_s2 + $0x800] ss:$16 sps:$4 sm:$0xff]   ;;  %v17892_v60 = vld [vmem:[%s24111_s2 + $0x808] ss:$16 sps:$4 sm:$0xff]  }
 0x7ad   :  { %11766 = vmatpush1.bf16.msra.mxu0 %v17875_v47  ;;  %11839 = vmatpush1.bf16.msra.mxu1 %v17876_v43  ;;  %v17893_v57 = vld [vmem:[%s24111_s2 + $0x824] ss:$16 sps:$4 sm:$0xff]   ;;  %v17896_v10 = vld [vmem:[%s24111_s2 + $0x828] ss:$16 sps:$4 sm:$0xff]   ;;  %v17898_v32 = vld [vmem:[%s24111_s2 + $0x84c] ss:$16 sps:$4 sm:$0xff]  }
 0x7ae   :  { %11767 = vmatprep.subr.bf16.mxu0 %v17877_v30  ;;  %11840 = vmatprep.subr.bf16.mxu1 %v17878_v55  ;;  %v17897_v40 = vld [vmem:[%s24111_s2 + $0x844] ss:$16 sps:$4 sm:$0xff]   ;;  %v17899_v6 = vld [vmem:[%s24111_s2 + $0x840] ss:$16 sps:$4 sm:$0xff]   ;;  %v17900_v34 = vld [vmem:[%s24111_s2 + $0x848] ss:$16 sps:$4 sm:$0xff]  }
 0x7af   :  { %v17901_v54 = vld [vmem:[%s24111_s2 + $0x864] ss:$16 sps:$4 sm:$0xff]   ;;  %v17904_v0 = vld [vmem:[%s24111_s2 + $0x868] ss:$16 sps:$4 sm:$0xff]   ;;  %v17906_v2 = vld [vmem:[%s24111_s2 + $0x88c] ss:$16 sps:$4 sm:$0xff]  }
 0x7b0   :  { %v17905_v41 = vld [vmem:[%s24111_s2 + $0x884] ss:$16 sps:$4 sm:$0xff]   ;;  %v17907_v27 = vld [vmem:[%s24111_s2 + $0x880] ss:$16 sps:$4 sm:$0xff]   ;;  %v17908_v31 = vld [vmem:[%s24111_s2 + $0x888] ss:$16 sps:$4 sm:$0xff]  }
 0x7b1   :  { %11768 = vmatpush1.bf16.msra.mxu0 %v17879_v33  ;;  %11841 = vmatpush1.bf16.msra.mxu1 %v17880_v48  ;;  %v17909_v47 = vld [vmem:[%s24111_s2 + $0x8a4] ss:$16 sps:$4 sm:$0xff]   ;;  %v17912_v43 = vld [vmem:[%s24111_s2 + $0x8a8] ss:$16 sps:$4 sm:$0xff]   ;;  %v17914_v55 = vld [vmem:[%s24111_s2 + $0x8cc] ss:$16 sps:$4 sm:$0xff]  }
 0x7b2   :  { %11769 = vmatprep.subr.bf16.mxu0 %v17881_v45  ;;  %11842 = vmatprep.subr.bf16.mxu1 %v17882_v1  ;;  %v17913_v30 = vld [vmem:[%s24111_s2 + $0x8c4] ss:$16 sps:$4 sm:$0xff]   ;;  %v17915_v33 = vld [vmem:[%s24111_s2 + $0x8c0] ss:$16 sps:$4 sm:$0xff]   ;;  %v17916_v48 = vld [vmem:[%s24111_s2 + $0x8c8] ss:$16 sps:$4 sm:$0xff]  }
 0x7b3   :  { %v17917_v45 = vld [vmem:[%s24111_s2 + $0x8e4] ss:$16 sps:$4 sm:$0xff]   ;;  %v17920_v1 = vld [vmem:[%s24111_s2 + $0x8e8] ss:$16 sps:$4 sm:$0xff]  }
 0x7b5   :  { %11770 = vmatpush1.bf16.msra.mxu0 %v17883_v29  ;;  %11843 = vmatpush1.bf16.msra.mxu1 %v17884_v39  ;;  %v17921_v29 = vld [vmem:[%s24111_s2 + $0x904] ss:$16 sps:$4 sm:$0xff]   ;;  %v17922_v39 = vld [vmem:[%s24111_s2 + $0x90c] ss:$16 sps:$4 sm:$0xff]  }
 0x7b6   :  { %11771 = vmatprep.subr.bf16.mxu0 %v17885_v23  ;;  %11844 = vmatprep.subr.bf16.mxu1 %v17886_v52  ;;  %v17923_v23 = vld [vmem:[%s24111_s2 + $0x900] ss:$16 sps:$4 sm:$0xff]   ;;  %v17924_v52 = vld [vmem:[%s24111_s2 + $0x908] ss:$16 sps:$4 sm:$0xff]  }
 0x7b9   :  { %11772 = vmatpush1.bf16.msra.mxu0 %v17887_v9  ;;  %11845 = vmatpush1.bf16.msra.mxu1 %v17888_v49  ;;  %v17925_v9 = vld [vmem:[%s24111_s2 + $0x924] ss:$16 sps:$4 sm:$0xff]   ;;  %v17926_v49 = vld [vmem:[%s24111_s2 + $0x92c] ss:$16 sps:$4 sm:$0xff]  }
 0x7ba   :  { %11919 = vmatprep.subr.bf16.mxu0 %v17889_v38  ;;  %11992 = vmatprep.subr.bf16.mxu1 %v17890_v21  ;;  %v17927_v38 = vld [vmem:[%s24111_s2 + $0x920] ss:$16 sps:$4 sm:$0xff]   ;;  %v17928_v21 = vld [vmem:[%s24111_s2 + $0x928] ss:$16 sps:$4 sm:$0xff]  }
 0x7bc   :  { %11774 = vmatmul.mubr.bf16.vlgmr.msra.gmra.mrb[144].mxu0 %v21558_v59  ;;  %11847 = vmatmul.mubr.bf16.vlgmr.msra.gmra.mrb[144].mxu1 %v21558_v59  ;;  %v17894_v59 = vld [vmem:[%s24111_s2 + $0x82c] ss:$16 sps:$4 sm:$0xff]  }
 0x7bd   :  { %11783 = vmatprep.mubr.bf16.mxu0 %v21631_v5  ;;  %11856 = vmatprep.mubr.bf16.mxu1 %v21631_v5  ;;  %v17895_v5 = vld [vmem:[%s24111_s2 + $0x820] ss:$16 sps:$4 sm:$0xff]  }
 0x7be   :  { %11920 = vmatpush1.bf16.msra.mxu0 %v17891_v24  ;;  %11993 = vmatpush1.bf16.msra.mxu1 %v17892_v60  ;;  %v17929_v24 = vld [vmem:[%s24111_s2 + $0x944] ss:$16 sps:$4 sm:$0xff]   ;;  %v17930_v60 = vld [vmem:[%s24111_s2 + $0x94c] ss:$16 sps:$4 sm:$0xff]  }
 0x7bf   :  { %11921 = vmatprep.subr.bf16.mxu0 %v17893_v57  ;;  %11994 = vmatprep.subr.bf16.mxu1 %v17894_v59  ;;  %v17931_v57 = vld [vmem:[%s24111_s2 + $0x940] ss:$16 sps:$4 sm:$0xff]   ;;  %v17932_v59 = vld [vmem:[%s24111_s2 + $0x948] ss:$16 sps:$4 sm:$0xff]  }
 0x7c2   :  { %11922 = vmatpush1.bf16.msra.mxu0 %v17895_v5  ;;  %11995 = vmatpush1.bf16.msra.mxu1 %v17896_v10  ;;  %v17933_v5 = vld [vmem:[%s24111_s2 + $0x964] ss:$16 sps:$4 sm:$0xff]   ;;  %v17934_v10 = vld [vmem:[%s24111_s2 + $0x96c] ss:$16 sps:$4 sm:$0xff]  }
 0x7c3   :  { %11923 = vmatprep.subr.bf16.mxu0 %v17897_v40  ;;  %11996 = vmatprep.subr.bf16.mxu1 %v17898_v32  ;;  %v17935_v40 = vld [vmem:[%s24111_s2 + $0x960] ss:$16 sps:$4 sm:$0xff]   ;;  %v17936_v32 = vld [vmem:[%s24111_s2 + $0x968] ss:$16 sps:$4 sm:$0xff]  }
 0x7c4   :  { %11784 = vmatmul.mubr.bf16.gmra.mrb[148].mxu0 %v21628_v28  ;;  %11857 = vmatmul.mubr.bf16.gmra.mrb[148].mxu1 %v21628_v28  ;;  %v17902_v28 = vld [vmem:[%s24111_s2 + $0x86c] ss:$16 sps:$4 sm:$0xff]  }
 0x7c5   :  { %11793 = vmatprep.mubr.bf16.mxu0 %v21700_v58  ;;  %11866 = vmatprep.mubr.bf16.mxu1 %v21700_v58  ;;  %v17903_v58 = vld [vmem:[%s24111_s2 + $0x860] ss:$16 sps:$4 sm:$0xff]  }
 0x7c6   :  { %11924 = vmatpush1.bf16.msra.mxu0 %v17899_v6  ;;  %11997 = vmatpush1.bf16.msra.mxu1 %v17900_v34  ;;  %v17937_v6 = vld [vmem:[%s24111_s2 + $0x984] ss:$16 sps:$4 sm:$0xff]   ;;  %v17938_v34 = vld [vmem:[%s24111_s2 + $0x98c] ss:$16 sps:$4 sm:$0xff]  }
 0x7c7   :  { %11925 = vmatprep.subr.bf16.mxu0 %v17901_v54  ;;  %11998 = vmatprep.subr.bf16.mxu1 %v17902_v28  ;;  %v17939_v54 = vld [vmem:[%s24111_s2 + $0x980] ss:$16 sps:$4 sm:$0xff]   ;;  %v17940_v28 = vld [vmem:[%s24111_s2 + $0x988] ss:$16 sps:$4 sm:$0xff]  }
 0x7ca   :  { %11926 = vmatpush1.bf16.msra.mxu0 %v17903_v58  ;;  %11999 = vmatpush1.bf16.msra.mxu1 %v17904_v0  ;;  %v17941_v58 = vld [vmem:[%s24111_s2 + $0x9a4] ss:$16 sps:$4 sm:$0xff]   ;;  %v17942_v0 = vld [vmem:[%s24111_s2 + $0x9ac] ss:$16 sps:$4 sm:$0xff]  }
 0x7cb   :  { %11927 = vmatprep.subr.bf16.mxu0 %v17905_v41  ;;  %12000 = vmatprep.subr.bf16.mxu1 %v17906_v2  ;;  %v17943_v41 = vld [vmem:[%s24111_s2 + $0x9a0] ss:$16 sps:$4 sm:$0xff]   ;;  %v17944_v2 = vld [vmem:[%s24111_s2 + $0x9a8] ss:$16 sps:$4 sm:$0xff]  }
 0x7cc   :  { %11794 = vmatmul.mubr.bf16.gmra.mrb[152].mxu0 %v21696_v17  ;;  %11867 = vmatmul.mubr.bf16.gmra.mrb[152].mxu1 %v21696_v17  ;;  %v17910_v17 = vld [vmem:[%s24111_s2 + $0x8ac] ss:$16 sps:$4 sm:$0xff]  }
 0x7cd   :  { %11803 = vmatprep.mubr.bf16.mxu0 %v21853_v3  ;;  %11876 = vmatprep.mubr.bf16.mxu1 %v21853_v3  ;;  %v17911_v3 = vld [vmem:[%s24111_s2 + $0x8a0] ss:$16 sps:$4 sm:$0xff]  }
 0x7ce   :  { %11928 = vmatpush1.bf16.msra.mxu0 %v17907_v27  ;;  %12001 = vmatpush1.bf16.msra.mxu1 %v17908_v31  ;;  %v17945_v27 = vld [vmem:[%s24111_s2 + $0x9c4] ss:$16 sps:$4 sm:$0xff]   ;;  %v17946_v31 = vld [vmem:[%s24111_s2 + $0x9cc] ss:$16 sps:$4 sm:$0xff]  }
 0x7cf   :  { %11929 = vmatprep.subr.bf16.mxu0 %v17909_v47  ;;  %12002 = vmatprep.subr.bf16.mxu1 %v17910_v17  ;;  %v12225_v47 = vld [vmem:[%s24113_s3 + $0x80] sm:$0xff]  ;;  %v12226_v17 = vld [vmem:[%s24113_s3 + $0x88] sm:$0xff] }
 0x7d2   :  { %11930 = vmatpush1.bf16.msra.mxu0 %v17911_v3  ;;  %12003 = vmatpush1.bf16.msra.mxu1 %v17912_v43  ;;  %v14483_v3 = vld [vmem:[%s24113_s3 + $0x180] sm:$0xff]  ;;  %v14484_v43 = vld [vmem:[%s24113_s3 + $0x188] sm:$0xff] }
 0x7d3   :  { %11931 = vmatprep.subr.bf16.mxu0 %v17913_v30  ;;  %12004 = vmatprep.subr.bf16.mxu1 %v17914_v55  ;;  %v17947_v30 = vld [vmem:[%s24111_s2 + $0x9c0] ss:$16 sps:$4 sm:$0xff]   ;;  %v17948_v55 = vld [vmem:[%s24111_s2 + $0x9c8] ss:$16 sps:$4 sm:$0xff]  }
 0x7d4   :  { %11804 = vmatmul.mubr.bf16.gmra.mrb[156].mxu0 %v21845_v4  ;;  %11877 = vmatmul.mubr.bf16.gmra.mrb[156].mxu1 %v21845_v4  ;;  %v17918_v4 = vld [vmem:[%s24111_s2 + $0x8ec] ss:$16 sps:$4 sm:$0xff]  }
 0x7d5   :  { %11951 = vmatprep.mubr.bf16.mxu0 %v21583_v7  ;;  %12024 = vmatprep.mubr.bf16.mxu1 %v21583_v7  ;;  %v17919_v7 = vld [vmem:[%s24111_s2 + $0x8e0] ss:$16 sps:$4 sm:$0xff]  }
 0x7d6   :  { %11932 = vmatpush1.bf16.msra.mxu0 %v17915_v33  ;;  %12005 = vmatpush1.bf16.msra.mxu1 %v17916_v48  ;;  %v17949_v33 = vld [vmem:[%s24111_s2 + $0x9e4] ss:$16 sps:$4 sm:$0xff]   ;;  %v17950_v48 = vld [vmem:[%s24111_s2 + $0x9ec] ss:$16 sps:$4 sm:$0xff]  }
 0x7d7   :  { %11933 = vmatprep.subr.bf16.mxu0 %v17917_v45  ;;  %12006 = vmatprep.subr.bf16.mxu1 %v17918_v4  ;;  %v14768_v45 = vpack.c.bf16 %v12226_v17, %v12225_v47  ;;  %v12209_v4 = vld [vmem:[%s24113_s3] sm:$0xff]  ;;  %v14472_v47 = vld [vmem:[%s24113_s3 + $0x128] sm:$0xff]  ;;  %v12232_v17 = vld [vmem:[%s24113_s3 + $0xb8] sm:$0xff] }
 0x7da   :  { %11934 = vmatpush1.bf16.msra.mxu0 %v17919_v7  ;;  %12007 = vmatpush1.bf16.msra.mxu1 %v17920_v1  ;;  %v12210_v7 = vld [vmem:[%s24113_s3 + $0x8] sm:$0xff]  ;;  %v14736_v1 = vpack.c.bf16 %v14484_v43, %v14483_v3  ;;  %v14489_v3 = vld [vmem:[%s24113_s3 + $0x1b0] sm:$0xff]  ;;  %v14490_v43 = vld [vmem:[%s24113_s3 + $0x1b8] sm:$0xff] }
 0x7db   :  { %11935 = vmatprep.subr.bf16.mxu0 %v17921_v29  ;;  %12008 = vmatprep.subr.bf16.mxu1 %v17922_v39  ;;  %v12227_v29 = vld [vmem:[%s24113_s3 + $0x90] sm:$0xff]  ;;  %v14467_v39 = vld [vmem:[%s24113_s3 + $0x100] sm:$0xff] }
 0x7de   :  { %11936 = vmatpush1.bf16.msra.mxu0 %v17923_v23  ;;  %12009 = vmatpush1.bf16.msra.mxu1 %v17924_v52  ;;  %v14468_v23 = vld [vmem:[%s24113_s3 + $0x108] sm:$0xff]  ;;  %v12228_v52 = vld [vmem:[%s24113_s3 + $0x98] sm:$0xff] }
 0x7df   :  { %11937 = vmatprep.subr.bf16.mxu0 %v17925_v9  ;;  %12010 = vmatprep.subr.bf16.mxu1 %v17926_v49  ;;  %v14485_v9 = vld [vmem:[%s24113_s3 + $0x190] sm:$0xff]  ;;  %v14486_v49 = vld [vmem:[%s24113_s3 + $0x198] sm:$0xff] }
 0x7e2   :  { %11938 = vmatpush1.bf16.msra.mxu0 %v17927_v38  ;;  %12011 = vmatpush1.bf16.msra.mxu1 %v17928_v21  ;;  %v17951_v38 = vld [vmem:[%s24111_s2 + $0x9e0] ss:$16 sps:$4 sm:$0xff]   ;;  %v17952_v21 = vld [vmem:[%s24111_s2 + $0x9e8] ss:$16 sps:$4 sm:$0xff]  }
 0x7e3   :  { %11939 = vmatprep.subr.bf16.mxu0 %v17929_v24  ;;  %12012 = vmatprep.subr.bf16.mxu1 %v17930_v60  ;;  %v14770_v24 = vpack.c.bf16 %v12210_v7, %v12209_v4  ;;  %v12211_v60 = vld [vmem:[%s24113_s3 + $0x10] sm:$0xff]  ;;  %v14748_v4 = vpack.c.bf16 %v14490_v43, %v14489_v3 }
 0x7e4   :  { %v14473_v7 = vld [vmem:[%s24113_s3 + $0x130] sm:$0xff] }
 0x7e5   :  { %v12223_v43 = vld [vmem:[%s24113_s3 + $0x70] sm:$0xff] }
 0x7e6   :  { %11940 = vmatpush1.bf16.msra.mxu0 %v17931_v57  ;;  %12013 = vmatpush1.bf16.msra.mxu1 %v17932_v59  ;;  %v12212_v57 = vld [vmem:[%s24113_s3 + $0x18] sm:$0xff]  ;;  %v14738_v59 = vpack.c.bf16 %v14468_v23, %v14467_v39  ;;  %v12234_v39 = vld [vmem:[%s24113_s3 + $0xc8] sm:$0xff] }
 0x7e7   :  { %11941 = vmatprep.subr.bf16.mxu0 %v17933_v5  ;;  %12014 = vmatprep.subr.bf16.mxu1 %v17934_v10  ;;  %v14772_v5 = vpack.c.bf16 %v12228_v52, %v12227_v29  ;;  %v12229_v10 = vld [vmem:[%s24113_s3 + $0xa0] sm:$0xff] }
 0x7e8   :  { %v12233_v29 = vld [vmem:[%s24113_s3 + $0xc0] sm:$0xff] }
 0x7ea   :  { %11942 = vmatpush1.bf16.msra.mxu0 %v17935_v40  ;;  %12015 = vmatpush1.bf16.msra.mxu1 %v17936_v32  ;;  %v14740_v40 = vpack.c.bf16 %v14486_v49, %v14485_v9  ;;  %v14469_v32 = vld [vmem:[%s24113_s3 + $0x110] sm:$0xff]  ;;  %v14784_v9 = vpack.c.bf16 %v12234_v39, %v12233_v29  ;;  %v12218_v49 = vld [vmem:[%s24113_s3 + $0x48] sm:$0xff] }
 0x7eb   :  { %11943 = vmatprep.subr.bf16.mxu0 %v17937_v6  ;;  %12016 = vmatprep.subr.bf16.mxu1 %v17938_v34  ;;  %v14470_v6 = vld [vmem:[%s24113_s3 + $0x118] sm:$0xff]  ;;  %v12230_v34 = vld [vmem:[%s24113_s3 + $0xa8] sm:$0xff] }
 0x7ec   :  { %v14480_v29 = vld [vmem:[%s24113_s3 + $0x168] sm:$0xff] }
 0x7ee   :  { %11944 = vmatpush1.bf16.msra.mxu0 %v17939_v54  ;;  %12017 = vmatpush1.bf16.msra.mxu1 %v17940_v28  ;;  %v14487_v54 = vld [vmem:[%s24113_s3 + $0x1a0] sm:$0xff]  ;;  %v14488_v28 = vld [vmem:[%s24113_s3 + $0x1a8] sm:$0xff] }
 0x7ef   :  { %11945 = vmatprep.subr.bf16.mxu0 %v17941_v58  ;;  %12018 = vmatprep.subr.bf16.mxu1 %v17942_v0  ;;  %v14774_v58 = vpack.c.bf16 %v12212_v57, %v12211_v60  ;;  %v12214_v0 = vld [vmem:[%s24113_s3 + $0x28] sm:$0xff]  ;;  %v12219_v60 = vld [vmem:[%s24113_s3 + $0x50] sm:$0xff]  ;;  %v12220_v57 = vld [vmem:[%s24113_s3 + $0x58] sm:$0xff] }
 0x7f2   :  { %11946 = vmatpush1.bf16.msra.mxu0 %v17943_v41  ;;  %12019 = vmatpush1.bf16.msra.mxu1 %v17944_v2  ;;  %v14742_v41 = vpack.c.bf16 %v14470_v6, %v14469_v32  ;;  %v14776_v2 = vpack.c.bf16 %v12230_v34, %v12229_v10  ;;  %v12237_v10 = vld [vmem:[%s24113_s3 + $0xe0] sm:$0xff]  ;;  %v12238_v32 = vld [vmem:[%s24113_s3 + $0xe8] sm:$0xff] }
 0x7f3   :  { %11947 = vmatprep.subr.bf16.mxu0 %v17945_v27  ;;  %12020 = vmatprep.subr.bf16.mxu1 %v17946_v31  ;;  %v12231_v27 = vld [vmem:[%s24113_s3 + $0xb0] sm:$0xff]  ;;  %v14471_v31 = vld [vmem:[%s24113_s3 + $0x120] sm:$0xff]  ;;  %v14476_v6 = vld [vmem:[%s24113_s3 + $0x148] sm:$0xff]  ;;  %v14792_v34 = vpack.c.bf16 %v12238_v32, %v12237_v10 }
 0x7f6   :  { %11948 = vmatpush1.bf16.msra.mxu0 %v17947_v30  ;;  %12021 = vmatpush1.bf16.msra.mxu1 %v17948_v55  ;;  %v12215_v55 = vld [vmem:[%s24113_s3 + $0x30] sm:$0xff] }
 0x7f7   :  { %11949 = vmatprep.subr.bf16.mxu0 %v17949_v33  ;;  %12022 = vmatprep.subr.bf16.mxu1 %v17950_v48  ;;  %v14746_v33 = vpack.c.bf16 %v14472_v47, %v14471_v31  ;;  %v14780_v48 = vpack.c.bf16 %v12232_v17, %v12231_v27  ;;  %v14477_v31 = vld [vmem:[%s24113_s3 + $0x150] sm:$0xff]  ;;  %v14478_v47 = vld [vmem:[%s24113_s3 + $0x158] sm:$0xff] }
 0x7f8   :  { %v14758_v3 = vpack.c.bf16 %v14478_v47, %v14477_v31  ;;  %v14531_v47 = vld [vmem:[%s24113_s3 + $0x300] sm:$0xff] }
 0x7fa   :  { %11950 = vmatpush1.bf16.msra.mxu0 %v17951_v38  ;;  %12023 = vmatpush1.bf16.msra.mxu1 %v17952_v21  ;;  %v12235_v38 = vld [vmem:[%s24113_s3 + $0xd0] sm:$0xff] }
 0x7fb   :  { %14769 = vmatprep.subr.bf16.mxu1 %v14768_v45  ;;  %14737 = vmatprep.subr.bf16.mxu0 %v14736_v1  ;;  %v12216_v45 = vld [vmem:[%s24113_s3 + $0x38] sm:$0xff] }
 0x7fc   :  { %v14474_v1 = vld [vmem:[%s24113_s3 + $0x138] sm:$0xff]  ;;  %v14782_v23 = vpack.c.bf16 %v12216_v45, %v12215_v55  ;;  %v14547_v45 = vld [vmem:[%s24113_s3 + $0x380] sm:$0xff] }
 0x7fd   :  { %11952 = vmatmul.mubr.bf16.vlgmr.msra.gmra.mrb[144].mxu0 %v21580_v56  ;;  %12025 = vmatmul.mubr.bf16.vlgmr.msra.gmra.mrb[144].mxu1 %v21580_v56  ;;  %v12213_v56 = vld [vmem:[%s24113_s3 + $0x20] sm:$0xff]  ;;  %v14750_v52 = vpack.c.bf16 %v14474_v1, %v14473_v7  ;;  %v14548_v7 = vld [vmem:[%s24113_s3 + $0x388] sm:$0xff] }
 0x7fe   :  { %11961 = vmatprep.mubr.bf16.mxu0 %v21652_v42  ;;  %12034 = vmatprep.mubr.bf16.mxu1 %v21652_v42  ;;  %v14744_v42 = vpack.c.bf16 %v14488_v28, %v14487_v54  ;;  %v14778_v30 = vpack.c.bf16 %v12214_v0, %v12213_v56  ;;  %v12221_v28 = vld [vmem:[%s24113_s3 + $0x60] sm:$0xff]  ;;  %v14493_v0 = vld [vmem:[%s24113_s3 + $0x1d0] sm:$0xff]  ;;  %v14832_v39 = vpack.c.bf16 %v14548_v7, %v14547_v45  ;;  %v23752_v45 = vld [vmem:[%s24113_s3 + $0x318] sm:$0xff] }
 0x7ff   :  { %14771 = vmatpush3.bf16.msra.mxu1 %v14770_v24  ;;  %14739 = vmatpush3.bf16.msra.mxu0 %v14738_v59  ;;  %v14790_v59 = vpack.c.bf16 %v12220_v57, %v12219_v60  ;;  %v14479_v1 = vld [vmem:[%s24113_s3 + $0x160] sm:$0xff] }
 0x800   :  { %14773 = vmatprep.subr.bf16.mxu1 %v14772_v5  ;;  %14741 = vmatprep.subr.bf16.mxu0 %v14740_v40  ;;  %v14491_v5 = vld [vmem:[%s24113_s3 + $0x1c0] sm:$0xff] }
 0x803   :  { %14775 = vmatpush3.bf16.msra.mxu1 %v14774_v58  ;;  %14743 = vmatpush3.bf16.msra.mxu0 %v14742_v41  ;;  %v12222_v58 = vld [vmem:[%s24113_s3 + $0x68] sm:$0xff]  ;;  %v14494_v41 = vld [vmem:[%s24113_s3 + $0x1d8] sm:$0xff] }
 0x804   :  { %14777 = vmatprep.subr.bf16.mxu1 %v14776_v2  ;;  %14745 = vmatprep.subr.bf16.mxu0 %v14744_v42  ;;  %v14794_v56 = vpack.c.bf16 %v12222_v58, %v12221_v28  ;;  %v12239_v2 = vld [vmem:[%s24113_s3 + $0xf0] sm:$0xff]  ;;  %v14756_v27 = vpack.c.bf16 %v14494_v41, %v14493_v0  ;;  %v12240_v42 = vld [vmem:[%s24113_s3 + $0xf8] sm:$0xff] }
 0x805   :  { %11962 = vmatmul.mubr.bf16.gmra.mrb[148].mxu0 %v21648_v53  ;;  %12035 = vmatmul.mubr.bf16.gmra.mrb[148].mxu1 %v21648_v53  ;;  %v12217_v53 = vld [vmem:[%s24113_s3 + $0x40] sm:$0xff]  ;;  %v14796_v17 = vpack.c.bf16 %v12240_v42, %v12239_v2 }
 0x806   :  { %11971 = vmatprep.mubr.bf16.mxu0 %v21723_v50  ;;  %12044 = vmatprep.mubr.bf16.mxu1 %v21723_v50  ;;  %v12236_v50 = vld [vmem:[%s24113_s3 + $0xd8] sm:$0xff]  ;;  %v14786_v21 = vpack.c.bf16 %v12218_v49, %v12217_v53  ;;  %v14481_v49 = vld [vmem:[%s24113_s3 + $0x170] sm:$0xff] }
 0x807   :  { %14779 = vmatpush3.bf16.msra.mxu1 %v14778_v30  ;;  %14747 = vmatpush3.bf16.msra.mxu0 %v14746_v33  ;;  %v14788_v24 = vpack.c.bf16 %v12236_v50, %v12235_v38  ;;  %v12224_v30 = vld [vmem:[%s24113_s3 + $0x78] sm:$0xff]  ;;  %v14495_v33 = vld [vmem:[%s24113_s3 + $0x1e0] sm:$0xff] }
 0x808   :  { %14781 = vmatprep.subr.bf16.mxu1 %v14780_v48  ;;  %14749 = vmatprep.subr.bf16.mxu0 %v14748_v4  ;;  %v14798_v55 = vpack.c.bf16 %v12224_v30, %v12223_v43  ;;  %v14496_v48 = vld [vmem:[%s24113_s3 + $0x1e8] sm:$0xff]  ;;  %v14482_v38 = vld [vmem:[%s24113_s3 + $0x178] sm:$0xff] }
 0x809   :  { %v14760_v4 = vpack.c.bf16 %v14496_v48, %v14495_v33  ;;  %v14766_v50 = vpack.c.bf16 %v14482_v38, %v14481_v49  ;;  %v14550_v33 = vld [vmem:[%s24113_s3 + $0x398] sm:$0xff]  ;;  %v23747_v48 = vld [vmem:[%s24113_s3 + $0x310] sm:$0xff]  ;;  %v23773_v49 = vld [vmem:[%s24113_s3 + $0x208] sm:$0xff] }
 0x80b   :  { %14783 = vmatpush3.bf16.msra.mxu1 %v14782_v23  ;;  %14751 = vmatpush3.bf16.msra.mxu0 %v14750_v52  ;;  %v14762_v23 = vpack.c.bf16 %v14480_v29, %v14479_v1  ;;  %v14497_v52 = vld [vmem:[%s24113_s3 + $0x1f0] sm:$0xff]  ;;  %v23757_v29 = vld [vmem:[%s24113_s3 + $0x3a0] sm:$0xff] }
 0x80c   :  { %14785 = vmatprep.subr.bf16.mxu1 %v14784_v9  ;;  %v14498_v9 = vld [vmem:[%s24113_s3 + $0x1f8] sm:$0xff] }
 0x80d   :  { %11972 = vmatmul.mubr.bf16.gmra.mrb[152].mxu0 %v21716_v63  ;;  %12045 = vmatmul.mubr.bf16.gmra.mrb[152].mxu1 %v21716_v63  ;;  %v14492_v63 = vld [vmem:[%s24113_s3 + $0x1c8] sm:$0xff]  ;;  %v14764_v53 = vpack.c.bf16 %v14498_v9, %v14497_v52 }
 0x80e   :  { %11981 = vmatprep.mubr.bf16.mxu0 %v24170_v12  ;;  %12054 = vmatprep.mubr.bf16.mxu1 %v24170_v12  ;;  %v14752_v40 = vpack.c.bf16 %v14492_v63, %v14491_v5 }
 0x80f   :  { %14787 = vmatpush3.bf16.msra.mxu1 %v14786_v21  ;;  %v14515_v21 = vld [vmem:[%s24113_s3 + $0x280] sm:$0xff] }
 0x810   :  { %14789 = vmatprep.subr.bf16.mxu1 %v14788_v24  ;;  %14753 = vmatprep.subr.bf16.mxu0 %v14752_v40  ;;  %v14516_v24 = vld [vmem:[%s24113_s3 + $0x288] sm:$0xff] }
 0x811   :  { %v14800_v60 = vpack.c.bf16 %v14516_v24, %v14515_v21 }
 0x813   :  { %14791 = vmatpush3.bf16.msra.mxu1 %v14790_v59 }
 0x814   :  { %14793 = vmatprep.subr.bf16.mxu1 %v14792_v34 }
 0x815   :  { %11982 = vmatmul.mubr.bf16.gmra.mrb[156].mxu0 %v24170_v12  ;;  %12055 = vmatmul.mubr.bf16.gmra.mrb[156].mxu1 %v24170_v12  ;;  %v14475_v12 = vld [vmem:[%s24113_s3 + $0x140] sm:$0xff] }
 0x816   :  { %v14754_v54 = vpack.c.bf16 %v14476_v6, %v14475_v12 }
 0x817   :  { %14795 = vmatpush3.bf16.msra.mxu1 %v14794_v56 }
 0x818   :  { %14755 = vmatpush3.bf16.msra.mxu0 %v14754_v54  ;;  %14797 = vmatprep.subr.bf16.mxu1 %v14796_v17  ;;  %v14532_v17 = vld [vmem:[%s24113_s3 + $0x308] sm:$0xff] }
 0x819   :  { %14757 = vmatprep.subr.bf16.mxu0 %v14756_v27  ;;  %v14834_v9 = vpack.c.bf16 %v14532_v17, %v14531_v47  ;;  %v23818_v47 = vld [vmem:[%s24113_s3 + $0x3b8] sm:$0xff] }
 0x81b   :  { %14799 = vmatpush3.bf16.msra.mxu1 %v14798_v55 }
 0x81c   :  { %14759 = vmatpush3.bf16.msra.mxu0 %v14758_v3  ;;  %14833 = vmatprep.subr.bf16.mxu1 %v14832_v39  ;;  %v14549_v3 = vld [vmem:[%s24113_s3 + $0x390] sm:$0xff]  ;;  %v23762_v39 = vld [vmem:[%s24113_s3 + $0x3a8] sm:$0xff] }
 0x81d   :  { %14761 = vmatprep.subr.bf16.mxu0 %v14760_v4 }
 0x820   :  { %14763 = vmatpush3.bf16.msra.mxu0 %v14762_v23 }
 0x821   :  { %14765 = vmatprep.subr.bf16.mxu0 %v14764_v53  ;;  %v23768_v53 = vld [vmem:[%s24113_s3 + $0x200] sm:$0xff] }
 0x824   :  { %14767 = vmatpush3.bf16.msra.mxu0 %v14766_v50 }
 0x825   :  { %14801 = vmatprep.subr.bf16.mxu0 %v14800_v60  ;;  %v14836_v60 = vpack.c.bf16 %v14550_v33, %v14549_v3  ;;  %v23830_v33 = vld [vmem:[%s24113_s3 + $0x218] sm:$0xff] }
 0x8d0   :  { %v11953_v57 = vpop.f32.mrb[144].mxu0  ;;  %v12026_v59 = vpop.f32.mrb[144].mxu1 }
 0x8d1   :  { %v12097_v5 = vadd.f32 %v11953_v57, %v23062_v18  ;;  %v12099_v63 = vadd.f32 %v12026_v59, %v23066_v13  ;;  %v11955_v10 = vpop.f32.mrb[145].mxu0  ;;  %v12028_v40 = vpop.f32.mrb[145].mxu1 }
 0x8d2   :  { %v12098_v32 = vadd.f32 %v11955_v10, %v23076_v61  ;;  %v12100_v12 = vadd.f32 %v12028_v40, %v23080_v26  ;;  %v11957_v6 = vpop.f32.mrb[146].mxu0  ;;  %v12030_v34 = vpop.f32.mrb[146].mxu1  ;;  %v14840_v40 = vpack.c.bf16 %v23762_v39, %v23757_v29  ;;  %v23842_v29 = vld [vmem:[%s24113_s3 + $0x338] sm:$0xff]  ;;  %v23847_v39 = vld [vmem:[%s24113_s3 + $0x2a0] sm:$0xff] }
 0x8d3   :  { %v12129_v54 = vmax.f32 %v12097_v5, 0.0  ;;  %v12131_v28 = vmax.f32 %v12099_v63, 0.0  ;;  %v12101_v58 = vadd.f32 %v11957_v6, %v23062_v18  ;;  %v12103_v56 = vadd.f32 %v12030_v34, %v23066_v13  ;;  %v11959_v0 = vpop.f32.mrb[147].mxu0  ;;  %v12032_v41 = vpop.f32.mrb[147].mxu1 }
 0x8d4   :  { %v12130_v2 = vmax.f32 %v12098_v32, 0.0  ;;  %v12132_v27 = vmax.f32 %v12100_v12, 0.0  ;;  %v12102_v42 = vadd.f32 %v11959_v0, %v23076_v61  ;;  %v12104_v31 = vadd.f32 %v12032_v41, %v23080_v26  ;;  %v23786_v32 = vld [vmem:[%s24113_s3 + $0x320] sm:$0xff] }
 0x8d5   :  { %v12177_v43 = vmax.f32 %v12129_v54, %v12131_v28  ;;  %v12133_v30 = vmax.f32 %v12101_v58, 0.0  ;;  %v12135_v55 = vmax.f32 %v12103_v56, 0.0  ;;  %v23796_v28 = vld [vmem:[%s24113_s3 + $0x328] sm:$0xff]  ;;  %v23801_v58 = vld [vmem:[%s24113_s3 + $0x290] sm:$0xff]  ;;  %v23806_v56 = vld [vmem:[%s24113_s3 + $0x298] sm:$0xff] }
 0x8d6   :  { %v12178_v4 = vmax.f32 %v12130_v2, %v12132_v27  ;;  %v12134_v7 = vmax.f32 %v12102_v42, 0.0  ;;  %v12136_v1 = vmax.f32 %v12104_v31, 0.0  ;;  %v23813_v31 = vld [vmem:[%s24113_s3 + $0x3b0] sm:$0xff] }
 0x8d7   :  { %v12193_v23 = vmax.f32 %v23112_v16, %v12177_v43  ;;  %v12179_v52 = vmax.f32 %v12133_v30, %v12135_v55  ;;  %v14838_v16 = vpack.c.bf16 %v23752_v45, %v23747_v48  ;;  %v23825_v55 = vld [vmem:[%s24113_s3 + $0x210] sm:$0xff] }
 0x8d8   :  { %v12180_v38 = vmax.f32 %v12134_v7, %v12136_v1  ;;  %v11963_v50 = vpop.f32.mrb[148].mxu0  ;;  %v12036_v21 = vpop.f32.mrb[148].mxu1  ;;  %v12194_v24 = vmax.f32 %v23114_v37, %v12178_v4  ;;  %v23835_v48 = vld [vmem:[%s24113_s3 + $0x330] sm:$0xff]  ;;  %v14842_v1 = vpack.c.bf16 %v23796_v28, %v23786_v32  ;;  %v23881_v32 = vld [vmem:[%s24113_s3 + $0x228] sm:$0xff] }
 0x8d9   :  { %v12105_v57 = vadd.f32 %v11963_v50, %v23062_v18  ;;  %v12107_v59 = vadd.f32 %v12036_v21, %v23066_v13  ;;  %v11965_v5 = vpop.f32.mrb[149].mxu0  ;;  %v12038_v63 = vpop.f32.mrb[149].mxu1  ;;  %v12195_v10 = vmax.f32 %v23122_v8, %v12179_v52  ;;  %v14802_v8 = vpack.c.bf16 %v23773_v49, %v23768_v53  ;;  %v23859_v21 = vld [vmem:[%s24113_s3 + $0x3c0] sm:$0xff] }
 0x8da   :  { %v12106_v37 = vadd.f32 %v11965_v5, %v23076_v61  ;;  %v12108_v12 = vadd.f32 %v12038_v63, %v23080_v26  ;;  %v11967_v6 = vpop.f32.mrb[150].mxu0  ;;  %v12040_v34 = vpop.f32.mrb[150].mxu1  ;;  %12413 = vmatprep.mubr.f32.mxu1 %v12194_v24  ;;  %v12196_v54 = vmax.f32 %v23130_v14, %v12180_v38  ;;  %v14804_v50 = vpack.c.bf16 %v23806_v56, %v23801_v58  ;;  %v23864_v24 = vld [vmem:[%s24113_s3 + $0x3c8] sm:$0xff]  ;;  %v23876_v63 = vld [vmem:[%s24113_s3 + $0x220] sm:$0xff] }
 0x8db   :  { %v12137_v0 = vmax.f32 %v12105_v57, 0.0  ;;  %v12139_v14 = vmax.f32 %v12107_v59, 0.0  ;;  %v12109_v41 = vadd.f32 %v11967_v6, %v23062_v18  ;;  %v12111_v2 = vadd.f32 %v12040_v34, %v23066_v13  ;;  %v11969_v27 = vpop.f32.mrb[151].mxu0  ;;  %v12042_v42 = vpop.f32.mrb[151].mxu1  ;;  %12414 = vmatmul.mubr.f32.vlgmr.msra.gmra.mrb[160].mxu1 %v12193_v23  ;;  %v23852_v23 = vld [vmem:[%s24113_s3 + $0x2a8] sm:$0xff] }
 0x8dc   :  { %v12138_v17 = vmax.f32 %v12106_v37, 0.0  ;;  %v12140_v3 = vmax.f32 %v12108_v12, 0.0  ;;  %v12110_v43 = vadd.f32 %v11969_v27, %v23076_v61  ;;  %v12112_v30 = vadd.f32 %v12042_v42, %v23080_v26  ;;  %14835 = vmatpush3.bf16.msra.mxu1 %v14834_v9  ;;  %12418 = vmatprep.mubr.f32.mxu1 %v12196_v54 }
 0x8dd   :  { %v12181_v45 = vmax.f32 %v12137_v0, %v12139_v14  ;;  %v12141_v4 = vmax.f32 %v12109_v41, 0.0  ;;  %v12143_v7 = vmax.f32 %v12111_v2, 0.0  ;;  %14837 = vmatprep.subr.bf16.mxu1 %v14836_v60  ;;  %v14844_v59 = vpack.c.bf16 %v23818_v47, %v23813_v31  ;;  %v23912_v31 = vld [vmem:[%s24113_s3 + $0x2b0] sm:$0xff] }
 0x8de   :  { %v12182_v52 = vmax.f32 %v12138_v17, %v12140_v3  ;;  %v12142_v9 = vmax.f32 %v12110_v43, 0.0  ;;  %v12144_v38 = vmax.f32 %v12112_v30, 0.0  ;;  %v14806_v5 = vpack.c.bf16 %v23830_v33, %v23825_v55 }
 0x8df   :  { %v12197_v60 = vmax.f32 %v23156_v11, %v12181_v45  ;;  %v23867_v57 = vmax.f32 %v12141_v4, %v12143_v7  ;;  %12419 = vmatmul.mubr.f32.gmra.mrb[162].mxu1 %v12195_v10  ;;  %v14846_v6 = vpack.c.bf16 %v23842_v29, %v23835_v48  ;;  %v14808_v34 = vpack.c.bf16 %v23852_v23, %v23847_v39  ;;  %v23919_v48 = vld [vmem:[%s24113_s3 + $0x2b8] sm:$0xff]  ;;  %v23924_v45 = vld [vmem:[%s24113_s3 + $0x3d0] sm:$0xff]  ;;  %v14560_v39 = vld [vmem:[%s24113_s3 + $0x3e8] sm:$0xff] }
 0x8e0   :  { %v12184_v11 = vmax.f32 %v12142_v9, %v12144_v38  ;;  %14839 = vmatpush3.bf16.msra.mxu1 %v14838_v16  ;;  %v11973_v37 = vpop.f32.mrb[152].mxu0  ;;  %v12046_v10 = vpop.f32.mrb[152].mxu1  ;;  %v12198_v12 = vmax.f32 %v23158_v19, %v12182_v52  ;;  %v14848_v0 = vpack.c.bf16 %v23864_v24, %v23859_v21  ;;  %v14810_v42 = vpack.c.bf16 %v23881_v32, %v23876_v63  ;;  %v23934_v9 = vld [vmem:[%s24113_s3 + $0x3d8] sm:$0xff]  ;;  %v23939_v38 = vld [vmem:[%s24113_s3 + $0x230] sm:$0xff]  ;;  %v14544_v63 = vld [vmem:[%s24113_s3 + $0x368] sm:$0xff] }
 0x8e1   :  { %v12113_v54 = vadd.f32 %v11973_v37, %v23062_v18  ;;  %v12115_v28 = vadd.f32 %v12046_v10, %v23066_v13  ;;  %v11975_v58 = vpop.f32.mrb[153].mxu0  ;;  %v12048_v56 = vpop.f32.mrb[153].mxu1  ;;  %14841 = vmatprep.subr.bf16.mxu1 %v14840_v40  ;;  %v12199_v16 = vmax.f32 %v23166_v15, %v23867_v57  ;;  %v23902_v40 = vld [vmem:[%s24113_s3 + $0x340] sm:$0xff]  ;;  %v23907_v15 = vld [vmem:[%s24113_s3 + $0x348] sm:$0xff]  ;;  %v23944_v21 = vld [vmem:[%s24113_s3 + $0x238] sm:$0xff] }
 0x8e2   :  { %v12114_v19 = vadd.f32 %v11975_v58, %v23076_v61  ;;  %v12116_v14 = vadd.f32 %v12048_v56, %v23080_v26  ;;  %v11977_v41 = vpop.f32.mrb[154].mxu0  ;;  %v12050_v2 = vpop.f32.mrb[154].mxu1  ;;  %12338 = vmatprep.mubr.f32.mxu0 %v12198_v12  ;;  %v12200_v27 = vmax.f32 %v23174_v22, %v12184_v11  ;;  %v23973_v58 = vld [vmem:[%s24113_s3 + $0x2c0] sm:$0xff]  ;;  %v14525_v32 = vld [vmem:[%s24113_s3 + $0x2d0] sm:$0xff] }
 0x8e3   :  { %v12145_v47 = vmax.f32 %v12113_v54, 0.0  ;;  %v12147_v22 = vmax.f32 %v12115_v28, 0.0  ;;  %v12117_v17 = vadd.f32 %v11977_v41, %v23062_v18  ;;  %v12119_v3 = vadd.f32 %v12050_v2, %v23066_v13  ;;  %v11979_v43 = vpop.f32.mrb[155].mxu0  ;;  %v12052_v30 = vpop.f32.mrb[155].mxu1  ;;  %12339 = vmatmul.mubr.f32.vlgmr.msra.gmra.mrb[160].mxu0 %v12197_v60  ;;  %v23958_v60 = vld [vmem:[%s24113_s3 + $0x358] sm:$0xff] }
 0x8e4   :  { %v12146_v4 = vmax.f32 %v12114_v19, 0.0  ;;  %v12148_v7 = vmax.f32 %v12116_v14, 0.0  ;;  %v12118_v29 = vadd.f32 %v11979_v43, %v23076_v61  ;;  %v12120_v52 = vadd.f32 %v12052_v30, %v23080_v26  ;;  %14803 = vmatpush3.bf16.msra.mxu0 %v14802_v8  ;;  %14843 = vmatpush3.bf16.msra.mxu1 %v14842_v1  ;;  %v23953_v1 = vld [vmem:[%s24113_s3 + $0x350] sm:$0xff] }
 0x8e5   :  { %v23946_v24 = vmax.f32 %v12145_v47, %v12147_v22  ;;  %v12149_v53 = vmax.f32 %v12117_v17, 0.0  ;;  %v12151_v49 = vmax.f32 %v12119_v3, 0.0  ;;  %12343 = vmatprep.mubr.f32.mxu0 %v12200_v27  ;;  %14805 = vmatprep.subr.bf16.mxu0 %v14804_v50  ;;  %v14850_v8 = vpack.c.bf16 %v23907_v15, %v23902_v40  ;;  %v14559_v47 = vld [vmem:[%s24113_s3 + $0x3e0] sm:$0xff] }
 0x8e6   :  { %v12186_v57 = vmax.f32 %v12146_v4, %v12148_v7  ;;  %v12150_v11 = vmax.f32 %v12118_v29, 0.0  ;;  %v12152_v37 = vmax.f32 %v12120_v52, 0.0  ;;  %14845 = vmatprep.subr.bf16.mxu1 %v14844_v59  ;;  %v14812_v50 = vpack.c.bf16 %v23919_v48, %v23912_v31  ;;  %v14524_v59 = vld [vmem:[%s24113_s3 + $0x2c8] sm:$0xff]  ;;  %v14507_v7 = vld [vmem:[%s24113_s3 + $0x240] sm:$0xff] }
 0x8e7   :  { %v12201_v10 = vmax.f32 %v23196_v25, %v23946_v24  ;;  %v23964_v12 = vmax.f32 %v12149_v53, %v12151_v49  ;;  %12344 = vmatmul.mubr.f32.gmra.mrb[162].mxu0 %v12199_v16  ;;  %v14852_v54 = vpack.c.bf16 %v23934_v9, %v23924_v45  ;;  %v14814_v28 = vpack.c.bf16 %v23944_v21, %v23939_v38  ;;  %v14526_v21 = vld [vmem:[%s24113_s3 + $0x2d8] sm:$0xff]  ;;  %v14561_v53 = vld [vmem:[%s24113_s3 + $0x3f0] sm:$0xff] }
 0x8e8   :  { %v23978_v56 = vmax.f32 %v12150_v11, %v12152_v37  ;;  %14807 = vmatpush3.bf16.msra.mxu0 %v14806_v5  ;;  %14847 = vmatpush3.bf16.msra.mxu1 %v14846_v6  ;;  %v11983_v16 = vpop.f32.mrb[156].mxu0  ;;  %v12056_v19 = vpop.f32.mrb[156].mxu1  ;;  %v12202_v14 = vmax.f32 %v23198_v51, %v12186_v57  ;;  %v14854_v41 = vpack.c.bf16 %v23958_v60, %v23953_v1  ;;  %v14562_v49 = vld [vmem:[%s24113_s3 + $0x3f8] sm:$0xff]  ;;  %v12657_v25 = vld [vmem:[%s24114_s7 + $0x10] sm:$0xff] }
 0x8e9   :  { %v12121_v2 = vadd.f32 %v11983_v16, %v23062_v18  ;;  %v12123_v27 = vadd.f32 %v12056_v19, %v23066_v13  ;;  %v11985_v40 = vpop.f32.mrb[157].mxu0  ;;  %v12058_v15 = vpop.f32.mrb[157].mxu1  ;;  %14809 = vmatprep.subr.bf16.mxu0 %v14808_v34  ;;  %14849 = vmatprep.subr.bf16.mxu1 %v14848_v0  ;;  %v12203_v55 = vmax.f32 %v23206_v44, %v23964_v12  ;;  %v14527_v16 = vld [vmem:[%s24113_s3 + $0x2e0] sm:$0xff]  ;;  %v14528_v19 = vld [vmem:[%s24113_s3 + $0x2e8] sm:$0xff]  ;;  %v12658_v44 = vld [vmem:[%s24114_s7 + $0x18] sm:$0xff] }
 0x8ea   :  { %v12122_v33 = vadd.f32 %v11985_v40, %v23076_v61  ;;  %v12124_v51 = vadd.f32 %v12058_v15, %v23080_v26  ;;  %v11987_v5 = vpop.f32.mrb[158].mxu0  ;;  %v12060_v6 = vpop.f32.mrb[158].mxu1  ;;  %12521 = vmatprep.mubr.f32.mxu0 %v12202_v14  ;;  %v14816_v31 = vpack.c.bf16 %v14524_v59, %v23973_v58  ;;  %v12204_v23 = vmax.f32 %v23214_v36, %v23978_v56  ;;  %v14512_v40 = vld [vmem:[%s24113_s3 + $0x268] sm:$0xff]  ;;  %v14529_v15 = vld [vmem:[%s24113_s3 + $0x2f0] sm:$0xff] }
 0x8eb   :  { %v12153_v34 = vmax.f32 %v12121_v2, 0.0  ;;  %v12155_v0 = vmax.f32 %v12123_v27, 0.0  ;;  %v12125_v22 = vadd.f32 %v11987_v5, %v23062_v18  ;;  %v12127_v17 = vadd.f32 %v12060_v6, %v23066_v13  ;;  %v11989_v3 = vpop.f32.mrb[159].mxu0  ;;  %v12062_v43 = vpop.f32.mrb[159].mxu1  ;;  %v14508_v18 = vld [vmem:[%s24113_s3 + $0x248] sm:$0xff]  ;;  %v14513_v5 = vld [vmem:[%s24113_s3 + $0x270] sm:$0xff] }
 0x8ec   :  { %v12154_v30 = vmax.f32 %v12122_v33, 0.0  ;;  %v12156_v48 = vmax.f32 %v12124_v51, 0.0  ;;  %v12126_v45 = vadd.f32 %v11989_v3, %v23076_v61  ;;  %v12128_v4 = vadd.f32 %v12062_v43, %v23080_v26  ;;  %14811 = vmatpush3.bf16.msra.mxu0 %v14810_v42  ;;  %14851 = vmatpush3.bf16.msra.mxu1 %v14850_v8  ;;  %v14543_v26 = vld [vmem:[%s24113_s3 + $0x360] sm:$0xff]  ;;  %v14514_v6 = vld [vmem:[%s24113_s3 + $0x278] sm:$0xff] }
 0x8ed   :  { %v12189_v13 = vmax.f32 %v12153_v34, %v12155_v0  ;;  %v12157_v29 = vmax.f32 %v12125_v22, 0.0  ;;  %v12159_v52 = vmax.f32 %v12127_v17, 0.0  ;;  %14813 = vmatprep.subr.bf16.mxu0 %v14812_v50  ;;  %14853 = vmatprep.subr.bf16.mxu1 %v14852_v54  ;;  %v14856_v61 = vpack.c.bf16 %v14560_v39, %v14559_v47  ;;  %v14509_v50 = vld [vmem:[%s24113_s3 + $0x250] sm:$0xff]  ;;  %v12655_v47 = vld [vmem:[%s24114_s7] sm:$0xff]  ;;  %v12656_v39 = vld [vmem:[%s24114_s7 + $0x8] sm:$0xff] }
 0x8ee   :  { %v12190_v42 = vmax.f32 %v12154_v30, %v12156_v48  ;;  %v12158_v9 = vmax.f32 %v12126_v45, 0.0  ;;  %v12160_v38 = vmax.f32 %v12128_v4, 0.0  ;;  %v14818_v60 = vpack.c.bf16 %v14508_v18, %v14507_v7 }
 0x8ef   :  { %v12205_v8 = vmax.f32 %v23236_v46, %v12189_v13  ;;  %v12191_v1 = vmax.f32 %v12157_v29, %v12159_v52  ;;  %v14858_v37 = vpack.c.bf16 %v14544_v63, %v14543_v26  ;;  %v14820_v54 = vpack.c.bf16 %v14526_v21, %v14525_v32  ;;  %v14510_v46 = vld [vmem:[%s24113_s3 + $0x258] sm:$0xff] }
 0x8f0   :  { %v12192_v57 = vmax.f32 %v12158_v9, %v12160_v38  ;;  %14815 = vmatpush3.bf16.msra.mxu0 %v14814_v28  ;;  %14855 = vmatpush3.bf16.msra.mxu1 %v14854_v41  ;;  %v12206_v11 = vmax.f32 %v23238_v35, %v12190_v42  ;;  %v14860_v58 = vpack.c.bf16 %v14562_v49, %v14561_v53  ;;  %v14545_v28 = vld [vmem:[%s24113_s3 + $0x370] sm:$0xff]  ;;  %v14546_v35 = vld [vmem:[%s24113_s3 + $0x378] sm:$0xff]  ;;  %v14563_v9 = vld [vmem:[%s24115_s6] ss:$0 sm:$0xff] }
 0x8f1   :  { %14817 = vmatprep.subr.bf16.mxu0 %v14816_v31  ;;  %14857 = vmatprep.subr.bf16.mxu1 %v14856_v61  ;;  %v12207_v59 = vmax.f32 %v23246_v62, %v12191_v1  ;;  %v14822_v41 = vpack.c.bf16 %v14510_v46, %v14509_v50  ;;  %v14862_v2 = vpack.c.bf16 %v14546_v35, %v14545_v28  ;;  %v14511_v62 = vld [vmem:[%s24113_s3 + $0x260] sm:$0xff] }
 0x8f2   :  { %12631 = vmatprep.mubr.f32.mxu1 %v12206_v11  ;;  %v12208_v14 = vmax.f32 %v23254_v20, %v12192_v57  ;;  %v14824_v27 = vpack.c.bf16 %v14528_v19, %v14527_v16  ;;  %v14530_v20 = vld [vmem:[%s24113_s3 + $0x2f8] sm:$0xff]  ;;  %v14826_v33 = vpack.c.bf16 %v14512_v40, %v14511_v62  ;;  %v14830_v31 = vpack.c.bf16 %v14514_v6, %v14513_v5 }
 0x8f3   :  { %v14828_v51 = vpack.c.bf16 %v14530_v20, %v14529_v15  ;;  %v14864_v34 = vpack.c.bf16 %v12656_v39, %v12655_v47  ;;  %v14868_v36 = vpack.c.bf16 %v12658_v44, %v12657_v25 }
 0x8f4   :  { %14819 = vmatpush3.bf16.msra.mxu0 %v14818_v60  ;;  %14859 = vmatpush3.bf16.msra.mxu1 %v14858_v37  ;;  %v14564_v37 = vld [vmem:[%s24116_s8] ss:$0 sm:$0xff] }
 0x8f5   :  { %14821 = vmatprep.subr.bf16.mxu0 %v14820_v54  ;;  %14861 = vmatprep.subr.bf16.mxu1 %v14860_v58 }
 0x8f8   :  { %14823 = vmatpush3.bf16.msra.mxu0 %v14822_v41  ;;  %14863 = vmatpush3.bf16.msra.mxu1 %v14862_v2 }
 0x8f9   :  { %14825 = vmatprep.subr.bf16.mxu0 %v14824_v27 }
 0x8fb   :  { %12632 = vmatmul.mubr.f32.vlgmr.msra.gmra.mrb[164].mxu1 %v12205_v8 }
 0x8fc   :  { %14827 = vmatpush3.bf16.msra.mxu0 %v14826_v33  ;;  %12636 = vmatprep.mubr.f32.mxu1 %v12208_v14 }
 0x8fd   :  { %14829 = vmatprep.subr.bf16.mxu0 %v14828_v51 }
 0x8ff   :  { %12637 = vmatmul.mubr.f32.gmra.mrb[166].mxu1 %v12207_v59 }
 0x900   :  { %14831 = vmatpush3.bf16.msra.mxu0 %v14830_v31 }
 0x901   :  { %14865 = vmatprep.subr.bf16.mxu0 %v14864_v34 }
 0x903   :  { %12522 = vmatmul.mubr.f32.vlgmr.msra.gmra.mrb[164].mxu0 %v12201_v10 }
 0x904   :  { %12526 = vmatprep.mubr.f32.mxu0 %v12204_v23  ;;  %14867 = vmatpush3.bf16.msra.mxu0 %v14864_v34 }
 0x905   :  { %14869 = vmatprep.subr.bf16.mxu0 %v14868_v36 }
 0x907   :  { %12527 = vmatmul.mubr.f32.gmra.mrb[166].mxu0 %v12203_v55 }
 0x908   :  { %14871 = vmatpush3.bf16.msra.mxu0 %v14868_v36 }
 0x9ae   :  { %v14637_v24 = vpop.f32.mrb[160].mxu1 }
 0x9af   :  { %v14638_v10 = vpop.f32.mrb[161].mxu1 }
 0x9b0   :  { %v14639_v12 = vadd.f32 %v14638_v10, %v14637_v24 }
 0x9b2   :  { %v14640_v56 = vpop.f32.mrb[162].mxu1 }
 0x9b3   :  { %v14641_v55 = vpop.f32.mrb[163].mxu1 }
 0x9b4   :  { %v14642_v23 = vadd.f32 %v14641_v55, %v14640_v56 }
 0x9b6   :  { %v14599_v0 = vpop.f32.mrb[160].mxu0 }
 0x9b7   :  { %v14600_v22 = vpop.f32.mrb[161].mxu0 }
 0x9b8   :  { %v14601_v17 = vadd.f32 %v14600_v22, %v14599_v0 }
 0x9ba   :  { %v12416_v3 = vadd.f32 %v14639_v12, %v14601_v17  ;;  %v14602_v43 = vpop.f32.mrb[162].mxu0 }
 0x9bb   :  { %v14603_v30 = vpop.f32.mrb[163].mxu0 }
 0x9bc   :  { %v14604_v48 = vadd.f32 %v14603_v30, %v14602_v43 }
 0x9be   :  { %v12421_v45 = vadd.f32 %v14642_v23, %v14604_v48 }
 0x9ce   :  { %v14713_v4 = vpop.f32.mrb[164].mxu1 }
 0x9cf   :  { %v14714_v7 = vpop.f32.mrb[165].mxu1 }
 0x9d0   :  { %v14715_v18 = vadd.f32 %v14714_v7, %v14713_v4 }
 0x9d2   :  { %v14716_v13 = vpop.f32.mrb[166].mxu1 }
 0x9d3   :  { %v14717_v29 = vpop.f32.mrb[167].mxu1 }
 0x9d4   :  { %v14718_v52 = vadd.f32 %v14717_v29, %v14716_v13 }
 0x9d6   :  { %v14675_v61 = vpop.f32.mrb[164].mxu0 }
 0x9d7   :  { %v14676_v26 = vpop.f32.mrb[165].mxu0 }
 0x9d8   :  { %v14677_v63 = vadd.f32 %v14676_v26, %v14675_v61 }
 0x9da   :  { %v12532_v32 = vadd.f32 %v14677_v63, %v12416_v3  ;;  %v14678_v42 = vpop.f32.mrb[166].mxu0 }
 0x9db   :  { %v14679_v38 = vpop.f32.mrb[167].mxu0 }
 0x9dc   :  { %v12642_v21 = vadd.f32 %v14715_v18, %v12532_v32  ;;  %v14680_v53 = vadd.f32 %v14679_v38, %v14678_v42 }
 0x9de   :  { %v12651_v49 = vadd.f32 %v14563_v9, %v12642_v21  ;;  %v12533_v8 = vadd.f32 %v14680_v53, %v12421_v45 }
 0x9e0   :  { %v12653_v1 = vmax.f32 %v12651_v49, 0.0  ;;  %v12643_v60 = vadd.f32 %v14718_v52, %v12533_v8 }
 0x9e2   :  { %v12652_v57 = vadd.f32 %v14563_v9, %v12643_v60  ;;  %14733 = vmatprep.mubr.msk.f32.mxu0 %vm12666_vm1, %v12653_v1 }
 0x9e4   :  { %v12654_v11 = vmax.f32 %v12652_v57, 0.0 }
 0x9e6   :  { %14734 = vmatmul.mubr.msk.f32.vlgmr.msra.gmra.mrb[168].mxu0 %vm12666_vm1, %v12654_v11 }
 0xab9   :  { %v14735_v50 = vpop.f32.mrb[168].mxu0 }
 0xaba   :  { %v12745_v54 = vadd.f32 %v14735_v50, %v14564_v37  ;;  %v12739_v58 = vpop.f32.mrb[169].mxu0 }
 0xabb   :  { %v12740_v46 = vadd.f32 %v14564_v37, %v12739_v58 }
 0xabc   :  { %12750 = vst.msk [vmem:[%s24117_s9 + $0x8] sm:$0xff] %vm12748_vm2, %v12745_v54 }
 0xabd   :  { %12749 = vst.msk [vmem:[%s24117_s9] sm:$0xff] %vm12748_vm2, %v12740_v46 }

</bundles_post_ra>
